<compile_context>
chip_gen: v7x
topology: tpu7x:2x2x1
jax: 0.10.0
libtpu: 0.0.40
codegen_flags: <defaults>
</compile_context>

<pallas_src>
import functools
import math

import jax
import jax.numpy as jnp
from jax.experimental import pallas as pl
from jax.experimental.pallas import tpu as pltpu


# ----------------------------------------------------------------------------
# Pallas kernels
# ----------------------------------------------------------------------------
def _matmul_bias_act_kernel(x_ref, w_ref, b_ref, o_ref, *, act):
    # x: (TM, K) bf16, w: (K, N) bf16, b: (1, N) f32 -> o: (TM, N)
    acc = jnp.dot(x_ref[...], w_ref[...], preferred_element_type=jnp.float32)
    acc = acc + b_ref[...].astype(jnp.float32)
    if act == "silu":
        acc = acc * jax.nn.sigmoid(acc)
    o_ref[...] = acc.astype(o_ref.dtype)


def _pick_row_tile(m):
    # Largest tile from a fixed menu that evenly divides M (spatial dims here are
    # powers of two, so this always hits); fall back to a single full block.
    for cand in (512, 256, 128):
        if m % cand == 0:
            return cand
    return m


def matmul_bias_act(x, w, b, act="silu", out_dtype=jnp.float32):
    """Fused (M,K)@(K,N) + bias (+ SiLU) on the MXU.

    Gridded over M ("parallel") so input rows and output rows are pipelined
    through VMEM while w/b stay resident (constant block index).
    """
    M, K = x.shape
    N = w.shape[1]
    TM = _pick_row_tile(M)
    grid = (M // TM,)
    kern = functools.partial(_matmul_bias_act_kernel, act=act)
    cost = pl.CostEstimate(
        flops=2 * M * K * N,
        transcendentals=(M * N if act == "silu" else 0),
        bytes_accessed=(M * K * x.dtype.itemsize
                        + K * N * w.dtype.itemsize
                        + N * b.dtype.itemsize
                        + M * N * jnp.dtype(out_dtype).itemsize),
    )
    return pl.pallas_call(
        kern,
        out_shape=jax.ShapeDtypeStruct((M, N), out_dtype),
        grid=grid,
        in_specs=[
            pl.BlockSpec((TM, K), lambda i: (i, 0)),   # row tile of im2col matrix
            pl.BlockSpec((K, N), lambda i: (0, 0)),    # weights: VMEM resident
            pl.BlockSpec((1, N), lambda i: (0, 0)),    # bias:    VMEM resident
        ],
        out_specs=pl.BlockSpec((TM, N), lambda i: (i, 0)),
        compiler_params=pltpu.CompilerParams(dimension_semantics=("parallel",)),
        cost_estimate=cost,
    )(x, w, b)


def _decode_kernel(p_ref, g_ref, s_ref, o_ref):
    # p: (B, A, 5+C) raw head outputs [reg(4), obj(1), cls(C)]
    # g: (A, 2) grid offsets, s: (A, 1) per-anchor stride
    p = p_ref[...]
    g = g_ref[...][None, :, :]
    s = s_ref[...][None, :, :]
    # Slice-writes instead of a lane-axis concatenate (no vreg re-pack).
    o_ref[:, :, 0:2] = (p[:, :, 0:2] + g) * s
    o_ref[:, :, 2:4] = jnp.exp(p[:, :, 2:4]) * s
    o_ref[:, :, 4:] = jax.nn.sigmoid(p[:, :, 4:])


def decode_outputs(pred, grid, stride):
    B, A, C = pred.shape
    return pl.pallas_call(
        _decode_kernel,
        out_shape=jax.ShapeDtypeStruct((B, A, C), jnp.float32),
        in_specs=[pl.BlockSpec(memory_space=pltpu.MemorySpace.VMEM)] * 3,
        out_specs=pl.BlockSpec(memory_space=pltpu.MemorySpace.VMEM),
    )(pred, grid, stride)


# ----------------------------------------------------------------------------
# Conv glue (im2col) around the Pallas matmul kernel
# ----------------------------------------------------------------------------
def _im2col(x, k, stride, pad):
    # x: (N, H, W, C) -> (N*Ho*Wo, k*k*C), patch feature order = (kh, kw, C)
    N, H, W, C = x.shape
    if pad > 0:
        x = jnp.pad(x, ((0, 0), (pad, pad), (pad, pad), (0, 0)))
    Ho = (H + 2 * pad - k) // stride + 1
    Wo = (W + 2 * pad - k) // stride + 1
    cols = []
    for i in range(k):
        for j in range(k):
            cols.append(x[:, i:i + stride * Ho:stride, j:j + stride * Wo:stride, :])
    patches = jnp.concatenate(cols, axis=-1)
    return patches.reshape(N * Ho * Wo, k * k * C), Ho, Wo


def base_conv(x, p, stride=1, act="silu", out_dtype=jnp.bfloat16):
    """BaseConv: Conv2d (BN folded) + SiLU, NHWC. k/pad are static (from w.shape)."""
    w = p["w"]                              # (k, k, Cin, Cout), bf16
    k, _, cin, cout = w.shape               # static Python ints even under jit
    pad = (k - 1) // 2
    cols, Ho, Wo = _im2col(x, k, stride, pad)
    w2 = w.reshape(k * k * cin, cout)
    out = matmul_bias_act(cols.astype(jnp.bfloat16), w2, p["b"],
                          act=act, out_dtype=out_dtype)
    return out.reshape(x.shape[0], Ho, Wo, cout)


def focus(x):
    # YOLOX Focus: space-to-depth, cat([top_left, bot_left, top_right, bot_right])
    tl = x[:, ::2, ::2, :]
    bl = x[:, 1::2, ::2, :]
    tr = x[:, ::2, 1::2, :]
    br = x[:, 1::2, 1::2, :]
    return jnp.concatenate([tl, bl, tr, br], axis=-1)


def upsample2x(x):
    return jnp.repeat(jnp.repeat(x, 2, axis=1), 2, axis=2)


# ----------------------------------------------------------------------------
# Deterministic parameter init
#   weights stored as (k, k, Cin, Cout) bf16  (matmul-ready after reshape,
#   patch order (kh, kw, Cin) matches _im2col), bias as (1, Cout) f32.
# ----------------------------------------------------------------------------
def _key_stream(key):
    while True:
        key, sub = jax.random.split(key)
        yield sub


def _conv_params(keys, cin, cout, k):
    w = jax.random.normal(next(keys), (k, k, cin, cout), jnp.float32)
    w = w * (0.1 / math.sqrt(k * k * cin))
    b = jax.random.normal(next(keys), (1, cout), jnp.float32) * 0.01
    return {"w": w.astype(jnp.bfloat16), "b": b}


def _fused_pred_params(keys, hidden, num_classes):
    """Fused 1x1 head prediction: input = concat([reg_feat, cls_feat]) (2*hidden),
    output = [reg(4), obj(1), cls(num_classes)] in one block-diagonal matmul."""
    nout = 5 + num_classes
    sc = 0.1 / math.sqrt(hidden)
    w_reg = jax.random.normal(next(keys), (hidden, 4), jnp.float32) * sc
    w_obj = jax.random.normal(next(keys), (hidden, 1), jnp.float32) * sc
    w_cls = jax.random.normal(next(keys), (hidden, num_classes), jnp.float32) * sc
    w = jnp.zeros((2 * hidden, nout), jnp.float32)
    w = w.at[:hidden, 0:4].set(w_reg)
    w = w.at[:hidden, 4:5].set(w_obj)
    w = w.at[hidden:, 5:].set(w_cls)
    b_reg = jax.random.normal(next(keys), (1, 4), jnp.float32) * 0.01
    b_obj = jax.random.normal(next(keys), (1, 1), jnp.float32) * 0.01
    b_cls = jax.random.normal(next(keys), (1, num_classes), jnp.float32) * 0.01
    b = jnp.concatenate([b_reg, b_obj, b_cls], axis=-1)
    return {"w": w.reshape(1, 1, 2 * hidden, nout).astype(jnp.bfloat16), "b": b}


def init_params(key, base=8, hidden=32, num_classes=80):
    keys = _key_stream(key)
    P = {}
    # --- backbone (CSPDarknet-like, simplified) ---
    P["stem"] = _conv_params(keys, 12, base, 3)                      # after Focus (3*4=12)
    P["d2a"] = _conv_params(keys, base, 2 * base, 3)
    P["d2b"] = _conv_params(keys, 2 * base, 2 * base, 3)
    P["d3a"] = _conv_params(keys, 2 * base, 4 * base, 3)
    P["d3b"] = _conv_params(keys, 4 * base, 4 * base, 3)
    P["d4a"] = _conv_params(keys, 4 * base, 8 * base, 3)
    P["d4b"] = _conv_params(keys, 8 * base, 8 * base, 3)
    P["d5a"] = _conv_params(keys, 8 * base, 16 * base, 3)
    P["d5b"] = _conv_params(keys, 16 * base, 16 * base, 3)
    # --- PAFPN ---
    P["lat0"] = _conv_params(keys, 16 * base, 8 * base, 1)
    P["c3_p4"] = _conv_params(keys, 16 * base, 8 * base, 3)
    P["red1"] = _conv_params(keys, 8 * base, 4 * base, 1)
    P["c3_p3"] = _conv_params(keys, 8 * base, 4 * base, 3)
    P["bu2"] = _conv_params(keys, 4 * base, 4 * base, 3)
    P["c3_n3"] = _conv_params(keys, 8 * base, 8 * base, 3)
    P["bu1"] = _conv_params(keys, 8 * base, 8 * base, 3)
    P["c3_n4"] = _conv_params(keys, 16 * base, 16 * base, 3)
    # --- decoupled head (3 levels), reg/obj/cls preds fused per level ---
    in_chs = [4 * base, 8 * base, 16 * base]
    P["head"] = []
    for cin in in_chs:
        lvl = {
            "stem": _conv_params(keys, cin, hidden, 1),
            "cls1": _conv_params(keys, hidden, hidden, 3),
            "cls2": _conv_params(keys, hidden, hidden, 3),
            "reg1": _conv_params(keys, hidden, hidden, 3),
            "reg2": _conv_params(keys, hidden, hidden, 3),
            "pred": _fused_pred_params(keys, hidden, num_classes),
        }
        P["head"].append(lvl)
    return P


# ----------------------------------------------------------------------------
# Forward passes
# ----------------------------------------------------------------------------
def backbone_pafpn(x, P):
    """YOLOPAFPN-like backbone -> (pan_out2 /8, pan_out1 /16, pan_out0 /32), NHWC."""
    # CSPDarknet trunk
    x = base_conv(focus(x), P["stem"])                                 # /2
    x = base_conv(base_conv(x, P["d2a"], stride=2), P["d2b"])          # /4
    c3 = base_conv(base_conv(x, P["d3a"], stride=2), P["d3b"])         # /8
    c4 = base_conv(base_conv(c3, P["d4a"], stride=2), P["d4b"])        # /16
    c5 = base_conv(base_conv(c4, P["d5a"], stride=2), P["d5b"])        # /32
    # top-down
    fpn_out0 = base_conv(c5, P["lat0"])                                # /32
    f_out0 = base_conv(jnp.concatenate([upsample2x(fpn_out0), c4], -1), P["c3_p4"])   # /16
    fpn_out1 = base_conv(f_out0, P["red1"])                            # /16
    pan_out2 = base_conv(jnp.concatenate([upsample2x(fpn_out1), c3], -1), P["c3_p3"])  # /8
    # bottom-up
    p_out1 = base_conv(pan_out2, P["bu2"], stride=2)                   # /16
    pan_out1 = base_conv(jnp.concatenate([p_out1, fpn_out1], -1), P["c3_n3"])          # /16
    p_out0 = base_conv(pan_out1, P["bu1"], stride=2)                   # /32
    pan_out0 = base_conv(jnp.concatenate([p_out0, fpn_out0], -1), P["c3_n4"])          # /32
    return pan_out2, pan_out1, pan_out0


def yolox_head(fpn_outs, P, strides=(8, 16, 32)):
    """YOLOXHead inference path: decoupled head per level, concat, grid-decode."""
    level_outs = []
    grids = []
    level_strides = []
    for feat, lvl, stride in zip(fpn_outs, P["head"], strides):
        x = base_conv(feat, lvl["stem"])
        cls_feat = base_conv(base_conv(x, lvl["cls1"]), lvl["cls2"])
        reg_feat = base_conv(base_conv(x, lvl["reg1"]), lvl["reg2"])
        # Fused reg/obj/cls prediction: one 1x1 conv over [reg_feat, cls_feat]
        # with a block-diagonal weight -> (B,H,W,5+C) in [reg, obj, cls] order.
        feat_cat = jnp.concatenate([reg_feat, cls_feat], axis=-1)
        out = base_conv(feat_cat, lvl["pred"], act="none", out_dtype=jnp.float32)
        B, H, W, C = out.shape
        level_outs.append(out.reshape(B, H * W, C))
        yv, xv = jnp.meshgrid(jnp.arange(H), jnp.arange(W), indexing="ij")
        grids.append(jnp.stack([xv, yv], axis=-1).reshape(-1, 2).astype(jnp.float32))
        level_strides.append(jnp.full((H * W, 1), float(stride), jnp.float32))
    pred = jnp.concatenate(level_outs, axis=1)          # (B, n_anchors_all, 5+C)
    grid = jnp.concatenate(grids, axis=0)               # (n_anchors_all, 2)
    stride_v = jnp.concatenate(level_strides, axis=0)   # (n_anchors_all, 1)
    return decode_outputs(pred, grid, stride_v)


def yolox_forward(x_nchw, P):
    """YOLOX.forward (eval mode): backbone -> head -> decoded detections."""
    x = jnp.transpose(x_nchw, (0, 2, 3, 1))  # NCHW -> NHWC (kernel layout)
    fpn_outs = backbone_pafpn(x, P)
    return yolox_head(fpn_outs, P)


# ----------------------------------------------------------------------------
if __name__ == "__main__":
    key = jax.random.PRNGKey(0)
    k_param, k_input = jax.random.split(key)

    params = init_params(k_param, base=8, hidden=32, num_classes=80)
    # Small NCHW input (divisible by max stride 32): batch=2, 3 channels, 64x64.
    x = jax.random.normal(k_input, (2, 3, 64, 64), jnp.float32)

    out = jax.jit(yolox_forward)(x, params)
    out = jax.block_until_ready(out)

    # Expected: (2, 64+16+4, 85) = (2, 84, 85)
    assert out.shape == (2, 84, 85), out.shape
    assert bool(jnp.all(jnp.isfinite(out)))
    print("KERNEL_OK")
</pallas_src>

<mosaic_0001>
module attributes {stable_mosaic.version = 11 : i64} {
  func.func @_matmul_bias_act_kernel(%arg0: i32, %arg1: memref<512x108xbf16, #tpu.memory_space<vmem>>, %arg2: memref<108x8xbf16, #tpu.memory_space<vmem>>, %arg3: memref<1x8xf32, #tpu.memory_space<vmem>>, %arg4: memref<512x8xbf16, #tpu.memory_space<vmem>>) attributes {dimension_semantics = [#tpu.dimension_semantics<parallel>], iteration_bounds = array<i64: 4>, scalar_prefetch = 0 : i64, scratch_operands = 0 : i64, tpu.core_type = #tpu.core_type<tc>, window_params = [{transform_indices = @transform_0, window_bounds = array<i64: 512, 108>}, {pipeline_mode = #tpu.pipeline_mode<synchronous>, transform_indices = @transform_1, window_bounds = array<i64: 108, 8>}, {pipeline_mode = #tpu.pipeline_mode<synchronous>, transform_indices = @transform_2, window_bounds = array<i64: 1, 8>}, {transform_indices = @transform_3, window_bounds = array<i64: 512, 8>}]} {
    %c0 = arith.constant 0 : index
    %c0_0 = arith.constant 0 : index
    %0 = vector.load %arg1[%c0, %c0_0] : memref<512x108xbf16, #tpu.memory_space<vmem>>, vector<512x108xbf16>
    %c0_1 = arith.constant 0 : index
    %c0_2 = arith.constant 0 : index
    %1 = vector.load %arg2[%c0_1, %c0_2] : memref<108x8xbf16, #tpu.memory_space<vmem>>, vector<108x8xbf16>
    %cst = arith.constant dense<0.000000e+00> : vector<512x8xf32>
    %2 = tpu.matmul %0, %1, %cst {dimension_numbers = #tpu.dot_dimension_numbers<[1], [0], [0], [1], [0, 0, 1, 1], [], []>} : vector<512x108xbf16>, vector<108x8xbf16>, vector<512x8xf32> -> vector<512x8xf32>
    %c0_3 = arith.constant 0 : index
    %c0_4 = arith.constant 0 : index
    %3 = vector.load %arg3[%c0_3, %c0_4] : memref<1x8xf32, #tpu.memory_space<vmem>>, vector<1x8xf32>
    %4 = vector.broadcast %3 : vector<1x8xf32> to vector<512x8xf32>
    %5 = arith.addf %2, %4 : vector<512x8xf32>
    %6 = arith.negf %5 : vector<512x8xf32>
    %7 = math.exp %6 : vector<512x8xf32>
    %cst_5 = arith.constant 1.000000e+00 : f32
    %8 = vector.broadcast %cst_5 : f32 to vector<512x8xf32>
    %9 = arith.addf %8, %7 : vector<512x8xf32>
    %10 = arith.divf %8, %9 : vector<512x8xf32>
    %11 = arith.mulf %5, %10 : vector<512x8xf32>
    %12 = arith.truncf %11 : vector<512x8xf32> to vector<512x8xbf16>
    %c0_6 = arith.constant 0 : index
    %c0_7 = arith.constant 0 : index
    %13 = vector.load %arg4[%c0_6, %c0_7] : memref<512x8xbf16, #tpu.memory_space<vmem>>, vector<512x8xbf16>
    tpu.vector_store %arg4[%c0_6, %c0_7], %12 {strides = array<i32>} : memref<512x8xbf16, #tpu.memory_space<vmem>>, vector<512x8xbf16>,
    return
  }
  func.func @transform_0(%arg0: i32) -> (i32, i32) {
    %c0_i32 = arith.constant 0 : i32
    %c0_i32_0 = arith.constant 0 : i32
    return %arg0, %c0_i32 : i32, i32
  }
  func.func @transform_1(%arg0: i32) -> (i32, i32) {
    %c0_i32 = arith.constant 0 : i32
    %c0_i32_0 = arith.constant 0 : i32
    %c0_i32_1 = arith.constant 0 : i32
    return %c0_i32, %c0_i32_0 : i32, i32
  }
  func.func @transform_2(%arg0: i32) -> (i32, i32) {
    %c0_i32 = arith.constant 0 : i32
    %c0_i32_0 = arith.constant 0 : i32
    %c0_i32_1 = arith.constant 0 : i32
    return %c0_i32, %c0_i32_0 : i32, i32
  }
  func.func @transform_3(%arg0: i32) -> (i32, i32) {
    %c0_i32 = arith.constant 0 : i32
    %c0_i32_0 = arith.constant 0 : i32
    return %arg0, %c0_i32 : i32, i32
  }
}

module attributes {stable_mosaic.version = 11 : i64} {
  func.func @_matmul_bias_act_kernel(%arg0: i32, %arg1: memref<512x72xbf16, #tpu.memory_space<vmem>>, %arg2: memref<72x16xbf16, #tpu.memory_space<vmem>>, %arg3: memref<1x16xf32, #tpu.memory_space<vmem>>, %arg4: memref<512x16xbf16, #tpu.memory_space<vmem>>) attributes {dimension_semantics = [#tpu.dimension_semantics<parallel>], iteration_bounds = array<i64: 1>, scalar_prefetch = 0 : i64, scratch_operands = 0 : i64, tpu.core_type = #tpu.core_type<tc>, window_params = [{transform_indices = @transform_0, window_bounds = array<i64: 512, 72>}, {pipeline_mode = #tpu.pipeline_mode<synchronous>, transform_indices = @transform_1, window_bounds = array<i64: 72, 16>}, {pipeline_mode = #tpu.pipeline_mode<synchronous>, transform_indices = @transform_2, window_bounds = array<i64: 1, 16>}, {transform_indices = @transform_3, window_bounds = array<i64: 512, 16>}]} {
    %c0 = arith.constant 0 : index
    %c0_0 = arith.constant 0 : index
    %0 = vector.load %arg1[%c0, %c0_0] : memref<512x72xbf16, #tpu.memory_space<vmem>>, vector<512x72xbf16>
    %c0_1 = arith.constant 0 : index
    %c0_2 = arith.constant 0 : index
    %1 = vector.load %arg2[%c0_1, %c0_2] : memref<72x16xbf16, #tpu.memory_space<vmem>>, vector<72x16xbf16>
    %cst = arith.constant dense<0.000000e+00> : vector<512x16xf32>
    %2 = tpu.matmul %0, %1, %cst {dimension_numbers = #tpu.dot_dimension_numbers<[1], [0], [0], [1], [0, 0, 1, 1], [], []>} : vector<512x72xbf16>, vector<72x16xbf16>, vector<512x16xf32> -> vector<512x16xf32>
    %c0_3 = arith.constant 0 : index
    %c0_4 = arith.constant 0 : index
    %3 = vector.load %arg3[%c0_3, %c0_4] : memref<1x16xf32, #tpu.memory_space<vmem>>, vector<1x16xf32>
    %4 = vector.broadcast %3 : vector<1x16xf32> to vector<512x16xf32>
    %5 = arith.addf %2, %4 : vector<512x16xf32>
    %6 = arith.negf %5 : vector<512x16xf32>
    %7 = math.exp %6 : vector<512x16xf32>
    %cst_5 = arith.constant 1.000000e+00 : f32
    %8 = vector.broadcast %cst_5 : f32 to vector<512x16xf32>
    %9 = arith.addf %8, %7 : vector<512x16xf32>
    %10 = arith.divf %8, %9 : vector<512x16xf32>
    %11 = arith.mulf %5, %10 : vector<512x16xf32>
    %12 = arith.truncf %11 : vector<512x16xf32> to vector<512x16xbf16>
    %c0_6 = arith.constant 0 : index
    %c0_7 = arith.constant 0 : index
    %13 = vector.load %arg4[%c0_6, %c0_7] : memref<512x16xbf16, #tpu.memory_space<vmem>>, vector<512x16xbf16>
    tpu.vector_store %arg4[%c0_6, %c0_7], %12 {strides = array<i32>} : memref<512x16xbf16, #tpu.memory_space<vmem>>, vector<512x16xbf16>,
    return
  }
  func.func @transform_0(%arg0: i32) -> (i32, i32) {
    %c0_i32 = arith.constant 0 : i32
    %c0_i32_0 = arith.constant 0 : i32
    return %arg0, %c0_i32 : i32, i32
  }
  func.func @transform_1(%arg0: i32) -> (i32, i32) {
    %c0_i32 = arith.constant 0 : i32
    %c0_i32_0 = arith.constant 0 : i32
    %c0_i32_1 = arith.constant 0 : i32
    return %c0_i32, %c0_i32_0 : i32, i32
  }
  func.func @transform_2(%arg0: i32) -> (i32, i32) {
    %c0_i32 = arith.constant 0 : i32
    %c0_i32_0 = arith.constant 0 : i32
    %c0_i32_1 = arith.constant 0 : i32
    return %c0_i32, %c0_i32_0 : i32, i32
  }
  func.func @transform_3(%arg0: i32) -> (i32, i32) {
    %c0_i32 = arith.constant 0 : i32
    %c0_i32_0 = arith.constant 0 : i32
    return %arg0, %c0_i32 : i32, i32
  }
}

module attributes {stable_mosaic.version = 11 : i64} {
  func.func @_matmul_bias_act_kernel(%arg0: i32, %arg1: memref<512x144xbf16, #tpu.memory_space<vmem>>, %arg2: memref<144x16xbf16, #tpu.memory_space<vmem>>, %arg3: memref<1x16xf32, #tpu.memory_space<vmem>>, %arg4: memref<512x16xbf16, #tpu.memory_space<vmem>>) attributes {dimension_semantics = [#tpu.dimension_semantics<parallel>], iteration_bounds = array<i64: 1>, scalar_prefetch = 0 : i64, scratch_operands = 0 : i64, tpu.core_type = #tpu.core_type<tc>, window_params = [{transform_indices = @transform_0, window_bounds = array<i64: 512, 144>}, {pipeline_mode = #tpu.pipeline_mode<synchronous>, transform_indices = @transform_1, window_bounds = array<i64: 144, 16>}, {pipeline_mode = #tpu.pipeline_mode<synchronous>, transform_indices = @transform_2, window_bounds = array<i64: 1, 16>}, {transform_indices = @transform_3, window_bounds = array<i64: 512, 16>}]} {
    %c0 = arith.constant 0 : index
    %c0_0 = arith.constant 0 : index
    %0 = vector.load %arg1[%c0, %c0_0] : memref<512x144xbf16, #tpu.memory_space<vmem>>, vector<512x144xbf16>
    %c0_1 = arith.constant 0 : index
    %c0_2 = arith.constant 0 : index
    %1 = vector.load %arg2[%c0_1, %c0_2] : memref<144x16xbf16, #tpu.memory_space<vmem>>, vector<144x16xbf16>
    %cst = arith.constant dense<0.000000e+00> : vector<512x16xf32>
    %2 = tpu.matmul %0, %1, %cst {dimension_numbers = #tpu.dot_dimension_numbers<[1], [0], [0], [1], [0, 0, 1, 1], [], []>} : vector<512x144xbf16>, vector<144x16xbf16>, vector<512x16xf32> -> vector<512x16xf32>
    %c0_3 = arith.constant 0 : index
    %c0_4 = arith.constant 0 : index
    %3 = vector.load %arg3[%c0_3, %c0_4] : memref<1x16xf32, #tpu.memory_space<vmem>>, vector<1x16xf32>
    %4 = vector.broadcast %3 : vector<1x16xf32> to vector<512x16xf32>
    %5 = arith.addf %2, %4 : vector<512x16xf32>
    %6 = arith.negf %5 : vector<512x16xf32>
    %7 = math.exp %6 : vector<512x16xf32>
    %cst_5 = arith.constant 1.000000e+00 : f32
    %8 = vector.broadcast %cst_5 : f32 to vector<512x16xf32>
    %9 = arith.addf %8, %7 : vector<512x16xf32>
    %10 = arith.divf %8, %9 : vector<512x16xf32>
    %11 = arith.mulf %5, %10 : vector<512x16xf32>
    %12 = arith.truncf %11 : vector<512x16xf32> to vector<512x16xbf16>
    %c0_6 = arith.constant 0 : index
    %c0_7 = arith.constant 0 : index
    %13 = vector.load %arg4[%c0_6, %c0_7] : memref<512x16xbf16, #tpu.memory_space<vmem>>, vector<512x16xbf16>
    tpu.vector_store %arg4[%c0_6, %c0_7], %12 {strides = array<i32>} : memref<512x16xbf16, #tpu.memory_space<vmem>>, vector<512x16xbf16>,
    return
  }
  func.func @transform_0(%arg0: i32) -> (i32, i32) {
    %c0_i32 = arith.constant 0 : i32
    %c0_i32_0 = arith.constant 0 : i32
    return %arg0, %c0_i32 : i32, i32
  }
  func.func @transform_1(%arg0: i32) -> (i32, i32) {
    %c0_i32 = arith.constant 0 : i32
    %c0_i32_0 = arith.constant 0 : i32
    %c0_i32_1 = arith.constant 0 : i32
    return %c0_i32, %c0_i32_0 : i32, i32
  }
  func.func @transform_2(%arg0: i32) -> (i32, i32) {
    %c0_i32 = arith.constant 0 : i32
    %c0_i32_0 = arith.constant 0 : i32
    %c0_i32_1 = arith.constant 0 : i32
    return %c0_i32, %c0_i32_0 : i32, i32
  }
  func.func @transform_3(%arg0: i32) -> (i32, i32) {
    %c0_i32 = arith.constant 0 : i32
    %c0_i32_0 = arith.constant 0 : i32
    return %arg0, %c0_i32 : i32, i32
  }
}

module attributes {stable_mosaic.version = 11 : i64} {
  func.func @_matmul_bias_act_kernel(%arg0: i32, %arg1: memref<128x144xbf16, #tpu.memory_space<vmem>>, %arg2: memref<144x32xbf16, #tpu.memory_space<vmem>>, %arg3: memref<1x32xf32, #tpu.memory_space<vmem>>, %arg4: memref<128x32xbf16, #tpu.memory_space<vmem>>) attributes {dimension_semantics = [#tpu.dimension_semantics<parallel>], iteration_bounds = array<i64: 1>, scalar_prefetch = 0 : i64, scratch_operands = 0 : i64, tpu.core_type = #tpu.core_type<tc>, window_params = [{transform_indices = @transform_0, window_bounds = array<i64: 128, 144>}, {pipeline_mode = #tpu.pipeline_mode<synchronous>, transform_indices = @transform_1, window_bounds = array<i64: 144, 32>}, {pipeline_mode = #tpu.pipeline_mode<synchronous>, transform_indices = @transform_2, window_bounds = array<i64: 1, 32>}, {transform_indices = @transform_3, window_bounds = array<i64: 128, 32>}]} {
    %c0 = arith.constant 0 : index
    %c0_0 = arith.constant 0 : index
    %0 = vector.load %arg1[%c0, %c0_0] : memref<128x144xbf16, #tpu.memory_space<vmem>>, vector<128x144xbf16>
    %c0_1 = arith.constant 0 : index
    %c0_2 = arith.constant 0 : index
    %1 = vector.load %arg2[%c0_1, %c0_2] : memref<144x32xbf16, #tpu.memory_space<vmem>>, vector<144x32xbf16>
    %cst = arith.constant dense<0.000000e+00> : vector<128x32xf32>
    %2 = tpu.matmul %0, %1, %cst {dimension_numbers = #tpu.dot_dimension_numbers<[1], [0], [0], [1], [0, 0, 1, 1], [], []>} : vector<128x144xbf16>, vector<144x32xbf16>, vector<128x32xf32> -> vector<128x32xf32>
    %c0_3 = arith.constant 0 : index
    %c0_4 = arith.constant 0 : index
    %3 = vector.load %arg3[%c0_3, %c0_4] : memref<1x32xf32, #tpu.memory_space<vmem>>, vector<1x32xf32>
    %4 = vector.broadcast %3 : vector<1x32xf32> to vector<128x32xf32>
    %5 = arith.addf %2, %4 : vector<128x32xf32>
    %6 = arith.negf %5 : vector<128x32xf32>
    %7 = math.exp %6 : vector<128x32xf32>
    %cst_5 = arith.constant 1.000000e+00 : f32
    %8 = vector.broadcast %cst_5 : f32 to vector<128x32xf32>
    %9 = arith.addf %8, %7 : vector<128x32xf32>
    %10 = arith.divf %8, %9 : vector<128x32xf32>
    %11 = arith.mulf %5, %10 : vector<128x32xf32>
    %12 = arith.truncf %11 : vector<128x32xf32> to vector<128x32xbf16>
    %c0_6 = arith.constant 0 : index
    %c0_7 = arith.constant 0 : index
    %13 = vector.load %arg4[%c0_6, %c0_7] : memref<128x32xbf16, #tpu.memory_space<vmem>>, vector<128x32xbf16>
    tpu.vector_store %arg4[%c0_6, %c0_7], %12 {strides = array<i32>} : memref<128x32xbf16, #tpu.memory_space<vmem>>, vector<128x32xbf16>,
    return
  }
  func.func @transform_0(%arg0: i32) -> (i32, i32) {
    %c0_i32 = arith.constant 0 : i32
    %c0_i32_0 = arith.constant 0 : i32
    return %arg0, %c0_i32 : i32, i32
  }
  func.func @transform_1(%arg0: i32) -> (i32, i32) {
    %c0_i32 = arith.constant 0 : i32
    %c0_i32_0 = arith.constant 0 : i32
    %c0_i32_1 = arith.constant 0 : i32
    return %c0_i32, %c0_i32_0 : i32, i32
  }
  func.func @transform_2(%arg0: i32) -> (i32, i32) {
    %c0_i32 = arith.constant 0 : i32
    %c0_i32_0 = arith.constant 0 : i32
    %c0_i32_1 = arith.constant 0 : i32
    return %c0_i32, %c0_i32_0 : i32, i32
  }
  func.func @transform_3(%arg0: i32) -> (i32, i32) {
    %c0_i32 = arith.constant 0 : i32
    %c0_i32_0 = arith.constant 0 : i32
    return %arg0, %c0_i32 : i32, i32
  }
}

module attributes {stable_mosaic.version = 11 : i64} {
  func.func @_matmul_bias_act_kernel(%arg0: i32, %arg1: memref<128x288xbf16, #tpu.memory_space<vmem>>, %arg2: memref<288x32xbf16, #tpu.memory_space<vmem>>, %arg3: memref<1x32xf32, #tpu.memory_space<vmem>>, %arg4: memref<128x32xbf16, #tpu.memory_space<vmem>>) attributes {dimension_semantics = [#tpu.dimension_semantics<parallel>], iteration_bounds = array<i64: 1>, scalar_prefetch = 0 : i64, scratch_operands = 0 : i64, tpu.core_type = #tpu.core_type<tc>, window_params = [{transform_indices = @transform_0, window_bounds = array<i64: 128, 288>}, {pipeline_mode = #tpu.pipeline_mode<synchronous>, transform_indices = @transform_1, window_bounds = array<i64: 288, 32>}, {pipeline_mode = #tpu.pipeline_mode<synchronous>, transform_indices = @transform_2, window_bounds = array<i64: 1, 32>}, {transform_indices = @transform_3, window_bounds = array<i64: 128, 32>}]} {
    %c0 = arith.constant 0 : index
    %c0_0 = arith.constant 0 : index
    %0 = vector.load %arg1[%c0, %c0_0] : memref<128x288xbf16, #tpu.memory_space<vmem>>, vector<128x288xbf16>
    %c0_1 = arith.constant 0 : index
    %c0_2 = arith.constant 0 : index
    %1 = vector.load %arg2[%c0_1, %c0_2] : memref<288x32xbf16, #tpu.memory_space<vmem>>, vector<288x32xbf16>
    %cst = arith.constant dense<0.000000e+00> : vector<128x32xf32>
    %2 = tpu.matmul %0, %1, %cst {dimension_numbers = #tpu.dot_dimension_numbers<[1], [0], [0], [1], [0, 0, 1, 1], [], []>} : vector<128x288xbf16>, vector<288x32xbf16>, vector<128x32xf32> -> vector<128x32xf32>
    %c0_3 = arith.constant 0 : index
    %c0_4 = arith.constant 0 : index
    %3 = vector.load %arg3[%c0_3, %c0_4] : memref<1x32xf32, #tpu.memory_space<vmem>>, vector<1x32xf32>
    %4 = vector.broadcast %3 : vector<1x32xf32> to vector<128x32xf32>
    %5 = arith.addf %2, %4 : vector<128x32xf32>
    %6 = arith.negf %5 : vector<128x32xf32>
    %7 = math.exp %6 : vector<128x32xf32>
    %cst_5 = arith.constant 1.000000e+00 : f32
    %8 = vector.broadcast %cst_5 : f32 to vector<128x32xf32>
    %9 = arith.addf %8, %7 : vector<128x32xf32>
    %10 = arith.divf %8, %9 : vector<128x32xf32>
    %11 = arith.mulf %5, %10 : vector<128x32xf32>
    %12 = arith.truncf %11 : vector<128x32xf32> to vector<128x32xbf16>
    %c0_6 = arith.constant 0 : index
    %c0_7 = arith.constant 0 : index
    %13 = vector.load %arg4[%c0_6, %c0_7] : memref<128x32xbf16, #tpu.memory_space<vmem>>, vector<128x32xbf16>
    tpu.vector_store %arg4[%c0_6, %c0_7], %12 {strides = array<i32>} : memref<128x32xbf16, #tpu.memory_space<vmem>>, vector<128x32xbf16>,
    return
  }
  func.func @transform_0(%arg0: i32) -> (i32, i32) {
    %c0_i32 = arith.constant 0 : i32
    %c0_i32_0 = arith.constant 0 : i32
    return %arg0, %c0_i32 : i32, i32
  }
  func.func @transform_1(%arg0: i32) -> (i32, i32) {
    %c0_i32 = arith.constant 0 : i32
    %c0_i32_0 = arith.constant 0 : i32
    %c0_i32_1 = arith.constant 0 : i32
    return %c0_i32, %c0_i32_0 : i32, i32
  }
  func.func @transform_2(%arg0: i32) -> (i32, i32) {
    %c0_i32 = arith.constant 0 : i32
    %c0_i32_0 = arith.constant 0 : i32
    %c0_i32_1 = arith.constant 0 : i32
    return %c0_i32, %c0_i32_0 : i32, i32
  }
  func.func @transform_3(%arg0: i32) -> (i32, i32) {
    %c0_i32 = arith.constant 0 : i32
    %c0_i32_0 = arith.constant 0 : i32
    return %arg0, %c0_i32 : i32, i32
  }
}

module attributes {stable_mosaic.version = 11 : i64} {
  func.func @_matmul_bias_act_kernel(%arg0: i32, %arg1: memref<32x288xbf16, #tpu.memory_space<vmem>>, %arg2: memref<288x64xbf16, #tpu.memory_space<vmem>>, %arg3: memref<1x64xf32, #tpu.memory_space<vmem>>, %arg4: memref<32x64xbf16, #tpu.memory_space<vmem>>) attributes {dimension_semantics = [#tpu.dimension_semantics<parallel>], iteration_bounds = array<i64: 1>, scalar_prefetch = 0 : i64, scratch_operands = 0 : i64, tpu.core_type = #tpu.core_type<tc>, window_params = [{transform_indices = @transform_0, window_bounds = array<i64: 32, 288>}, {pipeline_mode = #tpu.pipeline_mode<synchronous>, transform_indices = @transform_1, window_bounds = array<i64: 288, 64>}, {pipeline_mode = #tpu.pipeline_mode<synchronous>, transform_indices = @transform_2, window_bounds = array<i64: 1, 64>}, {transform_indices = @transform_3, window_bounds = array<i64: 32, 64>}]} {
    %c0 = arith.constant 0 : index
    %c0_0 = arith.constant 0 : index
    %0 = vector.load %arg1[%c0, %c0_0] : memref<32x288xbf16, #tpu.memory_space<vmem>>, vector<32x288xbf16>
    %c0_1 = arith.constant 0 : index
    %c0_2 = arith.constant 0 : index
    %1 = vector.load %arg2[%c0_1, %c0_2] : memref<288x64xbf16, #tpu.memory_space<vmem>>, vector<288x64xbf16>
    %cst = arith.constant dense<0.000000e+00> : vector<32x64xf32>
    %2 = tpu.matmul %0, %1, %cst {dimension_numbers = #tpu.dot_dimension_numbers<[1], [0], [0], [1], [0, 0, 1, 1], [], []>} : vector<32x288xbf16>, vector<288x64xbf16>, vector<32x64xf32> -> vector<32x64xf32>
    %c0_3 = arith.constant 0 : index
    %c0_4 = arith.constant 0 : index
    %3 = vector.load %arg3[%c0_3, %c0_4] : memref<1x64xf32, #tpu.memory_space<vmem>>, vector<1x64xf32>
    %4 = vector.broadcast %3 : vector<1x64xf32> to vector<32x64xf32>
    %5 = arith.addf %2, %4 : vector<32x64xf32>
    %6 = arith.negf %5 : vector<32x64xf32>
    %7 = math.exp %6 : vector<32x64xf32>
    %cst_5 = arith.constant 1.000000e+00 : f32
    %8 = vector.broadcast %cst_5 : f32 to vector<32x64xf32>
    %9 = arith.addf %8, %7 : vector<32x64xf32>
    %10 = arith.divf %8, %9 : vector<32x64xf32>
    %11 = arith.mulf %5, %10 : vector<32x64xf32>
    %12 = arith.truncf %11 : vector<32x64xf32> to vector<32x64xbf16>
    %c0_6 = arith.constant 0 : index
    %c0_7 = arith.constant 0 : index
    %13 = vector.load %arg4[%c0_6, %c0_7] : memref<32x64xbf16, #tpu.memory_space<vmem>>, vector<32x64xbf16>
    tpu.vector_store %arg4[%c0_6, %c0_7], %12 {strides = array<i32>} : memref<32x64xbf16, #tpu.memory_space<vmem>>, vector<32x64xbf16>,
    return
  }
  func.func @transform_0(%arg0: i32) -> (i32, i32) {
    %c0_i32 = arith.constant 0 : i32
    %c0_i32_0 = arith.constant 0 : i32
    return %arg0, %c0_i32 : i32, i32
  }
  func.func @transform_1(%arg0: i32) -> (i32, i32) {
    %c0_i32 = arith.constant 0 : i32
    %c0_i32_0 = arith.constant 0 : i32
    %c0_i32_1 = arith.constant 0 : i32
    return %c0_i32, %c0_i32_0 : i32, i32
  }
  func.func @transform_2(%arg0: i32) -> (i32, i32) {
    %c0_i32 = arith.constant 0 : i32
    %c0_i32_0 = arith.constant 0 : i32
    %c0_i32_1 = arith.constant 0 : i32
    return %c0_i32, %c0_i32_0 : i32, i32
  }
  func.func @transform_3(%arg0: i32) -> (i32, i32) {
    %c0_i32 = arith.constant 0 : i32
    %c0_i32_0 = arith.constant 0 : i32
    return %arg0, %c0_i32 : i32, i32
  }
}

module attributes {stable_mosaic.version = 11 : i64} {
  func.func @_matmul_bias_act_kernel(%arg0: i32, %arg1: memref<32x576xbf16, #tpu.memory_space<vmem>>, %arg2: memref<576x64xbf16, #tpu.memory_space<vmem>>, %arg3: memref<1x64xf32, #tpu.memory_space<vmem>>, %arg4: memref<32x64xbf16, #tpu.memory_space<vmem>>) attributes {dimension_semantics = [#tpu.dimension_semantics<parallel>], iteration_bounds = array<i64: 1>, scalar_prefetch = 0 : i64, scratch_operands = 0 : i64, tpu.core_type = #tpu.core_type<tc>, window_params = [{transform_indices = @transform_0, window_bounds = array<i64: 32, 576>}, {pipeline_mode = #tpu.pipeline_mode<synchronous>, transform_indices = @transform_1, window_bounds = array<i64: 576, 64>}, {pipeline_mode = #tpu.pipeline_mode<synchronous>, transform_indices = @transform_2, window_bounds = array<i64: 1, 64>}, {transform_indices = @transform_3, window_bounds = array<i64: 32, 64>}]} {
    %c0 = arith.constant 0 : index
    %c0_0 = arith.constant 0 : index
    %0 = vector.load %arg1[%c0, %c0_0] : memref<32x576xbf16, #tpu.memory_space<vmem>>, vector<32x576xbf16>
    %c0_1 = arith.constant 0 : index
    %c0_2 = arith.constant 0 : index
    %1 = vector.load %arg2[%c0_1, %c0_2] : memref<576x64xbf16, #tpu.memory_space<vmem>>, vector<576x64xbf16>
    %cst = arith.constant dense<0.000000e+00> : vector<32x64xf32>
    %2 = tpu.matmul %0, %1, %cst {dimension_numbers = #tpu.dot_dimension_numbers<[1], [0], [0], [1], [0, 0, 1, 1], [], []>} : vector<32x576xbf16>, vector<576x64xbf16>, vector<32x64xf32> -> vector<32x64xf32>
    %c0_3 = arith.constant 0 : index
    %c0_4 = arith.constant 0 : index
    %3 = vector.load %arg3[%c0_3, %c0_4] : memref<1x64xf32, #tpu.memory_space<vmem>>, vector<1x64xf32>
    %4 = vector.broadcast %3 : vector<1x64xf32> to vector<32x64xf32>
    %5 = arith.addf %2, %4 : vector<32x64xf32>
    %6 = arith.negf %5 : vector<32x64xf32>
    %7 = math.exp %6 : vector<32x64xf32>
    %cst_5 = arith.constant 1.000000e+00 : f32
    %8 = vector.broadcast %cst_5 : f32 to vector<32x64xf32>
    %9 = arith.addf %8, %7 : vector<32x64xf32>
    %10 = arith.divf %8, %9 : vector<32x64xf32>
    %11 = arith.mulf %5, %10 : vector<32x64xf32>
    %12 = arith.truncf %11 : vector<32x64xf32> to vector<32x64xbf16>
    %c0_6 = arith.constant 0 : index
    %c0_7 = arith.constant 0 : index
    %13 = vector.load %arg4[%c0_6, %c0_7] : memref<32x64xbf16, #tpu.memory_space<vmem>>, vector<32x64xbf16>
    tpu.vector_store %arg4[%c0_6, %c0_7], %12 {strides = array<i32>} : memref<32x64xbf16, #tpu.memory_space<vmem>>, vector<32x64xbf16>,
    return
  }
  func.func @transform_0(%arg0: i32) -> (i32, i32) {
    %c0_i32 = arith.constant 0 : i32
    %c0_i32_0 = arith.constant 0 : i32
    return %arg0, %c0_i32 : i32, i32
  }
  func.func @transform_1(%arg0: i32) -> (i32, i32) {
    %c0_i32 = arith.constant 0 : i32
    %c0_i32_0 = arith.constant 0 : i32
    %c0_i32_1 = arith.constant 0 : i32
    return %c0_i32, %c0_i32_0 : i32, i32
  }
  func.func @transform_2(%arg0: i32) -> (i32, i32) {
    %c0_i32 = arith.constant 0 : i32
    %c0_i32_0 = arith.constant 0 : i32
    %c0_i32_1 = arith.constant 0 : i32
    return %c0_i32, %c0_i32_0 : i32, i32
  }
  func.func @transform_3(%arg0: i32) -> (i32, i32) {
    %c0_i32 = arith.constant 0 : i32
    %c0_i32_0 = arith.constant 0 : i32
    return %arg0, %c0_i32 : i32, i32
  }
}

module attributes {stable_mosaic.version = 11 : i64} {
  func.func @_matmul_bias_act_kernel(%arg0: i32, %arg1: memref<8x576xbf16, #tpu.memory_space<vmem>>, %arg2: memref<576x128xbf16, #tpu.memory_space<vmem>>, %arg3: memref<1x128xf32, #tpu.memory_space<vmem>>, %arg4: memref<8x128xbf16, #tpu.memory_space<vmem>>) attributes {dimension_semantics = [#tpu.dimension_semantics<parallel>], iteration_bounds = array<i64: 1>, scalar_prefetch = 0 : i64, scratch_operands = 0 : i64, tpu.core_type = #tpu.core_type<tc>, window_params = [{transform_indices = @transform_0, window_bounds = array<i64: 8, 576>}, {pipeline_mode = #tpu.pipeline_mode<synchronous>, transform_indices = @transform_1, window_bounds = array<i64: 576, 128>}, {pipeline_mode = #tpu.pipeline_mode<synchronous>, transform_indices = @transform_2, window_bounds = array<i64: 1, 128>}, {transform_indices = @transform_3, window_bounds = array<i64: 8, 128>}]} {
    %c0 = arith.constant 0 : index
    %c0_0 = arith.constant 0 : index
    %0 = vector.load %arg1[%c0, %c0_0] : memref<8x576xbf16, #tpu.memory_space<vmem>>, vector<8x576xbf16>
    %c0_1 = arith.constant 0 : index
    %c0_2 = arith.constant 0 : index
    %1 = vector.load %arg2[%c0_1, %c0_2] : memref<576x128xbf16, #tpu.memory_space<vmem>>, vector<576x128xbf16>
    %cst = arith.constant dense<0.000000e+00> : vector<8x128xf32>
    %2 = tpu.matmul %0, %1, %cst {dimension_numbers = #tpu.dot_dimension_numbers<[1], [0], [0], [1], [0, 0, 1, 1], [], []>} : vector<8x576xbf16>, vector<576x128xbf16>, vector<8x128xf32> -> vector<8x128xf32>
    %c0_3 = arith.constant 0 : index
    %c0_4 = arith.constant 0 : index
    %3 = vector.load %arg3[%c0_3, %c0_4] : memref<1x128xf32, #tpu.memory_space<vmem>>, vector<1x128xf32>
    %4 = vector.broadcast %3 : vector<1x128xf32> to vector<8x128xf32>
    %5 = arith.addf %2, %4 : vector<8x128xf32>
    %6 = arith.negf %5 : vector<8x128xf32>
    %7 = math.exp %6 : vector<8x128xf32>
    %cst_5 = arith.constant 1.000000e+00 : f32
    %8 = vector.broadcast %cst_5 : f32 to vector<8x128xf32>
    %9 = arith.addf %8, %7 : vector<8x128xf32>
    %10 = arith.divf %8, %9 : vector<8x128xf32>
    %11 = arith.mulf %5, %10 : vector<8x128xf32>
    %12 = arith.truncf %11 : vector<8x128xf32> to vector<8x128xbf16>
    %c0_6 = arith.constant 0 : index
    %c0_7 = arith.constant 0 : index
    %13 = vector.load %arg4[%c0_6, %c0_7] : memref<8x128xbf16, #tpu.memory_space<vmem>>, vector<8x128xbf16>
    tpu.vector_store %arg4[%c0_6, %c0_7], %12 {strides = array<i32>} : memref<8x128xbf16, #tpu.memory_space<vmem>>, vector<8x128xbf16>,
    return
  }
  func.func @transform_0(%arg0: i32) -> (i32, i32) {
    %c0_i32 = arith.constant 0 : i32
    %c0_i32_0 = arith.constant 0 : i32
    return %arg0, %c0_i32 : i32, i32
  }
  func.func @transform_1(%arg0: i32) -> (i32, i32) {
    %c0_i32 = arith.constant 0 : i32
    %c0_i32_0 = arith.constant 0 : i32
    %c0_i32_1 = arith.constant 0 : i32
    return %c0_i32, %c0_i32_0 : i32, i32
  }
  func.func @transform_2(%arg0: i32) -> (i32, i32) {
    %c0_i32 = arith.constant 0 : i32
    %c0_i32_0 = arith.constant 0 : i32
    %c0_i32_1 = arith.constant 0 : i32
    return %c0_i32, %c0_i32_0 : i32, i32
  }
  func.func @transform_3(%arg0: i32) -> (i32, i32) {
    %c0_i32 = arith.constant 0 : i32
    %c0_i32_0 = arith.constant 0 : i32
    return %arg0, %c0_i32 : i32, i32
  }
}

module attributes {stable_mosaic.version = 11 : i64} {
  func.func @_matmul_bias_act_kernel(%arg0: i32, %arg1: memref<8x1152xbf16, #tpu.memory_space<vmem>>, %arg2: memref<1152x128xbf16, #tpu.memory_space<vmem>>, %arg3: memref<1x128xf32, #tpu.memory_space<vmem>>, %arg4: memref<8x128xbf16, #tpu.memory_space<vmem>>) attributes {dimension_semantics = [#tpu.dimension_semantics<parallel>], iteration_bounds = array<i64: 1>, scalar_prefetch = 0 : i64, scratch_operands = 0 : i64, tpu.core_type = #tpu.core_type<tc>, window_params = [{transform_indices = @transform_0, window_bounds = array<i64: 8, 1152>}, {pipeline_mode = #tpu.pipeline_mode<synchronous>, transform_indices = @transform_1, window_bounds = array<i64: 1152, 128>}, {pipeline_mode = #tpu.pipeline_mode<synchronous>, transform_indices = @transform_2, window_bounds = array<i64: 1, 128>}, {transform_indices = @transform_3, window_bounds = array<i64: 8, 128>}]} {
    %c0 = arith.constant 0 : index
    %c0_0 = arith.constant 0 : index
    %0 = vector.load %arg1[%c0, %c0_0] : memref<8x1152xbf16, #tpu.memory_space<vmem>>, vector<8x1152xbf16>
    %c0_1 = arith.constant 0 : index
    %c0_2 = arith.constant 0 : index
    %1 = vector.load %arg2[%c0_1, %c0_2] : memref<1152x128xbf16, #tpu.memory_space<vmem>>, vector<1152x128xbf16>
    %cst = arith.constant dense<0.000000e+00> : vector<8x128xf32>
    %2 = tpu.matmul %0, %1, %cst {dimension_numbers = #tpu.dot_dimension_numbers<[1], [0], [0], [1], [0, 0, 1, 1], [], []>} : vector<8x1152xbf16>, vector<1152x128xbf16>, vector<8x128xf32> -> vector<8x128xf32>
    %c0_3 = arith.constant 0 : index
    %c0_4 = arith.constant 0 : index
    %3 = vector.load %arg3[%c0_3, %c0_4] : memref<1x128xf32, #tpu.memory_space<vmem>>, vector<1x128xf32>
    %4 = vector.broadcast %3 : vector<1x128xf32> to vector<8x128xf32>
    %5 = arith.addf %2, %4 : vector<8x128xf32>
    %6 = arith.negf %5 : vector<8x128xf32>
    %7 = math.exp %6 : vector<8x128xf32>
    %cst_5 = arith.constant 1.000000e+00 : f32
    %8 = vector.broadcast %cst_5 : f32 to vector<8x128xf32>
    %9 = arith.addf %8, %7 : vector<8x128xf32>
    %10 = arith.divf %8, %9 : vector<8x128xf32>
    %11 = arith.mulf %5, %10 : vector<8x128xf32>
    %12 = arith.truncf %11 : vector<8x128xf32> to vector<8x128xbf16>
    %c0_6 = arith.constant 0 : index
    %c0_7 = arith.constant 0 : index
    %13 = vector.load %arg4[%c0_6, %c0_7] : memref<8x128xbf16, #tpu.memory_space<vmem>>, vector<8x128xbf16>
    tpu.vector_store %arg4[%c0_6, %c0_7], %12 {strides = array<i32>} : memref<8x128xbf16, #tpu.memory_space<vmem>>, vector<8x128xbf16>,
    return
  }
  func.func @transform_0(%arg0: i32) -> (i32, i32) {
    %c0_i32 = arith.constant 0 : i32
    %c0_i32_0 = arith.constant 0 : i32
    return %arg0, %c0_i32 : i32, i32
  }
  func.func @transform_1(%arg0: i32) -> (i32, i32) {
    %c0_i32 = arith.constant 0 : i32
    %c0_i32_0 = arith.constant 0 : i32
    %c0_i32_1 = arith.constant 0 : i32
    return %c0_i32, %c0_i32_0 : i32, i32
  }
  func.func @transform_2(%arg0: i32) -> (i32, i32) {
    %c0_i32 = arith.constant 0 : i32
    %c0_i32_0 = arith.constant 0 : i32
    %c0_i32_1 = arith.constant 0 : i32
    return %c0_i32, %c0_i32_0 : i32, i32
  }
  func.func @transform_3(%arg0: i32) -> (i32, i32) {
    %c0_i32 = arith.constant 0 : i32
    %c0_i32_0 = arith.constant 0 : i32
    return %arg0, %c0_i32 : i32, i32
  }
}

module attributes {stable_mosaic.version = 11 : i64} {
  func.func @_matmul_bias_act_kernel(%arg0: i32, %arg1: memref<8x128xbf16, #tpu.memory_space<vmem>>, %arg2: memref<128x64xbf16, #tpu.memory_space<vmem>>, %arg3: memref<1x64xf32, #tpu.memory_space<vmem>>, %arg4: memref<8x64xbf16, #tpu.memory_space<vmem>>) attributes {dimension_semantics = [#tpu.dimension_semantics<parallel>], iteration_bounds = array<i64: 1>, scalar_prefetch = 0 : i64, scratch_operands = 0 : i64, tpu.core_type = #tpu.core_type<tc>, window_params = [{transform_indices = @transform_0, window_bounds = array<i64: 8, 128>}, {pipeline_mode = #tpu.pipeline_mode<synchronous>, transform_indices = @transform_1, window_bounds = array<i64: 128, 64>}, {pipeline_mode = #tpu.pipeline_mode<synchronous>, transform_indices = @transform_2, window_bounds = array<i64: 1, 64>}, {transform_indices = @transform_3, window_bounds = array<i64: 8, 64>}]} {
    %c0 = arith.constant 0 : index
    %c0_0 = arith.constant 0 : index
    %0 = vector.load %arg1[%c0, %c0_0] : memref<8x128xbf16, #tpu.memory_space<vmem>>, vector<8x128xbf16>
    %c0_1 = arith.constant 0 : index
    %c0_2 = arith.constant 0 : index
    %1 = vector.load %arg2[%c0_1, %c0_2] : memref<128x64xbf16, #tpu.memory_space<vmem>>, vector<128x64xbf16>
    %cst = arith.constant dense<0.000000e+00> : vector<8x64xf32>
    %2 = tpu.matmul %0, %1, %cst {dimension_numbers = #tpu.dot_dimension_numbers<[1], [0], [0], [1], [0, 0, 1, 1], [], []>} : vector<8x128xbf16>, vector<128x64xbf16>, vector<8x64xf32> -> vector<8x64xf32>
    %c0_3 = arith.constant 0 : index
    %c0_4 = arith.constant 0 : index
    %3 = vector.load %arg3[%c0_3, %c0_4] : memref<1x64xf32, #tpu.memory_space<vmem>>, vector<1x64xf32>
    %4 = vector.broadcast %3 : vector<1x64xf32> to vector<8x64xf32>
    %5 = arith.addf %2, %4 : vector<8x64xf32>
    %6 = arith.negf %5 : vector<8x64xf32>
    %7 = math.exp %6 : vector<8x64xf32>
    %cst_5 = arith.constant 1.000000e+00 : f32
    %8 = vector.broadcast %cst_5 : f32 to vector<8x64xf32>
    %9 = arith.addf %8, %7 : vector<8x64xf32>
    %10 = arith.divf %8, %9 : vector<8x64xf32>
    %11 = arith.mulf %5, %10 : vector<8x64xf32>
    %12 = arith.truncf %11 : vector<8x64xf32> to vector<8x64xbf16>
    %c0_6 = arith.constant 0 : index
    %c0_7 = arith.constant 0 : index
    %13 = vector.load %arg4[%c0_6, %c0_7] : memref<8x64xbf16, #tpu.memory_space<vmem>>, vector<8x64xbf16>
    tpu.vector_store %arg4[%c0_6, %c0_7], %12 {strides = array<i32>} : memref<8x64xbf16, #tpu.memory_space<vmem>>, vector<8x64xbf16>,
    return
  }
  func.func @transform_0(%arg0: i32) -> (i32, i32) {
    %c0_i32 = arith.constant 0 : i32
    %c0_i32_0 = arith.constant 0 : i32
    return %arg0, %c0_i32 : i32, i32
  }
  func.func @transform_1(%arg0: i32) -> (i32, i32) {
    %c0_i32 = arith.constant 0 : i32
    %c0_i32_0 = arith.constant 0 : i32
    %c0_i32_1 = arith.constant 0 : i32
    return %c0_i32, %c0_i32_0 : i32, i32
  }
  func.func @transform_2(%arg0: i32) -> (i32, i32) {
    %c0_i32 = arith.constant 0 : i32
    %c0_i32_0 = arith.constant 0 : i32
    %c0_i32_1 = arith.constant 0 : i32
    return %c0_i32, %c0_i32_0 : i32, i32
  }
  func.func @transform_3(%arg0: i32) -> (i32, i32) {
    %c0_i32 = arith.constant 0 : i32
    %c0_i32_0 = arith.constant 0 : i32
    return %arg0, %c0_i32 : i32, i32
  }
}

module attributes {stable_mosaic.version = 11 : i64} {
  func.func @_matmul_bias_act_kernel(%arg0: i32, %arg1: memref<32x1152xbf16, #tpu.memory_space<vmem>>, %arg2: memref<1152x64xbf16, #tpu.memory_space<vmem>>, %arg3: memref<1x64xf32, #tpu.memory_space<vmem>>, %arg4: memref<32x64xbf16, #tpu.memory_space<vmem>>) attributes {dimension_semantics = [#tpu.dimension_semantics<parallel>], iteration_bounds = array<i64: 1>, scalar_prefetch = 0 : i64, scratch_operands = 0 : i64, tpu.core_type = #tpu.core_type<tc>, window_params = [{transform_indices = @transform_0, window_bounds = array<i64: 32, 1152>}, {pipeline_mode = #tpu.pipeline_mode<synchronous>, transform_indices = @transform_1, window_bounds = array<i64: 1152, 64>}, {pipeline_mode = #tpu.pipeline_mode<synchronous>, transform_indices = @transform_2, window_bounds = array<i64: 1, 64>}, {transform_indices = @transform_3, window_bounds = array<i64: 32, 64>}]} {
    %c0 = arith.constant 0 : index
    %c0_0 = arith.constant 0 : index
    %0 = vector.load %arg1[%c0, %c0_0] : memref<32x1152xbf16, #tpu.memory_space<vmem>>, vector<32x1152xbf16>
    %c0_1 = arith.constant 0 : index
    %c0_2 = arith.constant 0 : index
    %1 = vector.load %arg2[%c0_1, %c0_2] : memref<1152x64xbf16, #tpu.memory_space<vmem>>, vector<1152x64xbf16>
    %cst = arith.constant dense<0.000000e+00> : vector<32x64xf32>
    %2 = tpu.matmul %0, %1, %cst {dimension_numbers = #tpu.dot_dimension_numbers<[1], [0], [0], [1], [0, 0, 1, 1], [], []>} : vector<32x1152xbf16>, vector<1152x64xbf16>, vector<32x64xf32> -> vector<32x64xf32>
    %c0_3 = arith.constant 0 : index
    %c0_4 = arith.constant 0 : index
    %3 = vector.load %arg3[%c0_3, %c0_4] : memref<1x64xf32, #tpu.memory_space<vmem>>, vector<1x64xf32>
    %4 = vector.broadcast %3 : vector<1x64xf32> to vector<32x64xf32>
    %5 = arith.addf %2, %4 : vector<32x64xf32>
    %6 = arith.negf %5 : vector<32x64xf32>
    %7 = math.exp %6 : vector<32x64xf32>
    %cst_5 = arith.constant 1.000000e+00 : f32
    %8 = vector.broadcast %cst_5 : f32 to vector<32x64xf32>
    %9 = arith.addf %8, %7 : vector<32x64xf32>
    %10 = arith.divf %8, %9 : vector<32x64xf32>
    %11 = arith.mulf %5, %10 : vector<32x64xf32>
    %12 = arith.truncf %11 : vector<32x64xf32> to vector<32x64xbf16>
    %c0_6 = arith.constant 0 : index
    %c0_7 = arith.constant 0 : index
    %13 = vector.load %arg4[%c0_6, %c0_7] : memref<32x64xbf16, #tpu.memory_space<vmem>>, vector<32x64xbf16>
    tpu.vector_store %arg4[%c0_6, %c0_7], %12 {strides = array<i32>} : memref<32x64xbf16, #tpu.memory_space<vmem>>, vector<32x64xbf16>,
    return
  }
  func.func @transform_0(%arg0: i32) -> (i32, i32) {
    %c0_i32 = arith.constant 0 : i32
    %c0_i32_0 = arith.constant 0 : i32
    return %arg0, %c0_i32 : i32, i32
  }
  func.func @transform_1(%arg0: i32) -> (i32, i32) {
    %c0_i32 = arith.constant 0 : i32
    %c0_i32_0 = arith.constant 0 : i32
    %c0_i32_1 = arith.constant 0 : i32
    return %c0_i32, %c0_i32_0 : i32, i32
  }
  func.func @transform_2(%arg0: i32) -> (i32, i32) {
    %c0_i32 = arith.constant 0 : i32
    %c0_i32_0 = arith.constant 0 : i32
    %c0_i32_1 = arith.constant 0 : i32
    return %c0_i32, %c0_i32_0 : i32, i32
  }
  func.func @transform_3(%arg0: i32) -> (i32, i32) {
    %c0_i32 = arith.constant 0 : i32
    %c0_i32_0 = arith.constant 0 : i32
    return %arg0, %c0_i32 : i32, i32
  }
}

module attributes {stable_mosaic.version = 11 : i64} {
  func.func @_matmul_bias_act_kernel(%arg0: i32, %arg1: memref<32x64xbf16, #tpu.memory_space<vmem>>, %arg2: memref<64x32xbf16, #tpu.memory_space<vmem>>, %arg3: memref<1x32xf32, #tpu.memory_space<vmem>>, %arg4: memref<32x32xbf16, #tpu.memory_space<vmem>>) attributes {dimension_semantics = [#tpu.dimension_semantics<parallel>], iteration_bounds = array<i64: 1>, scalar_prefetch = 0 : i64, scratch_operands = 0 : i64, tpu.core_type = #tpu.core_type<tc>, window_params = [{transform_indices = @transform_0, window_bounds = array<i64: 32, 64>}, {pipeline_mode = #tpu.pipeline_mode<synchronous>, transform_indices = @transform_1, window_bounds = array<i64: 64, 32>}, {pipeline_mode = #tpu.pipeline_mode<synchronous>, transform_indices = @transform_2, window_bounds = array<i64: 1, 32>}, {transform_indices = @transform_3, window_bounds = array<i64: 32, 32>}]} {
    %c0 = arith.constant 0 : index
    %c0_0 = arith.constant 0 : index
    %0 = vector.load %arg1[%c0, %c0_0] : memref<32x64xbf16, #tpu.memory_space<vmem>>, vector<32x64xbf16>
    %c0_1 = arith.constant 0 : index
    %c0_2 = arith.constant 0 : index
    %1 = vector.load %arg2[%c0_1, %c0_2] : memref<64x32xbf16, #tpu.memory_space<vmem>>, vector<64x32xbf16>
    %cst = arith.constant dense<0.000000e+00> : vector<32x32xf32>
    %2 = tpu.matmul %0, %1, %cst {dimension_numbers = #tpu.dot_dimension_numbers<[1], [0], [0], [1], [0, 0, 1, 1], [], []>} : vector<32x64xbf16>, vector<64x32xbf16>, vector<32x32xf32> -> vector<32x32xf32>
    %c0_3 = arith.constant 0 : index
    %c0_4 = arith.constant 0 : index
    %3 = vector.load %arg3[%c0_3, %c0_4] : memref<1x32xf32, #tpu.memory_space<vmem>>, vector<1x32xf32>
    %4 = vector.broadcast %3 : vector<1x32xf32> to vector<32x32xf32>
    %5 = arith.addf %2, %4 : vector<32x32xf32>
    %6 = arith.negf %5 : vector<32x32xf32>
    %7 = math.exp %6 : vector<32x32xf32>
    %cst_5 = arith.constant 1.000000e+00 : f32
    %8 = vector.broadcast %cst_5 : f32 to vector<32x32xf32>
    %9 = arith.addf %8, %7 : vector<32x32xf32>
    %10 = arith.divf %8, %9 : vector<32x32xf32>
    %11 = arith.mulf %5, %10 : vector<32x32xf32>
    %12 = arith.truncf %11 : vector<32x32xf32> to vector<32x32xbf16>
    %c0_6 = arith.constant 0 : index
    %c0_7 = arith.constant 0 : index
    %13 = vector.load %arg4[%c0_6, %c0_7] : memref<32x32xbf16, #tpu.memory_space<vmem>>, vector<32x32xbf16>
    tpu.vector_store %arg4[%c0_6, %c0_7], %12 {strides = array<i32>} : memref<32x32xbf16, #tpu.memory_space<vmem>>, vector<32x32xbf16>,
    return
  }
  func.func @transform_0(%arg0: i32) -> (i32, i32) {
    %c0_i32 = arith.constant 0 : i32
    %c0_i32_0 = arith.constant 0 : i32
    return %arg0, %c0_i32 : i32, i32
  }
  func.func @transform_1(%arg0: i32) -> (i32, i32) {
    %c0_i32 = arith.constant 0 : i32
    %c0_i32_0 = arith.constant 0 : i32
    %c0_i32_1 = arith.constant 0 : i32
    return %c0_i32, %c0_i32_0 : i32, i32
  }
  func.func @transform_2(%arg0: i32) -> (i32, i32) {
    %c0_i32 = arith.constant 0 : i32
    %c0_i32_0 = arith.constant 0 : i32
    %c0_i32_1 = arith.constant 0 : i32
    return %c0_i32, %c0_i32_0 : i32, i32
  }
  func.func @transform_3(%arg0: i32) -> (i32, i32) {
    %c0_i32 = arith.constant 0 : i32
    %c0_i32_0 = arith.constant 0 : i32
    return %arg0, %c0_i32 : i32, i32
  }
}

module attributes {stable_mosaic.version = 11 : i64} {
  func.func @_matmul_bias_act_kernel(%arg0: i32, %arg1: memref<128x576xbf16, #tpu.memory_space<vmem>>, %arg2: memref<576x32xbf16, #tpu.memory_space<vmem>>, %arg3: memref<1x32xf32, #tpu.memory_space<vmem>>, %arg4: memref<128x32xbf16, #tpu.memory_space<vmem>>) attributes {dimension_semantics = [#tpu.dimension_semantics<parallel>], iteration_bounds = array<i64: 1>, scalar_prefetch = 0 : i64, scratch_operands = 0 : i64, tpu.core_type = #tpu.core_type<tc>, window_params = [{transform_indices = @transform_0, window_bounds = array<i64: 128, 576>}, {pipeline_mode = #tpu.pipeline_mode<synchronous>, transform_indices = @transform_1, window_bounds = array<i64: 576, 32>}, {pipeline_mode = #tpu.pipeline_mode<synchronous>, transform_indices = @transform_2, window_bounds = array<i64: 1, 32>}, {transform_indices = @transform_3, window_bounds = array<i64: 128, 32>}]} {
    %c0 = arith.constant 0 : index
    %c0_0 = arith.constant 0 : index
    %0 = vector.load %arg1[%c0, %c0_0] : memref<128x576xbf16, #tpu.memory_space<vmem>>, vector<128x576xbf16>
    %c0_1 = arith.constant 0 : index
    %c0_2 = arith.constant 0 : index
    %1 = vector.load %arg2[%c0_1, %c0_2] : memref<576x32xbf16, #tpu.memory_space<vmem>>, vector<576x32xbf16>
    %cst = arith.constant dense<0.000000e+00> : vector<128x32xf32>
    %2 = tpu.matmul %0, %1, %cst {dimension_numbers = #tpu.dot_dimension_numbers<[1], [0], [0], [1], [0, 0, 1, 1], [], []>} : vector<128x576xbf16>, vector<576x32xbf16>, vector<128x32xf32> -> vector<128x32xf32>
    %c0_3 = arith.constant 0 : index
    %c0_4 = arith.constant 0 : index
    %3 = vector.load %arg3[%c0_3, %c0_4] : memref<1x32xf32, #tpu.memory_space<vmem>>, vector<1x32xf32>
    %4 = vector.broadcast %3 : vector<1x32xf32> to vector<128x32xf32>
    %5 = arith.addf %2, %4 : vector<128x32xf32>
    %6 = arith.negf %5 : vector<128x32xf32>
    %7 = math.exp %6 : vector<128x32xf32>
    %cst_5 = arith.constant 1.000000e+00 : f32
    %8 = vector.broadcast %cst_5 : f32 to vector<128x32xf32>
    %9 = arith.addf %8, %7 : vector<128x32xf32>
    %10 = arith.divf %8, %9 : vector<128x32xf32>
    %11 = arith.mulf %5, %10 : vector<128x32xf32>
    %12 = arith.truncf %11 : vector<128x32xf32> to vector<128x32xbf16>
    %c0_6 = arith.constant 0 : index
    %c0_7 = arith.constant 0 : index
    %13 = vector.load %arg4[%c0_6, %c0_7] : memref<128x32xbf16, #tpu.memory_space<vmem>>, vector<128x32xbf16>
    tpu.vector_store %arg4[%c0_6, %c0_7], %12 {strides = array<i32>} : memref<128x32xbf16, #tpu.memory_space<vmem>>, vector<128x32xbf16>,
    return
  }
  func.func @transform_0(%arg0: i32) -> (i32, i32) {
    %c0_i32 = arith.constant 0 : i32
    %c0_i32_0 = arith.constant 0 : i32
    return %arg0, %c0_i32 : i32, i32
  }
  func.func @transform_1(%arg0: i32) -> (i32, i32) {
    %c0_i32 = arith.constant 0 : i32
    %c0_i32_0 = arith.constant 0 : i32
    %c0_i32_1 = arith.constant 0 : i32
    return %c0_i32, %c0_i32_0 : i32, i32
  }
  func.func @transform_2(%arg0: i32) -> (i32, i32) {
    %c0_i32 = arith.constant 0 : i32
    %c0_i32_0 = arith.constant 0 : i32
    %c0_i32_1 = arith.constant 0 : i32
    return %c0_i32, %c0_i32_0 : i32, i32
  }
  func.func @transform_3(%arg0: i32) -> (i32, i32) {
    %c0_i32 = arith.constant 0 : i32
    %c0_i32_0 = arith.constant 0 : i32
    return %arg0, %c0_i32 : i32, i32
  }
}

module attributes {stable_mosaic.version = 11 : i64} {
  func.func @_matmul_bias_act_kernel(%arg0: i32, %arg1: memref<32x288xbf16, #tpu.memory_space<vmem>>, %arg2: memref<288x32xbf16, #tpu.memory_space<vmem>>, %arg3: memref<1x32xf32, #tpu.memory_space<vmem>>, %arg4: memref<32x32xbf16, #tpu.memory_space<vmem>>) attributes {dimension_semantics = [#tpu.dimension_semantics<parallel>], iteration_bounds = array<i64: 1>, scalar_prefetch = 0 : i64, scratch_operands = 0 : i64, tpu.core_type = #tpu.core_type<tc>, window_params = [{transform_indices = @transform_0, window_bounds = array<i64: 32, 288>}, {pipeline_mode = #tpu.pipeline_mode<synchronous>, transform_indices = @transform_1, window_bounds = array<i64: 288, 32>}, {pipeline_mode = #tpu.pipeline_mode<synchronous>, transform_indices = @transform_2, window_bounds = array<i64: 1, 32>}, {transform_indices = @transform_3, window_bounds = array<i64: 32, 32>}]} {
    %c0 = arith.constant 0 : index
    %c0_0 = arith.constant 0 : index
    %0 = vector.load %arg1[%c0, %c0_0] : memref<32x288xbf16, #tpu.memory_space<vmem>>, vector<32x288xbf16>
    %c0_1 = arith.constant 0 : index
    %c0_2 = arith.constant 0 : index
    %1 = vector.load %arg2[%c0_1, %c0_2] : memref<288x32xbf16, #tpu.memory_space<vmem>>, vector<288x32xbf16>
    %cst = arith.constant dense<0.000000e+00> : vector<32x32xf32>
    %2 = tpu.matmul %0, %1, %cst {dimension_numbers = #tpu.dot_dimension_numbers<[1], [0], [0], [1], [0, 0, 1, 1], [], []>} : vector<32x288xbf16>, vector<288x32xbf16>, vector<32x32xf32> -> vector<32x32xf32>
    %c0_3 = arith.constant 0 : index
    %c0_4 = arith.constant 0 : index
    %3 = vector.load %arg3[%c0_3, %c0_4] : memref<1x32xf32, #tpu.memory_space<vmem>>, vector<1x32xf32>
    %4 = vector.broadcast %3 : vector<1x32xf32> to vector<32x32xf32>
    %5 = arith.addf %2, %4 : vector<32x32xf32>
    %6 = arith.negf %5 : vector<32x32xf32>
    %7 = math.exp %6 : vector<32x32xf32>
    %cst_5 = arith.constant 1.000000e+00 : f32
    %8 = vector.broadcast %cst_5 : f32 to vector<32x32xf32>
    %9 = arith.addf %8, %7 : vector<32x32xf32>
    %10 = arith.divf %8, %9 : vector<32x32xf32>
    %11 = arith.mulf %5, %10 : vector<32x32xf32>
    %12 = arith.truncf %11 : vector<32x32xf32> to vector<32x32xbf16>
    %c0_6 = arith.constant 0 : index
    %c0_7 = arith.constant 0 : index
    %13 = vector.load %arg4[%c0_6, %c0_7] : memref<32x32xbf16, #tpu.memory_space<vmem>>, vector<32x32xbf16>
    tpu.vector_store %arg4[%c0_6, %c0_7], %12 {strides = array<i32>} : memref<32x32xbf16, #tpu.memory_space<vmem>>, vector<32x32xbf16>,
    return
  }
  func.func @transform_0(%arg0: i32) -> (i32, i32) {
    %c0_i32 = arith.constant 0 : i32
    %c0_i32_0 = arith.constant 0 : i32
    return %arg0, %c0_i32 : i32, i32
  }
  func.func @transform_1(%arg0: i32) -> (i32, i32) {
    %c0_i32 = arith.constant 0 : i32
    %c0_i32_0 = arith.constant 0 : i32
    %c0_i32_1 = arith.constant 0 : i32
    return %c0_i32, %c0_i32_0 : i32, i32
  }
  func.func @transform_2(%arg0: i32) -> (i32, i32) {
    %c0_i32 = arith.constant 0 : i32
    %c0_i32_0 = arith.constant 0 : i32
    %c0_i32_1 = arith.constant 0 : i32
    return %c0_i32, %c0_i32_0 : i32, i32
  }
  func.func @transform_3(%arg0: i32) -> (i32, i32) {
    %c0_i32 = arith.constant 0 : i32
    %c0_i32_0 = arith.constant 0 : i32
    return %arg0, %c0_i32 : i32, i32
  }
}

module attributes {stable_mosaic.version = 11 : i64} {
  func.func @_matmul_bias_act_kernel(%arg0: i32, %arg1: memref<128x32xbf16, #tpu.memory_space<vmem>>, %arg2: memref<32x32xbf16, #tpu.memory_space<vmem>>, %arg3: memref<1x32xf32, #tpu.memory_space<vmem>>, %arg4: memref<128x32xbf16, #tpu.memory_space<vmem>>) attributes {dimension_semantics = [#tpu.dimension_semantics<parallel>], iteration_bounds = array<i64: 1>, scalar_prefetch = 0 : i64, scratch_operands = 0 : i64, tpu.core_type = #tpu.core_type<tc>, window_params = [{transform_indices = @transform_0, window_bounds = array<i64: 128, 32>}, {pipeline_mode = #tpu.pipeline_mode<synchronous>, transform_indices = @transform_1, window_bounds = array<i64: 32, 32>}, {pipeline_mode = #tpu.pipeline_mode<synchronous>, transform_indices = @transform_2, window_bounds = array<i64: 1, 32>}, {transform_indices = @transform_3, window_bounds = array<i64: 128, 32>}]} {
    %c0 = arith.constant 0 : index
    %c0_0 = arith.constant 0 : index
    %0 = vector.load %arg1[%c0, %c0_0] : memref<128x32xbf16, #tpu.memory_space<vmem>>, vector<128x32xbf16>
    %c0_1 = arith.constant 0 : index
    %c0_2 = arith.constant 0 : index
    %1 = vector.load %arg2[%c0_1, %c0_2] : memref<32x32xbf16, #tpu.memory_space<vmem>>, vector<32x32xbf16>
    %cst = arith.constant dense<0.000000e+00> : vector<128x32xf32>
    %2 = tpu.matmul %0, %1, %cst {dimension_numbers = #tpu.dot_dimension_numbers<[1], [0], [0], [1], [0, 0, 1, 1], [], []>} : vector<128x32xbf16>, vector<32x32xbf16>, vector<128x32xf32> -> vector<128x32xf32>
    %c0_3 = arith.constant 0 : index
    %c0_4 = arith.constant 0 : index
    %3 = vector.load %arg3[%c0_3, %c0_4] : memref<1x32xf32, #tpu.memory_space<vmem>>, vector<1x32xf32>
    %4 = vector.broadcast %3 : vector<1x32xf32> to vector<128x32xf32>
    %5 = arith.addf %2, %4 : vector<128x32xf32>
    %6 = arith.negf %5 : vector<128x32xf32>
    %7 = math.exp %6 : vector<128x32xf32>
    %cst_5 = arith.constant 1.000000e+00 : f32
    %8 = vector.broadcast %cst_5 : f32 to vector<128x32xf32>
    %9 = arith.addf %8, %7 : vector<128x32xf32>
    %10 = arith.divf %8, %9 : vector<128x32xf32>
    %11 = arith.mulf %5, %10 : vector<128x32xf32>
    %12 = arith.truncf %11 : vector<128x32xf32> to vector<128x32xbf16>
    %c0_6 = arith.constant 0 : index
    %c0_7 = arith.constant 0 : index
    %13 = vector.load %arg4[%c0_6, %c0_7] : memref<128x32xbf16, #tpu.memory_space<vmem>>, vector<128x32xbf16>
    tpu.vector_store %arg4[%c0_6, %c0_7], %12 {strides = array<i32>} : memref<128x32xbf16, #tpu.memory_space<vmem>>, vector<128x32xbf16>,
    return
  }
  func.func @transform_0(%arg0: i32) -> (i32, i32) {
    %c0_i32 = arith.constant 0 : i32
    %c0_i32_0 = arith.constant 0 : i32
    return %arg0, %c0_i32 : i32, i32
  }
  func.func @transform_1(%arg0: i32) -> (i32, i32) {
    %c0_i32 = arith.constant 0 : i32
    %c0_i32_0 = arith.constant 0 : i32
    %c0_i32_1 = arith.constant 0 : i32
    return %c0_i32, %c0_i32_0 : i32, i32
  }
  func.func @transform_2(%arg0: i32) -> (i32, i32) {
    %c0_i32 = arith.constant 0 : i32
    %c0_i32_0 = arith.constant 0 : i32
    %c0_i32_1 = arith.constant 0 : i32
    return %c0_i32, %c0_i32_0 : i32, i32
  }
  func.func @transform_3(%arg0: i32) -> (i32, i32) {
    %c0_i32 = arith.constant 0 : i32
    %c0_i32_0 = arith.constant 0 : i32
    return %arg0, %c0_i32 : i32, i32
  }
}

module attributes {stable_mosaic.version = 11 : i64} {
  func.func @_matmul_bias_act_kernel(%arg0: i32, %arg1: memref<128x64xbf16, #tpu.memory_space<vmem>>, %arg2: memref<64x85xbf16, #tpu.memory_space<vmem>>, %arg3: memref<1x85xf32, #tpu.memory_space<vmem>>, %arg4: memref<128x85xf32, #tpu.memory_space<vmem>>) attributes {dimension_semantics = [#tpu.dimension_semantics<parallel>], iteration_bounds = array<i64: 1>, scalar_prefetch = 0 : i64, scratch_operands = 0 : i64, tpu.core_type = #tpu.core_type<tc>, window_params = [{transform_indices = @transform_0, window_bounds = array<i64: 128, 64>}, {pipeline_mode = #tpu.pipeline_mode<synchronous>, transform_indices = @transform_1, window_bounds = array<i64: 64, 85>}, {pipeline_mode = #tpu.pipeline_mode<synchronous>, transform_indices = @transform_2, window_bounds = array<i64: 1, 85>}, {transform_indices = @transform_3, window_bounds = array<i64: 128, 85>}]} {
    %c0 = arith.constant 0 : index
    %c0_0 = arith.constant 0 : index
    %0 = vector.load %arg1[%c0, %c0_0] : memref<128x64xbf16, #tpu.memory_space<vmem>>, vector<128x64xbf16>
    %c0_1 = arith.constant 0 : index
    %c0_2 = arith.constant 0 : index
    %1 = vector.load %arg2[%c0_1, %c0_2] : memref<64x85xbf16, #tpu.memory_space<vmem>>, vector<64x85xbf16>
    %cst = arith.constant dense<0.000000e+00> : vector<128x85xf32>
    %2 = tpu.matmul %0, %1, %cst {dimension_numbers = #tpu.dot_dimension_numbers<[1], [0], [0], [1], [0, 0, 1, 1], [], []>} : vector<128x64xbf16>, vector<64x85xbf16>, vector<128x85xf32> -> vector<128x85xf32>
    %c0_3 = arith.constant 0 : index
    %c0_4 = arith.constant 0 : index
    %3 = vector.load %arg3[%c0_3, %c0_4] : memref<1x85xf32, #tpu.memory_space<vmem>>, vector<1x85xf32>
    %4 = vector.broadcast %3 : vector<1x85xf32> to vector<128x85xf32>
    %5 = arith.addf %2, %4 : vector<128x85xf32>
    %c0_5 = arith.constant 0 : index
    %c0_6 = arith.constant 0 : index
    %6 = vector.load %arg4[%c0_5, %c0_6] : memref<128x85xf32, #tpu.memory_space<vmem>>, vector<128x85xf32>
    tpu.vector_store %arg4[%c0_5, %c0_6], %5 {strides = array<i32>} : memref<128x85xf32, #tpu.memory_space<vmem>>, vector<128x85xf32>,
    return
  }
  func.func @transform_0(%arg0: i32) -> (i32, i32) {
    %c0_i32 = arith.constant 0 : i32
    %c0_i32_0 = arith.constant 0 : i32
    return %arg0, %c0_i32 : i32, i32
  }
  func.func @transform_1(%arg0: i32) -> (i32, i32) {
    %c0_i32 = arith.constant 0 : i32
    %c0_i32_0 = arith.constant 0 : i32
    %c0_i32_1 = arith.constant 0 : i32
    return %c0_i32, %c0_i32_0 : i32, i32
  }
  func.func @transform_2(%arg0: i32) -> (i32, i32) {
    %c0_i32 = arith.constant 0 : i32
    %c0_i32_0 = arith.constant 0 : i32
    %c0_i32_1 = arith.constant 0 : i32
    return %c0_i32, %c0_i32_0 : i32, i32
  }
  func.func @transform_3(%arg0: i32) -> (i32, i32) {
    %c0_i32 = arith.constant 0 : i32
    %c0_i32_0 = arith.constant 0 : i32
    return %arg0, %c0_i32 : i32, i32
  }
}

module attributes {stable_mosaic.version = 11 : i64} {
  func.func @_matmul_bias_act_kernel(%arg0: i32, %arg1: memref<32x64xbf16, #tpu.memory_space<vmem>>, %arg2: memref<64x85xbf16, #tpu.memory_space<vmem>>, %arg3: memref<1x85xf32, #tpu.memory_space<vmem>>, %arg4: memref<32x85xf32, #tpu.memory_space<vmem>>) attributes {dimension_semantics = [#tpu.dimension_semantics<parallel>], iteration_bounds = array<i64: 1>, scalar_prefetch = 0 : i64, scratch_operands = 0 : i64, tpu.core_type = #tpu.core_type<tc>, window_params = [{transform_indices = @transform_0, window_bounds = array<i64: 32, 64>}, {pipeline_mode = #tpu.pipeline_mode<synchronous>, transform_indices = @transform_1, window_bounds = array<i64: 64, 85>}, {pipeline_mode = #tpu.pipeline_mode<synchronous>, transform_indices = @transform_2, window_bounds = array<i64: 1, 85>}, {transform_indices = @transform_3, window_bounds = array<i64: 32, 85>}]} {
    %c0 = arith.constant 0 : index
    %c0_0 = arith.constant 0 : index
    %0 = vector.load %arg1[%c0, %c0_0] : memref<32x64xbf16, #tpu.memory_space<vmem>>, vector<32x64xbf16>
    %c0_1 = arith.constant 0 : index
    %c0_2 = arith.constant 0 : index
    %1 = vector.load %arg2[%c0_1, %c0_2] : memref<64x85xbf16, #tpu.memory_space<vmem>>, vector<64x85xbf16>
    %cst = arith.constant dense<0.000000e+00> : vector<32x85xf32>
    %2 = tpu.matmul %0, %1, %cst {dimension_numbers = #tpu.dot_dimension_numbers<[1], [0], [0], [1], [0, 0, 1, 1], [], []>} : vector<32x64xbf16>, vector<64x85xbf16>, vector<32x85xf32> -> vector<32x85xf32>
    %c0_3 = arith.constant 0 : index
    %c0_4 = arith.constant 0 : index
    %3 = vector.load %arg3[%c0_3, %c0_4] : memref<1x85xf32, #tpu.memory_space<vmem>>, vector<1x85xf32>
    %4 = vector.broadcast %3 : vector<1x85xf32> to vector<32x85xf32>
    %5 = arith.addf %2, %4 : vector<32x85xf32>
    %c0_5 = arith.constant 0 : index
    %c0_6 = arith.constant 0 : index
    %6 = vector.load %arg4[%c0_5, %c0_6] : memref<32x85xf32, #tpu.memory_space<vmem>>, vector<32x85xf32>
    tpu.vector_store %arg4[%c0_5, %c0_6], %5 {strides = array<i32>} : memref<32x85xf32, #tpu.memory_space<vmem>>, vector<32x85xf32>,
    return
  }
  func.func @transform_0(%arg0: i32) -> (i32, i32) {
    %c0_i32 = arith.constant 0 : i32
    %c0_i32_0 = arith.constant 0 : i32
    return %arg0, %c0_i32 : i32, i32
  }
  func.func @transform_1(%arg0: i32) -> (i32, i32) {
    %c0_i32 = arith.constant 0 : i32
    %c0_i32_0 = arith.constant 0 : i32
    %c0_i32_1 = arith.constant 0 : i32
    return %c0_i32, %c0_i32_0 : i32, i32
  }
  func.func @transform_2(%arg0: i32) -> (i32, i32) {
    %c0_i32 = arith.constant 0 : i32
    %c0_i32_0 = arith.constant 0 : i32
    %c0_i32_1 = arith.constant 0 : i32
    return %c0_i32, %c0_i32_0 : i32, i32
  }
  func.func @transform_3(%arg0: i32) -> (i32, i32) {
    %c0_i32 = arith.constant 0 : i32
    %c0_i32_0 = arith.constant 0 : i32
    return %arg0, %c0_i32 : i32, i32
  }
}

module attributes {stable_mosaic.version = 11 : i64} {
  func.func @_matmul_bias_act_kernel(%arg0: i32, %arg1: memref<8x128xbf16, #tpu.memory_space<vmem>>, %arg2: memref<128x32xbf16, #tpu.memory_space<vmem>>, %arg3: memref<1x32xf32, #tpu.memory_space<vmem>>, %arg4: memref<8x32xbf16, #tpu.memory_space<vmem>>) attributes {dimension_semantics = [#tpu.dimension_semantics<parallel>], iteration_bounds = array<i64: 1>, scalar_prefetch = 0 : i64, scratch_operands = 0 : i64, tpu.core_type = #tpu.core_type<tc>, window_params = [{transform_indices = @transform_0, window_bounds = array<i64: 8, 128>}, {pipeline_mode = #tpu.pipeline_mode<synchronous>, transform_indices = @transform_1, window_bounds = array<i64: 128, 32>}, {pipeline_mode = #tpu.pipeline_mode<synchronous>, transform_indices = @transform_2, window_bounds = array<i64: 1, 32>}, {transform_indices = @transform_3, window_bounds = array<i64: 8, 32>}]} {
    %c0 = arith.constant 0 : index
    %c0_0 = arith.constant 0 : index
    %0 = vector.load %arg1[%c0, %c0_0] : memref<8x128xbf16, #tpu.memory_space<vmem>>, vector<8x128xbf16>
    %c0_1 = arith.constant 0 : index
    %c0_2 = arith.constant 0 : index
    %1 = vector.load %arg2[%c0_1, %c0_2] : memref<128x32xbf16, #tpu.memory_space<vmem>>, vector<128x32xbf16>
    %cst = arith.constant dense<0.000000e+00> : vector<8x32xf32>
    %2 = tpu.matmul %0, %1, %cst {dimension_numbers = #tpu.dot_dimension_numbers<[1], [0], [0], [1], [0, 0, 1, 1], [], []>} : vector<8x128xbf16>, vector<128x32xbf16>, vector<8x32xf32> -> vector<8x32xf32>
    %c0_3 = arith.constant 0 : index
    %c0_4 = arith.constant 0 : index
    %3 = vector.load %arg3[%c0_3, %c0_4] : memref<1x32xf32, #tpu.memory_space<vmem>>, vector<1x32xf32>
    %4 = vector.broadcast %3 : vector<1x32xf32> to vector<8x32xf32>
    %5 = arith.addf %2, %4 : vector<8x32xf32>
    %6 = arith.negf %5 : vector<8x32xf32>
    %7 = math.exp %6 : vector<8x32xf32>
    %cst_5 = arith.constant 1.000000e+00 : f32
    %8 = vector.broadcast %cst_5 : f32 to vector<8x32xf32>
    %9 = arith.addf %8, %7 : vector<8x32xf32>
    %10 = arith.divf %8, %9 : vector<8x32xf32>
    %11 = arith.mulf %5, %10 : vector<8x32xf32>
    %12 = arith.truncf %11 : vector<8x32xf32> to vector<8x32xbf16>
    %c0_6 = arith.constant 0 : index
    %c0_7 = arith.constant 0 : index
    %13 = vector.load %arg4[%c0_6, %c0_7] : memref<8x32xbf16, #tpu.memory_space<vmem>>, vector<8x32xbf16>
    tpu.vector_store %arg4[%c0_6, %c0_7], %12 {strides = array<i32>} : memref<8x32xbf16, #tpu.memory_space<vmem>>, vector<8x32xbf16>,
    return
  }
  func.func @transform_0(%arg0: i32) -> (i32, i32) {
    %c0_i32 = arith.constant 0 : i32
    %c0_i32_0 = arith.constant 0 : i32
    return %arg0, %c0_i32 : i32, i32
  }
  func.func @transform_1(%arg0: i32) -> (i32, i32) {
    %c0_i32 = arith.constant 0 : i32
    %c0_i32_0 = arith.constant 0 : i32
    %c0_i32_1 = arith.constant 0 : i32
    return %c0_i32, %c0_i32_0 : i32, i32
  }
  func.func @transform_2(%arg0: i32) -> (i32, i32) {
    %c0_i32 = arith.constant 0 : i32
    %c0_i32_0 = arith.constant 0 : i32
    %c0_i32_1 = arith.constant 0 : i32
    return %c0_i32, %c0_i32_0 : i32, i32
  }
  func.func @transform_3(%arg0: i32) -> (i32, i32) {
    %c0_i32 = arith.constant 0 : i32
    %c0_i32_0 = arith.constant 0 : i32
    return %arg0, %c0_i32 : i32, i32
  }
}

module attributes {stable_mosaic.version = 11 : i64} {
  func.func @_matmul_bias_act_kernel(%arg0: i32, %arg1: memref<8x576xbf16, #tpu.memory_space<vmem>>, %arg2: memref<576x64xbf16, #tpu.memory_space<vmem>>, %arg3: memref<1x64xf32, #tpu.memory_space<vmem>>, %arg4: memref<8x64xbf16, #tpu.memory_space<vmem>>) attributes {dimension_semantics = [#tpu.dimension_semantics<parallel>], iteration_bounds = array<i64: 1>, scalar_prefetch = 0 : i64, scratch_operands = 0 : i64, tpu.core_type = #tpu.core_type<tc>, window_params = [{transform_indices = @transform_0, window_bounds = array<i64: 8, 576>}, {pipeline_mode = #tpu.pipeline_mode<synchronous>, transform_indices = @transform_1, window_bounds = array<i64: 576, 64>}, {pipeline_mode = #tpu.pipeline_mode<synchronous>, transform_indices = @transform_2, window_bounds = array<i64: 1, 64>}, {transform_indices = @transform_3, window_bounds = array<i64: 8, 64>}]} {
    %c0 = arith.constant 0 : index
    %c0_0 = arith.constant 0 : index
    %0 = vector.load %arg1[%c0, %c0_0] : memref<8x576xbf16, #tpu.memory_space<vmem>>, vector<8x576xbf16>
    %c0_1 = arith.constant 0 : index
    %c0_2 = arith.constant 0 : index
    %1 = vector.load %arg2[%c0_1, %c0_2] : memref<576x64xbf16, #tpu.memory_space<vmem>>, vector<576x64xbf16>
    %cst = arith.constant dense<0.000000e+00> : vector<8x64xf32>
    %2 = tpu.matmul %0, %1, %cst {dimension_numbers = #tpu.dot_dimension_numbers<[1], [0], [0], [1], [0, 0, 1, 1], [], []>} : vector<8x576xbf16>, vector<576x64xbf16>, vector<8x64xf32> -> vector<8x64xf32>
    %c0_3 = arith.constant 0 : index
    %c0_4 = arith.constant 0 : index
    %3 = vector.load %arg3[%c0_3, %c0_4] : memref<1x64xf32, #tpu.memory_space<vmem>>, vector<1x64xf32>
    %4 = vector.broadcast %3 : vector<1x64xf32> to vector<8x64xf32>
    %5 = arith.addf %2, %4 : vector<8x64xf32>
    %6 = arith.negf %5 : vector<8x64xf32>
    %7 = math.exp %6 : vector<8x64xf32>
    %cst_5 = arith.constant 1.000000e+00 : f32
    %8 = vector.broadcast %cst_5 : f32 to vector<8x64xf32>
    %9 = arith.addf %8, %7 : vector<8x64xf32>
    %10 = arith.divf %8, %9 : vector<8x64xf32>
    %11 = arith.mulf %5, %10 : vector<8x64xf32>
    %12 = arith.truncf %11 : vector<8x64xf32> to vector<8x64xbf16>
    %c0_6 = arith.constant 0 : index
    %c0_7 = arith.constant 0 : index
    %13 = vector.load %arg4[%c0_6, %c0_7] : memref<8x64xbf16, #tpu.memory_space<vmem>>, vector<8x64xbf16>
    tpu.vector_store %arg4[%c0_6, %c0_7], %12 {strides = array<i32>} : memref<8x64xbf16, #tpu.memory_space<vmem>>, vector<8x64xbf16>,
    return
  }
  func.func @transform_0(%arg0: i32) -> (i32, i32) {
    %c0_i32 = arith.constant 0 : i32
    %c0_i32_0 = arith.constant 0 : i32
    return %arg0, %c0_i32 : i32, i32
  }
  func.func @transform_1(%arg0: i32) -> (i32, i32) {
    %c0_i32 = arith.constant 0 : i32
    %c0_i32_0 = arith.constant 0 : i32
    %c0_i32_1 = arith.constant 0 : i32
    return %c0_i32, %c0_i32_0 : i32, i32
  }
  func.func @transform_2(%arg0: i32) -> (i32, i32) {
    %c0_i32 = arith.constant 0 : i32
    %c0_i32_0 = arith.constant 0 : i32
    %c0_i32_1 = arith.constant 0 : i32
    return %c0_i32, %c0_i32_0 : i32, i32
  }
  func.func @transform_3(%arg0: i32) -> (i32, i32) {
    %c0_i32 = arith.constant 0 : i32
    %c0_i32_0 = arith.constant 0 : i32
    return %arg0, %c0_i32 : i32, i32
  }
}

module attributes {stable_mosaic.version = 11 : i64} {
  func.func @_matmul_bias_act_kernel(%arg0: i32, %arg1: memref<8x64xbf16, #tpu.memory_space<vmem>>, %arg2: memref<64x85xbf16, #tpu.memory_space<vmem>>, %arg3: memref<1x85xf32, #tpu.memory_space<vmem>>, %arg4: memref<8x85xf32, #tpu.memory_space<vmem>>) attributes {dimension_semantics = [#tpu.dimension_semantics<parallel>], iteration_bounds = array<i64: 1>, scalar_prefetch = 0 : i64, scratch_operands = 0 : i64, tpu.core_type = #tpu.core_type<tc>, window_params = [{transform_indices = @transform_0, window_bounds = array<i64: 8, 64>}, {pipeline_mode = #tpu.pipeline_mode<synchronous>, transform_indices = @transform_1, window_bounds = array<i64: 64, 85>}, {pipeline_mode = #tpu.pipeline_mode<synchronous>, transform_indices = @transform_2, window_bounds = array<i64: 1, 85>}, {transform_indices = @transform_3, window_bounds = array<i64: 8, 85>}]} {
    %c0 = arith.constant 0 : index
    %c0_0 = arith.constant 0 : index
    %0 = vector.load %arg1[%c0, %c0_0] : memref<8x64xbf16, #tpu.memory_space<vmem>>, vector<8x64xbf16>
    %c0_1 = arith.constant 0 : index
    %c0_2 = arith.constant 0 : index
    %1 = vector.load %arg2[%c0_1, %c0_2] : memref<64x85xbf16, #tpu.memory_space<vmem>>, vector<64x85xbf16>
    %cst = arith.constant dense<0.000000e+00> : vector<8x85xf32>
    %2 = tpu.matmul %0, %1, %cst {dimension_numbers = #tpu.dot_dimension_numbers<[1], [0], [0], [1], [0, 0, 1, 1], [], []>} : vector<8x64xbf16>, vector<64x85xbf16>, vector<8x85xf32> -> vector<8x85xf32>
    %c0_3 = arith.constant 0 : index
    %c0_4 = arith.constant 0 : index
    %3 = vector.load %arg3[%c0_3, %c0_4] : memref<1x85xf32, #tpu.memory_space<vmem>>, vector<1x85xf32>
    %4 = vector.broadcast %3 : vector<1x85xf32> to vector<8x85xf32>
    %5 = arith.addf %2, %4 : vector<8x85xf32>
    %c0_5 = arith.constant 0 : index
    %c0_6 = arith.constant 0 : index
    %6 = vector.load %arg4[%c0_5, %c0_6] : memref<8x85xf32, #tpu.memory_space<vmem>>, vector<8x85xf32>
    tpu.vector_store %arg4[%c0_5, %c0_6], %5 {strides = array<i32>} : memref<8x85xf32, #tpu.memory_space<vmem>>, vector<8x85xf32>,
    return
  }
  func.func @transform_0(%arg0: i32) -> (i32, i32) {
    %c0_i32 = arith.constant 0 : i32
    %c0_i32_0 = arith.constant 0 : i32
    return %arg0, %c0_i32 : i32, i32
  }
  func.func @transform_1(%arg0: i32) -> (i32, i32) {
    %c0_i32 = arith.constant 0 : i32
    %c0_i32_0 = arith.constant 0 : i32
    %c0_i32_1 = arith.constant 0 : i32
    return %c0_i32, %c0_i32_0 : i32, i32
  }
  func.func @transform_2(%arg0: i32) -> (i32, i32) {
    %c0_i32 = arith.constant 0 : i32
    %c0_i32_0 = arith.constant 0 : i32
    %c0_i32_1 = arith.constant 0 : i32
    return %c0_i32, %c0_i32_0 : i32, i32
  }
  func.func @transform_3(%arg0: i32) -> (i32, i32) {
    %c0_i32 = arith.constant 0 : i32
    %c0_i32_0 = arith.constant 0 : i32
    return %arg0, %c0_i32 : i32, i32
  }
}

module attributes {stable_mosaic.version = 11 : i64} {
  func.func @_matmul_bias_act_kernel(%arg0: i32, %arg1: memref<8x288xbf16, #tpu.memory_space<vmem>>, %arg2: memref<288x32xbf16, #tpu.memory_space<vmem>>, %arg3: memref<1x32xf32, #tpu.memory_space<vmem>>, %arg4: memref<8x32xbf16, #tpu.memory_space<vmem>>) attributes {dimension_semantics = [#tpu.dimension_semantics<parallel>], iteration_bounds = array<i64: 1>, scalar_prefetch = 0 : i64, scratch_operands = 0 : i64, tpu.core_type = #tpu.core_type<tc>, window_params = [{transform_indices = @transform_0, window_bounds = array<i64: 8, 288>}, {pipeline_mode = #tpu.pipeline_mode<synchronous>, transform_indices = @transform_1, window_bounds = array<i64: 288, 32>}, {pipeline_mode = #tpu.pipeline_mode<synchronous>, transform_indices = @transform_2, window_bounds = array<i64: 1, 32>}, {transform_indices = @transform_3, window_bounds = array<i64: 8, 32>}]} {
    %c0 = arith.constant 0 : index
    %c0_0 = arith.constant 0 : index
    %0 = vector.load %arg1[%c0, %c0_0] : memref<8x288xbf16, #tpu.memory_space<vmem>>, vector<8x288xbf16>
    %c0_1 = arith.constant 0 : index
    %c0_2 = arith.constant 0 : index
    %1 = vector.load %arg2[%c0_1, %c0_2] : memref<288x32xbf16, #tpu.memory_space<vmem>>, vector<288x32xbf16>
    %cst = arith.constant dense<0.000000e+00> : vector<8x32xf32>
    %2 = tpu.matmul %0, %1, %cst {dimension_numbers = #tpu.dot_dimension_numbers<[1], [0], [0], [1], [0, 0, 1, 1], [], []>} : vector<8x288xbf16>, vector<288x32xbf16>, vector<8x32xf32> -> vector<8x32xf32>
    %c0_3 = arith.constant 0 : index
    %c0_4 = arith.constant 0 : index
    %3 = vector.load %arg3[%c0_3, %c0_4] : memref<1x32xf32, #tpu.memory_space<vmem>>, vector<1x32xf32>
    %4 = vector.broadcast %3 : vector<1x32xf32> to vector<8x32xf32>
    %5 = arith.addf %2, %4 : vector<8x32xf32>
    %6 = arith.negf %5 : vector<8x32xf32>
    %7 = math.exp %6 : vector<8x32xf32>
    %cst_5 = arith.constant 1.000000e+00 : f32
    %8 = vector.broadcast %cst_5 : f32 to vector<8x32xf32>
    %9 = arith.addf %8, %7 : vector<8x32xf32>
    %10 = arith.divf %8, %9 : vector<8x32xf32>
    %11 = arith.mulf %5, %10 : vector<8x32xf32>
    %12 = arith.truncf %11 : vector<8x32xf32> to vector<8x32xbf16>
    %c0_6 = arith.constant 0 : index
    %c0_7 = arith.constant 0 : index
    %13 = vector.load %arg4[%c0_6, %c0_7] : memref<8x32xbf16, #tpu.memory_space<vmem>>, vector<8x32xbf16>
    tpu.vector_store %arg4[%c0_6, %c0_7], %12 {strides = array<i32>} : memref<8x32xbf16, #tpu.memory_space<vmem>>, vector<8x32xbf16>,
    return
  }
  func.func @transform_0(%arg0: i32) -> (i32, i32) {
    %c0_i32 = arith.constant 0 : i32
    %c0_i32_0 = arith.constant 0 : i32
    return %arg0, %c0_i32 : i32, i32
  }
  func.func @transform_1(%arg0: i32) -> (i32, i32) {
    %c0_i32 = arith.constant 0 : i32
    %c0_i32_0 = arith.constant 0 : i32
    %c0_i32_1 = arith.constant 0 : i32
    return %c0_i32, %c0_i32_0 : i32, i32
  }
  func.func @transform_2(%arg0: i32) -> (i32, i32) {
    %c0_i32 = arith.constant 0 : i32
    %c0_i32_0 = arith.constant 0 : i32
    %c0_i32_1 = arith.constant 0 : i32
    return %c0_i32, %c0_i32_0 : i32, i32
  }
  func.func @transform_3(%arg0: i32) -> (i32, i32) {
    %c0_i32 = arith.constant 0 : i32
    %c0_i32_0 = arith.constant 0 : i32
    return %arg0, %c0_i32 : i32, i32
  }
}

module attributes {stable_mosaic.version = 11 : i64} {
  func.func @_decode_kernel(%arg0: memref<2x84x85xf32, #tpu.memory_space<vmem>>, %arg1: memref<84x2xf32, #tpu.memory_space<vmem>>, %arg2: memref<84x1xf32, #tpu.memory_space<vmem>>, %arg3: memref<2x84x85xf32, #tpu.memory_space<vmem>>) attributes {dimension_semantics = [], scalar_prefetch = 0 : i64, scratch_operands = 0 : i64, tpu.core_type = #tpu.core_type<tc>} {
    %c0 = arith.constant 0 : index
    %c0_0 = arith.constant 0 : index
    %c0_1 = arith.constant 0 : index
    %0 = vector.load %arg0[%c0, %c0_0, %c0_1] : memref<2x84x85xf32, #tpu.memory_space<vmem>>, vector<2x84x85xf32>
    %c0_2 = arith.constant 0 : index
    %c0_3 = arith.constant 0 : index
    %1 = vector.load %arg1[%c0_2, %c0_3] : memref<84x2xf32, #tpu.memory_space<vmem>>, vector<84x2xf32>
    %2 = vector.shape_cast %1 : vector<84x2xf32> to vector<1x84x2xf32>
    %c0_4 = arith.constant 0 : index
    %c0_5 = arith.constant 0 : index
    %3 = vector.load %arg2[%c0_4, %c0_5] : memref<84x1xf32, #tpu.memory_space<vmem>>, vector<84x1xf32>
    %4 = vector.shape_cast %3 : vector<84x1xf32> to vector<1x84x1xf32>
    %5 = vector.extract_strided_slice %0 {offsets = [0, 0, 0], sizes = [2, 84, 2], strides = [1, 1, 1]} : vector<2x84x85xf32> to vector<2x84x2xf32>
    %6 = vector.broadcast %2 : vector<1x84x2xf32> to vector<2x84x2xf32>
    %7 = arith.addf %5, %6 : vector<2x84x2xf32>
    %8 = vector.broadcast %4 : vector<1x84x1xf32> to vector<2x84x2xf32>
    %9 = arith.mulf %7, %8 : vector<2x84x2xf32>
    %c0_6 = arith.constant 0 : index
    %c0_7 = arith.constant 0 : index
    %c0_8 = arith.constant 0 : index
    %10 = vector.load %arg3[%c0_6, %c0_7, %c0_8] : memref<2x84x85xf32, #tpu.memory_space<vmem>>, vector<2x84x2xf32>
    tpu.vector_store %arg3[%c0_6, %c0_7, %c0_8], %9 {strides = array<i32>} : memref<2x84x85xf32, #tpu.memory_space<vmem>>, vector<2x84x2xf32>,
    %11 = vector.extract_strided_slice %0 {offsets = [0, 0, 2], sizes = [2, 84, 2], strides = [1, 1, 1]} : vector<2x84x85xf32> to vector<2x84x2xf32>
    %12 = math.exp %11 : vector<2x84x2xf32>
    %13 = vector.broadcast %4 : vector<1x84x1xf32> to vector<2x84x2xf32>
    %14 = arith.mulf %12, %13 : vector<2x84x2xf32>
    %c0_9 = arith.constant 0 : index
    %c0_10 = arith.constant 0 : index
    %c2 = arith.constant 2 : index
    %15 = vector.load %arg3[%c0_9, %c0_10, %c2] : memref<2x84x85xf32, #tpu.memory_space<vmem>>, vector<2x84x2xf32>
    tpu.vector_store %arg3[%c0_9, %c0_10, %c2], %14 {strides = array<i32>} : memref<2x84x85xf32, #tpu.memory_space<vmem>>, vector<2x84x2xf32>,
    %16 = vector.extract_strided_slice %0 {offsets = [0, 0, 4], sizes = [2, 84, 81], strides = [1, 1, 1]} : vector<2x84x85xf32> to vector<2x84x81xf32>
    %17 = arith.negf %16 : vector<2x84x81xf32>
    %18 = math.exp %17 : vector<2x84x81xf32>
    %cst = arith.constant 1.000000e+00 : f32
    %19 = vector.broadcast %cst : f32 to vector<2x84x81xf32>
    %20 = arith.addf %19, %18 : vector<2x84x81xf32>
    %21 = arith.divf %19, %20 : vector<2x84x81xf32>
    %c0_11 = arith.constant 0 : index
    %c0_12 = arith.constant 0 : index
    %c4 = arith.constant 4 : index
    %22 = vector.load %arg3[%c0_11, %c0_12, %c4] : memref<2x84x85xf32, #tpu.memory_space<vmem>>, vector<2x84x81xf32>
    tpu.vector_store %arg3[%c0_11, %c0_12, %c4], %21 {strides = array<i32>} : memref<2x84x85xf32, #tpu.memory_space<vmem>>, vector<2x84x81xf32>,
    return
  }
}

</mosaic_0001>

<bundles_post_ra>
// kernel: yolox_forward.36
= control target key start
LH: loop header
LB: loop body
LE: loop exit
PB: predicated region body
PF: predicated region fallthrough
CT: control target
= control target key end

     0   :  { %s2416_s12 = smov 0   ;;  %s3093_s0 = inlined_call_operand.vmem [shape: bf16[2048,108], index: 0, kind: input, shape index: {}]   ;;  %s3094_s1 = inlined_call_operand.vmem [shape: bf16[108,8], index: 1, kind: input, shape index: {}]   ;;  %s3095_s2 = inlined_call_operand.vmem [shape: f32[1,8], index: 2, kind: input, shape index: {}]   ;;  %s3096_s3 = inlined_call_operand.vmem [shape: bf16[2048,8], index: 3, kind: output, shape index: {}]  }
   0x1 LB: > { %s1676_s13 = sadd.s32 4294967295, %s2394_s12   ;;  %p1680_p0 = scmp.ge.s32.totalorder %s2394_s12, 1  ;;  %s2394_s12 = sphi %s2416_s12, %s13_s12  }
   0x2   : > { %p138_p1 = scmp.lt.s32.totalorder %s2394_s12, 5 }
   0x4   : > { %p139_p2 = pnand %p1680_p0, %p138_p1 }
   0x6   : > { %142 = sbr.rel (%p139_p2) target bundleno = 405 (0x195), region = 32 }
   0xd   : > { %v2092_v0 = vld [vmem:[%s3094_s1] sm:$0xff]   ;;  %v2093_v1 = vld [vmem:[%s3094_s1 + $0x8] sm:$0xff]   ;;  %s1681_s18 = sshll.u32 %s1676_s13, 6  ;;  %v2094_v2 = vld [vmem:[%s3094_s1 + $0x10] sm:$0xff]   ;;  %vm461_vm0 = vcmask 883712   ;;  %vm558_vm1 = vcmask 1045504  }
   0xe   : > { %1990 = vmatprep.subr.bf16.mxu0 %v2092_v0  ;;  %2068 = vmatprep.subr.bf16.mxu1 %v2092_v0  ;;  %p163_p3 = scmp.lt.s32.totalorder %s1681_s18, 255  ;;  %v2095_v3 = vld [vmem:[%s3094_s1 + $0x18] sm:$0xff]   ;;  %v2096_v6 = vld [vmem:[%s3094_s1 + $0x20] sm:$0xff]   ;;  %v2097_v7 = vld [vmem:[%s3094_s1 + $0x28] sm:$0xff]   ;;  %vm1555_vm2 = vcmask 60416  }
   0xf   : > { %1991 = vmatpush3.bf16.msra.mxu0 %v2092_v0  ;;  %2075 = vmatpush3.bf16.msra.mxu1 %v2092_v0  ;;  %v2098_v8 = vld [vmem:[%s3094_s1 + $0x30] sm:$0x3f]   ;;  %v2522_v40 = vld [vmem:[%s3095_s2] ss:$0 sm:$0xff] }
  0x10   : > { %1992 = vmatprep.subr.bf16.mxu0 %v2093_v1  ;;  %2069 = vmatprep.subr.bf16.mxu1 %v2093_v1  ;;  %s3104_s18 = smov (!%p163_p3, %s1681_s18), 255  ;;  %v560_v9 = vsel %vm558_vm1, %v2098_v8, 0 }
  0x11   : > { %s1682_s21 = sshll.u32 %s3104_s18, 2 }
  0x12   : > { %s2444_s26 = scalar_lea.vmem %s3093_s0, %s1682_s21  ;;  %s2631_s10 = scalar_lea.vmem %s3096_s3, %s1682_s21 }
  0x13   : > { %1993 = vmatpush3.bf16.msra.mxu0 %v2093_v1  ;;  %2076 = vmatpush3.bf16.msra.mxu1 %v2093_v1  ;;  %v2099_v4 = vld [vmem:[%s2444_s26] sm:$0xff]   ;;  %v2101_v10 = vld [vmem:[%s2444_s26 + $0x8] sm:$0xff]   ;;  %v2103_v12 = vld [vmem:[%s2444_s26 + $0x10] sm:$0xff]  }
  0x14   : > { %1994 = vmatprep.subr.bf16.mxu0 %v2094_v2  ;;  %2070 = vmatprep.subr.bf16.mxu1 %v2094_v2  ;;  %v2100_v5 = vld [vmem:[%s2444_s26 + $0x80] sm:$0xff]   ;;  %v2102_v11 = vld [vmem:[%s2444_s26 + $0x88] sm:$0xff]   ;;  %v2104_v13 = vld [vmem:[%s2444_s26 + $0x90] sm:$0xff]  }
  0x15   : > { %2004 = vmatprep.mubr.msk.bf16.mxu0 %vm461_vm0, %v2099_v4  ;;  %2036 = vmatprep.mubr.msk.bf16.mxu1 %vm461_vm0, %v2100_v5  ;;  %v2105_v14 = vld [vmem:[%s2444_s26 + $0x18] sm:$0xff]   ;;  %v2107_v16 = vld [vmem:[%s2444_s26 + $0x20] sm:$0xff]   ;;  %v2109_v18 = vld [vmem:[%s2444_s26 + $0x28] sm:$0xff]  }
  0x16   : > { %v2106_v15 = vld [vmem:[%s2444_s26 + $0x98] sm:$0xff]   ;;  %v2108_v17 = vld [vmem:[%s2444_s26 + $0xa0] sm:$0xff]   ;;  %v2110_v19 = vld [vmem:[%s2444_s26 + $0xa8] sm:$0xff]  }
  0x17   : > { %1995 = vmatpush3.bf16.msra.mxu0 %v2094_v2  ;;  %2077 = vmatpush3.bf16.msra.mxu1 %v2094_v2  ;;  %v2111_v20 = vld [vmem:[%s2444_s26 + $0x30] sm:$0xff]   ;;  %v2113_v22 = vld [vmem:[%s2444_s26 + $0x38] sm:$0xff]   ;;  %v2115_v24 = vld [vmem:[%s2444_s26 + $0x40] sm:$0xff]  }
  0x18   : > { %1996 = vmatprep.subr.bf16.mxu0 %v2095_v3  ;;  %2071 = vmatprep.subr.bf16.mxu1 %v2095_v3  ;;  %v2112_v21 = vld [vmem:[%s2444_s26 + $0xb0] sm:$0xff]   ;;  %v2114_v23 = vld [vmem:[%s2444_s26 + $0xb8] sm:$0xff]   ;;  %v2116_v25 = vld [vmem:[%s2444_s26 + $0xc0] sm:$0xff]  }
  0x19   : > { %v2117_v26 = vld [vmem:[%s2444_s26 + $0x48] sm:$0xff]   ;;  %v2119_v28 = vld [vmem:[%s2444_s26 + $0x50] sm:$0xff]   ;;  %v2121_v30 = vld [vmem:[%s2444_s26 + $0x58] sm:$0xff]  }
  0x1a   : > { %v2118_v27 = vld [vmem:[%s2444_s26 + $0xc8] sm:$0xff]   ;;  %v2120_v29 = vld [vmem:[%s2444_s26 + $0xd0] sm:$0xff]   ;;  %v2122_v31 = vld [vmem:[%s2444_s26 + $0xd8] sm:$0xff]  }
  0x1b   : > { %1997 = vmatpush3.bf16.msra.mxu0 %v2095_v3  ;;  %2078 = vmatpush3.bf16.msra.mxu1 %v2095_v3  ;;  %v2123_v32 = vld [vmem:[%s2444_s26 + $0x60] sm:$0xff]   ;;  %v2125_v34 = vld [vmem:[%s2444_s26 + $0x68] sm:$0xff]   ;;  %v2127_v36 = vld [vmem:[%s2444_s26 + $0x70] sm:$0xff]  }
  0x1c   : > { %1998 = vmatprep.subr.bf16.mxu0 %v2096_v6  ;;  %2072 = vmatprep.subr.bf16.mxu1 %v2096_v6  ;;  %v2124_v33 = vld [vmem:[%s2444_s26 + $0xe0] sm:$0xff]   ;;  %v2126_v35 = vld [vmem:[%s2444_s26 + $0xe8] sm:$0xff]   ;;  %v2128_v37 = vld [vmem:[%s2444_s26 + $0xf0] sm:$0xff]  }
  0x1d   : > { %v2129_v38 = vld [vmem:[%s2444_s26 + $0x78] sm:$0xff]  }
  0x1e   : > { %v2130_v39 = vld [vmem:[%s2444_s26 + $0xf8] sm:$0xff]  }
  0x1f   : > { %1999 = vmatpush3.bf16.msra.mxu0 %v2096_v6  ;;  %2079 = vmatpush3.bf16.msra.mxu1 %v2096_v6 }
  0x20   : > { %2000 = vmatprep.subr.bf16.mxu0 %v2097_v7  ;;  %2073 = vmatprep.subr.bf16.mxu1 %v2097_v7 }
  0x23   : > { %2001 = vmatpush3.bf16.msra.mxu0 %v2097_v7  ;;  %2080 = vmatpush3.bf16.msra.mxu1 %v2097_v7 }
  0x24   : > { %2082 = vmatprep.subr.msk.bf16.mxu0 %vm558_vm1, %v2098_v8  ;;  %2083 = vmatprep.subr.msk.bf16.mxu1 %vm558_vm1, %v2098_v8 }
  0x27   : > { %2003 = vmatpush3.bf16.msra.mxu0 %v560_v9  ;;  %2081 = vmatpush3.bf16.msra.mxu1 %v560_v9 }
  0x2a   : > { %2005 = vmatmul.mubr.msk.bf16.vlgmr.msra.gmra.mrb[0].mxu0 %vm461_vm0, %v2101_v10  ;;  %2037 = vmatmul.mubr.msk.bf16.vlgmr.msra.gmra.mrb[0].mxu1 %vm461_vm0, %v2102_v11 }
  0x2b   : > { %2008 = vmatprep.mubr.msk.bf16.mxu0 %vm461_vm0, %v2103_v12  ;;  %2040 = vmatprep.mubr.msk.bf16.mxu1 %vm461_vm0, %v2104_v13 }
  0x32   : > { %2009 = vmatmul.mubr.msk.bf16.gmra.mrb[4].mxu0 %vm461_vm0, %v2105_v14  ;;  %2041 = vmatmul.mubr.msk.bf16.gmra.mrb[4].mxu1 %vm461_vm0, %v2106_v15 }
  0x33   : > { %2012 = vmatprep.mubr.msk.bf16.mxu0 %vm461_vm0, %v2107_v16  ;;  %2044 = vmatprep.mubr.msk.bf16.mxu1 %vm461_vm0, %v2108_v17 }
  0x3a   : > { %2013 = vmatmul.mubr.msk.bf16.gmra.mrb[8].mxu0 %vm461_vm0, %v2109_v18  ;;  %2045 = vmatmul.mubr.msk.bf16.gmra.mrb[8].mxu1 %vm461_vm0, %v2110_v19 }
  0x3b   : > { %2016 = vmatprep.mubr.msk.bf16.mxu0 %vm461_vm0, %v2111_v20  ;;  %2048 = vmatprep.mubr.msk.bf16.mxu1 %vm461_vm0, %v2112_v21 }
  0x42   : > { %2017 = vmatmul.mubr.msk.bf16.gmra.mrb[12].mxu0 %vm461_vm0, %v2113_v22  ;;  %2049 = vmatmul.mubr.msk.bf16.gmra.mrb[12].mxu1 %vm461_vm0, %v2114_v23 }
  0x43   : > { %2020 = vmatprep.mubr.msk.bf16.mxu0 %vm461_vm0, %v2115_v24  ;;  %2052 = vmatprep.mubr.msk.bf16.mxu1 %vm461_vm0, %v2116_v25 }
  0x4a   : > { %2021 = vmatmul.mubr.msk.bf16.gmra.mrb[16].mxu0 %vm461_vm0, %v2117_v26  ;;  %2053 = vmatmul.mubr.msk.bf16.gmra.mrb[16].mxu1 %vm461_vm0, %v2118_v27 }
  0x4b   : > { %2024 = vmatprep.mubr.msk.bf16.mxu0 %vm461_vm0, %v2119_v28  ;;  %2056 = vmatprep.mubr.msk.bf16.mxu1 %vm461_vm0, %v2120_v29 }
  0x52   : > { %2025 = vmatmul.mubr.msk.bf16.gmra.mrb[20].mxu0 %vm461_vm0, %v2121_v30  ;;  %2057 = vmatmul.mubr.msk.bf16.gmra.mrb[20].mxu1 %vm461_vm0, %v2122_v31 }
  0x53   : > { %2028 = vmatprep.mubr.msk.bf16.mxu0 %vm461_vm0, %v2123_v32  ;;  %2060 = vmatprep.mubr.msk.bf16.mxu1 %vm461_vm0, %v2124_v33 }
  0x5a   : > { %2029 = vmatmul.mubr.msk.bf16.gmra.mrb[24].mxu0 %vm461_vm0, %v2125_v34  ;;  %2061 = vmatmul.mubr.msk.bf16.gmra.mrb[24].mxu1 %vm461_vm0, %v2126_v35 }
  0x5b   : > { %2032 = vmatprep.mubr.msk.bf16.mxu0 %vm461_vm0, %v2127_v36  ;;  %2064 = vmatprep.mubr.msk.bf16.mxu1 %vm461_vm0, %v2128_v37 }
  0x62   : > { %2033 = vmatmul.mubr.msk.bf16.gmra.mrb[28].mxu0 %vm461_vm0, %v2129_v38  ;;  %2065 = vmatmul.mubr.msk.bf16.gmra.mrb[28].mxu1 %vm461_vm0, %v2130_v39 }
  0xfd   : > { %v2006_v41 = vpop.f32.mrb[0].mxu0  ;;  %v2038_v42 = vpop.f32.mrb[0].mxu1 }
  0xfe   : > { %v2525_v43 = vadd.f32 %v2006_v41, %v2522_v40  ;;  %v2528_v44 = vadd.f32 %v2038_v42, %v2522_v40  ;;  %v596_v45 = vpop.f32.mrb[1].mxu0  ;;  %v724_v46 = vpop.f32.mrb[1].mxu1 }
  0xff   : > { %v2531_v47 = vadd.f32 %v2522_v40, %v596_v45  ;;  %v2534_v48 = vadd.f32 %v2522_v40, %v724_v46  ;;  %v2007_v49 = vpop.f32.mrb[2].mxu0  ;;  %v2039_v50 = vpop.f32.mrb[2].mxu1 }
 0x100   : > { %v1759_v51 = vmul.f32 -1.442695, %v2525_v43  ;;  %v1791_v52 = vmul.f32 -1.442695, %v2528_v44  ;;  %v2539_v53 = vadd.f32 %v2007_v49, %v2522_v40  ;;  %v2542_v54 = vadd.f32 %v2039_v50, %v2522_v40  ;;  %v599_v55 = vpop.f32.mrb[3].mxu0  ;;  %v727_v56 = vpop.f32.mrb[3].mxu1 }
 0x101   : > { %v1757_v57 = vmul.f32 -1.442695, %v2531_v47  ;;  %v1789_v58 = vmul.f32 -1.442695, %v2534_v48  ;;  %v2547_v59 = vadd.f32 %v2522_v40, %v599_v55  ;;  %v2550_v60 = vadd.f32 %v2522_v40, %v727_v56 }
 0x102   : > { %2131 = vpow2.f32 %v1759_v51  ;;  %v1760_v61 = vmul.f32 -1.442695, %v2539_v53  ;;  %v1792_v62 = vmul.f32 -1.442695, %v2542_v54 }
 0x103   : > { %2133 = vpow2.f32 %v1791_v52  ;;  %v1758_v63 = vmul.f32 -1.442695, %v2547_v59  ;;  %v1790_v0 = vmul.f32 -1.442695, %v2550_v60 }
 0x104   : > { %2135 = vpow2.f32 %v1757_v57 }
 0x105   : > { %2137 = vpow2.f32 %v1789_v58  ;;  %v2010_v1 = vpop.f32.mrb[4].mxu0  ;;  %v2042_v2 = vpop.f32.mrb[4].mxu1 }
 0x106   : > { %2139 = vpow2.f32 %v1760_v61  ;;  %v2557_v3 = vadd.f32 %v2010_v1, %v2522_v40  ;;  %v2560_v4 = vadd.f32 %v2042_v2, %v2522_v40  ;;  %v612_v5 = vpop.f32.mrb[5].mxu0  ;;  %v740_v6 = vpop.f32.mrb[5].mxu1 }
 0x107   : > { %2141 = vpow2.f32 %v1792_v62  ;;  %v2563_v7 = vadd.f32 %v2522_v40, %v612_v5  ;;  %v2566_v8 = vadd.f32 %v2522_v40, %v740_v6  ;;  %v2011_v9 = vpop.f32.mrb[6].mxu0  ;;  %v2043_v10 = vpop.f32.mrb[6].mxu1 }
 0x108   : > { %2143 = vpow2.f32 %v1758_v63  ;;  %v1763_v11 = vmul.f32 -1.442695, %v2557_v3  ;;  %v1795_v12 = vmul.f32 -1.442695, %v2560_v4  ;;  %v2571_v13 = vadd.f32 %v2011_v9, %v2522_v40  ;;  %v615_v14 = vpop.f32.mrb[7].mxu0  ;;  %v743_v15 = vpop.f32.mrb[7].mxu1 }
 0x109   : > { %2145 = vpow2.f32 %v1790_v0  ;;  %v1761_v16 = vmul.f32 -1.442695, %v2563_v7  ;;  %v1793_v17 = vmul.f32 -1.442695, %v2566_v8  ;;  %v2577_v37 = vadd.f32 %v2043_v10, %v2522_v40 }
 0x10a   : > { %2147 = vpow2.f32 %v1763_v11  ;;  %v1764_v18 = vmul.f32 -1.442695, %v2571_v13  ;;  %v2580_v42 = vadd.f32 %v2522_v40, %v615_v14  ;;  %v2583_v49 = vadd.f32 %v2522_v40, %v743_v15 }
 0x10b   : > { %2149 = vpow2.f32 %v1795_v12  ;;  %v1796_v57 = vmul.f32 -1.442695, %v2577_v37 }
 0x10c   : > { %v2132_v19 = vpop.eup %2131  ;;  %2151 = vpow2.f32 %v1761_v16  ;;  %v1762_v0 = vmul.f32 -1.442695, %v2580_v42  ;;  %v1794_v10 = vmul.f32 -1.442695, %v2583_v49 }
 0x10d   : > { %v2134_v20 = vpop.eup %2133  ;;  %v1045_v21 = vadd.f32 1.0, %v2132_v19  ;;  %2153 = vpow2.f32 %v1793_v17  ;;  %v2014_v22 = vpop.f32.mrb[8].mxu0 }
 0x10e   : > { %v2046_v23 = vpop.f32.mrb[8].mxu1  ;;  %v2136_v24 = vpop.eup %2135  ;;  %v1077_v25 = vadd.f32 1.0, %v2134_v20  ;;  %2155 = vpow2.f32 %v1764_v18  ;;  %v2586_v52 = vadd.f32 %v2014_v22, %v2522_v40 }
 0x10f   : > { %v628_v26 = vpop.f32.mrb[9].mxu0  ;;  %v756_v27 = vpop.f32.mrb[9].mxu1  ;;  %2157 = vrcp.f32 %v1045_v21  ;;  %v1043_v29 = vadd.f32 1.0, %v2136_v24  ;;  %v2590_v58 = vadd.f32 %v2046_v23, %v2522_v40 }
 0x110   : > { %v2138_v28 = vpop.eup %2137  ;;  %v2015_v30 = vpop.f32.mrb[10].mxu0  ;;  %2159 = vrcp.f32 %v1077_v25  ;;  %v2596_v1 = vadd.f32 %v2522_v40, %v628_v26  ;;  %v2604_v11 = vadd.f32 %v2522_v40, %v756_v27  ;;  %v1767_v17 = vmul.f32 -1.442695, %v2586_v52 }
 0x111   : > { %v2047_v31 = vpop.f32.mrb[10].mxu1  ;;  %v2140_v32 = vpop.eup %2139  ;;  %v1075_v33 = vadd.f32 1.0, %v2138_v28  ;;  %2161 = vrcp.f32 %v1043_v29  ;;  %v1799_v22 = vmul.f32 -1.442695, %v2590_v58  ;;  %v2617_v23 = vadd.f32 %v2015_v30, %v2522_v40 }
 0x112   : > { %v631_v34 = vpop.f32.mrb[11].mxu0  ;;  %v2142_v35 = vpop.eup %2141  ;;  %v1046_v36 = vadd.f32 1.0, %v2140_v32  ;;  %v1765_v27 = vmul.f32 -1.442695, %v2596_v1  ;;  %v2624_v28 = vadd.f32 %v2047_v31, %v2522_v40  ;;  %v1797_v32 = vmul.f32 -1.442695, %v2604_v11 }
 0x113   : > { %v759_v38 = vpop.f32.mrb[11].mxu1  ;;  %v2144_v39 = vpop.eup %2143  ;;  %2163 = vrcp.f32 %v1075_v33  ;;  %v1078_v41 = vadd.f32 1.0, %v2142_v35 }
 0x114   : > { %v2146_v45 = vpop.eup %2145  ;;  %2165 = vrcp.f32 %v1046_v36  ;;  %v1044_v46 = vadd.f32 1.0, %v2144_v39  ;;  %v2640_v36 = vadd.f32 %v2522_v40, %v759_v38 }
 0x115   : > { %v2148_v50 = vpop.eup %2147  ;;  %2167 = vrcp.f32 %v1078_v41  ;;  %v1076_v51 = vadd.f32 1.0, %v2146_v45  ;;  %v2592_v61 = vpop.f32.mrb[12].mxu0  ;;  %v1768_v45 = vmul.f32 -1.442695, %v2617_v23 }
 0x116   : > { %v2150_v55 = vpop.eup %2149  ;;  %2169 = vrcp.f32 %v1044_v46  ;;  %v1049_v56 = vadd.f32 1.0, %v2148_v50  ;;  %v2598_v2 = vpop.f32.mrb[12].mxu1 }
 0x117   : > { %v2152_v62 = vpop.eup %2151  ;;  %2171 = vrcp.f32 %v1076_v51  ;;  %v1081_v63 = vadd.f32 1.0, %v2150_v55  ;;  %v2600_v5 = vpop.f32.mrb[13].mxu0  ;;  %v1800_v51 = vmul.f32 -1.442695, %v2624_v28 }
 0x118   : > { %v2154_v6 = vpop.eup %2153  ;;  %2173 = vrcp.f32 %v1049_v56  ;;  %v1047_v9 = vadd.f32 1.0, %v2152_v62  ;;  %v2606_v12 = vpop.f32.mrb[13].mxu1 }
 0x119   : > { %v2608_v14 = vpop.f32.mrb[14].mxu0  ;;  %v2156_v15 = vpop.eup %2155  ;;  %2175 = vrcp.f32 %v1081_v63  ;;  %v1079_v16 = vadd.f32 1.0, %v2154_v6  ;;  %v2661_v63 = vadd.f32 %v2592_v61, %v2522_v40 }
 0x11a   : > { %v2611_v18 = vpop.f32.mrb[14].mxu1  ;;  %v2613_v19 = vpop.f32.mrb[15].mxu0  ;;  %2177 = vrcp.f32 %v1047_v9  ;;  %v1050_v21 = vadd.f32 1.0, %v2156_v15 }
 0x11b   : > { %v2158_v20 = vpop.eup %2157  ;;  %v2619_v24 = vpop.f32.mrb[15].mxu1  ;;  %2179 = vrcp.f32 %v1079_v16 }
 0x11c   : > { %v2160_v25 = vpop.eup %2159  ;;  %v1237_v26 = vmul.f32 %v2158_v20, %v2525_v43  ;;  %2181 = vrcp.f32 %v1050_v21  ;;  %v2636_v43 = vadd.f32 %v2522_v40, %v631_v34 }
 0x11d   : > { %v2162_v29 = vpop.eup %2161  ;;  %v1269_v30 = vmul.f32 %v2160_v25, %v2528_v44  ;;  %2183 = vpow2.f32 %v1796_v57  ;;  %v2644_v46 = vpop.f32.mrb[16].mxu0  ;;  %v1798_v25 = vmul.f32 -1.442695, %v2640_v36 }
 0x11e   : > { %v2164_v33 = vpop.eup %2163  ;;  %v1889_v35 = vpack.c.bf16 %v1237_v26, %v1237_v26  ;;  %v1235_v31 = vmul.f32 %v2162_v29, %v2531_v47  ;;  %2185 = vpow2.f32 %v1762_v0  ;;  %v2646_v34 = vpop.f32.mrb[16].mxu1 }
 0x11f   : > { %v2166_v39 = vpop.eup %2165  ;;  %v1921_v41 = vpack.c.bf16 %v1269_v30, %v1269_v30  ;;  %v1267_v44 = vmul.f32 %v2164_v33, %v2534_v48  ;;  %2187 = vpow2.f32 %v1794_v10  ;;  %v2652_v55 = vpop.f32.mrb[17].mxu0 }
 0x120   : > { %v2168_v50 = vpop.eup %2167  ;;  %1558 = vst.msk [vmem:[%s2631_s10 + $0x8] sm:$0xf] %vm1555_vm2, %v1889_v35  ;;  %v1887_v47 = vpack.c.bf16 %v1235_v31, %v1235_v31  ;;  %v1238_v38 = vmul.f32 %v2166_v39, %v2539_v53  ;;  %v2654_v48 = vpop.f32.mrb[17].mxu1  ;;  %2189 = vpow2.f32 %v1767_v17 }
 0x121   : > { %v2170_v56 = vpop.eup %2169  ;;  %1590 = vst.msk [vmem:[%s2631_s10 + $0x88] sm:$0xf] %vm1555_vm2, %v1921_v41  ;;  %v1919_v57 = vpack.c.bf16 %v1267_v44, %v1267_v44  ;;  %v1270_v62 = vmul.f32 %v2168_v50, %v2542_v54  ;;  %v2663_v53 = vpop.f32.mrb[18].mxu0  ;;  %2191 = vpow2.f32 %v1799_v22  ;;  %v2672_v54 = vadd.f32 %v2598_v2, %v2522_v40 }
 0x122   : > { %v2665_v0 = vpop.f32.mrb[18].mxu1  ;;  %v2172_v6 = vpop.eup %2171  ;;  %1556 = vst.msk [vmem:[%s2631_s10] sm:$0xf] %vm1555_vm2, %v1887_v47  ;;  %v1890_v9 = vpack.c.bf16 %v1238_v38, %v1238_v38  ;;  %v1236_v10 = vmul.f32 %v2170_v56, %v2547_v59  ;;  %2193 = vpow2.f32 %v1765_v27  ;;  %v1766_v59 = vmul.f32 -1.442695, %v2636_v43 }
 0x123   : > { %v2674_v15 = vpop.f32.mrb[19].mxu0  ;;  %v2676_v61 = vpop.f32.mrb[19].mxu1  ;;  %1588 = vst.msk [vmem:[%s2631_s10 + $0x80] sm:$0xf] %vm1555_vm2, %v1919_v57  ;;  %v1922_v17 = vpack.c.bf16 %v1270_v62, %v1270_v62  ;;  %v1268_v20 = vmul.f32 %v2172_v6, %v2550_v60  ;;  %2195 = vpow2.f32 %v1797_v32  ;;  %v1771_v27 = vmul.f32 -1.442695, %v2661_v63 }
 0x124   : > { %v2174_v16 = vpop.eup %2173  ;;  %1559 = vst.msk [vmem:[%s2631_s10 + $0xc] sm:$0xf] %vm1555_vm2, %v1890_v9  ;;  %v1888_v2 = vpack.c.bf16 %v1236_v10, %v1236_v10  ;;  %2197 = vpow2.f32 %v1768_v45  ;;  %v1803_v32 = vmul.f32 -1.442695, %v2672_v54 }
 0x125   : > { %v2176_v21 = vpop.eup %2175  ;;  %v1241_v22 = vmul.f32 %v2174_v16, %v2557_v3  ;;  %1591 = vst.msk [vmem:[%s2631_s10 + $0x8c] sm:$0xf] %vm1555_vm2, %v1922_v17  ;;  %v1920_v29 = vpack.c.bf16 %v1268_v20, %v1268_v20  ;;  %2199 = vpow2.f32 %v1800_v51  ;;  %v2697_v39 = vpop.f32.mrb[20].mxu0 }
 0x126   : > { %v2178_v26 = vpop.eup %2177  ;;  %v1273_v60 = vmul.f32 %v2176_v21, %v2560_v4  ;;  %1557 = vst.msk [vmem:[%s2631_s10 + $0x4] sm:$0xf] %vm1555_vm2, %v1888_v2  ;;  %2201 = vpow2.f32 %v1766_v59  ;;  %v2699_v41 = vpop.f32.mrb[20].mxu1  ;;  %v2726_v21 = vadd.f32 %v2522_v40, %v2600_v5  ;;  %v2735_v5 = vadd.f32 %v2522_v40, %v2606_v12 }
 0x127   : > { %v2180_v30 = vpop.eup %2179  ;;  %v1893_v33 = vpack.c.bf16 %v1241_v22, %v1241_v22  ;;  %v1239_v3 = vmul.f32 %v2178_v26, %v2563_v7  ;;  %1589 = vst.msk [vmem:[%s2631_s10 + $0x84] sm:$0xf] %vm1555_vm2, %v1920_v29  ;;  %2203 = vpow2.f32 %v1798_v25  ;;  %v2704_v50 = vpop.f32.mrb[21].mxu0 }
 0x128   : > { %v2182_v35 = vpop.eup %2181  ;;  %v1925_v31 = vpack.c.bf16 %v1273_v60, %v1273_v60  ;;  %v1271_v4 = vmul.f32 %v2180_v30, %v2566_v8  ;;  %v2706_v47 = vpop.f32.mrb[21].mxu1  ;;  %2205 = vpow2.f32 %v1771_v27 }
 0x129   : > { %v2184_v44 = vpop.eup %2183  ;;  %1562 = vst.msk [vmem:[%s2631_s10 + $0x18] sm:$0xf] %vm1555_vm2, %v1893_v33  ;;  %v1891_v7 = vpack.c.bf16 %v1239_v3, %v1239_v3  ;;  %v1242_v45 = vmul.f32 %v2182_v35, %v2571_v13  ;;  %v2710_v56 = vpop.f32.mrb[22].mxu0  ;;  %2207 = vpow2.f32 %v1803_v32  ;;  %v1769_v32 = vmul.f32 -1.442695, %v2726_v21 }
 0x12a   : > { %v2186_v38 = vpop.eup %2185  ;;  %1594 = vst.msk [vmem:[%s2631_s10 + $0x98] sm:$0xf] %vm1555_vm2, %v1925_v31  ;;  %v1923_v8 = vpack.c.bf16 %v1271_v4, %v1271_v4  ;;  %v1082_v51 = vadd.f32 1.0, %v2184_v44  ;;  %v2712_v57 = vpop.f32.mrb[22].mxu1 }
 0x12b   : > { %v2188_v62 = vpop.eup %2187  ;;  %1560 = vst.msk [vmem:[%s2631_s10 + $0x10] sm:$0xf] %vm1555_vm2, %v1891_v7  ;;  %v1894_v13 = vpack.c.bf16 %v1242_v45, %v1242_v45  ;;  %v1048_v6 = vadd.f32 1.0, %v2186_v38  ;;  %v2716_v9 = vpop.f32.mrb[23].mxu0  ;;  %v2743_v7 = vadd.f32 %v2608_v14, %v2522_v40  ;;  %v2747_v45 = vadd.f32 %v2611_v18, %v2522_v40 }
 0x12c   : > { %v2718_v10 = vpop.f32.mrb[23].mxu1  ;;  %v2190_v16 = vpop.eup %2189  ;;  %1592 = vst.msk [vmem:[%s2631_s10 + $0x90] sm:$0xf] %vm1555_vm2, %v1923_v8  ;;  %2209 = vrcp.f32 %v1082_v51  ;;  %v1080_v17 = vadd.f32 1.0, %v2188_v62  ;;  %v2755_v62 = vadd.f32 %v2522_v40, %v2613_v19 }
 0x12d   : > { %v2192_v20 = vpop.eup %2191  ;;  %1563 = vst.msk [vmem:[%s2631_s10 + $0x1c] sm:$0xf] %vm1555_vm2, %v1894_v13  ;;  %2211 = vrcp.f32 %v1048_v6  ;;  %v1053_v59 = vadd.f32 1.0, %v2190_v16  ;;  %v2728_v27 = vpop.f32.mrb[24].mxu0  ;;  %v2759_v13 = vadd.f32 %v2522_v40, %v2619_v24  ;;  %v1801_v24 = vmul.f32 -1.442695, %v2735_v5 }
 0x12e   : > { %v2194_v2 = vpop.eup %2193  ;;  %2213 = vrcp.f32 %v1080_v17  ;;  %v1085_v22 = vadd.f32 1.0, %v2192_v20  ;;  %v2730_v30 = vpop.f32.mrb[24].mxu1  ;;  %v2767_v17 = vadd.f32 %v2644_v46, %v2522_v40  ;;  %v2771_v20 = vadd.f32 %v2646_v34, %v2522_v40 }
 0x12f   : > { %v2196_v25 = vpop.eup %2195  ;;  %2215 = vrcp.f32 %v1053_v59  ;;  %v1051_v26 = vadd.f32 1.0, %v2194_v2  ;;  %v2737_v35 = vpop.f32.mrb[25].mxu0  ;;  %v2776_v2 = vadd.f32 %v2522_v40, %v2652_v55  ;;  %v1804_v46 = vmul.f32 -1.442695, %v2747_v45 }
 0x130   : > { %v2198_v29 = vpop.eup %2197  ;;  %2217 = vrcp.f32 %v1085_v22  ;;  %v1083_v60 = vadd.f32 1.0, %v2196_v25  ;;  %v2739_v31 = vpop.f32.mrb[25].mxu1  ;;  %v1775_v55 = vmul.f32 -1.442695, %v2767_v17 }
 0x131   : > { %v2200_v33 = vpop.eup %2199  ;;  %2219 = vrcp.f32 %v1051_v26  ;;  %v1054_v3 = vadd.f32 1.0, %v2198_v29  ;;  %v2749_v38 = vpop.f32.mrb[26].mxu0  ;;  %v1772_v26 = vmul.f32 -1.442695, %v2743_v7 }
 0x132   : > { %v2202_v4 = vpop.eup %2201  ;;  %2221 = vrcp.f32 %v1083_v60  ;;  %v1086_v44 = vadd.f32 1.0, %v2200_v33  ;;  %v2751_v8 = vpop.f32.mrb[26].mxu1  ;;  %v1770_v60 = vmul.f32 -1.442695, %v2755_v62  ;;  %v1802_v33 = vmul.f32 -1.442695, %v2759_v13 }
 0x133   : > { %v2204_v12 = vpop.eup %2203  ;;  %2223 = vrcp.f32 %v1054_v3  ;;  %v1052_v51 = vadd.f32 1.0, %v2202_v4  ;;  %v2761_v14 = vpop.f32.mrb[27].mxu0 }
 0x134   : > { %v2763_v6 = vpop.f32.mrb[27].mxu1  ;;  %v2206_v18 = vpop.eup %2205  ;;  %2225 = vrcp.f32 %v1086_v44  ;;  %v1084_v16 = vadd.f32 1.0, %v2204_v12  ;;  %v1807_v44 = vmul.f32 -1.442695, %v2771_v20 }
 0x135   : > { %v2208_v19 = vpop.eup %2207  ;;  %2227 = vrcp.f32 %v1052_v51  ;;  %v1057_v59 = vadd.f32 1.0, %v2206_v18  ;;  %v2786_v12 = vpop.f32.mrb[28].mxu0 }
 0x136   : > { %v2210_v22 = vpop.eup %2209  ;;  %2229 = vrcp.f32 %v1084_v16  ;;  %v1089_v25 = vadd.f32 1.0, %v2208_v19  ;;  %v2788_v51 = vpop.f32.mrb[28].mxu1  ;;  %v1773_v19 = vmul.f32 -1.442695, %v2776_v2 }
 0x137   : > { %v2212_v29 = vpop.eup %2211  ;;  %v1274_v34 = vmul.f32 %v2210_v22, %v2577_v37  ;;  %2231 = vrcp.f32 %v1057_v59  ;;  %3097 = vst [vmem:[#allocation2_spill] sm:$0xff] %v2788_v51  ;;  %v2792_v59 = vpop.f32.mrb[29].mxu0  ;;  %v2799_v51 = vadd.f32 %v2522_v40, %v2654_v48 }
 0x138   : > { %v2214_v3 = vpop.eup %2213  ;;  %v1240_v4 = vmul.f32 %v2212_v29, %v2580_v42  ;;  %2233 = vrcp.f32 %v1089_v25  ;;  %v2794_v42 = vpop.f32.mrb[29].mxu1 }
 0x139   : > { %v2216_v18 = vpop.eup %2215  ;;  %v1926_v37 = vpack.c.bf16 %v1274_v34, %v1274_v34  ;;  %v1272_v16 = vmul.f32 %v2214_v3, %v2583_v49  ;;  %2235 = vpow2.f32 %v1769_v32  ;;  %3098 = vst [vmem:[#allocation3_spill] sm:$0xff] %v2794_v42  ;;  %v2801_v34 = vpop.f32.mrb[30].mxu0 }
 0x13a   : > { %v2218_v22 = vpop.eup %2217  ;;  %v1892_v25 = vpack.c.bf16 %v1240_v4, %v1240_v4  ;;  %v1245_v29 = vmul.f32 %v2216_v18, %v2586_v52  ;;  %2237 = vpow2.f32 %v1801_v24  ;;  %v2803_v49 = vpop.f32.mrb[30].mxu1  ;;  %v2810_v52 = vadd.f32 %v2663_v53, %v2522_v40 }
 0x13b   : > { %3099 = vst [vmem:[#allocation4_spill] sm:$0xff] %v2803_v49  ;;  %v2220_v32 = vpop.eup %2219  ;;  %1595 = vst.msk [vmem:[%s2631_s10 + $0x9c] sm:$0xf] %vm1555_vm2, %v1926_v37  ;;  %v1924_v3 = vpack.c.bf16 %v1272_v16, %v1272_v16  ;;  %v1277_v42 = vmul.f32 %v2218_v22, %v2590_v58  ;;  %2239 = vpow2.f32 %v1772_v26  ;;  %v2812_v24 = vpop.f32.mrb[31].mxu0  ;;  %v2821_v58 = vadd.f32 %v2665_v0, %v2522_v40 }
 0x13c   : > { %v2814_v48 = vpop.f32.mrb[31].mxu1  ;;  %v2222_v4 = vpop.eup %2221  ;;  %1561 = vst.msk [vmem:[%s2631_s10 + $0x14] sm:$0xf] %vm1555_vm2, %v1892_v25  ;;  %v1897_v18 = vpack.c.bf16 %v1245_v29, %v1245_v29  ;;  %v1243_v49 = vmul.f32 %v2220_v32, %v2596_v1  ;;  %2241 = vpow2.f32 %v1804_v46  ;;  %v2828_v16 = vadd.f32 %v2522_v40, %v2674_v15 }
 0x13d   : > { %v2224_v26 = vpop.eup %2223  ;;  %1593 = vst.msk [vmem:[%s2631_s10 + $0x94] sm:$0xf] %vm1555_vm2, %v1924_v3  ;;  %v1929_v53 = vpack.c.bf16 %v1277_v42, %v1277_v42  ;;  %v1275_v37 = vmul.f32 %v2222_v4, %v2604_v11  ;;  %2243 = vpow2.f32 %v1770_v60  ;;  %v1805_v0 = vmul.f32 -1.442695, %v2799_v51 }
 0x13e   : > { %v2226_v22 = vpop.eup %2225  ;;  %1566 = vst.msk [vmem:[%s2631_s10 + $0x28] sm:$0xf] %vm1555_vm2, %v1897_v18  ;;  %v1895_v1 = vpack.c.bf16 %v1243_v49, %v1243_v49  ;;  %v1246_v46 = vmul.f32 %v2224_v26, %v2617_v23  ;;  %2245 = vpow2.f32 %v1802_v33  ;;  %v1776_v15 = vmul.f32 -1.442695, %v2810_v52 }
 0x13f   : > { %v2228_v25 = vpop.eup %2227  ;;  %1598 = vst.msk [vmem:[%s2631_s10 + $0xa8] sm:$0xf] %vm1555_vm2, %v1929_v53  ;;  %v1927_v11 = vpack.c.bf16 %v1275_v37, %v1275_v37  ;;  %v1278_v60 = vmul.f32 %v2226_v22, %v2624_v28  ;;  %2247 = vpow2.f32 %v1775_v55  ;;  %v1808_v33 = vmul.f32 -1.442695, %v2821_v58 }
 0x140   : > { %v2230_v42 = vpop.eup %2229  ;;  %1564 = vst.msk [vmem:[%s2631_s10 + $0x20] sm:$0xf] %vm1555_vm2, %v1895_v1  ;;  %v1898_v29 = vpack.c.bf16 %v1246_v46, %v1246_v46  ;;  %v1244_v23 = vmul.f32 %v2228_v25, %v2636_v43  ;;  %2249 = vpow2.f32 %v1807_v44  ;;  %v1774_v55 = vmul.f32 -1.442695, %v2828_v16 }
 0x141   : > { %v2232_v49 = vpop.eup %2231  ;;  %1596 = vst.msk [vmem:[%s2631_s10 + $0xa0] sm:$0xf] %vm1555_vm2, %v1927_v11  ;;  %v1930_v32 = vpack.c.bf16 %v1278_v60, %v1278_v60  ;;  %v1276_v28 = vmul.f32 %v2230_v42, %v2640_v36  ;;  %2251 = vpow2.f32 %v1773_v19  ;;  %v2862_v60 = vadd.f32 %v2522_v40, %v2676_v61 }
 0x142   : > { %v2234_v3 = vpop.eup %2233  ;;  %1567 = vst.msk [vmem:[%s2631_s10 + $0x2c] sm:$0xf] %vm1555_vm2, %v1898_v29  ;;  %v1896_v4 = vpack.c.bf16 %v1244_v23, %v1244_v23  ;;  %v1249_v43 = vmul.f32 %v2232_v49, %v2661_v63  ;;  %2253 = vpow2.f32 %v1805_v0 }
 0x143   : > { %v2236_v44 = vpop.eup %2235  ;;  %1599 = vst.msk [vmem:[%s2631_s10 + $0xac] sm:$0xf] %vm1555_vm2, %v1930_v32  ;;  %v1928_v18 = vpack.c.bf16 %v1276_v28, %v1276_v28  ;;  %v1281_v26 = vmul.f32 %v2234_v3, %v2672_v54  ;;  %2255 = vpow2.f32 %v1776_v15  ;;  %v2866_v32 = vadd.f32 %v2697_v39, %v2522_v40 }
 0x144   : > { %v2238_v36 = vpop.eup %2237  ;;  %1565 = vst.msk [vmem:[%s2631_s10 + $0x24] sm:$0xf] %vm1555_vm2, %v1896_v4  ;;  %v1901_v19 = vpack.c.bf16 %v1249_v43, %v1249_v43  ;;  %v1055_v53 = vadd.f32 1.0, %v2236_v44  ;;  %2257 = vpow2.f32 %v1808_v33  ;;  %v2870_v28 = vadd.f32 %v2699_v41, %v2522_v40 }
 0x145   : > { %v2240_v37 = vpop.eup %2239  ;;  %1597 = vst.msk [vmem:[%s2631_s10 + $0xa4] sm:$0xf] %vm1555_vm2, %v1928_v18  ;;  %v1933_v63 = vpack.c.bf16 %v1281_v26, %v1281_v26  ;;  %v1087_v22 = vadd.f32 1.0, %v2238_v36  ;;  %2259 = vpow2.f32 %v1774_v55  ;;  %v1806_v3 = vmul.f32 -1.442695, %v2862_v60 }
 0x146   : > { %v2242_v1 = vpop.eup %2241  ;;  %1570 = vst.msk [vmem:[%s2631_s10 + $0x38] sm:$0xf] %vm1555_vm2, %v1901_v19  ;;  %2261 = vrcp.f32 %v1055_v53  ;;  %v1058_v46 = vadd.f32 1.0, %v2240_v37  ;;  %v2875_v4 = vadd.f32 %v2522_v40, %v2704_v50  ;;  %v2879_v39 = vadd.f32 %v2522_v40, %v2706_v47 }
 0x147   : > { %v2244_v54 = vpop.eup %2243  ;;  %1602 = vst.msk [vmem:[%s2631_s10 + $0xb8] sm:$0xf] %vm1555_vm2, %v1933_v63  ;;  %2263 = vrcp.f32 %v1087_v22  ;;  %v1090_v0 = vadd.f32 1.0, %v2242_v1  ;;  %v2883_v41 = vadd.f32 %v2710_v56, %v2522_v40  ;;  %v2887_v36 = vadd.f32 %v2712_v57, %v2522_v40 }
 0x148   : > { %v2246_v25 = vpop.eup %2245  ;;  %2265 = vrcp.f32 %v1058_v46  ;;  %v1056_v11 = vadd.f32 1.0, %v2244_v54  ;;  %v2891_v50 = vadd.f32 %v2522_v40, %v2716_v9  ;;  %v1779_v47 = vmul.f32 -1.442695, %v2866_v32 }
 0x149   : > { %v2248_v15 = vpop.eup %2247  ;;  %2267 = vrcp.f32 %v1090_v0  ;;  %v1088_v42 = vadd.f32 1.0, %v2246_v25  ;;  %v1811_v37 = vmul.f32 -1.442695, %v2870_v28  ;;  %v1777_v22 = vmul.f32 -1.442695, %v2875_v4 }
 0x14a   : > { %v2250_v29 = vpop.eup %2249  ;;  %2269 = vrcp.f32 %v1056_v11  ;;  %v1061_v23 = vadd.f32 1.0, %v2248_v15  ;;  %v2898_v57 = vadd.f32 %v2522_v40, %v2718_v10  ;;  %v1809_v46 = vmul.f32 -1.442695, %v2879_v39 }
 0x14b   : > { %v2252_v33 = vpop.eup %2251  ;;  %2271 = vrcp.f32 %v1088_v42  ;;  %v1093_v49 = vadd.f32 1.0, %v2250_v29  ;;  %v1780_v54 = vmul.f32 -1.442695, %v2883_v41  ;;  %v1812_v11 = vmul.f32 -1.442695, %v2887_v36 }
 0x14c   : > { %v2254_v55 = vpop.eup %2253  ;;  %2273 = vrcp.f32 %v1061_v23  ;;  %v1059_v61 = vadd.f32 1.0, %v2252_v33  ;;  %v1778_v15 = vmul.f32 -1.442695, %v2891_v50 }
 0x14d   : > { %v2256_v43 = vpop.eup %2255  ;;  %2275 = vrcp.f32 %v1093_v49  ;;  %v1091_v44 = vadd.f32 1.0, %v2254_v55 }
 0x14e   : > { %v2258_v18 = vpop.eup %2257  ;;  %2277 = vrcp.f32 %v1059_v61  ;;  %v1062_v26 = vadd.f32 1.0, %v2256_v43 }
 0x14f   : > { %v2260_v19 = vpop.eup %2259  ;;  %2279 = vrcp.f32 %v1091_v44  ;;  %v1094_v53 = vadd.f32 1.0, %v2258_v18  ;;  %v2925_v44 = vadd.f32 %v2522_v40, %v2737_v35 }
 0x150   : > { %v2262_v56 = vpop.eup %2261  ;;  %2281 = vrcp.f32 %v1062_v26  ;;  %v1060_v63 = vadd.f32 1.0, %v2260_v19 }
 0x151   : > { %v2264_v1 = vpop.eup %2263  ;;  %v1247_v9 = vmul.f32 %v2262_v56, %v2726_v21  ;;  %2283 = vrcp.f32 %v1094_v53  ;;  %v2909_v21 = vadd.f32 %v2728_v27, %v2522_v40  ;;  %v2918_v27 = vadd.f32 %v2730_v30, %v2522_v40 }
 0x152   : > { %v2266_v0 = vpop.eup %2265  ;;  %v1279_v25 = vmul.f32 %v2264_v1, %v2735_v5  ;;  %2285 = vrcp.f32 %v1060_v63  ;;  %v1810_v5 = vmul.f32 -1.442695, %v2898_v57  ;;  %v2932_v30 = vadd.f32 %v2522_v40, %v2739_v31 }
 0x153   : > { %v2268_v42 = vpop.eup %2267  ;;  %v1899_v10 = vpack.c.bf16 %v1247_v9, %v1247_v9  ;;  %v1250_v29 = vmul.f32 %v2266_v0, %v2743_v7  ;;  %2287 = vpow2.f32 %v1806_v3  ;;  %v1783_v35 = vmul.f32 -1.442695, %v2909_v21 }
 0x154   : > { %v2270_v23 = vpop.eup %2269  ;;  %v1931_v33 = vpack.c.bf16 %v1279_v25, %v1279_v25  ;;  %v1282_v49 = vmul.f32 %v2268_v42, %v2747_v45  ;;  %2289 = vpow2.f32 %v1779_v47  ;;  %v1815_v40 = vmul.f32 -1.442695, %v2918_v27 }
 0x155   : > { %v2272_v55 = vpop.eup %2271  ;;  %1568 = vst.msk [vmem:[%s2631_s10 + $0x30] sm:$0xf] %vm1555_vm2, %v1899_v10  ;;  %v1902_v61 = vpack.c.bf16 %v1250_v29, %v1250_v29  ;;  %v1248_v43 = vmul.f32 %v2270_v23, %v2755_v62  ;;  %2291 = vpow2.f32 %v1811_v37  ;;  %v1781_v63 = vmul.f32 -1.442695, %v2925_v44 }
 0x156   : > { %v2274_v7 = vpop.eup %2273  ;;  %1600 = vst.msk [vmem:[%s2631_s10 + $0xb0] sm:$0xf] %vm1555_vm2, %v1931_v33  ;;  %v1934_v45 = vpack.c.bf16 %v1282_v49, %v1282_v49  ;;  %v1280_v3 = vmul.f32 %v2272_v55, %v2759_v13  ;;  %2293 = vpow2.f32 %v1777_v22  ;;  %v1813_v9 = vmul.f32 -1.442695, %v2932_v30 }
 0x157   : > { %v2276_v18 = vpop.eup %2275  ;;  %1571 = vst.msk [vmem:[%s2631_s10 + $0x3c] sm:$0xf] %vm1555_vm2, %v1902_v61  ;;  %v1900_v62 = vpack.c.bf16 %v1248_v43, %v1248_v43  ;;  %v1253_v26 = vmul.f32 %v2274_v7, %v2767_v17  ;;  %2295 = vpow2.f32 %v1809_v46 }
 0x158   : > { %v2278_v19 = vpop.eup %2277  ;;  %1603 = vst.msk [vmem:[%s2631_s10 + $0xbc] sm:$0xf] %vm1555_vm2, %v1934_v45  ;;  %v1932_v13 = vpack.c.bf16 %v1280_v3, %v1280_v3  ;;  %v1285_v53 = vmul.f32 %v2276_v18, %v2771_v20  ;;  %2297 = vpow2.f32 %v1780_v54 }
 0x159   : > { %v2280_v47 = vpop.eup %2279  ;;  %1569 = vst.msk [vmem:[%s2631_s10 + $0x34] sm:$0xf] %vm1555_vm2, %v1900_v62  ;;  %v1905_v17 = vpack.c.bf16 %v1253_v26, %v1253_v26  ;;  %v1251_v37 = vmul.f32 %v2278_v19, %v2776_v2  ;;  %2299 = vpow2.f32 %v1812_v11  ;;  %v2387_v62 = vld [vmem:[%s3095_s2] ss:$0 sm:$0xff] }
 0x15a   : > { %v2282_v31 = vpop.eup %2281  ;;  %1601 = vst.msk [vmem:[%s2631_s10 + $0xb4] sm:$0xf] %vm1555_vm2, %v1932_v13  ;;  %v1937_v56 = vpack.c.bf16 %v1285_v53, %v1285_v53  ;;  %v1283_v20 = vmul.f32 %v2280_v47, %v2799_v51  ;;  %2301 = vpow2.f32 %v1778_v15  ;;  %v2968_v26 = vadd.f32 %v2387_v62, %v2749_v38  ;;  %v3100_v38 = vld [vmem:[#allocation2_spill] sm:$0xff] }
 0x15b   : > { %v2284_v22 = vpop.eup %2283  ;;  %1574 = vst.msk [vmem:[%s2631_s10 + $0x48] sm:$0xf] %vm1555_vm2, %v1905_v17  ;;  %v1903_v1 = vpack.c.bf16 %v1251_v37, %v1251_v37  ;;  %v1254_v2 = vmul.f32 %v2282_v31, %v2810_v52  ;;  %2303 = vpow2.f32 %v1810_v5  ;;  %v2971_v19 = vadd.f32 %v2387_v62, %v2751_v8 }
 0x15c   : > { %v2286_v46 = vpop.eup %2285  ;;  %1606 = vst.msk [vmem:[%s2631_s10 + $0xc8] sm:$0xf] %vm1555_vm2, %v1937_v56  ;;  %v1935_v54 = vpack.c.bf16 %v1283_v20, %v1283_v20  ;;  %v1286_v51 = vmul.f32 %v2284_v22, %v2821_v58  ;;  %2305 = vpow2.f32 %v1783_v35  ;;  %v2974_v35 = vadd.f32 %v2387_v62, %v2761_v14  ;;  %v3101_v14 = vld [vmem:[#allocation3_spill] sm:$0xff] }
 0x15d   : > { %v2288_v0 = vpop.eup %2287  ;;  %1572 = vst.msk [vmem:[%s2631_s10 + $0x40] sm:$0xf] %vm1555_vm2, %v1903_v1  ;;  %v1906_v25 = vpack.c.bf16 %v1254_v2, %v1254_v2  ;;  %v1252_v11 = vmul.f32 %v2286_v46, %v2828_v16  ;;  %2307 = vpow2.f32 %v1815_v40  ;;  %v2977_v47 = vadd.f32 %v2387_v62, %v2763_v6 }
 0x15e   : > { %v2290_v52 = vpop.eup %2289  ;;  %1604 = vst.msk [vmem:[%s2631_s10 + $0xc0] sm:$0xf] %vm1555_vm2, %v1935_v54  ;;  %v1938_v15 = vpack.c.bf16 %v1286_v51, %v1286_v51  ;;  %v1092_v42 = vadd.f32 1.0, %v2288_v0  ;;  %2309 = vpow2.f32 %v1781_v63  ;;  %v2980_v40 = vadd.f32 %v2387_v62, %v2786_v12 }
 0x15f   : > { %v2292_v10 = vpop.eup %2291  ;;  %1575 = vst.msk [vmem:[%s2631_s10 + $0x4c] sm:$0xf] %vm1555_vm2, %v1906_v25  ;;  %v1904_v58 = vpack.c.bf16 %v1252_v11, %v1252_v11  ;;  %v1065_v29 = vadd.f32 1.0, %v2290_v52  ;;  %2311 = vpow2.f32 %v1813_v9  ;;  %v2983_v31 = vadd.f32 %v2387_v62, %v3100_v38 }
 0x160   : > { %v2294_v23 = vpop.eup %2293  ;;  %1607 = vst.msk [vmem:[%s2631_s10 + $0xcc] sm:$0xf] %vm1555_vm2, %v1938_v15  ;;  %2313 = vrcp.f32 %v1092_v42  ;;  %v1097_v33 = vadd.f32 1.0, %v2292_v10  ;;  %v2986_v20 = vadd.f32 %v2387_v62, %v2792_v59  ;;  %v2989_v63 = vadd.f32 %v2387_v62, %v3101_v14 }
 0x161   : > { %v2296_v16 = vpop.eup %2295  ;;  %1573 = vst.msk [vmem:[%s2631_s10 + $0x44] sm:$0xf] %vm1555_vm2, %v1904_v58  ;;  %2315 = vrcp.f32 %v1065_v29  ;;  %v1063_v49 = vadd.f32 1.0, %v2294_v23  ;;  %v1784_v1 = vmul.f32 -1.442695, %v2968_v26 }
 0x162   : > { %v2298_v5 = vpop.eup %2297  ;;  %2317 = vrcp.f32 %v1097_v33  ;;  %v1095_v55 = vadd.f32 1.0, %v2296_v16  ;;  %v1816_v12 = vmul.f32 -1.442695, %v2971_v19  ;;  %v1782_v46 = vmul.f32 -1.442695, %v2974_v35 }
 0x163   : > { %v2300_v61 = vpop.eup %2299  ;;  %2319 = vrcp.f32 %v1063_v49  ;;  %v1066_v43 = vadd.f32 1.0, %v2298_v5  ;;  %v1814_v54 = vmul.f32 -1.442695, %v2977_v47  ;;  %v1787_v0 = vmul.f32 -1.442695, %v2980_v40 }
 0x164   : > { %v2302_v7 = vpop.eup %2301  ;;  %2321 = vrcp.f32 %v1095_v55  ;;  %v1098_v45 = vadd.f32 1.0, %v2300_v61  ;;  %v1819_v25 = vmul.f32 -1.442695, %v2983_v31  ;;  %v1785_v15 = vmul.f32 -1.442695, %v2986_v20 }
 0x165   : > { %v2304_v3 = vpop.eup %2303  ;;  %2323 = vrcp.f32 %v1066_v43  ;;  %v1064_v18 = vadd.f32 1.0, %v2302_v7  ;;  %v1817_v42 = vmul.f32 -1.442695, %v2989_v63  ;;  %v3019_v7 = vadd.f32 %v2387_v62, %v2814_v48 }
 0x166   : > { %v2306_v13 = vpop.eup %2305  ;;  %2325 = vrcp.f32 %v1098_v45  ;;  %v1096_v53 = vadd.f32 1.0, %v2304_v3 }
 0x167   : > { %v2308_v17 = vpop.eup %2307  ;;  %2327 = vrcp.f32 %v1064_v18  ;;  %v1069_v37 = vadd.f32 1.0, %v2306_v13 }
 0x168   : > { %v2310_v8 = vpop.eup %2309  ;;  %2329 = vrcp.f32 %v1096_v53  ;;  %v1101_v56 = vadd.f32 1.0, %v2308_v17 }
 0x169   : > { %v2312_v6 = vpop.eup %2311  ;;  %2331 = vrcp.f32 %v1069_v37  ;;  %v1067_v22 = vadd.f32 1.0, %v2310_v8  ;;  %v1818_v8 = vmul.f32 -1.442695, %v3019_v7 }
 0x16a   : > { %v2314_v2 = vpop.eup %2313  ;;  %2333 = vrcp.f32 %v1101_v56  ;;  %v1099_v9 = vadd.f32 1.0, %v2312_v6 }
 0x16b   : > { %v2316_v51 = vpop.eup %2315  ;;  %v1284_v59 = vmul.f32 %v2314_v2, %v2862_v60  ;;  %2335 = vrcp.f32 %v1067_v22  ;;  %v3003_v60 = vadd.f32 %v2387_v62, %v2801_v34  ;;  %v3013_v34 = vadd.f32 %v2387_v62, %v2812_v24 }
 0x16c   : > { %v2318_v11 = vpop.eup %2317  ;;  %v1257_v52 = vmul.f32 %v2316_v51, %v2866_v32  ;;  %2337 = vrcp.f32 %v1099_v9  ;;  %v3102_v32 = vld [vmem:[#allocation4_spill] sm:$0xff] }
 0x16d   : > { %v2320_v10 = vpop.eup %2319  ;;  %v1936_v58 = vpack.c.bf16 %v1284_v59, %v1284_v59  ;;  %v1289_v29 = vmul.f32 %v2318_v11, %v2870_v28  ;;  %2339 = vpow2.f32 %v1784_v1  ;;  %v3007_v49 = vadd.f32 %v2387_v62, %v3102_v32 }
 0x16e   : > { %v2322_v23 = vpop.eup %2321  ;;  %v1909_v33 = vpack.c.bf16 %v1257_v52, %v1257_v52  ;;  %v1255_v16 = vmul.f32 %v2320_v10, %v2875_v4  ;;  %2341 = vpow2.f32 %v1816_v12  ;;  %v1788_v24 = vmul.f32 -1.442695, %v3003_v60 }
 0x16f   : > { %v2324_v5 = vpop.eup %2323  ;;  %1605 = vst.msk [vmem:[%s2631_s10 + $0xc4] sm:$0xf] %vm1555_vm2, %v1936_v58  ;;  %v1941_v55 = vpack.c.bf16 %v1289_v29, %v1289_v29  ;;  %v1287_v61 = vmul.f32 %v2322_v23, %v2879_v39  ;;  %2343 = vpow2.f32 %v1782_v46  ;;  %v1820_v48 = vmul.f32 -1.442695, %v3007_v49 }
 0x170   : > { %v2326_v28 = vpop.eup %2325  ;;  %1578 = vst.msk [vmem:[%s2631_s10 + $0x58] sm:$0xf] %vm1555_vm2, %v1909_v33  ;;  %v1907_v4 = vpack.c.bf16 %v1255_v16, %v1255_v16  ;;  %v1258_v43 = vmul.f32 %v2324_v5, %v2883_v41  ;;  %2345 = vpow2.f32 %v1814_v54  ;;  %v1786_v17 = vmul.f32 -1.442695, %v3013_v34 }
 0x171   : > { %v2328_v45 = vpop.eup %2327  ;;  %1610 = vst.msk [vmem:[%s2631_s10 + $0xd8] sm:$0xf] %vm1555_vm2, %v1941_v55  ;;  %v1939_v39 = vpack.c.bf16 %v1287_v61, %v1287_v61  ;;  %v1290_v3 = vmul.f32 %v2326_v28, %v2887_v36  ;;  %2347 = vpow2.f32 %v1787_v0 }
 0x172   : > { %v2330_v18 = vpop.eup %2329  ;;  %1576 = vst.msk [vmem:[%s2631_s10 + $0x50] sm:$0xf] %vm1555_vm2, %v1907_v4  ;;  %v1910_v13 = vpack.c.bf16 %v1258_v43, %v1258_v43  ;;  %v1256_v41 = vmul.f32 %v2328_v45, %v2891_v50  ;;  %2349 = vpow2.f32 %v1819_v25 }
 0x173   : > { %v2332_v62 = vpop.eup %2331  ;;  %1608 = vst.msk [vmem:[%s2631_s10 + $0xd0] sm:$0xf] %vm1555_vm2, %v1939_v39  ;;  %v1942_v53 = vpack.c.bf16 %v1290_v3, %v1290_v3  ;;  %v1288_v36 = vmul.f32 %v2330_v18, %v2898_v57  ;;  %2351 = vpow2.f32 %v1785_v15 }
 0x174   : > { %v2334_v37 = vpop.eup %2333  ;;  %1579 = vst.msk [vmem:[%s2631_s10 + $0x5c] sm:$0xf] %vm1555_vm2, %v1910_v13  ;;  %v1908_v38 = vpack.c.bf16 %v1256_v41, %v1256_v41  ;;  %v1261_v50 = vmul.f32 %v2332_v62, %v2909_v21  ;;  %2353 = vpow2.f32 %v1817_v42 }
 0x175   : > { %v2336_v56 = vpop.eup %2335  ;;  %1611 = vst.msk [vmem:[%s2631_s10 + $0xdc] sm:$0xf] %vm1555_vm2, %v1942_v53  ;;  %v1940_v14 = vpack.c.bf16 %v1288_v36, %v1288_v36  ;;  %v1293_v57 = vmul.f32 %v2334_v37, %v2918_v27  ;;  %2355 = vpow2.f32 %v1788_v24 }
 0x176   : > { %v2338_v6 = vpop.eup %2337  ;;  %1577 = vst.msk [vmem:[%s2631_s10 + $0x54] sm:$0xf] %vm1555_vm2, %v1908_v38  ;;  %v1913_v22 = vpack.c.bf16 %v1261_v50, %v1261_v50  ;;  %v1259_v1 = vmul.f32 %v2336_v56, %v2925_v44  ;;  %2357 = vpow2.f32 %v1820_v48 }
 0x177   : > { %v2340_v21 = vpop.eup %2339  ;;  %1609 = vst.msk [vmem:[%s2631_s10 + $0xd4] sm:$0xf] %vm1555_vm2, %v1940_v14  ;;  %v1945_v12 = vpack.c.bf16 %v1293_v57, %v1293_v57  ;;  %v1291_v2 = vmul.f32 %v2338_v6, %v2932_v30  ;;  %2359 = vpow2.f32 %v1786_v17 }
 0x178   : > { %v2342_v9 = vpop.eup %2341  ;;  %1582 = vst.msk [vmem:[%s2631_s10 + $0x68] sm:$0xf] %vm1555_vm2, %v1913_v22  ;;  %v1911_v27 = vpack.c.bf16 %v1259_v1, %v1259_v1  ;;  %v1070_v46 = vadd.f32 1.0, %v2340_v21  ;;  %2361 = vpow2.f32 %v1818_v8 }
 0x179   : > { %v2344_v54 = vpop.eup %2343  ;;  %1614 = vst.msk [vmem:[%s2631_s10 + $0xe8] sm:$0xf] %vm1555_vm2, %v1945_v12  ;;  %v1943_v44 = vpack.c.bf16 %v1291_v2, %v1291_v2  ;;  %v1102_v51 = vadd.f32 1.0, %v2342_v9 }
 0x17a   : > { %v2346_v59 = vpop.eup %2345  ;;  %1580 = vst.msk [vmem:[%s2631_s10 + $0x60] sm:$0xf] %vm1555_vm2, %v1911_v27  ;;  %2363 = vrcp.f32 %v1070_v46  ;;  %v1068_v0 = vadd.f32 1.0, %v2344_v54 }
 0x17b   : > { %v2348_v25 = vpop.eup %2347  ;;  %1612 = vst.msk [vmem:[%s2631_s10 + $0xe0] sm:$0xf] %vm1555_vm2, %v1943_v44  ;;  %2365 = vrcp.f32 %v1102_v51  ;;  %v1100_v30 = vadd.f32 1.0, %v2346_v59 }
 0x17c   : > { %v2350_v11 = vpop.eup %2349  ;;  %2367 = vrcp.f32 %v1068_v0  ;;  %v1073_v52 = vadd.f32 1.0, %v2348_v25 }
 0x17d   : > { %v2352_v15 = vpop.eup %2351  ;;  %2369 = vrcp.f32 %v1100_v30  ;;  %v1105_v42 = vadd.f32 1.0, %v2350_v11 }
 0x17e   : > { %v2354_v10 = vpop.eup %2353  ;;  %2371 = vrcp.f32 %v1073_v52  ;;  %v1071_v58 = vadd.f32 1.0, %v2352_v15 }
 0x17f   : > { %v2356_v29 = vpop.eup %2355  ;;  %2373 = vrcp.f32 %v1105_v42  ;;  %v1103_v23 = vadd.f32 1.0, %v2354_v10 }
 0x180   : > { %v2358_v33 = vpop.eup %2357  ;;  %2375 = vrcp.f32 %v1071_v58  ;;  %v1074_v16 = vadd.f32 1.0, %v2356_v29 }
 0x181   : > { %v2360_v32 = vpop.eup %2359  ;;  %2377 = vrcp.f32 %v1103_v23  ;;  %v1106_v5 = vadd.f32 1.0, %v2358_v33 }
 0x182   : > { %v2362_v55 = vpop.eup %2361  ;;  %2379 = vrcp.f32 %v1074_v16  ;;  %v1072_v61 = vadd.f32 1.0, %v2360_v32 }
 0x183   : > { %2381 = vrcp.f32 %v1106_v5  ;;  %v1104_v28 = vadd.f32 1.0, %v2362_v55 }
 0x184   : > { %v2364_v4 = vpop.eup %2363  ;;  %2383 = vrcp.f32 %v1072_v61 }
 0x185   : > { %v2366_v43 = vpop.eup %2365  ;;  %v1262_v45 = vmul.f32 %v2364_v4, %v2968_v26  ;;  %2385 = vrcp.f32 %v1104_v28 }
 0x186   : > { %v2368_v39 = vpop.eup %2367  ;;  %v1294_v3 = vmul.f32 %v2366_v43, %v2971_v19 }
 0x187   : > { %v2370_v24 = vpop.eup %2369  ;;  %v1914_v18 = vpack.c.bf16 %v1262_v45, %v1262_v45  ;;  %v1260_v13 = vmul.f32 %v2368_v39, %v2974_v35 }
 0x188   : > { %v2372_v41 = vpop.eup %2371  ;;  %v1946_v48 = vpack.c.bf16 %v1294_v3, %v1294_v3  ;;  %v1292_v62 = vmul.f32 %v2370_v24, %v2977_v47 }
 0x189   : > { %v2374_v53 = vpop.eup %2373  ;;  %1583 = vst.msk [vmem:[%s2631_s10 + $0x6c] sm:$0xf] %vm1555_vm2, %v1914_v18  ;;  %v1912_v36 = vpack.c.bf16 %v1260_v13, %v1260_v13  ;;  %v1265_v26 = vmul.f32 %v2372_v41, %v2980_v40 }
 0x18a   : > { %v2376_v17 = vpop.eup %2375  ;;  %1615 = vst.msk [vmem:[%s2631_s10 + $0xec] sm:$0xf] %vm1555_vm2, %v1946_v48  ;;  %v1944_v19 = vpack.c.bf16 %v1292_v62, %v1292_v62  ;;  %v1297_v37 = vmul.f32 %v2374_v53, %v2983_v31 }
 0x18b   : > { %v2378_v35 = vpop.eup %2377  ;;  %1581 = vst.msk [vmem:[%s2631_s10 + $0x64] sm:$0xf] %vm1555_vm2, %v1912_v36  ;;  %v1917_v38 = vpack.c.bf16 %v1265_v26, %v1265_v26  ;;  %v1263_v47 = vmul.f32 %v2376_v17, %v2986_v20 }
 0x18c   : > { %v2380_v50 = vpop.eup %2379  ;;  %1613 = vst.msk [vmem:[%s2631_s10 + $0xe4] sm:$0xf] %vm1555_vm2, %v1944_v19  ;;  %v1949_v8 = vpack.c.bf16 %v1297_v37, %v1297_v37  ;;  %v1295_v40 = vmul.f32 %v2378_v35, %v2989_v63 }
 0x18d   : > { %v2382_v56 = vpop.eup %2381  ;;  %1586 = vst.msk [vmem:[%s2631_s10 + $0x78] sm:$0xf] %vm1555_vm2, %v1917_v38  ;;  %v1915_v31 = vpack.c.bf16 %v1263_v47, %v1263_v47  ;;  %v1266_v14 = vmul.f32 %v2380_v50, %v3003_v60 }
 0x18e   : > { %v2384_v57 = vpop.eup %2383  ;;  %1618 = vst.msk [vmem:[%s2631_s10 + $0xf8] sm:$0xf] %vm1555_vm2, %v1949_v8  ;;  %v1947_v20 = vpack.c.bf16 %v1295_v40, %v1295_v40  ;;  %v1298_v6 = vmul.f32 %v2382_v56, %v3007_v49 }
 0x18f   : > { %v2386_v22 = vpop.eup %2385  ;;  %1584 = vst.msk [vmem:[%s2631_s10 + $0x70] sm:$0xf] %vm1555_vm2, %v1915_v31  ;;  %v1918_v63 = vpack.c.bf16 %v1266_v14, %v1266_v14  ;;  %v1264_v1 = vmul.f32 %v2384_v57, %v3013_v34 }
 0x190   : > { %1616 = vst.msk [vmem:[%s2631_s10 + $0xf0] sm:$0xf] %vm1555_vm2, %v1947_v20  ;;  %v1950_v21 = vpack.c.bf16 %v1298_v6, %v1298_v6  ;;  %v1296_v12 = vmul.f32 %v2386_v22, %v3019_v7 }
 0x191   : > { %1587 = vst.msk [vmem:[%s2631_s10 + $0x7c] sm:$0xf] %vm1555_vm2, %v1918_v63  ;;  %v1916_v60 = vpack.c.bf16 %v1264_v1, %v1264_v1 }
 0x192   : > { %1619 = vst.msk [vmem:[%s2631_s10 + $0xfc] sm:$0xf] %vm1555_vm2, %v1950_v21  ;;  %v1948_v2 = vpack.c.bf16 %v1296_v12, %v1296_v12 }
 0x193   : > { %1585 = vst.msk [vmem:[%s2631_s10 + $0x74] sm:$0xf] %vm1555_vm2, %v1916_v60 }
 0x194   : > { %1617 = vst.msk [vmem:[%s2631_s10 + $0xf4] sm:$0xf] %vm1555_vm2, %v1948_v2 }
 0x195 PF: > { %s13_s12 = sadd.s32 1, %s2394_s12  }
 0x196   : > { %p10_p4 = scmp.ge.s32.totalorder %s13_s12, 6  }
 0x198   :  { %12 = sbr.rel (!%p10_p4) target bundleno = 1 (0x1), region = 62 }

// kernel: yolox_forward.37
= control target key start
LH: loop header
LB: loop body
LE: loop exit
PB: predicated region body
PF: predicated region fallthrough
CT: control target
= control target key end

     0   :  { %vm282_vm0 = vcmask 588800   ;;  %vm379_vm1 = vcmask 1043456   ;;  %vm1376_vm2 = vcmask 125952   ;;  %s2979_s1 = inlined_call_operand.vmem [shape: bf16[72,16], index: 1, kind: input, shape index: {}]   ;;  %s2980_s0 = inlined_call_operand.vmem [shape: bf16[512,72], index: 0, kind: input, shape index: {}]   ;;  %s2981_s2 = inlined_call_operand.vmem [shape: f32[1,16], index: 2, kind: input, shape index: {}]   ;;  %s2982_s3 = inlined_call_operand.vmem [shape: bf16[512,16], index: 3, kind: output, shape index: {}]  }
   0x1   :  { %v1830_v0 = vld [vmem:[%s2979_s1] sm:$0xff]   ;;  %v1831_v1 = vld [vmem:[%s2979_s1 + $0x8] sm:$0xff]   ;;  %v1832_v2 = vld [vmem:[%s2979_s1 + $0x10] sm:$0xff]  }
   0x2   :  { %1744 = vmatprep.subr.bf16.mxu0 %v1830_v0  ;;  %1818 = vmatprep.subr.bf16.mxu1 %v1830_v0  ;;  %v1835_v3 = vld [vmem:[%s2980_s0] sm:$0xff]   ;;  %v1833_v5 = vld [vmem:[%s2979_s1 + $0x18] sm:$0xff]   ;;  %v1837_v8 = vld [vmem:[%s2980_s0 + $0x8] sm:$0xff]  }
   0x3   :  { %1745 = vmatpush3.bf16.msra.mxu0 %v1830_v0  ;;  %1823 = vmatpush3.bf16.msra.mxu1 %v1830_v0  ;;  %v1836_v4 = vld [vmem:[%s2980_s0 + $0x80] sm:$0xff]   ;;  %v1838_v9 = vld [vmem:[%s2980_s0 + $0x88] sm:$0xff]   ;;  %v1839_v10 = vld [vmem:[%s2980_s0 + $0x10] sm:$0xff]  }
   0x4   :  { %1746 = vmatprep.subr.bf16.mxu0 %v1831_v1  ;;  %1819 = vmatprep.subr.bf16.mxu1 %v1831_v1  ;;  %v1834_v6 = vld [vmem:[%s2979_s1 + $0x20] ss:$0 sps:$4 sm:$0xff]   ;;  %v1840_v11 = vld [vmem:[%s2980_s0 + $0x90] sm:$0xff]   ;;  %v1841_v12 = vld [vmem:[%s2980_s0 + $0x18] sm:$0xff]  }
   0x5   :  { %1754 = vmatprep.mubr.msk.bf16.mxu0 %vm282_vm0, %v1835_v3  ;;  %1786 = vmatprep.mubr.msk.bf16.mxu1 %vm282_vm0, %v1836_v4  ;;  %v381_v7 = vsel %vm379_vm1, %v1834_v6, 0  ;;  %v1842_v13 = vld [vmem:[%s2980_s0 + $0x98] sm:$0xff]   ;;  %v1843_v14 = vld [vmem:[%s2980_s0 + $0x20] sm:$0xff]   ;;  %v1845_v16 = vld [vmem:[%s2980_s0 + $0x28] sm:$0xff]  }
   0x6   :  { %v1844_v15 = vld [vmem:[%s2980_s0 + $0xa0] sm:$0xff]   ;;  %v1846_v17 = vld [vmem:[%s2980_s0 + $0xa8] sm:$0xff]   ;;  %v1847_v18 = vld [vmem:[%s2980_s0 + $0x30] sm:$0xff]  }
   0x7   :  { %1747 = vmatpush3.bf16.msra.mxu0 %v1831_v1  ;;  %1824 = vmatpush3.bf16.msra.mxu1 %v1831_v1  ;;  %v1848_v19 = vld [vmem:[%s2980_s0 + $0xb0] sm:$0xff]   ;;  %v1849_v20 = vld [vmem:[%s2980_s0 + $0x38] sm:$0xff]   ;;  %v1851_v22 = vld [vmem:[%s2980_s0 + $0x40] sm:$0xff]  }
   0x8   :  { %1748 = vmatprep.subr.bf16.mxu0 %v1832_v2  ;;  %1820 = vmatprep.subr.bf16.mxu1 %v1832_v2  ;;  %v1850_v21 = vld [vmem:[%s2980_s0 + $0xb8] sm:$0xff]   ;;  %v1852_v23 = vld [vmem:[%s2980_s0 + $0xc0] sm:$0xff]   ;;  %v1853_v24 = vld [vmem:[%s2980_s0 + $0x48] sm:$0xff]  }
   0x9   :  { %v1854_v25 = vld [vmem:[%s2980_s0 + $0xc8] sm:$0xff]   ;;  %v1855_v26 = vld [vmem:[%s2980_s0 + $0x50] sm:$0xff]   ;;  %v1857_v28 = vld [vmem:[%s2980_s0 + $0x58] sm:$0xff]  }
   0xa   :  { %v1856_v27 = vld [vmem:[%s2980_s0 + $0xd0] sm:$0xff]   ;;  %v1858_v29 = vld [vmem:[%s2980_s0 + $0xd8] sm:$0xff]   ;;  %v1859_v30 = vld [vmem:[%s2980_s0 + $0x60] sm:$0xff]  }
   0xb   :  { %1749 = vmatpush3.bf16.msra.mxu0 %v1832_v2  ;;  %1825 = vmatpush3.bf16.msra.mxu1 %v1832_v2  ;;  %v1860_v31 = vld [vmem:[%s2980_s0 + $0xe0] sm:$0xff]   ;;  %v1861_v32 = vld [vmem:[%s2980_s0 + $0x68] sm:$0xff]   ;;  %v1863_v34 = vld [vmem:[%s2980_s0 + $0x70] sm:$0xff]  }
   0xc   :  { %1750 = vmatprep.subr.bf16.mxu0 %v1833_v5  ;;  %1821 = vmatprep.subr.bf16.mxu1 %v1833_v5  ;;  %v1862_v33 = vld [vmem:[%s2980_s0 + $0xe8] sm:$0xff]   ;;  %v1864_v35 = vld [vmem:[%s2980_s0 + $0xf0] sm:$0xff]   ;;  %v1865_v36 = vld [vmem:[%s2980_s0 + $0x78] sm:$0xff]  }
   0xd   :  { %v1866_v37 = vld [vmem:[%s2980_s0 + $0xf8] sm:$0xff]   ;;  %v2290_v38 = vld [vmem:[%s2981_s2] ss:$0 sm:$0xff] }
   0xf   :  { %1751 = vmatpush3.bf16.msra.mxu0 %v1833_v5  ;;  %1826 = vmatpush3.bf16.msra.mxu1 %v1833_v5 }
  0x10   :  { %1828 = vmatprep.subr.msk.bf16.mxu0 %vm379_vm1, %v1834_v6  ;;  %1829 = vmatprep.subr.msk.bf16.mxu1 %vm379_vm1, %v1834_v6 }
  0x13   :  { %1753 = vmatpush3.bf16.msra.mxu0 %v381_v7  ;;  %1827 = vmatpush3.bf16.msra.mxu1 %v381_v7 }
  0x16   :  { %1755 = vmatmul.mubr.msk.bf16.vlgmr.msra.gmra.mrb[0].mxu0 %vm282_vm0, %v1837_v8  ;;  %1787 = vmatmul.mubr.msk.bf16.vlgmr.msra.gmra.mrb[0].mxu1 %vm282_vm0, %v1838_v9 }
  0x17   :  { %1758 = vmatprep.mubr.msk.bf16.mxu0 %vm282_vm0, %v1839_v10  ;;  %1790 = vmatprep.mubr.msk.bf16.mxu1 %vm282_vm0, %v1840_v11 }
  0x1e   :  { %1759 = vmatmul.mubr.msk.bf16.gmra.mrb[4].mxu0 %vm282_vm0, %v1841_v12  ;;  %1791 = vmatmul.mubr.msk.bf16.gmra.mrb[4].mxu1 %vm282_vm0, %v1842_v13 }
  0x1f   :  { %1762 = vmatprep.mubr.msk.bf16.mxu0 %vm282_vm0, %v1843_v14  ;;  %1794 = vmatprep.mubr.msk.bf16.mxu1 %vm282_vm0, %v1844_v15 }
  0x26   :  { %1763 = vmatmul.mubr.msk.bf16.gmra.mrb[8].mxu0 %vm282_vm0, %v1845_v16  ;;  %1795 = vmatmul.mubr.msk.bf16.gmra.mrb[8].mxu1 %vm282_vm0, %v1846_v17 }
  0x27   :  { %1766 = vmatprep.mubr.msk.bf16.mxu0 %vm282_vm0, %v1847_v18  ;;  %1798 = vmatprep.mubr.msk.bf16.mxu1 %vm282_vm0, %v1848_v19 }
  0x2e   :  { %1767 = vmatmul.mubr.msk.bf16.gmra.mrb[12].mxu0 %vm282_vm0, %v1849_v20  ;;  %1799 = vmatmul.mubr.msk.bf16.gmra.mrb[12].mxu1 %vm282_vm0, %v1850_v21 }
  0x2f   :  { %1770 = vmatprep.mubr.msk.bf16.mxu0 %vm282_vm0, %v1851_v22  ;;  %1802 = vmatprep.mubr.msk.bf16.mxu1 %vm282_vm0, %v1852_v23 }
  0x36   :  { %1771 = vmatmul.mubr.msk.bf16.gmra.mrb[16].mxu0 %vm282_vm0, %v1853_v24  ;;  %1803 = vmatmul.mubr.msk.bf16.gmra.mrb[16].mxu1 %vm282_vm0, %v1854_v25 }
  0x37   :  { %1774 = vmatprep.mubr.msk.bf16.mxu0 %vm282_vm0, %v1855_v26  ;;  %1806 = vmatprep.mubr.msk.bf16.mxu1 %vm282_vm0, %v1856_v27 }
  0x3e   :  { %1775 = vmatmul.mubr.msk.bf16.gmra.mrb[20].mxu0 %vm282_vm0, %v1857_v28  ;;  %1807 = vmatmul.mubr.msk.bf16.gmra.mrb[20].mxu1 %vm282_vm0, %v1858_v29 }
  0x3f   :  { %1778 = vmatprep.mubr.msk.bf16.mxu0 %vm282_vm0, %v1859_v30  ;;  %1810 = vmatprep.mubr.msk.bf16.mxu1 %vm282_vm0, %v1860_v31 }
  0x46   :  { %1779 = vmatmul.mubr.msk.bf16.gmra.mrb[24].mxu0 %vm282_vm0, %v1861_v32  ;;  %1811 = vmatmul.mubr.msk.bf16.gmra.mrb[24].mxu1 %vm282_vm0, %v1862_v33 }
  0x47   :  { %1782 = vmatprep.mubr.msk.bf16.mxu0 %vm282_vm0, %v1863_v34  ;;  %1814 = vmatprep.mubr.msk.bf16.mxu1 %vm282_vm0, %v1864_v35 }
  0x4e   :  { %1783 = vmatmul.mubr.msk.bf16.gmra.mrb[28].mxu0 %vm282_vm0, %v1865_v36  ;;  %1815 = vmatmul.mubr.msk.bf16.gmra.mrb[28].mxu1 %vm282_vm0, %v1866_v37 }
  0xe9   :  { %v1756_v39 = vpop.f32.mrb[0].mxu0  ;;  %v1788_v40 = vpop.f32.mrb[0].mxu1 }
  0xea   :  { %v2293_v41 = vadd.f32 %v1756_v39, %v2290_v38  ;;  %v2296_v42 = vadd.f32 %v1788_v40, %v2290_v38  ;;  %v417_v43 = vpop.f32.mrb[1].mxu0  ;;  %v545_v44 = vpop.f32.mrb[1].mxu1 }
  0xeb   :  { %v2299_v45 = vadd.f32 %v2290_v38, %v417_v43  ;;  %v2302_v46 = vadd.f32 %v2290_v38, %v545_v44  ;;  %v1757_v47 = vpop.f32.mrb[2].mxu0  ;;  %v1789_v48 = vpop.f32.mrb[2].mxu1 }
  0xec   :  { %v1517_v49 = vmul.f32 -1.442695, %v2293_v41  ;;  %v1549_v50 = vmul.f32 -1.442695, %v2296_v42  ;;  %v2307_v51 = vadd.f32 %v1757_v47, %v2290_v38  ;;  %v2310_v52 = vadd.f32 %v1789_v48, %v2290_v38  ;;  %v420_v53 = vpop.f32.mrb[3].mxu0  ;;  %v548_v54 = vpop.f32.mrb[3].mxu1 }
  0xed   :  { %v1515_v55 = vmul.f32 -1.442695, %v2299_v45  ;;  %v1547_v56 = vmul.f32 -1.442695, %v2302_v46  ;;  %v2315_v57 = vadd.f32 %v2290_v38, %v420_v53  ;;  %v2318_v58 = vadd.f32 %v2290_v38, %v548_v54 }
  0xee   :  { %1867 = vpow2.f32 %v1517_v49  ;;  %v1518_v59 = vmul.f32 -1.442695, %v2307_v51  ;;  %v1550_v60 = vmul.f32 -1.442695, %v2310_v52 }
  0xef   :  { %1869 = vpow2.f32 %v1549_v50  ;;  %v1516_v61 = vmul.f32 -1.442695, %v2315_v57  ;;  %v1548_v62 = vmul.f32 -1.442695, %v2318_v58 }
  0xf0   :  { %1871 = vpow2.f32 %v1515_v55 }
  0xf1   :  { %1873 = vpow2.f32 %v1547_v56  ;;  %v1760_v63 = vpop.f32.mrb[4].mxu0  ;;  %v1792_v0 = vpop.f32.mrb[4].mxu1 }
  0xf2   :  { %1875 = vpow2.f32 %v1518_v59  ;;  %v2325_v1 = vadd.f32 %v1760_v63, %v2290_v38  ;;  %v2328_v2 = vadd.f32 %v1792_v0, %v2290_v38  ;;  %v433_v3 = vpop.f32.mrb[5].mxu0  ;;  %v561_v4 = vpop.f32.mrb[5].mxu1 }
  0xf3   :  { %1877 = vpow2.f32 %v1550_v60  ;;  %v2331_v5 = vadd.f32 %v2290_v38, %v433_v3  ;;  %v2334_v6 = vadd.f32 %v2290_v38, %v561_v4  ;;  %v1761_v7 = vpop.f32.mrb[6].mxu0  ;;  %v1793_v8 = vpop.f32.mrb[6].mxu1 }
  0xf4   :  { %1879 = vpow2.f32 %v1516_v61  ;;  %v1521_v9 = vmul.f32 -1.442695, %v2325_v1  ;;  %v1553_v10 = vmul.f32 -1.442695, %v2328_v2  ;;  %v2339_v11 = vadd.f32 %v1761_v7, %v2290_v38  ;;  %v436_v12 = vpop.f32.mrb[7].mxu0  ;;  %v564_v13 = vpop.f32.mrb[7].mxu1 }
  0xf5   :  { %1881 = vpow2.f32 %v1548_v62  ;;  %v1519_v14 = vmul.f32 -1.442695, %v2331_v5  ;;  %v1551_v15 = vmul.f32 -1.442695, %v2334_v6  ;;  %v2345_v35 = vadd.f32 %v1793_v8, %v2290_v38 }
  0xf6   :  { %1883 = vpow2.f32 %v1521_v9  ;;  %v1522_v16 = vmul.f32 -1.442695, %v2339_v11  ;;  %v2348_v40 = vadd.f32 %v2290_v38, %v436_v12  ;;  %v2351_v47 = vadd.f32 %v2290_v38, %v564_v13 }
  0xf7   :  { %1885 = vpow2.f32 %v1553_v10  ;;  %v1554_v55 = vmul.f32 -1.442695, %v2345_v35 }
  0xf8   :  { %v1868_v17 = vpop.eup %1867  ;;  %1887 = vpow2.f32 %v1519_v14  ;;  %v1520_v62 = vmul.f32 -1.442695, %v2348_v40  ;;  %v1552_v8 = vmul.f32 -1.442695, %v2351_v47 }
  0xf9   :  { %v1870_v18 = vpop.eup %1869  ;;  %v866_v19 = vadd.f32 1.0, %v1868_v17  ;;  %1889 = vpow2.f32 %v1551_v15  ;;  %v1764_v20 = vpop.f32.mrb[8].mxu0 }
  0xfa   :  { %v1796_v21 = vpop.f32.mrb[8].mxu1  ;;  %v1872_v22 = vpop.eup %1871  ;;  %v898_v23 = vadd.f32 1.0, %v1870_v18  ;;  %1891 = vpow2.f32 %v1522_v16  ;;  %v2354_v50 = vadd.f32 %v1764_v20, %v2290_v38 }
  0xfb   :  { %v449_v24 = vpop.f32.mrb[9].mxu0  ;;  %v577_v25 = vpop.f32.mrb[9].mxu1  ;;  %1893 = vrcp.f32 %v866_v19  ;;  %v864_v27 = vadd.f32 1.0, %v1872_v22  ;;  %v2358_v56 = vadd.f32 %v1796_v21, %v2290_v38 }
  0xfc   :  { %v1874_v26 = vpop.eup %1873  ;;  %v1765_v28 = vpop.f32.mrb[10].mxu0  ;;  %1895 = vrcp.f32 %v898_v23  ;;  %v2364_v63 = vadd.f32 %v2290_v38, %v449_v24  ;;  %v2372_v9 = vadd.f32 %v2290_v38, %v577_v25  ;;  %v1525_v15 = vmul.f32 -1.442695, %v2354_v50 }
  0xfd   :  { %v1797_v29 = vpop.f32.mrb[10].mxu1  ;;  %v1876_v30 = vpop.eup %1875  ;;  %v896_v31 = vadd.f32 1.0, %v1874_v26  ;;  %1897 = vrcp.f32 %v864_v27  ;;  %v1557_v20 = vmul.f32 -1.442695, %v2358_v56  ;;  %v2385_v21 = vadd.f32 %v1765_v28, %v2290_v38 }
  0xfe   :  { %v452_v32 = vpop.f32.mrb[11].mxu0  ;;  %v1878_v33 = vpop.eup %1877  ;;  %v867_v34 = vadd.f32 1.0, %v1876_v30  ;;  %v1523_v25 = vmul.f32 -1.442695, %v2364_v63  ;;  %v2392_v26 = vadd.f32 %v1797_v29, %v2290_v38 }
  0xff   :  { %v580_v36 = vpop.f32.mrb[11].mxu1  ;;  %v1880_v37 = vpop.eup %1879  ;;  %1899 = vrcp.f32 %v896_v31  ;;  %v899_v39 = vadd.f32 1.0, %v1878_v33  ;;  %v1555_v31 = vmul.f32 -1.442695, %v2372_v9  ;;  %v2397_v28 = vadd.f32 %v2290_v38, %v452_v32 }
 0x100   :  { %v1882_v43 = vpop.eup %1881  ;;  %1901 = vrcp.f32 %v867_v34  ;;  %v865_v44 = vadd.f32 1.0, %v1880_v37 }
 0x101   :  { %v1884_v48 = vpop.eup %1883  ;;  %1903 = vrcp.f32 %v899_v39  ;;  %v897_v49 = vadd.f32 1.0, %v1882_v43  ;;  %v2360_v59 = vpop.f32.mrb[12].mxu0 }
 0x102   :  { %v1886_v53 = vpop.eup %1885  ;;  %1905 = vrcp.f32 %v865_v44  ;;  %v870_v54 = vadd.f32 1.0, %v1884_v48  ;;  %v2366_v0 = vpop.f32.mrb[12].mxu1 }
 0x103   :  { %v1888_v60 = vpop.eup %1887  ;;  %1907 = vrcp.f32 %v897_v49  ;;  %v902_v61 = vadd.f32 1.0, %v1886_v53  ;;  %v2368_v3 = vpop.f32.mrb[13].mxu0  ;;  %v1558_v49 = vmul.f32 -1.442695, %v2392_v26 }
 0x104   :  { %v1890_v4 = vpop.eup %1889  ;;  %1909 = vrcp.f32 %v870_v54  ;;  %v868_v7 = vadd.f32 1.0, %v1888_v60  ;;  %v2374_v10 = vpop.f32.mrb[13].mxu1 }
 0x105   :  { %v2376_v12 = vpop.f32.mrb[14].mxu0  ;;  %v1892_v13 = vpop.eup %1891  ;;  %1911 = vrcp.f32 %v902_v61  ;;  %v900_v14 = vadd.f32 1.0, %v1890_v4 }
 0x106   :  { %v2379_v16 = vpop.f32.mrb[14].mxu1  ;;  %v2381_v17 = vpop.f32.mrb[15].mxu0  ;;  %1913 = vrcp.f32 %v868_v7  ;;  %v871_v19 = vadd.f32 1.0, %v1892_v13 }
 0x107   :  { %v1894_v18 = vpop.eup %1893  ;;  %v2387_v22 = vpop.f32.mrb[15].mxu1  ;;  %1915 = vrcp.f32 %v900_v14 }
 0x108   :  { %v1896_v23 = vpop.eup %1895  ;;  %v1058_v24 = vmul.f32 %v1894_v18, %v2293_v41  ;;  %1917 = vrcp.f32 %v871_v19  ;;  %v2401_v41 = vadd.f32 %v2290_v38, %v580_v36 }
 0x109   :  { %v1898_v27 = vpop.eup %1897  ;;  %v1090_v30 = vmul.f32 %v1896_v23, %v2296_v42  ;;  %1919 = vpow2.f32 %v1554_v55  ;;  %v1526_v42 = vmul.f32 -1.442695, %v2385_v21  ;;  %v2405_v44 = vpop.f32.mrb[16].mxu0 }
 0x10a   :  { %v1900_v33 = vpop.eup %1899  ;;  %v1645_v34 = vpack.c.bf16 %v1058_v24, %v1058_v24  ;;  %v1056_v37 = vmul.f32 %v1898_v27, %v2299_v45  ;;  %1921 = vpow2.f32 %v1520_v62  ;;  %v2407_v48 = vpop.f32.mrb[16].mxu1  ;;  %v1556_v23 = vmul.f32 -1.442695, %v2401_v41 }
 0x10b   :  { %v1902_v39 = vpop.eup %1901  ;;  %v1677_v29 = vpack.c.bf16 %v1090_v30, %v1090_v30  ;;  %v1088_v43 = vmul.f32 %v1900_v33, %v2302_v46  ;;  %1923 = vpow2.f32 %v1552_v8  ;;  %v2415_v46 = vpop.f32.mrb[17].mxu0 }
 0x10c   :  { %v1904_v32 = vpop.eup %1903  ;;  %1379 = vst.msk [vmem:[%s2982_s3 + $0x8] sm:$0xf] %vm1376_vm2, %v1645_v34  ;;  %v1643_v45 = vpack.c.bf16 %v1056_v37, %v1056_v37  ;;  %v1059_v36 = vmul.f32 %v1902_v39, %v2307_v51  ;;  %v2417_v53 = vpop.f32.mrb[17].mxu1  ;;  %1925 = vpow2.f32 %v1525_v15  ;;  %v2426_v51 = vadd.f32 %v2360_v59, %v2290_v38 }
 0x10d   :  { %v1906_v54 = vpop.eup %1905  ;;  %1411 = vst.msk [vmem:[%s2982_s3 + $0x88] sm:$0xf] %vm1376_vm2, %v1677_v29  ;;  %v1675_v55 = vpack.c.bf16 %v1088_v43, %v1088_v43  ;;  %v1091_v60 = vmul.f32 %v1904_v32, %v2310_v52  ;;  %v2428_v61 = vpop.f32.mrb[18].mxu0  ;;  %1927 = vpow2.f32 %v1557_v20  ;;  %v2439_v52 = vadd.f32 %v2366_v0, %v2290_v38 }
 0x10e   :  { %v2430_v62 = vpop.f32.mrb[18].mxu1  ;;  %v1908_v4 = vpop.eup %1907  ;;  %1377 = vst.msk [vmem:[%s2982_s3] sm:$0xf] %vm1376_vm2, %v1643_v45  ;;  %v1646_v7 = vpack.c.bf16 %v1059_v36, %v1059_v36  ;;  %v1057_v8 = vmul.f32 %v1906_v54, %v2315_v57  ;;  %1929 = vpow2.f32 %v1523_v25  ;;  %v1524_v57 = vmul.f32 -1.442695, %v2397_v28 }
 0x10f   :  { %v2441_v59 = vpop.f32.mrb[19].mxu0  ;;  %v2443_v13 = vpop.f32.mrb[19].mxu1  ;;  %1409 = vst.msk [vmem:[%s2982_s3 + $0x80] sm:$0xf] %vm1376_vm2, %v1675_v55  ;;  %v1678_v15 = vpack.c.bf16 %v1091_v60, %v1091_v60  ;;  %v1089_v18 = vmul.f32 %v1908_v4, %v2318_v58  ;;  %1931 = vpow2.f32 %v1555_v31  ;;  %v1529_v27 = vmul.f32 -1.442695, %v2426_v51 }
 0x110   :  { %v1910_v14 = vpop.eup %1909  ;;  %1380 = vst.msk [vmem:[%s2982_s3 + $0xc] sm:$0xf] %vm1376_vm2, %v1646_v7  ;;  %v1644_v0 = vpack.c.bf16 %v1057_v8, %v1057_v8  ;;  %1933 = vpow2.f32 %v1526_v42  ;;  %v1561_v33 = vmul.f32 -1.442695, %v2439_v52 }
 0x111   :  { %v1912_v19 = vpop.eup %1911  ;;  %v1062_v20 = vmul.f32 %v1910_v14, %v2325_v1  ;;  %1412 = vst.msk [vmem:[%s2982_s3 + $0x8c] sm:$0xf] %vm1376_vm2, %v1678_v15  ;;  %v1676_v58 = vpack.c.bf16 %v1089_v18, %v1089_v18  ;;  %1935 = vpow2.f32 %v1558_v49  ;;  %v2474_v39 = vpop.f32.mrb[20].mxu0 }
 0x112   :  { %v1914_v24 = vpop.eup %1913  ;;  %v1094_v25 = vmul.f32 %v1912_v19, %v2328_v2  ;;  %1378 = vst.msk [vmem:[%s2982_s3 + $0x4] sm:$0xf] %vm1376_vm2, %v1644_v0  ;;  %1937 = vpow2.f32 %v1524_v57  ;;  %v2476_v29 = vpop.f32.mrb[20].mxu1  ;;  %v2513_v19 = vadd.f32 %v2290_v38, %v2368_v3  ;;  %v2522_v3 = vadd.f32 %v2290_v38, %v2374_v10 }
 0x113   :  { %v1916_v30 = vpop.eup %1915  ;;  %v1649_v1 = vpack.c.bf16 %v1062_v20, %v1062_v20  ;;  %v1060_v31 = vmul.f32 %v1914_v24, %v2331_v5  ;;  %1410 = vst.msk [vmem:[%s2982_s3 + $0x84] sm:$0xf] %vm1376_vm2, %v1676_v58  ;;  %1939 = vpow2.f32 %v1556_v23  ;;  %v2483_v32 = vpop.f32.mrb[21].mxu0 }
 0x114   :  { %v1918_v34 = vpop.eup %1917  ;;  %v1681_v2 = vpack.c.bf16 %v1094_v25, %v1094_v25  ;;  %v1092_v37 = vmul.f32 %v1916_v30, %v2334_v6  ;;  %v2485_v45 = vpop.f32.mrb[21].mxu1  ;;  %1941 = vpow2.f32 %v1529_v27 }
 0x115   :  { %v1920_v43 = vpop.eup %1919  ;;  %1383 = vst.msk [vmem:[%s2982_s3 + $0x18] sm:$0xf] %vm1376_vm2, %v1649_v1  ;;  %v1647_v5 = vpack.c.bf16 %v1060_v31, %v1060_v31  ;;  %v1063_v42 = vmul.f32 %v1918_v34, %v2339_v11  ;;  %v2491_v54 = vpop.f32.mrb[22].mxu0  ;;  %1943 = vpow2.f32 %v1561_v33  ;;  %v1527_v33 = vmul.f32 -1.442695, %v2513_v19 }
 0x116   :  { %v1922_v6 = vpop.eup %1921  ;;  %1415 = vst.msk [vmem:[%s2982_s3 + $0x98] sm:$0xf] %vm1376_vm2, %v1681_v2  ;;  %v1679_v36 = vpack.c.bf16 %v1092_v37, %v1092_v37  ;;  %v903_v49 = vadd.f32 1.0, %v1920_v43  ;;  %v2493_v55 = vpop.f32.mrb[22].mxu1 }
 0x117   :  { %v1924_v60 = vpop.eup %1923  ;;  %1381 = vst.msk [vmem:[%s2982_s3 + $0x10] sm:$0xf] %vm1376_vm2, %v1647_v5  ;;  %v1650_v11 = vpack.c.bf16 %v1063_v42, %v1063_v42  ;;  %v869_v4 = vadd.f32 1.0, %v1922_v6  ;;  %v2499_v7 = vpop.f32.mrb[23].mxu0  ;;  %v2530_v5 = vadd.f32 %v2376_v12, %v2290_v38  ;;  %v2534_v42 = vadd.f32 %v2379_v16, %v2290_v38 }
 0x118   :  { %v2501_v8 = vpop.f32.mrb[23].mxu1  ;;  %v1926_v14 = vpop.eup %1925  ;;  %1413 = vst.msk [vmem:[%s2982_s3 + $0x90] sm:$0xf] %vm1376_vm2, %v1679_v36  ;;  %1945 = vrcp.f32 %v903_v49  ;;  %v901_v15 = vadd.f32 1.0, %v1924_v60  ;;  %v2542_v60 = vadd.f32 %v2290_v38, %v2381_v17 }
 0x119   :  { %v1928_v18 = vpop.eup %1927  ;;  %1384 = vst.msk [vmem:[%s2982_s3 + $0x1c] sm:$0xf] %vm1376_vm2, %v1650_v11  ;;  %1947 = vrcp.f32 %v869_v4  ;;  %v874_v57 = vadd.f32 1.0, %v1926_v14  ;;  %v2515_v27 = vpop.f32.mrb[24].mxu0  ;;  %v2546_v11 = vadd.f32 %v2290_v38, %v2387_v22  ;;  %v1559_v22 = vmul.f32 -1.442695, %v2522_v3 }
 0x11a   :  { %v1930_v0 = vpop.eup %1929  ;;  %1949 = vrcp.f32 %v901_v15  ;;  %v906_v20 = vadd.f32 1.0, %v1928_v18  ;;  %v2517_v30 = vpop.f32.mrb[24].mxu1  ;;  %v2554_v15 = vadd.f32 %v2405_v44, %v2290_v38  ;;  %v2558_v18 = vadd.f32 %v2407_v48, %v2290_v38 }
 0x11b   :  { %v1932_v23 = vpop.eup %1931  ;;  %1951 = vrcp.f32 %v874_v57  ;;  %v872_v24 = vadd.f32 1.0, %v1930_v0  ;;  %v2524_v34 = vpop.f32.mrb[25].mxu0  ;;  %v2563_v0 = vadd.f32 %v2290_v38, %v2415_v46  ;;  %v1562_v44 = vmul.f32 -1.442695, %v2534_v42 }
 0x11c   :  { %v1934_v58 = vpop.eup %1933  ;;  %1953 = vrcp.f32 %v906_v20  ;;  %v904_v25 = vadd.f32 1.0, %v1932_v23  ;;  %v2526_v2 = vpop.f32.mrb[25].mxu1  ;;  %v1533_v46 = vmul.f32 -1.442695, %v2554_v15 }
 0x11d   :  { %v1936_v1 = vpop.eup %1935  ;;  %1955 = vrcp.f32 %v872_v24  ;;  %v875_v31 = vadd.f32 1.0, %v1934_v58  ;;  %v2536_v6 = vpop.f32.mrb[26].mxu0  ;;  %v1530_v24 = vmul.f32 -1.442695, %v2530_v5 }
 0x11e   :  { %v1938_v37 = vpop.eup %1937  ;;  %1957 = vrcp.f32 %v904_v25  ;;  %v907_v43 = vadd.f32 1.0, %v1936_v1  ;;  %v2538_v36 = vpop.f32.mrb[26].mxu1  ;;  %v1528_v25 = vmul.f32 -1.442695, %v2542_v60  ;;  %v1560_v1 = vmul.f32 -1.442695, %v2546_v11 }
 0x11f   :  { %v1940_v10 = vpop.eup %1939  ;;  %1959 = vrcp.f32 %v875_v31  ;;  %v873_v49 = vadd.f32 1.0, %v1938_v37  ;;  %v2548_v12 = vpop.f32.mrb[27].mxu0 }
 0x120   :  { %v2550_v4 = vpop.f32.mrb[27].mxu1  ;;  %v1942_v16 = vpop.eup %1941  ;;  %1961 = vrcp.f32 %v907_v43  ;;  %v905_v14 = vadd.f32 1.0, %v1940_v10  ;;  %v1565_v43 = vmul.f32 -1.442695, %v2558_v18 }
 0x121   :  { %v1944_v17 = vpop.eup %1943  ;;  %1963 = vrcp.f32 %v873_v49  ;;  %v878_v57 = vadd.f32 1.0, %v1942_v16  ;;  %v2573_v10 = vpop.f32.mrb[28].mxu0 }
 0x122   :  { %v1946_v20 = vpop.eup %1945  ;;  %1965 = vrcp.f32 %v905_v14  ;;  %v910_v23 = vadd.f32 1.0, %v1944_v17  ;;  %2983 = vst [vmem:[#allocation2_spill] sm:$0xff] %v2573_v10  ;;  %v2575_v49 = vpop.f32.mrb[28].mxu1  ;;  %v1531_v17 = vmul.f32 -1.442695, %v2563_v0  ;;  %v2586_v10 = vadd.f32 %v2290_v38, %v2417_v53 }
 0x123   :  { %v1948_v58 = vpop.eup %1947  ;;  %v1095_v48 = vmul.f32 %v1946_v20, %v2345_v35  ;;  %1967 = vrcp.f32 %v878_v57  ;;  %2984 = vst [vmem:[#allocation3_spill] sm:$0xff] %v2575_v49  ;;  %v2579_v57 = vpop.f32.mrb[29].mxu0 }
 0x124   :  { %v1950_v31 = vpop.eup %1949  ;;  %v1061_v37 = vmul.f32 %v1948_v58, %v2348_v40  ;;  %1969 = vrcp.f32 %v910_v23  ;;  %v2581_v20 = vpop.f32.mrb[29].mxu1 }
 0x125   :  { %v1952_v16 = vpop.eup %1951  ;;  %v1682_v14 = vpack.c.bf16 %v1095_v48, %v1095_v48  ;;  %v1093_v35 = vmul.f32 %v1950_v31, %v2351_v47  ;;  %1971 = vpow2.f32 %v1527_v33  ;;  %v2588_v49 = vpop.f32.mrb[30].mxu0 }
 0x126   :  { %v1954_v40 = vpop.eup %1953  ;;  %v1648_v23 = vpack.c.bf16 %v1061_v37, %v1061_v37  ;;  %v1066_v58 = vmul.f32 %v1952_v16, %v2354_v50  ;;  %1973 = vpow2.f32 %v1559_v22  ;;  %v2590_v48 = vpop.f32.mrb[30].mxu1  ;;  %v2599_v50 = vadd.f32 %v2428_v61, %v2290_v38 }
 0x127   :  { %v1956_v47 = vpop.eup %1955  ;;  %1416 = vst.msk [vmem:[%s2982_s3 + $0x9c] sm:$0xf] %vm1376_vm2, %v1682_v14  ;;  %v1680_v33 = vpack.c.bf16 %v1093_v35, %v1093_v35  ;;  %v1098_v31 = vmul.f32 %v1954_v40, %v2358_v56  ;;  %1975 = vpow2.f32 %v1530_v24  ;;  %v2601_v53 = vpop.f32.mrb[31].mxu0  ;;  %v2612_v56 = vadd.f32 %v2430_v62, %v2290_v38 }
 0x128   :  { %v2603_v22 = vpop.f32.mrb[31].mxu1  ;;  %v1958_v37 = vpop.eup %1957  ;;  %1382 = vst.msk [vmem:[%s2982_s3 + $0x14] sm:$0xf] %vm1376_vm2, %v1648_v23  ;;  %v1653_v16 = vpack.c.bf16 %v1066_v58, %v1066_v58  ;;  %v1064_v14 = vmul.f32 %v1956_v47, %v2364_v63  ;;  %1977 = vpow2.f32 %v1562_v44  ;;  %v2621_v40 = vadd.f32 %v2290_v38, %v2441_v59 }
 0x129   :  { %v1960_v61 = vpop.eup %1959  ;;  %1414 = vst.msk [vmem:[%s2982_s3 + $0x94] sm:$0xf] %vm1376_vm2, %v1680_v33  ;;  %v1685_v24 = vpack.c.bf16 %v1098_v31, %v1098_v31  ;;  %v1096_v35 = vmul.f32 %v1958_v37, %v2372_v9  ;;  %1979 = vpow2.f32 %v1528_v25  ;;  %v1563_v23 = vmul.f32 -1.442695, %v2586_v10 }
 0x12a   :  { %v1962_v63 = vpop.eup %1961  ;;  %1387 = vst.msk [vmem:[%s2982_s3 + $0x28] sm:$0xf] %vm1376_vm2, %v1653_v16  ;;  %v1651_v62 = vpack.c.bf16 %v1064_v14, %v1064_v14  ;;  %v1067_v44 = vmul.f32 %v1960_v61, %v2385_v21  ;;  %1981 = vpow2.f32 %v1560_v1  ;;  %v1534_v25 = vmul.f32 -1.442695, %v2599_v50 }
 0x12b   :  { %v1964_v58 = vpop.eup %1963  ;;  %1419 = vst.msk [vmem:[%s2982_s3 + $0xa8] sm:$0xf] %vm1376_vm2, %v1685_v24  ;;  %v1683_v9 = vpack.c.bf16 %v1096_v35, %v1096_v35  ;;  %v1099_v59 = vmul.f32 %v1962_v63, %v2392_v26  ;;  %1983 = vpow2.f32 %v1533_v46  ;;  %v1566_v33 = vmul.f32 -1.442695, %v2612_v56 }
 0x12c   :  { %v1966_v47 = vpop.eup %1965  ;;  %1385 = vst.msk [vmem:[%s2982_s3 + $0x20] sm:$0xf] %vm1376_vm2, %v1651_v62  ;;  %v1654_v21 = vpack.c.bf16 %v1067_v44, %v1067_v44  ;;  %v1065_v1 = vmul.f32 %v1964_v58, %v2397_v28  ;;  %1985 = vpow2.f32 %v1565_v43  ;;  %v1532_v37 = vmul.f32 -1.442695, %v2621_v40 }
 0x12d   :  { %v1968_v31 = vpop.eup %1967  ;;  %1417 = vst.msk [vmem:[%s2982_s3 + $0xa0] sm:$0xf] %vm1376_vm2, %v1683_v9  ;;  %v1686_v26 = vpack.c.bf16 %v1099_v59, %v1099_v59  ;;  %v1097_v46 = vmul.f32 %v1966_v47, %v2401_v41  ;;  %1987 = vpow2.f32 %v1531_v17 }
 0x12e   :  { %v1970_v16 = vpop.eup %1969  ;;  %1388 = vst.msk [vmem:[%s2982_s3 + $0x2c] sm:$0xf] %vm1376_vm2, %v1654_v21  ;;  %v1652_v28 = vpack.c.bf16 %v1065_v1, %v1065_v1  ;;  %v1070_v43 = vmul.f32 %v1968_v31, %v2426_v51  ;;  %1989 = vpow2.f32 %v1563_v23 }
 0x12f   :  { %v1972_v14 = vpop.eup %1971  ;;  %1420 = vst.msk [vmem:[%s2982_s3 + $0xac] sm:$0xf] %vm1376_vm2, %v1686_v26  ;;  %v1684_v41 = vpack.c.bf16 %v1097_v46, %v1097_v46  ;;  %v1102_v17 = vmul.f32 %v1970_v16, %v2439_v52  ;;  %1991 = vpow2.f32 %v1534_v25  ;;  %v2675_v25 = vadd.f32 %v2290_v38, %v2443_v13 }
 0x130   :  { %v1974_v61 = vpop.eup %1973  ;;  %1386 = vst.msk [vmem:[%s2982_s3 + $0x24] sm:$0xf] %vm1376_vm2, %v1652_v28  ;;  %v1657_v24 = vpack.c.bf16 %v1070_v43, %v1070_v43  ;;  %v876_v35 = vadd.f32 1.0, %v1972_v14  ;;  %1993 = vpow2.f32 %v1566_v33  ;;  %v2679_v46 = vadd.f32 %v2474_v39, %v2290_v38 }
 0x131   :  { %v1976_v51 = vpop.eup %1975  ;;  %1418 = vst.msk [vmem:[%s2982_s3 + $0xa4] sm:$0xf] %vm1376_vm2, %v1684_v41  ;;  %v1689_v63 = vpack.c.bf16 %v1102_v17, %v1102_v17  ;;  %v908_v62 = vadd.f32 1.0, %v1974_v61  ;;  %1995 = vpow2.f32 %v1532_v37  ;;  %v2683_v37 = vadd.f32 %v2476_v29, %v2290_v38 }
 0x132   :  { %v1978_v52 = vpop.eup %1977  ;;  %1391 = vst.msk [vmem:[%s2982_s3 + $0x38] sm:$0xf] %vm1376_vm2, %v1657_v24  ;;  %1997 = vrcp.f32 %v876_v35  ;;  %v879_v44 = vadd.f32 1.0, %v1976_v51  ;;  %v1564_v28 = vmul.f32 -1.442695, %v2675_v25  ;;  %v2688_v43 = vadd.f32 %v2290_v38, %v2483_v32 }
 0x133   :  { %v1980_v23 = vpop.eup %1979  ;;  %1423 = vst.msk [vmem:[%s2982_s3 + $0xb8] sm:$0xf] %vm1376_vm2, %v1689_v63  ;;  %1999 = vrcp.f32 %v908_v62  ;;  %v911_v58 = vadd.f32 1.0, %v1978_v52  ;;  %v2692_v39 = vadd.f32 %v2290_v38, %v2485_v45  ;;  %v2696_v29 = vadd.f32 %v2491_v54, %v2290_v38 }
 0x134   :  { %v1982_v9 = vpop.eup %1981  ;;  %2001 = vrcp.f32 %v879_v44  ;;  %v877_v59 = vadd.f32 1.0, %v1980_v23  ;;  %v2700_v24 = vadd.f32 %v2493_v55, %v2290_v38  ;;  %v2704_v32 = vadd.f32 %v2290_v38, %v2499_v7 }
 0x135   :  { %v1984_v47 = vpop.eup %1983  ;;  %2003 = vrcp.f32 %v911_v58  ;;  %v909_v21 = vadd.f32 1.0, %v1982_v9  ;;  %v1537_v45 = vmul.f32 -1.442695, %v2679_v46  ;;  %v1569_v63 = vmul.f32 -1.442695, %v2683_v37 }
 0x136   :  { %v1986_v1 = vpop.eup %1985  ;;  %2005 = vrcp.f32 %v877_v59  ;;  %v882_v33 = vadd.f32 1.0, %v1984_v47  ;;  %v1535_v52 = vmul.f32 -1.442695, %v2688_v43  ;;  %v2711_v55 = vadd.f32 %v2290_v38, %v2501_v8 }
 0x137   :  { %v1988_v31 = vpop.eup %1987  ;;  %2007 = vrcp.f32 %v909_v21  ;;  %v914_v26 = vadd.f32 1.0, %v1986_v1  ;;  %v1567_v23 = vmul.f32 -1.442695, %v2692_v39  ;;  %v1538_v58 = vmul.f32 -1.442695, %v2696_v29 }
 0x138   :  { %v1990_v16 = vpop.eup %1989  ;;  %2009 = vrcp.f32 %v882_v33  ;;  %v880_v13 = vadd.f32 1.0, %v1988_v31  ;;  %v1570_v47 = vmul.f32 -1.442695, %v2700_v24  ;;  %v1536_v21 = vmul.f32 -1.442695, %v2704_v32 }
 0x139   :  { %v1992_v14 = vpop.eup %1991  ;;  %2011 = vrcp.f32 %v914_v26  ;;  %v912_v41 = vadd.f32 1.0, %v1990_v16 }
 0x13a   :  { %v1994_v17 = vpop.eup %1993  ;;  %2013 = vrcp.f32 %v880_v13  ;;  %v883_v61 = vadd.f32 1.0, %v1992_v14 }
 0x13b   :  { %v1996_v35 = vpop.eup %1995  ;;  %2015 = vrcp.f32 %v912_v41  ;;  %v915_v51 = vadd.f32 1.0, %v1994_v17  ;;  %v2742_v17 = vadd.f32 %v2290_v38, %v2524_v34 }
 0x13c   :  { %v1998_v54 = vpop.eup %1997  ;;  %2017 = vrcp.f32 %v883_v61  ;;  %v881_v62 = vadd.f32 1.0, %v1996_v35  ;;  %v2751_v35 = vadd.f32 %v2290_v38, %v2526_v2 }
 0x13d   :  { %v2000_v44 = vpop.eup %1999  ;;  %v1068_v7 = vmul.f32 %v1998_v54, %v2513_v19  ;;  %2019 = vrcp.f32 %v915_v51  ;;  %v2722_v19 = vadd.f32 %v2515_v27, %v2290_v38  ;;  %v2733_v27 = vadd.f32 %v2517_v30, %v2290_v38 }
 0x13e   :  { %v2002_v9 = vpop.eup %2001  ;;  %v1100_v59 = vmul.f32 %v2000_v44, %v2522_v3  ;;  %2021 = vrcp.f32 %v881_v62  ;;  %v1568_v3 = vmul.f32 -1.442695, %v2711_v55 }
 0x13f   :  { %v2004_v1 = vpop.eup %2003  ;;  %v1655_v33 = vpack.c.bf16 %v1068_v7, %v1068_v7  ;;  %v1071_v8 = vmul.f32 %v2002_v9, %v2530_v5  ;;  %2023 = vpow2.f32 %v1564_v28 }
 0x140   :  { %v2006_v31 = vpop.eup %2005  ;;  %v1687_v26 = vpack.c.bf16 %v1100_v59, %v1100_v59  ;;  %v1103_v16 = vmul.f32 %v2004_v1, %v2534_v42  ;;  %2025 = vpow2.f32 %v1537_v45  ;;  %v1541_v45 = vmul.f32 -1.442695, %v2722_v19 }
 0x141   :  { %v2008_v13 = vpop.eup %2007  ;;  %1389 = vst.msk [vmem:[%s2982_s3 + $0x30] sm:$0xf] %vm1376_vm2, %v1655_v33  ;;  %v1658_v14 = vpack.c.bf16 %v1071_v8, %v1071_v8  ;;  %v1069_v5 = vmul.f32 %v2006_v31, %v2542_v60  ;;  %2027 = vpow2.f32 %v1569_v63 }
 0x142   :  { %v2010_v28 = vpop.eup %2009  ;;  %1421 = vst.msk [vmem:[%s2982_s3 + $0xb0] sm:$0xf] %vm1376_vm2, %v1687_v26  ;;  %v1690_v42 = vpack.c.bf16 %v1103_v16, %v1103_v16  ;;  %v1101_v41 = vmul.f32 %v2008_v13, %v2546_v11  ;;  %2029 = vpow2.f32 %v1535_v52  ;;  %v1539_v52 = vmul.f32 -1.442695, %v2742_v17 }
 0x143   :  { %v2012_v60 = vpop.eup %2011  ;;  %1392 = vst.msk [vmem:[%s2982_s3 + $0x3c] sm:$0xf] %vm1376_vm2, %v1658_v14  ;;  %v1656_v30 = vpack.c.bf16 %v1069_v5, %v1069_v5  ;;  %v1074_v61 = vmul.f32 %v2010_v28, %v2554_v15  ;;  %2031 = vpow2.f32 %v1567_v23  ;;  %v1573_v15 = vmul.f32 -1.442695, %v2733_v27 }
 0x144   :  { %v2014_v11 = vpop.eup %2013  ;;  %1424 = vst.msk [vmem:[%s2982_s3 + $0xbc] sm:$0xf] %vm1376_vm2, %v1690_v42  ;;  %v1688_v34 = vpack.c.bf16 %v1101_v41, %v1101_v41  ;;  %v1106_v51 = vmul.f32 %v2012_v60, %v2558_v18  ;;  %2033 = vpow2.f32 %v1538_v58  ;;  %v1571_v23 = vmul.f32 -1.442695, %v2751_v35 }
 0x145   :  { %v2016_v63 = vpop.eup %2015  ;;  %1390 = vst.msk [vmem:[%s2982_s3 + $0x34] sm:$0xf] %vm1376_vm2, %v1656_v30  ;;  %v1661_v38 = vpack.c.bf16 %v1074_v61, %v1074_v61  ;;  %v1072_v2 = vmul.f32 %v2014_v11, %v2563_v0  ;;  %2035 = vpow2.f32 %v1570_v47  ;;  %v2123_v61 = vld [vmem:[%s2981_s2] ss:$0 sm:$0xff] }
 0x146   :  { %v2018_v54 = vpop.eup %2017  ;;  %1422 = vst.msk [vmem:[%s2982_s3 + $0xb4] sm:$0xf] %vm1376_vm2, %v1688_v34  ;;  %v1693_v18 = vpack.c.bf16 %v1106_v51, %v1106_v51  ;;  %v1104_v62 = vmul.f32 %v2016_v63, %v2586_v10  ;;  %2037 = vpow2.f32 %v1536_v21  ;;  %v2807_v11 = vadd.f32 %v2123_v61, %v2536_v6  ;;  %v2986_v6 = vld [vmem:[#allocation3_spill] sm:$0xff] }
 0x147   :  { %v2020_v44 = vpop.eup %2019  ;;  %1395 = vst.msk [vmem:[%s2982_s3 + $0x48] sm:$0xf] %vm1376_vm2, %v1661_v38  ;;  %v1659_v0 = vpack.c.bf16 %v1072_v2, %v1072_v2  ;;  %v1075_v7 = vmul.f32 %v2018_v54, %v2599_v50  ;;  %2039 = vpow2.f32 %v1568_v3  ;;  %v2810_v34 = vadd.f32 %v2123_v61, %v2538_v36  ;;  %v2985_v54 = vld [vmem:[#allocation2_spill] sm:$0xff] }
 0x148   :  { %v2022_v58 = vpop.eup %2021  ;;  %1427 = vst.msk [vmem:[%s2982_s3 + $0xc8] sm:$0xf] %vm1376_vm2, %v1693_v18  ;;  %v1691_v10 = vpack.c.bf16 %v1104_v62, %v1104_v62  ;;  %v1107_v9 = vmul.f32 %v2020_v44, %v2612_v56  ;;  %2041 = vpow2.f32 %v1541_v45  ;;  %v2813_v63 = vadd.f32 %v2123_v61, %v2548_v12 }
 0x149   :  { %v2024_v59 = vpop.eup %2023  ;;  %1393 = vst.msk [vmem:[%s2982_s3 + $0x40] sm:$0xf] %vm1376_vm2, %v1659_v0  ;;  %v1662_v50 = vpack.c.bf16 %v1075_v7, %v1075_v7  ;;  %v1073_v47 = vmul.f32 %v2022_v58, %v2621_v40  ;;  %2043 = vpow2.f32 %v1573_v15  ;;  %v2816_v38 = vadd.f32 %v2123_v61, %v2550_v4 }
 0x14a   :  { %v2026_v21 = vpop.eup %2025  ;;  %1425 = vst.msk [vmem:[%s2982_s3 + $0xc0] sm:$0xf] %vm1376_vm2, %v1691_v10  ;;  %v1694_v1 = vpack.c.bf16 %v1107_v9, %v1107_v9  ;;  %v913_v33 = vadd.f32 1.0, %v2024_v59  ;;  %2045 = vpow2.f32 %v1539_v52  ;;  %v2819_v18 = vadd.f32 %v2123_v61, %v2985_v54 }
 0x14b   :  { %v2028_v56 = vpop.eup %2027  ;;  %1396 = vst.msk [vmem:[%s2982_s3 + $0x4c] sm:$0xf] %vm1376_vm2, %v1662_v50  ;;  %v1660_v8 = vpack.c.bf16 %v1073_v47, %v1073_v47  ;;  %v886_v31 = vadd.f32 1.0, %v2026_v21  ;;  %2047 = vpow2.f32 %v1571_v23  ;;  %v2822_v62 = vadd.f32 %v2123_v61, %v2986_v6 }
 0x14c   :  { %v2030_v40 = vpop.eup %2029  ;;  %1428 = vst.msk [vmem:[%s2982_s3 + $0xcc] sm:$0xf] %vm1376_vm2, %v1694_v1  ;;  %2049 = vrcp.f32 %v913_v33  ;;  %v918_v26 = vadd.f32 1.0, %v2028_v56  ;;  %v2825_v44 = vadd.f32 %v2123_v61, %v2579_v57  ;;  %v2828_v12 = vadd.f32 %v2123_v61, %v2581_v20 }
 0x14d   :  { %v2032_v16 = vpop.eup %2031  ;;  %1394 = vst.msk [vmem:[%s2982_s3 + $0x44] sm:$0xf] %vm1376_vm2, %v1660_v8  ;;  %2051 = vrcp.f32 %v886_v31  ;;  %v884_v3 = vadd.f32 1.0, %v2030_v40  ;;  %v1542_v7 = vmul.f32 -1.442695, %v2807_v11 }
 0x14e   :  { %v2034_v13 = vpop.eup %2033  ;;  %2053 = vrcp.f32 %v918_v26  ;;  %v916_v14 = vadd.f32 1.0, %v2032_v16  ;;  %v1574_v23 = vmul.f32 -1.442695, %v2810_v34  ;;  %v1540_v9 = vmul.f32 -1.442695, %v2813_v63 }
 0x14f   :  { %v2036_v5 = vpop.eup %2035  ;;  %2055 = vrcp.f32 %v884_v3  ;;  %v887_v28 = vadd.f32 1.0, %v2034_v13  ;;  %v1572_v59 = vmul.f32 -1.442695, %v2816_v38  ;;  %v1545_v20 = vmul.f32 -1.442695, %v2819_v18 }
 0x150   :  { %v2038_v42 = vpop.eup %2037  ;;  %2057 = vrcp.f32 %v916_v14  ;;  %v919_v41 = vadd.f32 1.0, %v2036_v5  ;;  %v1577_v47 = vmul.f32 -1.442695, %v2822_v62  ;;  %v1543_v33 = vmul.f32 -1.442695, %v2825_v44 }
 0x151   :  { %v2040_v60 = vpop.eup %2039  ;;  %2059 = vrcp.f32 %v887_v28  ;;  %v885_v30 = vadd.f32 1.0, %v2038_v42  ;;  %v1575_v56 = vmul.f32 -1.442695, %v2828_v12  ;;  %v2862_v28 = vadd.f32 %v2123_v61, %v2603_v22 }
 0x152   :  { %v2042_v51 = vpop.eup %2041  ;;  %2061 = vrcp.f32 %v919_v41  ;;  %v917_v45 = vadd.f32 1.0, %v2040_v60 }
 0x153   :  { %v2044_v2 = vpop.eup %2043  ;;  %2063 = vrcp.f32 %v885_v30  ;;  %v890_v15 = vadd.f32 1.0, %v2042_v51  ;;  %v1576_v54 = vmul.f32 -1.442695, %v2862_v28 }
 0x154   :  { %v2046_v36 = vpop.eup %2045  ;;  %2065 = vrcp.f32 %v917_v45  ;;  %v922_v52 = vadd.f32 1.0, %v2044_v2 }
 0x155   :  { %v2048_v4 = vpop.eup %2047  ;;  %2067 = vrcp.f32 %v890_v15  ;;  %v888_v0 = vadd.f32 1.0, %v2046_v36 }
 0x156   :  { %v2050_v58 = vpop.eup %2049  ;;  %2069 = vrcp.f32 %v922_v52  ;;  %v920_v10 = vadd.f32 1.0, %v2048_v4 }
 0x157   :  { %v2052_v50 = vpop.eup %2051  ;;  %v1105_v57 = vmul.f32 %v2050_v58, %v2675_v25  ;;  %2071 = vrcp.f32 %v888_v0  ;;  %v2842_v25 = vadd.f32 %v2123_v61, %v2588_v49  ;;  %v2854_v49 = vadd.f32 %v2123_v61, %v2601_v53 }
 0x158   :  { %v2054_v21 = vpop.eup %2053  ;;  %v1078_v1 = vmul.f32 %v2052_v50, %v2679_v46  ;;  %2073 = vrcp.f32 %v920_v10  ;;  %v2846_v46 = vadd.f32 %v2123_v61, %v2590_v48 }
 0x159   :  { %v2056_v8 = vpop.eup %2055  ;;  %v1692_v31 = vpack.c.bf16 %v1105_v57, %v1105_v57  ;;  %v1110_v40 = vmul.f32 %v2054_v21, %v2683_v37  ;;  %2075 = vpow2.f32 %v1542_v7  ;;  %v1546_v41 = vmul.f32 -1.442695, %v2842_v25 }
 0x15a   :  { %v2058_v26 = vpop.eup %2057  ;;  %v1665_v16 = vpack.c.bf16 %v1078_v1, %v1078_v1  ;;  %v1076_v3 = vmul.f32 %v2056_v8, %v2688_v43  ;;  %2077 = vpow2.f32 %v1574_v23  ;;  %v1578_v30 = vmul.f32 -1.442695, %v2846_v46 }
 0x15b   :  { %v2060_v13 = vpop.eup %2059  ;;  %1426 = vst.msk [vmem:[%s2982_s3 + $0xc4] sm:$0xf] %vm1376_vm2, %v1692_v31  ;;  %v1697_v14 = vpack.c.bf16 %v1110_v40, %v1110_v40  ;;  %v1108_v37 = vmul.f32 %v2058_v26, %v2692_v39  ;;  %2079 = vpow2.f32 %v1540_v9  ;;  %v1544_v45 = vmul.f32 -1.442695, %v2854_v49 }
 0x15c   :  { %v2062_v5 = vpop.eup %2061  ;;  %1399 = vst.msk [vmem:[%s2982_s3 + $0x58] sm:$0xf] %vm1376_vm2, %v1665_v16  ;;  %v1663_v48 = vpack.c.bf16 %v1076_v3, %v1076_v3  ;;  %v1079_v43 = vmul.f32 %v2060_v13, %v2696_v29  ;;  %2081 = vpow2.f32 %v1572_v59 }
 0x15d   :  { %v2064_v42 = vpop.eup %2063  ;;  %1431 = vst.msk [vmem:[%s2982_s3 + $0xd8] sm:$0xf] %vm1376_vm2, %v1697_v14  ;;  %v1695_v53 = vpack.c.bf16 %v1108_v37, %v1108_v37  ;;  %v1111_v39 = vmul.f32 %v2062_v5, %v2700_v24  ;;  %2083 = vpow2.f32 %v1545_v20 }
 0x15e   :  { %v2066_v60 = vpop.eup %2065  ;;  %1397 = vst.msk [vmem:[%s2982_s3 + $0x50] sm:$0xf] %vm1376_vm2, %v1663_v48  ;;  %v1666_v22 = vpack.c.bf16 %v1079_v43, %v1079_v43  ;;  %v1077_v29 = vmul.f32 %v2064_v42, %v2704_v32  ;;  %2085 = vpow2.f32 %v1577_v47 }
 0x15f   :  { %v2068_v61 = vpop.eup %2067  ;;  %1429 = vst.msk [vmem:[%s2982_s3 + $0xd0] sm:$0xf] %vm1376_vm2, %v1695_v53  ;;  %v1698_v24 = vpack.c.bf16 %v1111_v39, %v1111_v39  ;;  %v1109_v51 = vmul.f32 %v2066_v60, %v2711_v55  ;;  %2087 = vpow2.f32 %v1543_v33 }
 0x160   :  { %v2070_v2 = vpop.eup %2069  ;;  %1400 = vst.msk [vmem:[%s2982_s3 + $0x5c] sm:$0xf] %vm1376_vm2, %v1666_v22  ;;  %v1664_v32 = vpack.c.bf16 %v1077_v29, %v1077_v29  ;;  %v1082_v15 = vmul.f32 %v2068_v61, %v2722_v19  ;;  %2089 = vpow2.f32 %v1575_v56 }
 0x161   :  { %v2072_v6 = vpop.eup %2071  ;;  %1432 = vst.msk [vmem:[%s2982_s3 + $0xdc] sm:$0xf] %vm1376_vm2, %v1698_v24  ;;  %v1696_v55 = vpack.c.bf16 %v1109_v51, %v1109_v51  ;;  %v1114_v36 = vmul.f32 %v2070_v2, %v2733_v27  ;;  %2091 = vpow2.f32 %v1546_v41 }
 0x162   :  { %v2074_v52 = vpop.eup %2073  ;;  %1398 = vst.msk [vmem:[%s2982_s3 + $0x54] sm:$0xf] %vm1376_vm2, %v1664_v32  ;;  %v1669_v19 = vpack.c.bf16 %v1082_v15, %v1082_v15  ;;  %v1080_v4 = vmul.f32 %v2072_v6, %v2742_v17  ;;  %2093 = vpow2.f32 %v1578_v30 }
 0x163   :  { %v2076_v0 = vpop.eup %2075  ;;  %1430 = vst.msk [vmem:[%s2982_s3 + $0xd4] sm:$0xf] %vm1376_vm2, %v1696_v55  ;;  %v1701_v7 = vpack.c.bf16 %v1114_v36, %v1114_v36  ;;  %v1112_v27 = vmul.f32 %v2074_v52, %v2751_v35  ;;  %2095 = vpow2.f32 %v1544_v45 }
 0x164   :  { %v2078_v23 = vpop.eup %2077  ;;  %1403 = vst.msk [vmem:[%s2982_s3 + $0x68] sm:$0xf] %vm1376_vm2, %v1669_v19  ;;  %v1667_v58 = vpack.c.bf16 %v1080_v4, %v1080_v4  ;;  %v891_v10 = vadd.f32 1.0, %v2076_v0  ;;  %2097 = vpow2.f32 %v1576_v54 }
 0x165   :  { %v2080_v17 = vpop.eup %2079  ;;  %1435 = vst.msk [vmem:[%s2982_s3 + $0xe8] sm:$0xf] %vm1376_vm2, %v1701_v7  ;;  %v1699_v9 = vpack.c.bf16 %v1112_v27, %v1112_v27  ;;  %v923_v59 = vadd.f32 1.0, %v2078_v23 }
 0x166   :  { %v2082_v50 = vpop.eup %2081  ;;  %1401 = vst.msk [vmem:[%s2982_s3 + $0x60] sm:$0xf] %vm1376_vm2, %v1667_v58  ;;  %2099 = vrcp.f32 %v891_v10  ;;  %v889_v35 = vadd.f32 1.0, %v2080_v17 }
 0x167   :  { %v2084_v57 = vpop.eup %2083  ;;  %1433 = vst.msk [vmem:[%s2982_s3 + $0xe0] sm:$0xf] %vm1376_vm2, %v1699_v9  ;;  %2101 = vrcp.f32 %v923_v59  ;;  %v921_v20 = vadd.f32 1.0, %v2082_v50 }
 0x168   :  { %v2086_v47 = vpop.eup %2085  ;;  %2103 = vrcp.f32 %v889_v35  ;;  %v894_v21 = vadd.f32 1.0, %v2084_v57 }
 0x169   :  { %v2088_v1 = vpop.eup %2087  ;;  %2105 = vrcp.f32 %v921_v20  ;;  %v926_v33 = vadd.f32 1.0, %v2086_v47 }
 0x16a   :  { %v2090_v56 = vpop.eup %2089  ;;  %2107 = vrcp.f32 %v894_v21  ;;  %v892_v8 = vadd.f32 1.0, %v2088_v1 }
 0x16b   :  { %v2092_v31 = vpop.eup %2091  ;;  %2109 = vrcp.f32 %v926_v33  ;;  %v924_v40 = vadd.f32 1.0, %v2090_v56 }
 0x16c   :  { %v2094_v26 = vpop.eup %2093  ;;  %2111 = vrcp.f32 %v892_v8  ;;  %v895_v16 = vadd.f32 1.0, %v2092_v31 }
 0x16d   :  { %v2096_v3 = vpop.eup %2095  ;;  %2113 = vrcp.f32 %v924_v40  ;;  %v927_v13 = vadd.f32 1.0, %v2094_v26 }
 0x16e   :  { %v2098_v14 = vpop.eup %2097  ;;  %2115 = vrcp.f32 %v895_v16  ;;  %v893_v37 = vadd.f32 1.0, %v2096_v3 }
 0x16f   :  { %2117 = vrcp.f32 %v927_v13  ;;  %v925_v5 = vadd.f32 1.0, %v2098_v14 }
 0x170   :  { %v2100_v48 = vpop.eup %2099  ;;  %2119 = vrcp.f32 %v893_v37 }
 0x171   :  { %v2102_v43 = vpop.eup %2101  ;;  %v1083_v42 = vmul.f32 %v2100_v48, %v2807_v11  ;;  %2121 = vrcp.f32 %v925_v5 }
 0x172   :  { %v2104_v53 = vpop.eup %2103  ;;  %v1115_v39 = vmul.f32 %v2102_v43, %v2810_v34 }
 0x173   :  { %v2106_v41 = vpop.eup %2105  ;;  %v1670_v60 = vpack.c.bf16 %v1083_v42, %v1083_v42  ;;  %v1081_v22 = vmul.f32 %v2104_v53, %v2813_v63 }
 0x174   :  { %v2108_v29 = vpop.eup %2107  ;;  %v1702_v30 = vpack.c.bf16 %v1115_v39, %v1115_v39  ;;  %v1113_v61 = vmul.f32 %v2106_v41, %v2816_v38 }
 0x175   :  { %v2110_v24 = vpop.eup %2109  ;;  %1404 = vst.msk [vmem:[%s2982_s3 + $0x6c] sm:$0xf] %vm1376_vm2, %v1670_v60  ;;  %v1668_v51 = vpack.c.bf16 %v1081_v22, %v1081_v22  ;;  %v1086_v11 = vmul.f32 %v2108_v29, %v2819_v18 }
 0x176   :  { %v2112_v45 = vpop.eup %2111  ;;  %1436 = vst.msk [vmem:[%s2982_s3 + $0xec] sm:$0xf] %vm1376_vm2, %v1702_v30  ;;  %v1700_v34 = vpack.c.bf16 %v1113_v61, %v1113_v61  ;;  %v1118_v63 = vmul.f32 %v2110_v24, %v2822_v62 }
 0x177   :  { %v2114_v2 = vpop.eup %2113  ;;  %1402 = vst.msk [vmem:[%s2982_s3 + $0x64] sm:$0xf] %vm1376_vm2, %v1668_v51  ;;  %v1673_v38 = vpack.c.bf16 %v1086_v11, %v1086_v11  ;;  %v1084_v32 = vmul.f32 %v2112_v45, %v2825_v44 }
 0x178   :  { %v2116_v15 = vpop.eup %2115  ;;  %1434 = vst.msk [vmem:[%s2982_s3 + $0xe4] sm:$0xf] %vm1376_vm2, %v1700_v34  ;;  %v1705_v18 = vpack.c.bf16 %v1118_v63, %v1118_v63  ;;  %v1116_v54 = vmul.f32 %v2114_v2, %v2828_v12 }
 0x179   :  { %v2118_v6 = vpop.eup %2117  ;;  %1407 = vst.msk [vmem:[%s2982_s3 + $0x78] sm:$0xf] %vm1376_vm2, %v1673_v38  ;;  %v1671_v62 = vpack.c.bf16 %v1084_v32, %v1084_v32  ;;  %v1087_v55 = vmul.f32 %v2116_v15, %v2842_v25 }
 0x17a   :  { %v2120_v36 = vpop.eup %2119  ;;  %1439 = vst.msk [vmem:[%s2982_s3 + $0xf8] sm:$0xf] %vm1376_vm2, %v1705_v18  ;;  %v1703_v44 = vpack.c.bf16 %v1116_v54, %v1116_v54  ;;  %v1119_v52 = vmul.f32 %v2118_v6, %v2846_v46 }
 0x17b   :  { %v2122_v19 = vpop.eup %2121  ;;  %1405 = vst.msk [vmem:[%s2982_s3 + $0x70] sm:$0xf] %vm1376_vm2, %v1671_v62  ;;  %v1674_v12 = vpack.c.bf16 %v1087_v55, %v1087_v55  ;;  %v1085_v4 = vmul.f32 %v2120_v36, %v2854_v49 }
 0x17c   :  { %1437 = vst.msk [vmem:[%s2982_s3 + $0xf0] sm:$0xf] %vm1376_vm2, %v1703_v44  ;;  %v1706_v25 = vpack.c.bf16 %v1119_v52, %v1119_v52  ;;  %v1117_v0 = vmul.f32 %v2122_v19, %v2862_v28 }
 0x17d   :  { %1408 = vst.msk [vmem:[%s2982_s3 + $0x7c] sm:$0xf] %vm1376_vm2, %v1674_v12  ;;  %v1672_v46 = vpack.c.bf16 %v1085_v4, %v1085_v4 }
 0x17e   :  { %1440 = vst.msk [vmem:[%s2982_s3 + $0xfc] sm:$0xf] %vm1376_vm2, %v1706_v25  ;;  %v1704_v49 = vpack.c.bf16 %v1117_v0, %v1117_v0 }
 0x17f   :  { %1406 = vst.msk [vmem:[%s2982_s3 + $0x74] sm:$0xf] %vm1376_vm2, %v1672_v46 }
 0x180   :  { %1438 = vst.msk [vmem:[%s2982_s3 + $0xf4] sm:$0xf] %vm1376_vm2, %v1704_v49 }

// kernel: yolox_forward.38
= control target key start
LH: loop header
LB: loop body
LE: loop exit
PB: predicated region body
PF: predicated region fallthrough
CT: control target
= control target key end

     0   :  { %v2284_v0 = vmov 0   ;;  %vm446_vm0 = vcmask 130048   ;;  %vm1536_vm1 = vcmask 125952   ;;  %s3142_s1 = inlined_call_operand.vmem [shape: bf16[144,16], index: 1, kind: input, shape index: {}]   ;;  %s3143_s0 = inlined_call_operand.vmem [shape: bf16[512,144], index: 0, kind: input, shape index: {}]   ;;  %s3144_s2 = inlined_call_operand.vmem [shape: f32[1,16], index: 2, kind: input, shape index: {}]   ;;  %s3145_s3 = inlined_call_operand.vmem [shape: bf16[512,16], index: 3, kind: output, shape index: {}]  }
   0x1   :  { %543 = vmatprep.subr.bf16.mxu0 %v2284_v0  ;;  %1903 = vmatprep.subr.bf16.mxu1 %v2284_v0  ;;  %v1922_v1 = vld [vmem:[%s3142_s1] sm:$0xff]   ;;  %v1923_v2 = vld [vmem:[%s3142_s1 + $0x8] sm:$0xff]   ;;  %v1924_v3 = vld [vmem:[%s3142_s1 + $0x10] sm:$0xff]  }
   0x2   :  { %544 = vmatpush1.bf16.msra.mxu0 %v1922_v1  ;;  %1912 = vmatpush1.bf16.msra.mxu1 %v1922_v1  ;;  %v1925_v4 = vld [vmem:[%s3142_s1 + $0x18] sm:$0xff]   ;;  %v1933_v5 = vld [vmem:[%s3143_s0 + $0x4] ss:$8 sps:$4 sm:$0xff]   ;;  %v1928_v9 = vld [vmem:[%s3142_s1 + $0x30] sm:$0xff]  }
   0x3   :  { %545 = vmatprep.subr.bf16.mxu0 %v2284_v0  ;;  %1904 = vmatprep.subr.bf16.mxu1 %v2284_v0  ;;  %v1936_v6 = vld [vmem:[%s3143_s0 + $0x104] ss:$8 sps:$4 sm:$0xff]   ;;  %v1929_v10 = vld [vmem:[%s3142_s1 + $0x38] sm:$0xff]   ;;  %v1931_v12 = vld [vmem:[%s3143_s0] ss:$8 sps:$4 sm:$0xff]  }
   0x4   :  { %1679 = vmatprep.mubr.msk.bf16.mxu0 %vm446_vm0, %v1933_v5  ;;  %1695 = vmatprep.mubr.msk.bf16.mxu1 %vm446_vm0, %v1936_v6  ;;  %v1926_v7 = vld [vmem:[%s3142_s1 + $0x20] sm:$0xff]   ;;  %v1927_v8 = vld [vmem:[%s3142_s1 + $0x28] sm:$0xff]   ;;  %v1937_v14 = vld [vmem:[%s3143_s0 + $0x14] ss:$8 sps:$4 sm:$0xff]  }
   0x5   :  { %v1930_v11 = vld [vmem:[%s3142_s1 + $0x40] sm:$0xff]   ;;  %v1939_v15 = vld [vmem:[%s3143_s0 + $0x114] ss:$8 sps:$4 sm:$0xff]   ;;  %v1941_v16 = vld [vmem:[%s3143_s0 + $0x10] ss:$8 sps:$4 sm:$0xff]  }
   0x6   :  { %546 = vmatpush1.bf16.msra.mxu0 %v1923_v2  ;;  %1913 = vmatpush1.bf16.msra.mxu1 %v1923_v2  ;;  %v1934_v13 = vld [vmem:[%s3143_s0 + $0x100] ss:$8 sps:$4 sm:$0xff]   ;;  %v1942_v17 = vld [vmem:[%s3143_s0 + $0x110] ss:$8 sps:$4 sm:$0xff]   ;;  %v1943_v18 = vld [vmem:[%s3143_s0 + $0x24] ss:$8 sps:$4 sm:$0xff]  }
   0x7   :  { %547 = vmatprep.subr.bf16.mxu0 %v2284_v0  ;;  %1905 = vmatprep.subr.bf16.mxu1 %v2284_v0  ;;  %v1945_v19 = vld [vmem:[%s3143_s0 + $0x124] ss:$8 sps:$4 sm:$0xff]   ;;  %v1947_v20 = vld [vmem:[%s3143_s0 + $0x20] ss:$8 sps:$4 sm:$0xff]   ;;  %v1949_v22 = vld [vmem:[%s3143_s0 + $0x34] ss:$8 sps:$4 sm:$0xff]  }
   0x8   :  { %v1948_v21 = vld [vmem:[%s3143_s0 + $0x120] ss:$8 sps:$4 sm:$0xff]   ;;  %v1951_v23 = vld [vmem:[%s3143_s0 + $0x134] ss:$8 sps:$4 sm:$0xff]   ;;  %v1953_v24 = vld [vmem:[%s3143_s0 + $0x30] ss:$8 sps:$4 sm:$0xff]  }
   0x9   :  { %v1954_v25 = vld [vmem:[%s3143_s0 + $0x130] ss:$8 sps:$4 sm:$0xff]   ;;  %v1955_v26 = vld [vmem:[%s3143_s0 + $0x44] ss:$8 sps:$4 sm:$0xff]   ;;  %v1959_v28 = vld [vmem:[%s3143_s0 + $0x40] ss:$8 sps:$4 sm:$0xff]  }
   0xa   :  { %548 = vmatpush1.bf16.msra.mxu0 %v1924_v3  ;;  %1914 = vmatpush1.bf16.msra.mxu1 %v1924_v3  ;;  %v1957_v27 = vld [vmem:[%s3143_s0 + $0x144] ss:$8 sps:$4 sm:$0xff]   ;;  %v1960_v29 = vld [vmem:[%s3143_s0 + $0x140] ss:$8 sps:$4 sm:$0xff]   ;;  %v1961_v30 = vld [vmem:[%s3143_s0 + $0x54] ss:$8 sps:$4 sm:$0xff]  }
   0xb   :  { %549 = vmatprep.subr.bf16.mxu0 %v2284_v0  ;;  %1906 = vmatprep.subr.bf16.mxu1 %v2284_v0  ;;  %v1963_v31 = vld [vmem:[%s3143_s0 + $0x154] ss:$8 sps:$4 sm:$0xff]   ;;  %v1965_v32 = vld [vmem:[%s3143_s0 + $0x50] ss:$8 sps:$4 sm:$0xff]   ;;  %v1967_v34 = vld [vmem:[%s3143_s0 + $0x64] ss:$8 sps:$4 sm:$0xff]  }
   0xc   :  { %v1966_v33 = vld [vmem:[%s3143_s0 + $0x150] ss:$8 sps:$4 sm:$0xff]   ;;  %v1969_v35 = vld [vmem:[%s3143_s0 + $0x164] ss:$8 sps:$4 sm:$0xff]   ;;  %v1971_v36 = vld [vmem:[%s3143_s0 + $0x60] ss:$8 sps:$4 sm:$0xff]  }
   0xd   :  { %v1972_v37 = vld [vmem:[%s3143_s0 + $0x160] ss:$8 sps:$4 sm:$0xff]   ;;  %v1973_v38 = vld [vmem:[%s3143_s0 + $0x74] ss:$8 sps:$4 sm:$0xff]   ;;  %v1977_v40 = vld [vmem:[%s3143_s0 + $0x70] ss:$8 sps:$4 sm:$0xff]  }
   0xe   :  { %550 = vmatpush1.bf16.msra.mxu0 %v1925_v4  ;;  %1915 = vmatpush1.bf16.msra.mxu1 %v1925_v4  ;;  %v1975_v39 = vld [vmem:[%s3143_s0 + $0x174] ss:$8 sps:$4 sm:$0xff]   ;;  %v1978_v41 = vld [vmem:[%s3143_s0 + $0x170] ss:$8 sps:$4 sm:$0xff]   ;;  %v1979_v42 = vld [vmem:[%s3143_s0 + $0x84] ss:$8 sps:$4 sm:$0xff]  }
   0xf   :  { %551 = vmatprep.subr.bf16.mxu0 %v2284_v0  ;;  %1907 = vmatprep.subr.bf16.mxu1 %v2284_v0  ;;  %v1981_v43 = vld [vmem:[%s3143_s0 + $0x184] ss:$8 sps:$4 sm:$0xff]   ;;  %v1983_v44 = vld [vmem:[%s3143_s0 + $0x80] ss:$8 sps:$4 sm:$0xff]   ;;  %v1985_v46 = vld [vmem:[%s3143_s0 + $0x94] ss:$8 sps:$4 sm:$0xff]  }
  0x10   :  { %v1984_v45 = vld [vmem:[%s3143_s0 + $0x180] ss:$8 sps:$4 sm:$0xff]   ;;  %v1987_v47 = vld [vmem:[%s3143_s0 + $0x194] ss:$8 sps:$4 sm:$0xff]   ;;  %v1989_v48 = vld [vmem:[%s3143_s0 + $0x90] ss:$8 sps:$4 sm:$0xff]  }
  0x11   :  { %v1990_v49 = vld [vmem:[%s3143_s0 + $0x190] ss:$8 sps:$4 sm:$0xff]   ;;  %v1991_v50 = vld [vmem:[%s3143_s0 + $0xa4] ss:$8 sps:$4 sm:$0xff]   ;;  %v1995_v52 = vld [vmem:[%s3143_s0 + $0xa0] ss:$8 sps:$4 sm:$0xff]  }
  0x12   :  { %552 = vmatpush1.bf16.msra.mxu0 %v1926_v7  ;;  %1916 = vmatpush1.bf16.msra.mxu1 %v1926_v7  ;;  %v1993_v51 = vld [vmem:[%s3143_s0 + $0x1a4] ss:$8 sps:$4 sm:$0xff]   ;;  %v1996_v53 = vld [vmem:[%s3143_s0 + $0x1a0] ss:$8 sps:$4 sm:$0xff]   ;;  %v1997_v54 = vld [vmem:[%s3143_s0 + $0xb4] ss:$8 sps:$4 sm:$0xff]  }
  0x13   :  { %553 = vmatprep.subr.bf16.mxu0 %v2284_v0  ;;  %1908 = vmatprep.subr.bf16.mxu1 %v2284_v0  ;;  %v1999_v55 = vld [vmem:[%s3143_s0 + $0x1b4] ss:$8 sps:$4 sm:$0xff]   ;;  %v2001_v56 = vld [vmem:[%s3143_s0 + $0xb0] ss:$8 sps:$4 sm:$0xff]   ;;  %v2003_v58 = vld [vmem:[%s3143_s0 + $0xc4] ss:$8 sps:$4 sm:$0xff]  }
  0x14   :  { %v2002_v57 = vld [vmem:[%s3143_s0 + $0x1b0] ss:$8 sps:$4 sm:$0xff]   ;;  %v2005_v59 = vld [vmem:[%s3143_s0 + $0x1c4] ss:$8 sps:$4 sm:$0xff]   ;;  %v2007_v60 = vld [vmem:[%s3143_s0 + $0xc0] ss:$8 sps:$4 sm:$0xff]  }
  0x15   :  { %v2008_v61 = vld [vmem:[%s3143_s0 + $0x1c0] ss:$8 sps:$4 sm:$0xff]   ;;  %v2009_v62 = vld [vmem:[%s3143_s0 + $0xd4] ss:$8 sps:$4 sm:$0xff]   ;;  %v2014_v1 = vld [vmem:[%s3143_s0 + $0x1d0] ss:$8 sps:$4 sm:$0xff]  }
  0x16   :  { %554 = vmatpush1.bf16.msra.mxu0 %v1927_v8  ;;  %1917 = vmatpush1.bf16.msra.mxu1 %v1927_v8  ;;  %v2011_v63 = vld [vmem:[%s3143_s0 + $0x1d4] ss:$8 sps:$4 sm:$0xff]   ;;  %v2015_v2 = vld [vmem:[%s3143_s0 + $0xe4] ss:$8 sps:$4 sm:$0xff]   ;;  %v2019_v4 = vld [vmem:[%s3143_s0 + $0xe0] ss:$8 sps:$4 sm:$0xff]  }
  0x17   :  { %555 = vmatprep.subr.bf16.mxu0 %v2284_v0  ;;  %1909 = vmatprep.subr.bf16.mxu1 %v2284_v0  ;;  %v2017_v3 = vld [vmem:[%s3143_s0 + $0x1e4] ss:$8 sps:$4 sm:$0xff]   ;;  %v2020_v5 = vld [vmem:[%s3143_s0 + $0x1e0] ss:$8 sps:$4 sm:$0xff]   ;;  %v2021_v6 = vld [vmem:[%s3143_s0 + $0xf4] ss:$8 sps:$4 sm:$0xff]  }
  0x18   :  { %v2023_v7 = vld [vmem:[%s3143_s0 + $0x1f4] ss:$8 sps:$4 sm:$0xff]   ;;  %v2025_v8 = vld [vmem:[%s3143_s0 + $0xf0] ss:$8 sps:$4 sm:$0xff]  }
  0x1a   :  { %556 = vmatpush1.bf16.msra.mxu0 %v1928_v9  ;;  %1918 = vmatpush1.bf16.msra.mxu1 %v1928_v9  ;;  %v2026_v9 = vld [vmem:[%s3143_s0 + $0x1f0] ss:$8 sps:$4 sm:$0xff]  }
  0x1b   :  { %557 = vmatprep.subr.bf16.mxu0 %v2284_v0  ;;  %1910 = vmatprep.subr.bf16.mxu1 %v2284_v0 }
  0x1e   :  { %558 = vmatpush1.bf16.msra.mxu0 %v1929_v10  ;;  %1919 = vmatpush1.bf16.msra.mxu1 %v1929_v10  ;;  %v2559_v10 = vld [vmem:[%s3144_s2] ss:$0 sm:$0xff] }
  0x1f   :  { %559 = vmatprep.subr.bf16.mxu0 %v2284_v0  ;;  %1911 = vmatprep.subr.bf16.mxu1 %v2284_v0  ;;  %v2013_v0 = vld [vmem:[%s3143_s0 + $0xd0] ss:$8 sps:$4 sm:$0xff]  }
  0x22   :  { %560 = vmatpush1.bf16.msra.mxu0 %v1930_v11  ;;  %1920 = vmatpush1.bf16.msra.mxu1 %v1930_v11 }
  0x25   :  { %576 = vmatmul.mubr.bf16.vlgmr.msra.gmra.mrb[0].mxu0 %v1931_v12  ;;  %704 = vmatmul.mubr.bf16.vlgmr.msra.gmra.mrb[0].mxu1 %v1934_v13 }
  0x26   :  { %1680 = vmatprep.mubr.msk.bf16.mxu0 %vm446_vm0, %v1937_v14  ;;  %1696 = vmatprep.mubr.msk.bf16.mxu1 %vm446_vm0, %v1939_v15 }
  0x2d   :  { %584 = vmatmul.mubr.bf16.gmra.mrb[4].mxu0 %v1941_v16  ;;  %712 = vmatmul.mubr.bf16.gmra.mrb[4].mxu1 %v1942_v17 }
  0x2e   :  { %1681 = vmatprep.mubr.msk.bf16.mxu0 %vm446_vm0, %v1943_v18  ;;  %1697 = vmatprep.mubr.msk.bf16.mxu1 %vm446_vm0, %v1945_v19 }
  0x35   :  { %592 = vmatmul.mubr.bf16.gmra.mrb[8].mxu0 %v1947_v20  ;;  %720 = vmatmul.mubr.bf16.gmra.mrb[8].mxu1 %v1948_v21 }
  0x36   :  { %1682 = vmatprep.mubr.msk.bf16.mxu0 %vm446_vm0, %v1949_v22  ;;  %1698 = vmatprep.mubr.msk.bf16.mxu1 %vm446_vm0, %v1951_v23 }
  0x3d   :  { %600 = vmatmul.mubr.bf16.gmra.mrb[12].mxu0 %v1953_v24  ;;  %728 = vmatmul.mubr.bf16.gmra.mrb[12].mxu1 %v1954_v25 }
  0x3e   :  { %1683 = vmatprep.mubr.msk.bf16.mxu0 %vm446_vm0, %v1955_v26  ;;  %1699 = vmatprep.mubr.msk.bf16.mxu1 %vm446_vm0, %v1957_v27 }
  0x45   :  { %608 = vmatmul.mubr.bf16.gmra.mrb[16].mxu0 %v1959_v28  ;;  %736 = vmatmul.mubr.bf16.gmra.mrb[16].mxu1 %v1960_v29 }
  0x46   :  { %1684 = vmatprep.mubr.msk.bf16.mxu0 %vm446_vm0, %v1961_v30  ;;  %1700 = vmatprep.mubr.msk.bf16.mxu1 %vm446_vm0, %v1963_v31 }
  0x4d   :  { %616 = vmatmul.mubr.bf16.gmra.mrb[20].mxu0 %v1965_v32  ;;  %744 = vmatmul.mubr.bf16.gmra.mrb[20].mxu1 %v1966_v33 }
  0x4e   :  { %1685 = vmatprep.mubr.msk.bf16.mxu0 %vm446_vm0, %v1967_v34  ;;  %1701 = vmatprep.mubr.msk.bf16.mxu1 %vm446_vm0, %v1969_v35 }
  0x55   :  { %624 = vmatmul.mubr.bf16.gmra.mrb[24].mxu0 %v1971_v36  ;;  %752 = vmatmul.mubr.bf16.gmra.mrb[24].mxu1 %v1972_v37 }
  0x56   :  { %1686 = vmatprep.mubr.msk.bf16.mxu0 %vm446_vm0, %v1973_v38  ;;  %1702 = vmatprep.mubr.msk.bf16.mxu1 %vm446_vm0, %v1975_v39 }
  0x5d   :  { %632 = vmatmul.mubr.bf16.gmra.mrb[28].mxu0 %v1977_v40  ;;  %760 = vmatmul.mubr.bf16.gmra.mrb[28].mxu1 %v1978_v41 }
  0x5e   :  { %1687 = vmatprep.mubr.msk.bf16.mxu0 %vm446_vm0, %v1979_v42  ;;  %1703 = vmatprep.mubr.msk.bf16.mxu1 %vm446_vm0, %v1981_v43 }
  0x65   :  { %640 = vmatmul.mubr.bf16.gmra.mrb[32].mxu0 %v1983_v44  ;;  %768 = vmatmul.mubr.bf16.gmra.mrb[32].mxu1 %v1984_v45 }
  0x66   :  { %1688 = vmatprep.mubr.msk.bf16.mxu0 %vm446_vm0, %v1985_v46  ;;  %1704 = vmatprep.mubr.msk.bf16.mxu1 %vm446_vm0, %v1987_v47 }
  0x6d   :  { %648 = vmatmul.mubr.bf16.gmra.mrb[36].mxu0 %v1989_v48  ;;  %776 = vmatmul.mubr.bf16.gmra.mrb[36].mxu1 %v1990_v49 }
  0x6e   :  { %1689 = vmatprep.mubr.msk.bf16.mxu0 %vm446_vm0, %v1991_v50  ;;  %1705 = vmatprep.mubr.msk.bf16.mxu1 %vm446_vm0, %v1993_v51 }
  0x75   :  { %656 = vmatmul.mubr.bf16.gmra.mrb[40].mxu0 %v1995_v52  ;;  %784 = vmatmul.mubr.bf16.gmra.mrb[40].mxu1 %v1996_v53 }
  0x76   :  { %1690 = vmatprep.mubr.msk.bf16.mxu0 %vm446_vm0, %v1997_v54  ;;  %1706 = vmatprep.mubr.msk.bf16.mxu1 %vm446_vm0, %v1999_v55 }
  0x7d   :  { %664 = vmatmul.mubr.bf16.gmra.mrb[44].mxu0 %v2001_v56  ;;  %792 = vmatmul.mubr.bf16.gmra.mrb[44].mxu1 %v2002_v57 }
  0x7e   :  { %1691 = vmatprep.mubr.msk.bf16.mxu0 %vm446_vm0, %v2003_v58  ;;  %1707 = vmatprep.mubr.msk.bf16.mxu1 %vm446_vm0, %v2005_v59 }
  0x85   :  { %672 = vmatmul.mubr.bf16.gmra.mrb[48].mxu0 %v2007_v60  ;;  %800 = vmatmul.mubr.bf16.gmra.mrb[48].mxu1 %v2008_v61 }
  0x86   :  { %1692 = vmatprep.mubr.msk.bf16.mxu0 %vm446_vm0, %v2009_v62  ;;  %1708 = vmatprep.mubr.msk.bf16.mxu1 %vm446_vm0, %v2011_v63 }
  0x8d   :  { %680 = vmatmul.mubr.bf16.gmra.mrb[52].mxu0 %v2013_v0  ;;  %808 = vmatmul.mubr.bf16.gmra.mrb[52].mxu1 %v2014_v1 }
  0x8e   :  { %1693 = vmatprep.mubr.msk.bf16.mxu0 %vm446_vm0, %v2015_v2  ;;  %1709 = vmatprep.mubr.msk.bf16.mxu1 %vm446_vm0, %v2017_v3 }
  0x95   :  { %688 = vmatmul.mubr.bf16.gmra.mrb[56].mxu0 %v2019_v4  ;;  %816 = vmatmul.mubr.bf16.gmra.mrb[56].mxu1 %v2020_v5 }
  0x96   :  { %1694 = vmatprep.mubr.msk.bf16.mxu0 %vm446_vm0, %v2021_v6  ;;  %1710 = vmatprep.mubr.msk.bf16.mxu1 %vm446_vm0, %v2023_v7 }
  0x9d   :  { %696 = vmatmul.mubr.bf16.gmra.mrb[60].mxu0 %v2025_v8  ;;  %824 = vmatmul.mubr.bf16.gmra.mrb[60].mxu1 %v2026_v9 }
  0xf8   :  { %v577_v11 = vpop.f32.mrb[0].mxu0  ;;  %v705_v12 = vpop.f32.mrb[0].mxu1 }
  0xf9   :  { %v2562_v13 = vadd.f32 %v2559_v10, %v577_v11  ;;  %v2565_v14 = vadd.f32 %v2559_v10, %v705_v12  ;;  %v579_v15 = vpop.f32.mrb[1].mxu0  ;;  %v707_v16 = vpop.f32.mrb[1].mxu1 }
  0xfa   :  { %v580_v17 = vpop.f32.mrb[2].mxu0  ;;  %v708_v18 = vpop.f32.mrb[2].mxu1 }
  0xfb   :  { %v1711_v19 = vmul.f32 -1.442695, %v2562_v13  ;;  %v1743_v20 = vmul.f32 -1.442695, %v2565_v14  ;;  %v2570_v21 = vadd.f32 %v2559_v10, %v580_v17  ;;  %v2573_v22 = vadd.f32 %v2559_v10, %v708_v18  ;;  %v582_v23 = vpop.f32.mrb[3].mxu0  ;;  %v710_v24 = vpop.f32.mrb[3].mxu1 }
  0xfd   :  { %2027 = vpow2.f32 %v1711_v19  ;;  %v1712_v25 = vmul.f32 -1.442695, %v2570_v21  ;;  %v1744_v26 = vmul.f32 -1.442695, %v2573_v22 }
  0xfe   :  { %2029 = vpow2.f32 %v1743_v20 }
  0xff   :  { %2031 = vpow2.f32 %v1712_v25 }
 0x100   :  { %2033 = vpow2.f32 %v1744_v26  ;;  %v585_v27 = vpop.f32.mrb[4].mxu0  ;;  %v713_v28 = vpop.f32.mrb[4].mxu1 }
 0x101   :  { %v2578_v29 = vadd.f32 %v2559_v10, %v585_v27  ;;  %v2581_v30 = vadd.f32 %v2559_v10, %v713_v28  ;;  %v587_v31 = vpop.f32.mrb[5].mxu0  ;;  %v715_v32 = vpop.f32.mrb[5].mxu1 }
 0x102   :  { %v588_v33 = vpop.f32.mrb[6].mxu0  ;;  %v716_v34 = vpop.f32.mrb[6].mxu1 }
 0x103   :  { %v1713_v35 = vmul.f32 -1.442695, %v2578_v29  ;;  %v1745_v36 = vmul.f32 -1.442695, %v2581_v30  ;;  %v2586_v37 = vadd.f32 %v2559_v10, %v588_v33  ;;  %v2589_v38 = vadd.f32 %v2559_v10, %v716_v34  ;;  %v590_v39 = vpop.f32.mrb[7].mxu0  ;;  %v718_v40 = vpop.f32.mrb[7].mxu1 }
 0x105   :  { %2035 = vpow2.f32 %v1713_v35  ;;  %v1714_v41 = vmul.f32 -1.442695, %v2586_v37  ;;  %v1746_v42 = vmul.f32 -1.442695, %v2589_v38 }
 0x106   :  { %2037 = vpow2.f32 %v1745_v36 }
 0x107   :  { %v2028_v43 = vpop.eup %2027  ;;  %2039 = vpow2.f32 %v1714_v41 }
 0x108   :  { %v2030_v44 = vpop.eup %2029  ;;  %v1024_v45 = vadd.f32 1.0, %v2028_v43  ;;  %2041 = vpow2.f32 %v1746_v42  ;;  %v593_v46 = vpop.f32.mrb[8].mxu0 }
 0x109   :  { %v721_v47 = vpop.f32.mrb[8].mxu1  ;;  %v2032_v48 = vpop.eup %2031  ;;  %v1056_v49 = vadd.f32 1.0, %v2030_v44  ;;  %v2594_v50 = vadd.f32 %v2559_v10, %v593_v46 }
 0x10a   :  { %v2597_v51 = vadd.f32 %v2559_v10, %v721_v47  ;;  %v595_v52 = vpop.f32.mrb[9].mxu0  ;;  %v723_v53 = vpop.f32.mrb[9].mxu1  ;;  %2043 = vrcp.f32 %v1024_v45  ;;  %v1025_v55 = vadd.f32 1.0, %v2032_v48 }
 0x10b   :  { %v2034_v54 = vpop.eup %2033  ;;  %v596_v56 = vpop.f32.mrb[10].mxu0  ;;  %2045 = vrcp.f32 %v1056_v49  ;;  %v1715_v59 = vmul.f32 -1.442695, %v2594_v50 }
 0x10c   :  { %v724_v57 = vpop.f32.mrb[10].mxu1  ;;  %v1057_v58 = vadd.f32 1.0, %v2034_v54  ;;  %v1747_v60 = vmul.f32 -1.442695, %v2597_v51  ;;  %v598_v61 = vpop.f32.mrb[11].mxu0  ;;  %2047 = vrcp.f32 %v1025_v55  ;;  %v2602_v62 = vadd.f32 %v2559_v10, %v596_v56 }
 0x10d   :  { %v2605_v63 = vadd.f32 %v2559_v10, %v724_v57  ;;  %v726_v0 = vpop.f32.mrb[11].mxu1 }
 0x10e   :  { %2049 = vrcp.f32 %v1057_v58  ;;  %v1716_v1 = vmul.f32 -1.442695, %v2602_v62 }
 0x10f   :  { %2051 = vpow2.f32 %v1715_v59  ;;  %v1748_v2 = vmul.f32 -1.442695, %v2605_v63  ;;  %v2036_v3 = vpop.eup %2035 }
 0x110   :  { %2053 = vpow2.f32 %v1747_v60  ;;  %v2038_v4 = vpop.eup %2037  ;;  %v1026_v5 = vadd.f32 1.0, %v2036_v3  ;;  %v601_v6 = vpop.f32.mrb[12].mxu0 }
 0x111   :  { %2055 = vpow2.f32 %v1716_v1  ;;  %v729_v7 = vpop.f32.mrb[12].mxu1  ;;  %v2040_v8 = vpop.eup %2039  ;;  %v1058_v9 = vadd.f32 1.0, %v2038_v4  ;;  %v2610_v11 = vadd.f32 %v2559_v10, %v601_v6 }
 0x112   :  { %2057 = vpow2.f32 %v1748_v2  ;;  %v2613_v12 = vadd.f32 %v2559_v10, %v729_v7  ;;  %v603_v15 = vpop.f32.mrb[13].mxu0  ;;  %v731_v16 = vpop.f32.mrb[13].mxu1  ;;  %v1027_v18 = vadd.f32 1.0, %v2040_v8 }
 0x113   :  { %v2042_v17 = vpop.eup %2041  ;;  %2059 = vrcp.f32 %v1026_v5  ;;  %v604_v19 = vpop.f32.mrb[14].mxu0  ;;  %v1717_v24 = vmul.f32 -1.442695, %v2610_v11 }
 0x114   :  { %v732_v20 = vpop.f32.mrb[14].mxu1  ;;  %2061 = vrcp.f32 %v1058_v9  ;;  %v1059_v23 = vadd.f32 1.0, %v2042_v17  ;;  %v1749_v25 = vmul.f32 -1.442695, %v2613_v12  ;;  %v606_v26 = vpop.f32.mrb[15].mxu0  ;;  %v2618_v28 = vadd.f32 %v2559_v10, %v604_v19 }
 0x115   :  { %v2044_v27 = vpop.eup %2043  ;;  %2063 = vrcp.f32 %v1027_v18  ;;  %v2621_v31 = vadd.f32 %v2559_v10, %v732_v20  ;;  %v734_v32 = vpop.f32.mrb[15].mxu1 }
 0x116   :  { %v2046_v33 = vpop.eup %2045  ;;  %v1216_v34 = vmul.f32 %v2044_v27, %v2562_v13  ;;  %2065 = vrcp.f32 %v1059_v23  ;;  %v1718_v39 = vmul.f32 -1.442695, %v2618_v28 }
 0x117   :  { %v2048_v35 = vpop.eup %2047  ;;  %v1248_v36 = vmul.f32 %v2046_v33, %v2565_v14  ;;  %2067 = vpow2.f32 %v1717_v24  ;;  %v1750_v40 = vmul.f32 -1.442695, %v2621_v31 }
 0x118   :  { %v2050_v41 = vpop.eup %2049  ;;  %v1839_v42 = vpack.c.bf16 %v1216_v34, %v1216_v34  ;;  %v1217_v43 = vmul.f32 %v2048_v35, %v2570_v21  ;;  %2069 = vpow2.f32 %v1749_v25  ;;  %v609_v13 = vpop.f32.mrb[16].mxu0 }
 0x119   :  { %v2052_v44 = vpop.eup %2051  ;;  %v1871_v45 = vpack.c.bf16 %v1248_v36, %v1248_v36  ;;  %v1249_v46 = vmul.f32 %v2050_v41, %v2573_v22  ;;  %2071 = vpow2.f32 %v1718_v39  ;;  %v737_v47 = vpop.f32.mrb[16].mxu1  ;;  %v2634_v52 = vadd.f32 %v2559_v10, %v609_v13 }
 0x11a   :  { %v2054_v48 = vpop.eup %2053  ;;  %1537 = vst.msk [vmem:[%s3145_s3] sm:$0xf] %vm1536_vm1, %v1839_v42  ;;  %v1840_v14 = vpack.c.bf16 %v1217_v43, %v1217_v43  ;;  %v1028_v49 = vadd.f32 1.0, %v2052_v44  ;;  %2073 = vpow2.f32 %v1750_v40  ;;  %v611_v21 = vpop.f32.mrb[17].mxu0  ;;  %v2641_v56 = vadd.f32 %v2559_v10, %v737_v47 }
 0x11b   :  { %v739_v53 = vpop.f32.mrb[17].mxu1  ;;  %v2056_v54 = vpop.eup %2055  ;;  %1569 = vst.msk [vmem:[%s3145_s3 + $0x80] sm:$0xf] %vm1536_vm1, %v1871_v45  ;;  %v1872_v22 = vpack.c.bf16 %v1249_v46, %v1249_v46  ;;  %v1060_v55 = vadd.f32 1.0, %v2054_v48  ;;  %v1719_v61 = vmul.f32 -1.442695, %v2634_v52 }
 0x11c   :  { %v612_v57 = vpop.f32.mrb[18].mxu0  ;;  %v740_v58 = vpop.f32.mrb[18].mxu1  ;;  %1538 = vst.msk [vmem:[%s3145_s3 + $0x4] sm:$0xf] %vm1536_vm1, %v1840_v14  ;;  %2075 = vrcp.f32 %v1028_v49  ;;  %v1029_v60 = vadd.f32 1.0, %v2056_v54 }
 0x11d   :  { %v2058_v59 = vpop.eup %2057  ;;  %v2649_v0 = vadd.f32 %v2559_v10, %v612_v57  ;;  %v614_v1 = vpop.f32.mrb[19].mxu0  ;;  %1570 = vst.msk [vmem:[%s3145_s3 + $0x84] sm:$0xf] %vm1536_vm1, %v1872_v22  ;;  %2077 = vrcp.f32 %v1060_v55  ;;  %v1751_v5 = vmul.f32 -1.442695, %v2641_v56  ;;  %v2657_v6 = vadd.f32 %v2559_v10, %v740_v58 }
 0x11e   :  { %v742_v2 = vpop.f32.mrb[19].mxu1  ;;  %v2060_v3 = vpop.eup %2059  ;;  %v1061_v4 = vadd.f32 1.0, %v2058_v59  ;;  %2079 = vrcp.f32 %v1029_v60 }
 0x11f   :  { %v2062_v7 = vpop.eup %2061  ;;  %v1218_v8 = vmul.f32 %v2060_v3, %v2578_v29  ;;  %v1720_v9 = vmul.f32 -1.442695, %v2649_v0  ;;  %v1752_v17 = vmul.f32 -1.442695, %v2657_v6 }
 0x120   :  { %v2064_v15 = vpop.eup %2063  ;;  %v1250_v16 = vmul.f32 %v2062_v7, %v2581_v30  ;;  %2081 = vrcp.f32 %v1061_v4  ;;  %v617_v29 = vpop.f32.mrb[20].mxu0 }
 0x121   :  { %v2066_v18 = vpop.eup %2065  ;;  %v1841_v19 = vpack.c.bf16 %v1218_v8, %v1218_v8  ;;  %v1219_v20 = vmul.f32 %v2064_v15, %v2586_v37  ;;  %2083 = vpow2.f32 %v1719_v61  ;;  %v745_v26 = vpop.f32.mrb[20].mxu1  ;;  %v2670_v33 = vadd.f32 %v2559_v10, %v617_v29 }
 0x122   :  { %v2068_v23 = vpop.eup %2067  ;;  %v1873_v24 = vpack.c.bf16 %v1250_v16, %v1250_v16  ;;  %v1251_v25 = vmul.f32 %v2066_v18, %v2589_v38  ;;  %2085 = vpow2.f32 %v1751_v5  ;;  %v619_v37 = vpop.f32.mrb[21].mxu0  ;;  %v2677_v39 = vadd.f32 %v2559_v10, %v745_v26 }
 0x123   :  { %v2070_v27 = vpop.eup %2069  ;;  %1539 = vst.msk [vmem:[%s3145_s3 + $0x8] sm:$0xf] %vm1536_vm1, %v1841_v19  ;;  %v1842_v30 = vpack.c.bf16 %v1219_v20, %v1219_v20  ;;  %v1030_v32 = vadd.f32 1.0, %v2068_v23  ;;  %2087 = vpow2.f32 %v1720_v9  ;;  %v747_v34 = vpop.f32.mrb[21].mxu1  ;;  %v1721_v44 = vmul.f32 -1.442695, %v2670_v33 }
 0x124   :  { %v2072_v35 = vpop.eup %2071  ;;  %1571 = vst.msk [vmem:[%s3145_s3 + $0x88] sm:$0xf] %vm1536_vm1, %v1873_v24  ;;  %v1874_v38 = vpack.c.bf16 %v1251_v25, %v1251_v25  ;;  %v1062_v36 = vadd.f32 1.0, %v2070_v27  ;;  %2089 = vpow2.f32 %v1752_v17  ;;  %v620_v40 = vpop.f32.mrb[22].mxu0  ;;  %v1753_v48 = vmul.f32 -1.442695, %v2677_v39 }
 0x125   :  { %v748_v41 = vpop.f32.mrb[22].mxu1  ;;  %v2074_v42 = vpop.eup %2073  ;;  %1540 = vst.msk [vmem:[%s3145_s3 + $0xc] sm:$0xf] %vm1536_vm1, %v1842_v30  ;;  %2091 = vrcp.f32 %v1030_v32  ;;  %v1031_v43 = vadd.f32 1.0, %v2072_v35  ;;  %v2685_v45 = vadd.f32 %v2559_v10, %v620_v40 }
 0x126   :  { %v622_v46 = vpop.f32.mrb[23].mxu0  ;;  %v750_v13 = vpop.f32.mrb[23].mxu1  ;;  %1572 = vst.msk [vmem:[%s3145_s3 + $0x8c] sm:$0xf] %vm1536_vm1, %v1874_v38  ;;  %2093 = vrcp.f32 %v1062_v36  ;;  %v1063_v47 = vadd.f32 1.0, %v2074_v42  ;;  %v2693_v14 = vadd.f32 %v2559_v10, %v748_v41 }
 0x127   :  { %v2076_v49 = vpop.eup %2075  ;;  %2095 = vrcp.f32 %v1031_v43  ;;  %v1722_v21 = vmul.f32 -1.442695, %v2685_v45 }
 0x128   :  { %v2078_v53 = vpop.eup %2077  ;;  %v1220_v54 = vmul.f32 %v2076_v49, %v2594_v50  ;;  %2097 = vrcp.f32 %v1063_v47  ;;  %v1754_v22 = vmul.f32 -1.442695, %v2693_v14  ;;  %v625_v61 = vpop.f32.mrb[24].mxu0 }
 0x129   :  { %v2080_v55 = vpop.eup %2079  ;;  %v1252_v57 = vmul.f32 %v2078_v53, %v2597_v51  ;;  %2099 = vpow2.f32 %v1721_v44  ;;  %v753_v1 = vpop.f32.mrb[24].mxu1  ;;  %v2702_v50 = vadd.f32 %v2559_v10, %v625_v61 }
 0x12a   :  { %v2082_v58 = vpop.eup %2081  ;;  %v1843_v59 = vpack.c.bf16 %v1220_v54, %v1220_v54  ;;  %v1221_v60 = vmul.f32 %v2080_v55, %v2602_v62  ;;  %2101 = vpow2.f32 %v1753_v48  ;;  %v627_v5 = vpop.f32.mrb[25].mxu0  ;;  %v2709_v9 = vadd.f32 %v2559_v10, %v753_v1 }
 0x12b   :  { %v2084_v2 = vpop.eup %2083  ;;  %v1875_v3 = vpack.c.bf16 %v1252_v57, %v1252_v57  ;;  %v1253_v4 = vmul.f32 %v2082_v58, %v2605_v63  ;;  %2103 = vpow2.f32 %v1722_v21  ;;  %v755_v7 = vpop.f32.mrb[25].mxu1  ;;  %v1723_v29 = vmul.f32 -1.442695, %v2702_v50 }
 0x12c   :  { %v2086_v8 = vpop.eup %2085  ;;  %1541 = vst.msk [vmem:[%s3145_s3 + $0x10] sm:$0xf] %vm1536_vm1, %v1843_v59  ;;  %v1844_v51 = vpack.c.bf16 %v1221_v60, %v1221_v60  ;;  %v1032_v62 = vadd.f32 1.0, %v2084_v2  ;;  %2105 = vpow2.f32 %v1754_v22  ;;  %v628_v15 = vpop.f32.mrb[26].mxu0  ;;  %v1755_v32 = vmul.f32 -1.442695, %v2709_v9 }
 0x12d   :  { %v756_v63 = vpop.f32.mrb[26].mxu1  ;;  %v2088_v16 = vpop.eup %2087  ;;  %1573 = vst.msk [vmem:[%s3145_s3 + $0x90] sm:$0xf] %vm1536_vm1, %v1875_v3  ;;  %v1876_v17 = vpack.c.bf16 %v1253_v4, %v1253_v4  ;;  %v1064_v18 = vadd.f32 1.0, %v2086_v8  ;;  %v2716_v19 = vadd.f32 %v2559_v10, %v628_v15 }
 0x12e   :  { %v630_v20 = vpop.f32.mrb[27].mxu0  ;;  %v758_v23 = vpop.f32.mrb[27].mxu1  ;;  %1542 = vst.msk [vmem:[%s3145_s3 + $0x14] sm:$0xf] %vm1536_vm1, %v1844_v51  ;;  %2107 = vrcp.f32 %v1032_v62  ;;  %v1033_v25 = vadd.f32 1.0, %v2088_v16  ;;  %v2724_v26 = vadd.f32 %v2559_v10, %v756_v63 }
 0x12f   :  { %v2090_v24 = vpop.eup %2089  ;;  %1574 = vst.msk [vmem:[%s3145_s3 + $0x94] sm:$0xf] %vm1536_vm1, %v1876_v17  ;;  %2109 = vrcp.f32 %v1064_v18  ;;  %v1724_v35 = vmul.f32 -1.442695, %v2716_v19 }
 0x130   :  { %v2092_v27 = vpop.eup %2091  ;;  %v1065_v30 = vadd.f32 1.0, %v2090_v24  ;;  %2111 = vrcp.f32 %v1033_v25  ;;  %v1756_v40 = vmul.f32 -1.442695, %v2724_v26  ;;  %v633_v44 = vpop.f32.mrb[28].mxu0 }
 0x131   :  { %v2094_v37 = vpop.eup %2093  ;;  %v1222_v34 = vmul.f32 %v2092_v27, %v2610_v11  ;;  %v761_v46 = vpop.f32.mrb[28].mxu1  ;;  %v2738_v48 = vadd.f32 %v2559_v10, %v633_v44 }
 0x132   :  { %v2096_v38 = vpop.eup %2095  ;;  %v1254_v36 = vmul.f32 %v2094_v37, %v2613_v12  ;;  %2113 = vrcp.f32 %v1065_v30  ;;  %v635_v49 = vpop.f32.mrb[29].mxu0  ;;  %v2745_v54 = vadd.f32 %v2559_v10, %v761_v46 }
 0x133   :  { %v2098_v41 = vpop.eup %2097  ;;  %v1845_v42 = vpack.c.bf16 %v1222_v34, %v1222_v34  ;;  %v1223_v43 = vmul.f32 %v2096_v38, %v2618_v28  ;;  %2115 = vpow2.f32 %v1723_v29  ;;  %v763_v12 = vpop.f32.mrb[29].mxu1  ;;  %v1725_v2 = vmul.f32 -1.442695, %v2738_v48 }
 0x134   :  { %v2100_v13 = vpop.eup %2099  ;;  %v1877_v47 = vpack.c.bf16 %v1254_v36, %v1254_v36  ;;  %v1255_v11 = vmul.f32 %v2098_v41, %v2621_v31  ;;  %2117 = vpow2.f32 %v1755_v32  ;;  %v636_v22 = vpop.f32.mrb[30].mxu0  ;;  %v1757_v5 = vmul.f32 -1.442695, %v2745_v54 }
 0x135   :  { %v2102_v21 = vpop.eup %2101  ;;  %1543 = vst.msk [vmem:[%s3145_s3 + $0x18] sm:$0xf] %vm1536_vm1, %v1845_v42  ;;  %v1846_v28 = vpack.c.bf16 %v1223_v43, %v1223_v43  ;;  %v1034_v53 = vadd.f32 1.0, %v2100_v13  ;;  %2119 = vpow2.f32 %v1724_v35  ;;  %v764_v31 = vpop.f32.mrb[30].mxu1  ;;  %v2757_v3 = vadd.f32 %v2559_v10, %v636_v22 }
 0x136   :  { %v2104_v55 = vpop.eup %2103  ;;  %1575 = vst.msk [vmem:[%s3145_s3 + $0x98] sm:$0xf] %vm1536_vm1, %v1877_v47  ;;  %v1878_v57 = vpack.c.bf16 %v1255_v11, %v1255_v11  ;;  %v1066_v58 = vadd.f32 1.0, %v2102_v21  ;;  %2121 = vpow2.f32 %v1756_v40  ;;  %v638_v59 = vpop.f32.mrb[31].mxu0  ;;  %v2765_v7 = vadd.f32 %v2559_v10, %v764_v31 }
 0x137   :  { %v766_v60 = vpop.f32.mrb[31].mxu1  ;;  %v2106_v61 = vpop.eup %2105  ;;  %1544 = vst.msk [vmem:[%s3145_s3 + $0x1c] sm:$0xf] %vm1536_vm1, %v1846_v28  ;;  %2123 = vrcp.f32 %v1034_v53  ;;  %v1035_v1 = vadd.f32 1.0, %v2104_v55  ;;  %v1726_v51 = vmul.f32 -1.442695, %v2757_v3 }
 0x138   :  { %1576 = vst.msk [vmem:[%s3145_s3 + $0x9c] sm:$0xf] %vm1536_vm1, %v1878_v57  ;;  %2125 = vrcp.f32 %v1066_v58  ;;  %v1067_v4 = vadd.f32 1.0, %v2106_v61  ;;  %v2108_v8 = vpop.eup %2107  ;;  %v1758_v63 = vmul.f32 -1.442695, %v2765_v7  ;;  %v641_v18 = vpop.f32.mrb[32].mxu0 }
 0x139   :  { %2127 = vrcp.f32 %v1035_v1  ;;  %v2110_v62 = vpop.eup %2109  ;;  %v1224_v15 = vmul.f32 %v2108_v8, %v2634_v52  ;;  %v769_v20 = vpop.f32.mrb[32].mxu1  ;;  %v2773_v29 = vadd.f32 %v2559_v10, %v641_v18 }
 0x13a   :  { %2129 = vrcp.f32 %v1067_v4  ;;  %v2112_v16 = vpop.eup %2111  ;;  %v1256_v17 = vmul.f32 %v2110_v62, %v2641_v56  ;;  %v643_v27 = vpop.f32.mrb[33].mxu0  ;;  %v2777_v56 = vadd.f32 %v2559_v10, %v769_v20 }
 0x13b   :  { %2131 = vpow2.f32 %v1725_v2  ;;  %v1847_v24 = vpack.c.bf16 %v1224_v15, %v1224_v15  ;;  %v1225_v25 = vmul.f32 %v2112_v16, %v2649_v0  ;;  %v771_v30 = vpop.f32.mrb[33].mxu1  ;;  %v644_v34 = vpop.f32.mrb[34].mxu0  ;;  %v1727_v47 = vmul.f32 -1.442695, %v2773_v29 }
 0x13c   :  { %v2114_v23 = vpop.eup %2113  ;;  %2133 = vpow2.f32 %v1757_v5  ;;  %v1879_v32 = vpack.c.bf16 %v1256_v17, %v1256_v17  ;;  %v772_v35 = vpop.f32.mrb[34].mxu1  ;;  %v2788_v44 = vadd.f32 %v2559_v10, %v644_v34  ;;  %v1759_v21 = vmul.f32 -1.442695, %v2777_v56 }
 0x13d   :  { %v2116_v52 = vpop.eup %2115  ;;  %v1257_v37 = vmul.f32 %v2114_v23, %v2657_v6  ;;  %2135 = vpow2.f32 %v1726_v51  ;;  %1545 = vst.msk [vmem:[%s3145_s3 + $0x20] sm:$0xf] %vm1536_vm1, %v1847_v24  ;;  %v1848_v0 = vpack.c.bf16 %v1225_v25, %v1225_v25  ;;  %v646_v40 = vpop.f32.mrb[35].mxu0  ;;  %v2796_v11 = vadd.f32 %v2559_v10, %v772_v35 }
 0x13e   :  { %v2118_v38 = vpop.eup %2117  ;;  %v1036_v36 = vadd.f32 1.0, %v2116_v52  ;;  %2137 = vpow2.f32 %v1758_v63  ;;  %v774_v41 = vpop.f32.mrb[35].mxu1  ;;  %1577 = vst.msk [vmem:[%s3145_s3 + $0xa0] sm:$0xf] %vm1536_vm1, %v1879_v32  ;;  %v1728_v22 = vmul.f32 -1.442695, %v2788_v44 }
 0x13f   :  { %v2120_v42 = vpop.eup %2119  ;;  %v1880_v6 = vpack.c.bf16 %v1257_v37, %v1257_v37  ;;  %v1068_v43 = vadd.f32 1.0, %v2118_v38  ;;  %1546 = vst.msk [vmem:[%s3145_s3 + $0x24] sm:$0xf] %vm1536_vm1, %v1848_v0  ;;  %v1760_v57 = vmul.f32 -1.442695, %v2796_v11 }
 0x140   :  { %v2122_v46 = vpop.eup %2121  ;;  %2139 = vrcp.f32 %v1036_v36  ;;  %v1037_v13 = vadd.f32 1.0, %v2120_v42  ;;  %v649_v58 = vpop.f32.mrb[36].mxu0 }
 0x141   :  { %v2124_v49 = vpop.eup %2123  ;;  %1578 = vst.msk [vmem:[%s3145_s3 + $0xa4] sm:$0xf] %vm1536_vm1, %v1880_v6  ;;  %2141 = vrcp.f32 %v1068_v43  ;;  %v1069_v12 = vadd.f32 1.0, %v2122_v46  ;;  %v777_v59 = vpop.f32.mrb[36].mxu1  ;;  %v2809_v2 = vadd.f32 %v2559_v10, %v649_v58 }
 0x142   :  { %v2126_v28 = vpop.eup %2125  ;;  %v1226_v53 = vmul.f32 %v2124_v49, %v2670_v33  ;;  %2143 = vrcp.f32 %v1037_v13  ;;  %v651_v33 = vpop.f32.mrb[37].mxu0 }
 0x143   :  { %v2128_v31 = vpop.eup %2127  ;;  %v1258_v55 = vmul.f32 %v2126_v28, %v2677_v39  ;;  %2145 = vrcp.f32 %v1069_v12  ;;  %v779_v4 = vpop.f32.mrb[37].mxu1  ;;  %v2813_v39 = vadd.f32 %v2559_v10, %v777_v59  ;;  %v1729_v24 = vmul.f32 -1.442695, %v2809_v2 }
 0x144   :  { %v2130_v60 = vpop.eup %2129  ;;  %v1849_v61 = vpack.c.bf16 %v1226_v53, %v1226_v53  ;;  %v1227_v1 = vmul.f32 %v2128_v31, %v2685_v45  ;;  %2147 = vpow2.f32 %v1727_v47  ;;  %v652_v62 = vpop.f32.mrb[38].mxu0 }
 0x145   :  { %v2132_v5 = vpop.eup %2131  ;;  %v1881_v8 = vpack.c.bf16 %v1258_v55, %v1258_v55  ;;  %v1259_v51 = vmul.f32 %v2130_v60, %v2693_v14  ;;  %2149 = vpow2.f32 %v1759_v21  ;;  %v780_v15 = vpop.f32.mrb[38].mxu1  ;;  %v2829_v30 = vadd.f32 %v2559_v10, %v652_v62 }
 0x146   :  { %v2134_v63 = vpop.eup %2133  ;;  %1547 = vst.msk [vmem:[%s3145_s3 + $0x28] sm:$0xf] %vm1536_vm1, %v1849_v61  ;;  %v1850_v45 = vpack.c.bf16 %v1227_v1, %v1227_v1  ;;  %v1038_v16 = vadd.f32 1.0, %v2132_v5  ;;  %2151 = vpow2.f32 %v1728_v22  ;;  %v654_v17 = vpop.f32.mrb[39].mxu0  ;;  %v2832_v52 = vadd.f32 %v2559_v10, %v780_v15 }
 0x147   :  { %v782_v18 = vpop.f32.mrb[39].mxu1  ;;  %v2136_v20 = vpop.eup %2135  ;;  %1579 = vst.msk [vmem:[%s3145_s3 + $0xa8] sm:$0xf] %vm1536_vm1, %v1881_v8  ;;  %v1882_v14 = vpack.c.bf16 %v1259_v51, %v1259_v51  ;;  %v1070_v23 = vadd.f32 1.0, %v2134_v63  ;;  %2153 = vpow2.f32 %v1760_v57  ;;  %v1761_v37 = vmul.f32 -1.442695, %v2813_v39 }
 0x148   :  { %v2138_v25 = vpop.eup %2137  ;;  %1548 = vst.msk [vmem:[%s3145_s3 + $0x2c] sm:$0xf] %vm1536_vm1, %v1850_v45  ;;  %2155 = vrcp.f32 %v1038_v16  ;;  %v1039_v27 = vadd.f32 1.0, %v2136_v20  ;;  %v1730_v35 = vmul.f32 -1.442695, %v2829_v30  ;;  %v657_v40 = vpop.f32.mrb[40].mxu0 }
 0x149   :  { %1580 = vst.msk [vmem:[%s3145_s3 + $0xac] sm:$0xf] %vm1536_vm1, %v1882_v14  ;;  %2157 = vrcp.f32 %v1070_v23  ;;  %v1071_v32 = vadd.f32 1.0, %v2138_v25  ;;  %v1762_v36 = vmul.f32 -1.442695, %v2832_v52  ;;  %v785_v41 = vpop.f32.mrb[40].mxu1  ;;  %v2844_v43 = vadd.f32 %v2559_v10, %v657_v40 }
 0x14a   :  { %v2140_v34 = vpop.eup %2139  ;;  %2159 = vrcp.f32 %v1039_v27  ;;  %v659_v46 = vpop.f32.mrb[41].mxu0 }
 0x14b   :  { %v2142_v38 = vpop.eup %2141  ;;  %v1228_v0 = vmul.f32 %v2140_v34, %v2702_v50  ;;  %2161 = vrcp.f32 %v1071_v32  ;;  %v787_v13 = vpop.f32.mrb[41].mxu1  ;;  %v2848_v50 = vadd.f32 %v2559_v10, %v785_v41  ;;  %v1731_v31 = vmul.f32 -1.442695, %v2844_v43 }
 0x14c   :  { %v2144_v42 = vpop.eup %2143  ;;  %v1260_v6 = vmul.f32 %v2142_v38, %v2709_v9  ;;  %2163 = vpow2.f32 %v1729_v24  ;;  %v660_v21 = vpop.f32.mrb[42].mxu0 }
 0x14d   :  { %v2146_v47 = vpop.eup %2145  ;;  %v1851_v49 = vpack.c.bf16 %v1228_v0, %v1228_v0  ;;  %v1229_v12 = vmul.f32 %v2144_v42, %v2716_v19  ;;  %2165 = vpow2.f32 %v1761_v37  ;;  %v788_v28 = vpop.f32.mrb[42].mxu1  ;;  %v2861_v1 = vadd.f32 %v2559_v10, %v660_v21 }
 0x14e   :  { %v2148_v53 = vpop.eup %2147  ;;  %v1883_v22 = vpack.c.bf16 %v1260_v6, %v1260_v6  ;;  %v1261_v9 = vmul.f32 %v2146_v47, %v2724_v26  ;;  %2167 = vpow2.f32 %v1730_v35  ;;  %v662_v55 = vpop.f32.mrb[43].mxu0  ;;  %v1763_v5 = vmul.f32 -1.442695, %v2848_v50 }
 0x14f   :  { %v790_v57 = vpop.f32.mrb[43].mxu1  ;;  %v2150_v58 = vpop.eup %2149  ;;  %1549 = vst.msk [vmem:[%s3145_s3 + $0x30] sm:$0xf] %vm1536_vm1, %v1851_v49  ;;  %v1852_v19 = vpack.c.bf16 %v1229_v12, %v1229_v12  ;;  %v1040_v59 = vadd.f32 1.0, %v2148_v53  ;;  %2169 = vpow2.f32 %v1762_v36  ;;  %v2869_v8 = vadd.f32 %v2559_v10, %v788_v28 }
 0x150   :  { %v2152_v60 = vpop.eup %2151  ;;  %1581 = vst.msk [vmem:[%s3145_s3 + $0xb0] sm:$0xf] %vm1536_vm1, %v1883_v22  ;;  %v1884_v26 = vpack.c.bf16 %v1261_v9, %v1261_v9  ;;  %v1072_v61 = vadd.f32 1.0, %v2150_v58  ;;  %2171 = vpow2.f32 %v1731_v31  ;;  %v1732_v15 = vmul.f32 -1.442695, %v2861_v1  ;;  %v665_v17 = vpop.f32.mrb[44].mxu0 }
 0x151   :  { %v2154_v33 = vpop.eup %2153  ;;  %1550 = vst.msk [vmem:[%s3145_s3 + $0x34] sm:$0xf] %vm1536_vm1, %v1852_v19  ;;  %2173 = vrcp.f32 %v1040_v59  ;;  %v1041_v4 = vadd.f32 1.0, %v2152_v60  ;;  %v1764_v16 = vmul.f32 -1.442695, %v2869_v8  ;;  %v793_v18 = vpop.f32.mrb[44].mxu1  ;;  %v2880_v23 = vadd.f32 %v2559_v10, %v665_v17 }
 0x152   :  { %v2156_v51 = vpop.eup %2155  ;;  %1582 = vst.msk [vmem:[%s3145_s3 + $0xb4] sm:$0xf] %vm1536_vm1, %v1884_v26  ;;  %2175 = vrcp.f32 %v1072_v61  ;;  %v1073_v62 = vadd.f32 1.0, %v2154_v33  ;;  %v667_v24 = vpop.f32.mrb[45].mxu0 }
 0x153   :  { %v2158_v63 = vpop.eup %2157  ;;  %v1230_v45 = vmul.f32 %v2156_v51, %v2738_v48  ;;  %2177 = vrcp.f32 %v1041_v4  ;;  %v795_v25 = vpop.f32.mrb[45].mxu1  ;;  %v2884_v48 = vadd.f32 %v2559_v10, %v793_v18  ;;  %v1733_v36 = vmul.f32 -1.442695, %v2880_v23 }
 0x154   :  { %v2160_v20 = vpop.eup %2159  ;;  %v1262_v14 = vmul.f32 %v2158_v63, %v2745_v54  ;;  %2179 = vrcp.f32 %v1073_v62  ;;  %v668_v34 = vpop.f32.mrb[46].mxu0 }
 0x155   :  { %v2162_v27 = vpop.eup %2161  ;;  %v1853_v32 = vpack.c.bf16 %v1230_v45, %v1230_v45  ;;  %v1231_v37 = vmul.f32 %v2160_v20, %v2757_v3  ;;  %2181 = vpow2.f32 %v1763_v5  ;;  %v796_v35 = vpop.f32.mrb[46].mxu1  ;;  %v2897_v47 = vadd.f32 %v2559_v10, %v668_v34 }
 0x156   :  { %v2164_v38 = vpop.eup %2163  ;;  %v1885_v0 = vpack.c.bf16 %v1262_v14, %v1262_v14  ;;  %v1263_v54 = vmul.f32 %v2162_v27, %v2765_v7  ;;  %2183 = vpow2.f32 %v1732_v15  ;;  %v670_v40 = vpop.f32.mrb[47].mxu0  ;;  %v2904_v21 = vadd.f32 %v2559_v10, %v796_v35 }
 0x157   :  { %v798_v41 = vpop.f32.mrb[47].mxu1  ;;  %v2166_v42 = vpop.eup %2165  ;;  %1551 = vst.msk [vmem:[%s3145_s3 + $0x38] sm:$0xf] %vm1536_vm1, %v1853_v32  ;;  %v1854_v3 = vpack.c.bf16 %v1231_v37, %v1231_v37  ;;  %v1042_v6 = vadd.f32 1.0, %v2164_v38  ;;  %2185 = vpow2.f32 %v1764_v16  ;;  %v1765_v22 = vmul.f32 -1.442695, %v2884_v48 }
 0x158   :  { %v2168_v46 = vpop.eup %2167  ;;  %1583 = vst.msk [vmem:[%s3145_s3 + $0xb8] sm:$0xf] %vm1536_vm1, %v1885_v0  ;;  %v1886_v7 = vpack.c.bf16 %v1263_v54, %v1263_v54  ;;  %v1074_v13 = vadd.f32 1.0, %v2166_v42  ;;  %2187 = vpow2.f32 %v1733_v36  ;;  %v1734_v55 = vmul.f32 -1.442695, %v2897_v47  ;;  %v673_v57 = vpop.f32.mrb[48].mxu0 }
 0x159   :  { %v2170_v49 = vpop.eup %2169  ;;  %1552 = vst.msk [vmem:[%s3145_s3 + $0x3c] sm:$0xf] %vm1536_vm1, %v1854_v3  ;;  %2189 = vrcp.f32 %v1042_v6  ;;  %v1043_v12 = vadd.f32 1.0, %v2168_v46  ;;  %v801_v58 = vpop.f32.mrb[48].mxu1  ;;  %v1766_v60 = vmul.f32 -1.442695, %v2904_v21  ;;  %v2915_v26 = vadd.f32 %v2559_v10, %v673_v57 }
 0x15a   :  { %v2172_v28 = vpop.eup %2171  ;;  %1584 = vst.msk [vmem:[%s3145_s3 + $0xbc] sm:$0xf] %vm1536_vm1, %v1886_v7  ;;  %2191 = vrcp.f32 %v1074_v13  ;;  %v1075_v53 = vadd.f32 1.0, %v2170_v49  ;;  %v675_v61 = vpop.f32.mrb[49].mxu0  ;;  %v2919_v51 = vadd.f32 %v2559_v10, %v801_v58 }
 0x15b   :  { %v2174_v9 = vpop.eup %2173  ;;  %2193 = vrcp.f32 %v1043_v12  ;;  %v1044_v31 = vadd.f32 1.0, %v2172_v28  ;;  %v803_v33 = vpop.f32.mrb[49].mxu1  ;;  %v1735_v16 = vmul.f32 -1.442695, %v2915_v26 }
 0x15c   :  { %v2176_v19 = vpop.eup %2175  ;;  %v1232_v59 = vmul.f32 %v2174_v9, %v2773_v29  ;;  %2195 = vrcp.f32 %v1075_v53  ;;  %v676_v62 = vpop.f32.mrb[50].mxu0  ;;  %v1767_v0 = vmul.f32 -1.442695, %v2919_v51 }
 0x15d   :  { %v2178_v4 = vpop.eup %2177  ;;  %v1264_v5 = vmul.f32 %v2176_v19, %v2777_v56  ;;  %2197 = vrcp.f32 %v1044_v31  ;;  %v804_v15 = vpop.f32.mrb[50].mxu1 }
 0x15e   :  { %v2180_v63 = vpop.eup %2179  ;;  %v1855_v45 = vpack.c.bf16 %v1232_v59, %v1232_v59  ;;  %v1233_v29 = vmul.f32 %v2178_v4, %v2788_v44  ;;  %2199 = vpow2.f32 %v1765_v22  ;;  %v678_v17 = vpop.f32.mrb[51].mxu0  ;;  %v2931_v44 = vld [vmem:[%s3144_s2] ss:$0 sm:$0xff] }
 0x15f   :  { %v806_v18 = vpop.f32.mrb[51].mxu1  ;;  %v2182_v20 = vpop.eup %2181  ;;  %v1887_v14 = vpack.c.bf16 %v1264_v5, %v1264_v5  ;;  %v1265_v24 = vmul.f32 %v2180_v63, %v2796_v11  ;;  %2201 = vpow2.f32 %v1734_v55  ;;  %v2934_v27 = vadd.f32 %v2931_v44, %v676_v62 }
 0x160   :  { %v2184_v56 = vpop.eup %2183  ;;  %1553 = vst.msk [vmem:[%s3145_s3 + $0x40] sm:$0xf] %vm1536_vm1, %v1855_v45  ;;  %v1856_v10 = vpack.c.bf16 %v1233_v29, %v1233_v29  ;;  %v1076_v25 = vadd.f32 1.0, %v2182_v20  ;;  %2203 = vpow2.f32 %v1766_v60  ;;  %v2941_v34 = vadd.f32 %v2931_v44, %v804_v15  ;;  %v681_v42 = vpop.f32.mrb[52].mxu0 }
 0x161   :  { %v2186_v32 = vpop.eup %2185  ;;  %1585 = vst.msk [vmem:[%s3145_s3 + $0xc0] sm:$0xf] %vm1536_vm1, %v1887_v14  ;;  %v1888_v11 = vpack.c.bf16 %v1265_v24, %v1265_v24  ;;  %v1045_v37 = vadd.f32 1.0, %v2184_v56  ;;  %2205 = vpow2.f32 %v1735_v16  ;;  %v1736_v54 = vmul.f32 -1.442695, %v2934_v27  ;;  %v809_v3 = vpop.f32.mrb[52].mxu1 }
 0x162   :  { %v2188_v35 = vpop.eup %2187  ;;  %1554 = vst.msk [vmem:[%s3145_s3 + $0x44] sm:$0xf] %vm1536_vm1, %v1856_v10  ;;  %2207 = vrcp.f32 %v1076_v25  ;;  %v1077_v38 = vadd.f32 1.0, %v2186_v32  ;;  %v1768_v41 = vmul.f32 -1.442695, %v2941_v34  ;;  %v2956_v7 = vadd.f32 %v2931_v44, %v681_v42  ;;  %v683_v49 = vpop.f32.mrb[53].mxu0 }
 0x163   :  { %v2190_v36 = vpop.eup %2189  ;;  %1586 = vst.msk [vmem:[%s3145_s3 + $0xc4] sm:$0xf] %vm1536_vm1, %v1888_v11  ;;  %2209 = vrcp.f32 %v1045_v37  ;;  %v1046_v40 = vadd.f32 1.0, %v2188_v35  ;;  %v2959_v13 = vadd.f32 %v2931_v44, %v809_v3  ;;  %v811_v12 = vpop.f32.mrb[53].mxu1 }
 0x164   :  { %v2192_v6 = vpop.eup %2191  ;;  %v1234_v46 = vmul.f32 %v2190_v36, %v2809_v2  ;;  %2211 = vrcp.f32 %v1077_v38  ;;  %v684_v22 = vpop.f32.mrb[54].mxu0  ;;  %v1737_v2 = vmul.f32 -1.442695, %v2956_v7 }
 0x165   :  { %v2194_v28 = vpop.eup %2193  ;;  %v1266_v53 = vmul.f32 %v2192_v6, %v2813_v39  ;;  %2213 = vrcp.f32 %v1046_v40  ;;  %v812_v9 = vpop.f32.mrb[54].mxu1  ;;  %v1769_v33 = vmul.f32 -1.442695, %v2959_v13  ;;  %v2972_v5 = vadd.f32 %v2931_v44, %v684_v22 }
 0x166   :  { %v2196_v31 = vpop.eup %2195  ;;  %v1857_v55 = vpack.c.bf16 %v1234_v46, %v1234_v46  ;;  %v1235_v57 = vmul.f32 %v2194_v28, %v2829_v30  ;;  %2215 = vpow2.f32 %v1767_v0  ;;  %v686_v58 = vpop.f32.mrb[55].mxu0  ;;  %v2979_v63 = vadd.f32 %v2931_v44, %v812_v9 }
 0x167   :  { %v814_v19 = vpop.f32.mrb[55].mxu1  ;;  %v2198_v59 = vpop.eup %2197  ;;  %v1889_v60 = vpack.c.bf16 %v1266_v53, %v1266_v53  ;;  %v1267_v61 = vmul.f32 %v2196_v31, %v2832_v52  ;;  %2217 = vpow2.f32 %v1736_v54  ;;  %v1738_v16 = vmul.f32 -1.442695, %v2972_v5 }
 0x168   :  { %v2200_v39 = vpop.eup %2199  ;;  %1555 = vst.msk [vmem:[%s3145_s3 + $0x48] sm:$0xf] %vm1536_vm1, %v1857_v55  ;;  %v1858_v4 = vpack.c.bf16 %v1235_v57, %v1235_v57  ;;  %v1236_v30 = vmul.f32 %v2198_v59, %v2844_v43  ;;  %2219 = vpow2.f32 %v1768_v41  ;;  %v1770_v20 = vmul.f32 -1.442695, %v2979_v63  ;;  %v689_v14 = vpop.f32.mrb[56].mxu0 }
 0x169   :  { %v2202_v62 = vpop.eup %2201  ;;  %1587 = vst.msk [vmem:[%s3145_s3 + $0xc8] sm:$0xf] %vm1536_vm1, %v1889_v60  ;;  %v1890_v52 = vpack.c.bf16 %v1267_v61, %v1267_v61  ;;  %v1078_v15 = vadd.f32 1.0, %v2200_v39  ;;  %2221 = vpow2.f32 %v1737_v2  ;;  %v817_v24 = vpop.f32.mrb[56].mxu1  ;;  %v2996_v25 = vadd.f32 %v2931_v44, %v689_v14 }
 0x16a   :  { %v2204_v45 = vpop.eup %2203  ;;  %1556 = vst.msk [vmem:[%s3145_s3 + $0x4c] sm:$0xf] %vm1536_vm1, %v1858_v4  ;;  %v1859_v43 = vpack.c.bf16 %v1236_v30, %v1236_v30  ;;  %v1047_v29 = vadd.f32 1.0, %v2202_v62  ;;  %2223 = vpow2.f32 %v1769_v33  ;;  %v2999_v32 = vadd.f32 %v2931_v44, %v817_v24  ;;  %v691_v11 = vpop.f32.mrb[57].mxu0 }
 0x16b   :  { %v2206_v17 = vpop.eup %2205  ;;  %1588 = vst.msk [vmem:[%s3145_s3 + $0xcc] sm:$0xf] %vm1536_vm1, %v1890_v52  ;;  %2225 = vrcp.f32 %v1078_v15  ;;  %v1079_v18 = vadd.f32 1.0, %v2204_v45  ;;  %v819_v37 = vpop.f32.mrb[57].mxu1  ;;  %v1739_v41 = vmul.f32 -1.442695, %v2996_v25 }
 0x16c   :  { %v2208_v56 = vpop.eup %2207  ;;  %1557 = vst.msk [vmem:[%s3145_s3 + $0x50] sm:$0xf] %vm1536_vm1, %v1859_v43  ;;  %2227 = vrcp.f32 %v1047_v29  ;;  %v1048_v10 = vadd.f32 1.0, %v2206_v17  ;;  %v692_v0 = vpop.f32.mrb[58].mxu0  ;;  %v1771_v42 = vmul.f32 -1.442695, %v2999_v32 }
 0x16d   :  { %v2210_v35 = vpop.eup %2209  ;;  %v1268_v38 = vmul.f32 %v2208_v56, %v2848_v50  ;;  %2229 = vrcp.f32 %v1079_v18  ;;  %v820_v54 = vpop.f32.mrb[58].mxu1  ;;  %v3007_v50 = vadd.f32 %v2931_v44, %v692_v0 }
 0x16e   :  { %v2212_v36 = vpop.eup %2211  ;;  %v1237_v40 = vmul.f32 %v2210_v35, %v2861_v1  ;;  %2231 = vrcp.f32 %v1048_v10  ;;  %v694_v3 = vpop.f32.mrb[59].mxu0 }
 0x16f   :  { %v822_v6 = vpop.f32.mrb[59].mxu1  ;;  %v2214_v46 = vpop.eup %2213  ;;  %v1891_v49 = vpack.c.bf16 %v1268_v38, %v1268_v38  ;;  %v1269_v12 = vmul.f32 %v2212_v36, %v2869_v8  ;;  %2233 = vpow2.f32 %v1738_v16  ;;  %v3015_v8 = vadd.f32 %v2931_v44, %v820_v54 }
 0x170   :  { %v2216_v28 = vpop.eup %2215  ;;  %v1860_v53 = vpack.c.bf16 %v1237_v40, %v1237_v40  ;;  %v1238_v22 = vmul.f32 %v2214_v46, %v2880_v23  ;;  %2235 = vpow2.f32 %v1770_v20  ;;  %v1740_v19 = vmul.f32 -1.442695, %v3007_v50  ;;  %v697_v59 = vpop.f32.mrb[60].mxu0 }
 0x171   :  { %v2218_v1 = vpop.eup %2217  ;;  %1589 = vst.msk [vmem:[%s3145_s3 + $0xd0] sm:$0xf] %vm1536_vm1, %v1891_v49  ;;  %v1892_v9 = vpack.c.bf16 %v1269_v12, %v1269_v12  ;;  %v1080_v31 = vadd.f32 1.0, %v2216_v28  ;;  %2237 = vpow2.f32 %v1739_v41  ;;  %v825_v60 = vpop.f32.mrb[60].mxu1  ;;  %v3031_v39 = vadd.f32 %v2931_v44, %v697_v59 }
 0x172   :  { %v2220_v55 = vpop.eup %2219  ;;  %1558 = vst.msk [vmem:[%s3145_s3 + $0x54] sm:$0xf] %vm1536_vm1, %v1860_v53  ;;  %v1861_v23 = vpack.c.bf16 %v1238_v22, %v1238_v22  ;;  %v1049_v57 = vadd.f32 1.0, %v2218_v1  ;;  %2239 = vpow2.f32 %v1771_v42  ;;  %v3034_v4 = vadd.f32 %v2931_v44, %v825_v60  ;;  %v699_v30 = vpop.f32.mrb[61].mxu0 }
 0x173   :  { %v2222_v2 = vpop.eup %2221  ;;  %1590 = vst.msk [vmem:[%s3145_s3 + $0xd4] sm:$0xf] %vm1536_vm1, %v1892_v9  ;;  %2241 = vrcp.f32 %v1080_v31  ;;  %v1081_v58 = vadd.f32 1.0, %v2220_v55  ;;  %v827_v62 = vpop.f32.mrb[61].mxu1  ;;  %v1772_v45 = vmul.f32 -1.442695, %v3015_v8 }
 0x174   :  { %v2224_v61 = vpop.eup %2223  ;;  %1559 = vst.msk [vmem:[%s3145_s3 + $0x58] sm:$0xf] %vm1536_vm1, %v1861_v23  ;;  %2243 = vrcp.f32 %v1049_v57  ;;  %v1050_v33 = vadd.f32 1.0, %v2222_v2  ;;  %v700_v43 = vpop.f32.mrb[62].mxu0  ;;  %v1741_v18 = vmul.f32 -1.442695, %v3031_v39 }
 0x175   :  { %v2226_v52 = vpop.eup %2225  ;;  %2245 = vrcp.f32 %v1081_v58  ;;  %v1082_v15 = vadd.f32 1.0, %v2224_v61  ;;  %v828_v29 = vpop.f32.mrb[62].mxu1  ;;  %v1773_v10 = vmul.f32 -1.442695, %v3034_v4  ;;  %v3043_v38 = vadd.f32 %v2931_v44, %v700_v43 }
 0x176   :  { %v2228_v16 = vpop.eup %2227  ;;  %v1270_v17 = vmul.f32 %v2226_v52, %v2884_v48  ;;  %2247 = vrcp.f32 %v1050_v33  ;;  %v702_v20 = vpop.f32.mrb[63].mxu0  ;;  %v3047_v36 = vadd.f32 %v2931_v44, %v828_v29 }
 0x177   :  { %v830_v14 = vpop.f32.mrb[63].mxu1  ;;  %v2230_v24 = vpop.eup %2229  ;;  %v1239_v56 = vmul.f32 %v2228_v16, %v2897_v47  ;;  %2249 = vrcp.f32 %v1082_v15  ;;  %v1742_v6 = vmul.f32 -1.442695, %v3043_v38 }
 0x178   :  { %v2232_v11 = vpop.eup %2231  ;;  %v1893_v37 = vpack.c.bf16 %v1270_v17, %v1270_v17  ;;  %v1271_v35 = vmul.f32 %v2230_v24, %v2904_v21  ;;  %2251 = vpow2.f32 %v1740_v19  ;;  %v1774_v12 = vmul.f32 -1.442695, %v3047_v36 }
 0x179   :  { %v2234_v48 = vpop.eup %2233  ;;  %v1862_v0 = vpack.c.bf16 %v1239_v56, %v1239_v56  ;;  %v1240_v54 = vmul.f32 %v2232_v11, %v2915_v26  ;;  %2253 = vpow2.f32 %v1772_v45 }
 0x17a   :  { %v2236_v47 = vpop.eup %2235  ;;  %1591 = vst.msk [vmem:[%s3145_s3 + $0xd8] sm:$0xf] %vm1536_vm1, %v1893_v37  ;;  %v1894_v40 = vpack.c.bf16 %v1271_v35, %v1271_v35  ;;  %v1051_v21 = vadd.f32 1.0, %v2234_v48  ;;  %2255 = vpow2.f32 %v1741_v18 }
 0x17b   :  { %v2238_v41 = vpop.eup %2237  ;;  %1560 = vst.msk [vmem:[%s3145_s3 + $0x5c] sm:$0xf] %vm1536_vm1, %v1862_v0  ;;  %v1863_v26 = vpack.c.bf16 %v1240_v54, %v1240_v54  ;;  %v1083_v42 = vadd.f32 1.0, %v2236_v47  ;;  %2257 = vpow2.f32 %v1773_v10 }
 0x17c   :  { %v2240_v44 = vpop.eup %2239  ;;  %1592 = vst.msk [vmem:[%s3145_s3 + $0xdc] sm:$0xf] %vm1536_vm1, %v1894_v40  ;;  %2259 = vrcp.f32 %v1051_v21  ;;  %v1052_v3 = vadd.f32 1.0, %v2238_v41 }
 0x17d   :  { %v2242_v46 = vpop.eup %2241  ;;  %1561 = vst.msk [vmem:[%s3145_s3 + $0x60] sm:$0xf] %vm1536_vm1, %v1863_v26  ;;  %2261 = vrcp.f32 %v1083_v42  ;;  %v1084_v49 = vadd.f32 1.0, %v2240_v44 }
 0x17e   :  { %v2244_v28 = vpop.eup %2243  ;;  %v1272_v53 = vmul.f32 %v2242_v46, %v2919_v51  ;;  %2263 = vrcp.f32 %v1052_v3 }
 0x17f   :  { %v2246_v22 = vpop.eup %2245  ;;  %v1241_v1 = vmul.f32 %v2244_v28, %v2934_v27  ;;  %2265 = vrcp.f32 %v1084_v49 }
 0x180   :  { %v2248_v9 = vpop.eup %2247  ;;  %v1895_v31 = vpack.c.bf16 %v1272_v53, %v1272_v53  ;;  %v1273_v55 = vmul.f32 %v2246_v22, %v2941_v34  ;;  %2267 = vpow2.f32 %v1742_v6 }
 0x181   :  { %v2250_v23 = vpop.eup %2249  ;;  %v1864_v57 = vpack.c.bf16 %v1241_v1, %v1241_v1  ;;  %v1242_v2 = vmul.f32 %v2248_v9, %v2956_v7  ;;  %2269 = vpow2.f32 %v1774_v12 }
 0x182   :  { %v2252_v58 = vpop.eup %2251  ;;  %1593 = vst.msk [vmem:[%s3145_s3 + $0xe0] sm:$0xf] %vm1536_vm1, %v1895_v31  ;;  %v1896_v51 = vpack.c.bf16 %v1273_v55, %v1273_v55  ;;  %v1274_v27 = vmul.f32 %v2250_v23, %v2959_v13 }
 0x183   :  { %v2254_v19 = vpop.eup %2253  ;;  %1562 = vst.msk [vmem:[%s3145_s3 + $0x64] sm:$0xf] %vm1536_vm1, %v1864_v57  ;;  %v1865_v34 = vpack.c.bf16 %v1242_v2, %v1242_v2  ;;  %v1053_v59 = vadd.f32 1.0, %v2252_v58 }
 0x184   :  { %v2256_v60 = vpop.eup %2255  ;;  %1594 = vst.msk [vmem:[%s3145_s3 + $0xe4] sm:$0xf] %vm1536_vm1, %v1896_v51  ;;  %v1897_v7 = vpack.c.bf16 %v1274_v27, %v1274_v27  ;;  %v1085_v61 = vadd.f32 1.0, %v2254_v19 }
 0x185   :  { %v2258_v33 = vpop.eup %2257  ;;  %1563 = vst.msk [vmem:[%s3145_s3 + $0x68] sm:$0xf] %vm1536_vm1, %v1865_v34  ;;  %2271 = vrcp.f32 %v1053_v59  ;;  %v1054_v13 = vadd.f32 1.0, %v2256_v60 }
 0x186   :  { %v2260_v30 = vpop.eup %2259  ;;  %1595 = vst.msk [vmem:[%s3145_s3 + $0xe8] sm:$0xf] %vm1536_vm1, %v1897_v7  ;;  %2273 = vrcp.f32 %v1085_v61  ;;  %v1086_v62 = vadd.f32 1.0, %v2258_v33 }
 0x187   :  { %v2262_v52 = vpop.eup %2261  ;;  %v1243_v15 = vmul.f32 %v2260_v30, %v2972_v5  ;;  %2275 = vrcp.f32 %v1054_v13 }
 0x188   :  { %v2264_v45 = vpop.eup %2263  ;;  %v1275_v43 = vmul.f32 %v2262_v52, %v2979_v63  ;;  %2277 = vrcp.f32 %v1086_v62 }
 0x189   :  { %v2266_v29 = vpop.eup %2265  ;;  %v1866_v16 = vpack.c.bf16 %v1243_v15, %v1243_v15  ;;  %v1244_v17 = vmul.f32 %v2264_v45, %v2996_v25 }
 0x18a   :  { %v2268_v18 = vpop.eup %2267  ;;  %v1898_v20 = vpack.c.bf16 %v1275_v43, %v1275_v43  ;;  %v1276_v14 = vmul.f32 %v2266_v29, %v2999_v32 }
 0x18b   :  { %v2270_v24 = vpop.eup %2269  ;;  %1564 = vst.msk [vmem:[%s3145_s3 + $0x6c] sm:$0xf] %vm1536_vm1, %v1866_v16  ;;  %v1867_v5 = vpack.c.bf16 %v1244_v17, %v1244_v17  ;;  %v1055_v56 = vadd.f32 1.0, %v2268_v18 }
 0x18c   :  { %1596 = vst.msk [vmem:[%s3145_s3 + $0xec] sm:$0xf] %vm1536_vm1, %v1898_v20  ;;  %v1899_v63 = vpack.c.bf16 %v1276_v14, %v1276_v14  ;;  %v1087_v10 = vadd.f32 1.0, %v2270_v24 }
 0x18d   :  { %1565 = vst.msk [vmem:[%s3145_s3 + $0x70] sm:$0xf] %vm1536_vm1, %v1867_v5  ;;  %2279 = vrcp.f32 %v1055_v56 }
 0x18e   :  { %1597 = vst.msk [vmem:[%s3145_s3 + $0xf0] sm:$0xf] %vm1536_vm1, %v1899_v63  ;;  %2281 = vrcp.f32 %v1087_v10 }
 0x18f   :  { %v2272_v25 = vpop.eup %2271 }
 0x190   :  { %v2274_v32 = vpop.eup %2273  ;;  %v1245_v11 = vmul.f32 %v2272_v25, %v3007_v50 }
 0x191   :  { %v2276_v37 = vpop.eup %2275  ;;  %v1277_v35 = vmul.f32 %v2274_v32, %v3015_v8 }
 0x192   :  { %v2278_v48 = vpop.eup %2277  ;;  %v1868_v0 = vpack.c.bf16 %v1245_v11, %v1245_v11  ;;  %v1246_v54 = vmul.f32 %v2276_v37, %v3031_v39 }
 0x193   :  { %v1900_v47 = vpack.c.bf16 %v1277_v35, %v1277_v35  ;;  %v1278_v40 = vmul.f32 %v2278_v48, %v3034_v4 }
 0x194   :  { %1566 = vst.msk [vmem:[%s3145_s3 + $0x74] sm:$0xf] %vm1536_vm1, %v1868_v0  ;;  %v1869_v21 = vpack.c.bf16 %v1246_v54, %v1246_v54 }
 0x195   :  { %1598 = vst.msk [vmem:[%s3145_s3 + $0xf4] sm:$0xf] %vm1536_vm1, %v1900_v47  ;;  %v1901_v50 = vpack.c.bf16 %v1278_v40, %v1278_v40 }
 0x196   :  { %1567 = vst.msk [vmem:[%s3145_s3 + $0x78] sm:$0xf] %vm1536_vm1, %v1869_v21 }
 0x197   :  { %v2280_v8 = vpop.eup %2279  ;;  %1599 = vst.msk [vmem:[%s3145_s3 + $0xf8] sm:$0xf] %vm1536_vm1, %v1901_v50 }
 0x198   :  { %v2282_v39 = vpop.eup %2281  ;;  %v1247_v4 = vmul.f32 %v2280_v8, %v3043_v38 }
 0x199   :  { %v1279_v41 = vmul.f32 %v2282_v39, %v3047_v36 }
 0x19a   :  { %v1870_v26 = vpack.c.bf16 %v1247_v4, %v1247_v4 }
 0x19b   :  { %v1902_v42 = vpack.c.bf16 %v1279_v41, %v1279_v41 }
 0x19c   :  { %1568 = vst.msk [vmem:[%s3145_s3 + $0x7c] sm:$0xf] %vm1536_vm1, %v1870_v26 }
 0x19d   :  { %1600 = vst.msk [vmem:[%s3145_s3 + $0xfc] sm:$0xf] %vm1536_vm1, %v1902_v42 }

// kernel: yolox_forward.39
= control target key start
LH: loop header
LB: loop body
LE: loop exit
PB: predicated region body
PF: predicated region fallthrough
CT: control target
= control target key end

     0   :  { %v699_v0 = vmov 0   ;;  %vm182_vm0 = vcmask 130048   ;;  %vm480_vm1 = vcmask 257024   ;;  %s952_s1 = inlined_call_operand.vmem [shape: bf16[144,32], index: 1, kind: input, shape index: {}]   ;;  %s953_s0 = inlined_call_operand.vmem [shape: bf16[128,144], index: 0, kind: input, shape index: {}]   ;;  %s954_s2 = inlined_call_operand.vmem [shape: f32[1,32], index: 2, kind: input, shape index: {}]   ;;  %s955_s3 = inlined_call_operand.vmem [shape: bf16[128,32], index: 3, kind: output, shape index: {}]  }
   0x1   :  { %207 = vmatprep.subr.bf16.mxu0 %v699_v0  ;;  %583 = vmatprep.subr.bf16.mxu1 %v699_v0  ;;  %v602_v1 = vld [vmem:[%s952_s1] sm:$0xff]   ;;  %v603_v2 = vld [vmem:[%s952_s1 + $0x8] sm:$0xff]   ;;  %v604_v3 = vld [vmem:[%s952_s1 + $0x10] sm:$0xff]  }
   0x2   :  { %208 = vmatpush1.bf16.msra.mxu0 %v602_v1  ;;  %592 = vmatpush1.bf16.msra.mxu1 %v602_v1  ;;  %v605_v4 = vld [vmem:[%s952_s1 + $0x18] sm:$0xff]   ;;  %v613_v5 = vld [vmem:[%s953_s0 + $0x4] ss:$8 sps:$4 sm:$0xff]   ;;  %v608_v9 = vld [vmem:[%s952_s1 + $0x30] sm:$0xff]  }
   0x3   :  { %209 = vmatprep.subr.bf16.mxu0 %v699_v0  ;;  %584 = vmatprep.subr.bf16.mxu1 %v699_v0  ;;  %v616_v6 = vld [vmem:[%s953_s0 + $0x44] ss:$8 sps:$4 sm:$0xff]   ;;  %v609_v10 = vld [vmem:[%s952_s1 + $0x38] sm:$0xff]   ;;  %v611_v12 = vld [vmem:[%s953_s0] ss:$8 sps:$4 sm:$0xff]  }
   0x4   :  { %527 = vmatprep.mubr.msk.bf16.mxu0 %vm182_vm0, %v613_v5  ;;  %531 = vmatprep.mubr.msk.bf16.mxu1 %vm182_vm0, %v616_v6  ;;  %v606_v7 = vld [vmem:[%s952_s1 + $0x20] sm:$0xff]   ;;  %v607_v8 = vld [vmem:[%s952_s1 + $0x28] sm:$0xff]   ;;  %v617_v14 = vld [vmem:[%s953_s0 + $0x14] ss:$8 sps:$4 sm:$0xff]  }
   0x5   :  { %v610_v11 = vld [vmem:[%s952_s1 + $0x40] sm:$0xff]   ;;  %v619_v15 = vld [vmem:[%s953_s0 + $0x54] ss:$8 sps:$4 sm:$0xff]   ;;  %v621_v16 = vld [vmem:[%s953_s0 + $0x10] ss:$8 sps:$4 sm:$0xff]  }
   0x6   :  { %210 = vmatpush1.bf16.msra.mxu0 %v603_v2  ;;  %593 = vmatpush1.bf16.msra.mxu1 %v603_v2  ;;  %v614_v13 = vld [vmem:[%s953_s0 + $0x40] ss:$8 sps:$4 sm:$0xff]   ;;  %v622_v17 = vld [vmem:[%s953_s0 + $0x50] ss:$8 sps:$4 sm:$0xff]   ;;  %v623_v18 = vld [vmem:[%s953_s0 + $0x24] ss:$8 sps:$4 sm:$0xff]  }
   0x7   :  { %211 = vmatprep.subr.bf16.mxu0 %v699_v0  ;;  %585 = vmatprep.subr.bf16.mxu1 %v699_v0  ;;  %v625_v19 = vld [vmem:[%s953_s0 + $0x64] ss:$8 sps:$4 sm:$0xff]   ;;  %v627_v20 = vld [vmem:[%s953_s0 + $0x20] ss:$8 sps:$4 sm:$0xff]   ;;  %v629_v22 = vld [vmem:[%s953_s0 + $0x34] ss:$8 sps:$4 sm:$0xff]  }
   0x8   :  { %v628_v21 = vld [vmem:[%s953_s0 + $0x60] ss:$8 sps:$4 sm:$0xff]   ;;  %v631_v23 = vld [vmem:[%s953_s0 + $0x74] ss:$8 sps:$4 sm:$0xff]   ;;  %v633_v24 = vld [vmem:[%s953_s0 + $0x30] ss:$8 sps:$4 sm:$0xff]  }
   0x9   :  { %v634_v25 = vld [vmem:[%s953_s0 + $0x70] ss:$8 sps:$4 sm:$0xff]   ;;  %v806_v26 = vld [vmem:[%s954_s2] ss:$0 sm:$0xff] }
   0xa   :  { %212 = vmatpush1.bf16.msra.mxu0 %v604_v3  ;;  %594 = vmatpush1.bf16.msra.mxu1 %v604_v3 }
   0xb   :  { %213 = vmatprep.subr.bf16.mxu0 %v699_v0  ;;  %586 = vmatprep.subr.bf16.mxu1 %v699_v0 }
   0xe   :  { %214 = vmatpush1.bf16.msra.mxu0 %v605_v4  ;;  %595 = vmatpush1.bf16.msra.mxu1 %v605_v4 }
   0xf   :  { %215 = vmatprep.subr.bf16.mxu0 %v699_v0  ;;  %587 = vmatprep.subr.bf16.mxu1 %v699_v0 }
  0x12   :  { %216 = vmatpush1.bf16.msra.mxu0 %v606_v7  ;;  %596 = vmatpush1.bf16.msra.mxu1 %v606_v7 }
  0x13   :  { %217 = vmatprep.subr.bf16.mxu0 %v699_v0  ;;  %588 = vmatprep.subr.bf16.mxu1 %v699_v0 }
  0x16   :  { %218 = vmatpush1.bf16.msra.mxu0 %v607_v8  ;;  %597 = vmatpush1.bf16.msra.mxu1 %v607_v8 }
  0x17   :  { %219 = vmatprep.subr.bf16.mxu0 %v699_v0  ;;  %589 = vmatprep.subr.bf16.mxu1 %v699_v0 }
  0x1a   :  { %220 = vmatpush1.bf16.msra.mxu0 %v608_v9  ;;  %598 = vmatpush1.bf16.msra.mxu1 %v608_v9 }
  0x1b   :  { %221 = vmatprep.subr.bf16.mxu0 %v699_v0  ;;  %590 = vmatprep.subr.bf16.mxu1 %v699_v0 }
  0x1e   :  { %222 = vmatpush1.bf16.msra.mxu0 %v609_v10  ;;  %599 = vmatpush1.bf16.msra.mxu1 %v609_v10 }
  0x1f   :  { %223 = vmatprep.subr.bf16.mxu0 %v699_v0  ;;  %591 = vmatprep.subr.bf16.mxu1 %v699_v0 }
  0x22   :  { %224 = vmatpush1.bf16.msra.mxu0 %v610_v11  ;;  %600 = vmatpush1.bf16.msra.mxu1 %v610_v11 }
  0x25   :  { %240 = vmatmul.mubr.bf16.vlgmr.msra.gmra.mrb[0].mxu0 %v611_v12  ;;  %272 = vmatmul.mubr.bf16.vlgmr.msra.gmra.mrb[0].mxu1 %v614_v13 }
  0x26   :  { %528 = vmatprep.mubr.msk.bf16.mxu0 %vm182_vm0, %v617_v14  ;;  %532 = vmatprep.mubr.msk.bf16.mxu1 %vm182_vm0, %v619_v15 }
  0x2d   :  { %248 = vmatmul.mubr.bf16.gmra.mrb[4].mxu0 %v621_v16  ;;  %280 = vmatmul.mubr.bf16.gmra.mrb[4].mxu1 %v622_v17 }
  0x2e   :  { %529 = vmatprep.mubr.msk.bf16.mxu0 %vm182_vm0, %v623_v18  ;;  %533 = vmatprep.mubr.msk.bf16.mxu1 %vm182_vm0, %v625_v19 }
  0x35   :  { %256 = vmatmul.mubr.bf16.gmra.mrb[8].mxu0 %v627_v20  ;;  %288 = vmatmul.mubr.bf16.gmra.mrb[8].mxu1 %v628_v21 }
  0x36   :  { %530 = vmatprep.mubr.msk.bf16.mxu0 %vm182_vm0, %v629_v22  ;;  %534 = vmatprep.mubr.msk.bf16.mxu1 %vm182_vm0, %v631_v23 }
  0x3d   :  { %264 = vmatmul.mubr.bf16.gmra.mrb[12].mxu0 %v633_v24  ;;  %296 = vmatmul.mubr.bf16.gmra.mrb[12].mxu1 %v634_v25 }
  0xf8   :  { %v241_v27 = vpop.f32.mrb[0].mxu0  ;;  %v273_v28 = vpop.f32.mrb[0].mxu1 }
  0xf9   :  { %v809_v29 = vadd.f32 %v806_v26, %v241_v27  ;;  %v812_v30 = vadd.f32 %v806_v26, %v273_v28  ;;  %v243_v31 = vpop.f32.mrb[1].mxu0  ;;  %v275_v32 = vpop.f32.mrb[1].mxu1 }
  0xfa   :  { %v244_v33 = vpop.f32.mrb[2].mxu0  ;;  %v276_v34 = vpop.f32.mrb[2].mxu1 }
  0xfb   :  { %v535_v35 = vmul.f32 -1.442695, %v809_v29  ;;  %v543_v36 = vmul.f32 -1.442695, %v812_v30  ;;  %v817_v37 = vadd.f32 %v806_v26, %v244_v33  ;;  %v820_v38 = vadd.f32 %v806_v26, %v276_v34  ;;  %v246_v39 = vpop.f32.mrb[3].mxu0  ;;  %v278_v40 = vpop.f32.mrb[3].mxu1 }
  0xfd   :  { %635 = vpow2.f32 %v535_v35  ;;  %v536_v41 = vmul.f32 -1.442695, %v817_v37  ;;  %v544_v42 = vmul.f32 -1.442695, %v820_v38 }
  0xfe   :  { %637 = vpow2.f32 %v543_v36 }
  0xff   :  { %639 = vpow2.f32 %v536_v41 }
 0x100   :  { %641 = vpow2.f32 %v544_v42  ;;  %v249_v43 = vpop.f32.mrb[4].mxu0  ;;  %v281_v44 = vpop.f32.mrb[4].mxu1 }
 0x101   :  { %v825_v45 = vadd.f32 %v806_v26, %v249_v43  ;;  %v828_v46 = vadd.f32 %v806_v26, %v281_v44  ;;  %v251_v47 = vpop.f32.mrb[5].mxu0  ;;  %v283_v48 = vpop.f32.mrb[5].mxu1 }
 0x102   :  { %v252_v49 = vpop.f32.mrb[6].mxu0  ;;  %v284_v50 = vpop.f32.mrb[6].mxu1 }
 0x103   :  { %v537_v51 = vmul.f32 -1.442695, %v825_v45  ;;  %v545_v52 = vmul.f32 -1.442695, %v828_v46  ;;  %v833_v53 = vadd.f32 %v806_v26, %v252_v49  ;;  %v836_v54 = vadd.f32 %v806_v26, %v284_v50  ;;  %v254_v55 = vpop.f32.mrb[7].mxu0  ;;  %v286_v56 = vpop.f32.mrb[7].mxu1 }
 0x105   :  { %643 = vpow2.f32 %v537_v51  ;;  %v538_v57 = vmul.f32 -1.442695, %v833_v53  ;;  %v546_v58 = vmul.f32 -1.442695, %v836_v54 }
 0x106   :  { %645 = vpow2.f32 %v545_v52 }
 0x107   :  { %v636_v59 = vpop.eup %635  ;;  %647 = vpow2.f32 %v538_v57 }
 0x108   :  { %v638_v60 = vpop.eup %637  ;;  %v352_v61 = vadd.f32 1.0, %v636_v59  ;;  %649 = vpow2.f32 %v546_v58  ;;  %v257_v62 = vpop.f32.mrb[8].mxu0 }
 0x109   :  { %v289_v63 = vpop.f32.mrb[8].mxu1  ;;  %v640_v0 = vpop.eup %639  ;;  %v360_v1 = vadd.f32 1.0, %v638_v60  ;;  %v841_v2 = vadd.f32 %v806_v26, %v257_v62 }
 0x10a   :  { %v844_v3 = vadd.f32 %v806_v26, %v289_v63  ;;  %v259_v4 = vpop.f32.mrb[9].mxu0  ;;  %v291_v5 = vpop.f32.mrb[9].mxu1  ;;  %651 = vrcp.f32 %v352_v61  ;;  %v353_v7 = vadd.f32 1.0, %v640_v0 }
 0x10b   :  { %v642_v6 = vpop.eup %641  ;;  %v260_v8 = vpop.f32.mrb[10].mxu0  ;;  %653 = vrcp.f32 %v360_v1  ;;  %v539_v11 = vmul.f32 -1.442695, %v841_v2 }
 0x10c   :  { %v292_v9 = vpop.f32.mrb[10].mxu1  ;;  %v361_v10 = vadd.f32 1.0, %v642_v6  ;;  %v547_v12 = vmul.f32 -1.442695, %v844_v3  ;;  %v262_v13 = vpop.f32.mrb[11].mxu0  ;;  %655 = vrcp.f32 %v353_v7  ;;  %v849_v14 = vadd.f32 %v806_v26, %v260_v8 }
 0x10d   :  { %v852_v15 = vadd.f32 %v806_v26, %v292_v9  ;;  %v294_v16 = vpop.f32.mrb[11].mxu1 }
 0x10e   :  { %657 = vrcp.f32 %v361_v10  ;;  %v540_v17 = vmul.f32 -1.442695, %v849_v14 }
 0x10f   :  { %659 = vpow2.f32 %v539_v11  ;;  %v548_v18 = vmul.f32 -1.442695, %v852_v15  ;;  %v644_v19 = vpop.eup %643 }
 0x110   :  { %661 = vpow2.f32 %v547_v12  ;;  %v646_v20 = vpop.eup %645  ;;  %v354_v21 = vadd.f32 1.0, %v644_v19  ;;  %v265_v22 = vpop.f32.mrb[12].mxu0 }
 0x111   :  { %663 = vpow2.f32 %v540_v17  ;;  %v297_v23 = vpop.f32.mrb[12].mxu1  ;;  %v648_v24 = vpop.eup %647  ;;  %v362_v25 = vadd.f32 1.0, %v646_v20  ;;  %v857_v27 = vadd.f32 %v806_v26, %v265_v22 }
 0x112   :  { %665 = vpow2.f32 %v548_v18  ;;  %v860_v28 = vadd.f32 %v806_v26, %v297_v23  ;;  %v267_v31 = vpop.f32.mrb[13].mxu0  ;;  %v299_v32 = vpop.f32.mrb[13].mxu1  ;;  %v355_v34 = vadd.f32 1.0, %v648_v24 }
 0x113   :  { %v650_v33 = vpop.eup %649  ;;  %667 = vrcp.f32 %v354_v21  ;;  %v268_v35 = vpop.f32.mrb[14].mxu0  ;;  %v541_v40 = vmul.f32 -1.442695, %v857_v27 }
 0x114   :  { %v300_v36 = vpop.f32.mrb[14].mxu1  ;;  %669 = vrcp.f32 %v362_v25  ;;  %v363_v39 = vadd.f32 1.0, %v650_v33  ;;  %v549_v41 = vmul.f32 -1.442695, %v860_v28  ;;  %v270_v42 = vpop.f32.mrb[15].mxu0  ;;  %v865_v44 = vadd.f32 %v806_v26, %v268_v35 }
 0x115   :  { %v652_v43 = vpop.eup %651  ;;  %671 = vrcp.f32 %v355_v34  ;;  %v868_v47 = vadd.f32 %v806_v26, %v300_v36  ;;  %v302_v48 = vpop.f32.mrb[15].mxu1 }
 0x116   :  { %v654_v49 = vpop.eup %653  ;;  %v400_v50 = vmul.f32 %v652_v43, %v809_v29  ;;  %673 = vrcp.f32 %v363_v39  ;;  %v542_v55 = vmul.f32 -1.442695, %v865_v44 }
 0x117   :  { %v656_v51 = vpop.eup %655  ;;  %v408_v52 = vmul.f32 %v654_v49, %v812_v30  ;;  %675 = vpow2.f32 %v541_v40  ;;  %v550_v56 = vmul.f32 -1.442695, %v868_v47 }
 0x118   :  { %v658_v57 = vpop.eup %657  ;;  %v567_v58 = vpack.c.bf16 %v400_v50, %v400_v50  ;;  %v401_v59 = vmul.f32 %v656_v51, %v817_v37  ;;  %677 = vpow2.f32 %v549_v41 }
 0x119   :  { %v660_v26 = vpop.eup %659  ;;  %v575_v60 = vpack.c.bf16 %v408_v52, %v408_v52  ;;  %v409_v61 = vmul.f32 %v658_v57, %v820_v38  ;;  %679 = vpow2.f32 %v542_v55 }
 0x11a   :  { %v662_v29 = vpop.eup %661  ;;  %481 = vst.msk [vmem:[%s955_s3] sm:$0xf] %vm480_vm1, %v567_v58  ;;  %v568_v30 = vpack.c.bf16 %v401_v59, %v401_v59  ;;  %v356_v62 = vadd.f32 1.0, %v660_v26  ;;  %681 = vpow2.f32 %v550_v56 }
 0x11b   :  { %v664_v63 = vpop.eup %663  ;;  %489 = vst.msk [vmem:[%s955_s3 + $0x20] sm:$0xf] %vm480_vm1, %v575_v60  ;;  %v576_v37 = vpack.c.bf16 %v409_v61, %v409_v61  ;;  %v364_v0 = vadd.f32 1.0, %v662_v29 }
 0x11c   :  { %v666_v1 = vpop.eup %665  ;;  %482 = vst.msk [vmem:[%s955_s3 + $0x4] sm:$0xf] %vm480_vm1, %v568_v30  ;;  %683 = vrcp.f32 %v356_v62  ;;  %v357_v38 = vadd.f32 1.0, %v664_v63 }
 0x11d   :  { %v668_v4 = vpop.eup %667  ;;  %490 = vst.msk [vmem:[%s955_s3 + $0x24] sm:$0xf] %vm480_vm1, %v576_v37  ;;  %685 = vrcp.f32 %v364_v0  ;;  %v365_v5 = vadd.f32 1.0, %v666_v1 }
 0x11e   :  { %v670_v6 = vpop.eup %669  ;;  %v402_v7 = vmul.f32 %v668_v4, %v825_v45  ;;  %687 = vrcp.f32 %v357_v38 }
 0x11f   :  { %v672_v8 = vpop.eup %671  ;;  %v410_v9 = vmul.f32 %v670_v6, %v828_v46  ;;  %689 = vrcp.f32 %v365_v5 }
 0x120   :  { %v674_v10 = vpop.eup %673  ;;  %v569_v11 = vpack.c.bf16 %v402_v7, %v402_v7  ;;  %v403_v12 = vmul.f32 %v672_v8, %v833_v53 }
 0x121   :  { %v676_v13 = vpop.eup %675  ;;  %v577_v16 = vpack.c.bf16 %v410_v9, %v410_v9  ;;  %v411_v17 = vmul.f32 %v674_v10, %v836_v54 }
 0x122   :  { %v678_v18 = vpop.eup %677  ;;  %483 = vst.msk [vmem:[%s955_s3 + $0x8] sm:$0xf] %vm480_vm1, %v569_v11  ;;  %v570_v45 = vpack.c.bf16 %v403_v12, %v403_v12  ;;  %v358_v19 = vadd.f32 1.0, %v676_v13 }
 0x123   :  { %v680_v20 = vpop.eup %679  ;;  %491 = vst.msk [vmem:[%s955_s3 + $0x28] sm:$0xf] %vm480_vm1, %v577_v16  ;;  %v578_v46 = vpack.c.bf16 %v411_v17, %v411_v17  ;;  %v366_v53 = vadd.f32 1.0, %v678_v18 }
 0x124   :  { %v682_v21 = vpop.eup %681  ;;  %484 = vst.msk [vmem:[%s955_s3 + $0xc] sm:$0xf] %vm480_vm1, %v570_v45  ;;  %691 = vrcp.f32 %v358_v19  ;;  %v359_v54 = vadd.f32 1.0, %v680_v20 }
 0x125   :  { %492 = vst.msk [vmem:[%s955_s3 + $0x2c] sm:$0xf] %vm480_vm1, %v578_v46  ;;  %693 = vrcp.f32 %v366_v53  ;;  %v367_v22 = vadd.f32 1.0, %v682_v21 }
 0x126   :  { %v684_v23 = vpop.eup %683  ;;  %695 = vrcp.f32 %v359_v54 }
 0x127   :  { %v686_v24 = vpop.eup %685  ;;  %v404_v25 = vmul.f32 %v684_v23, %v841_v2  ;;  %697 = vrcp.f32 %v367_v22 }
 0x128   :  { %v688_v31 = vpop.eup %687  ;;  %v412_v32 = vmul.f32 %v686_v24, %v844_v3 }
 0x129   :  { %v690_v33 = vpop.eup %689  ;;  %v571_v34 = vpack.c.bf16 %v404_v25, %v404_v25  ;;  %v405_v35 = vmul.f32 %v688_v31, %v849_v14 }
 0x12a   :  { %v579_v36 = vpack.c.bf16 %v412_v32, %v412_v32  ;;  %v413_v39 = vmul.f32 %v690_v33, %v852_v15 }
 0x12b   :  { %485 = vst.msk [vmem:[%s955_s3 + $0x10] sm:$0xf] %vm480_vm1, %v571_v34  ;;  %v572_v40 = vpack.c.bf16 %v405_v35, %v405_v35 }
 0x12c   :  { %493 = vst.msk [vmem:[%s955_s3 + $0x30] sm:$0xf] %vm480_vm1, %v579_v36  ;;  %v580_v2 = vpack.c.bf16 %v413_v39, %v413_v39 }
 0x12d   :  { %486 = vst.msk [vmem:[%s955_s3 + $0x14] sm:$0xf] %vm480_vm1, %v572_v40 }
 0x12e   :  { %v692_v3 = vpop.eup %691  ;;  %494 = vst.msk [vmem:[%s955_s3 + $0x34] sm:$0xf] %vm480_vm1, %v580_v2 }
 0x12f   :  { %v694_v14 = vpop.eup %693  ;;  %v406_v15 = vmul.f32 %v692_v3, %v857_v27 }
 0x130   :  { %v696_v41 = vpop.eup %695  ;;  %v414_v42 = vmul.f32 %v694_v14, %v860_v28 }
 0x131   :  { %v698_v43 = vpop.eup %697  ;;  %v573_v48 = vpack.c.bf16 %v406_v15, %v406_v15  ;;  %v407_v49 = vmul.f32 %v696_v41, %v865_v44 }
 0x132   :  { %v581_v50 = vpack.c.bf16 %v414_v42, %v414_v42  ;;  %v415_v51 = vmul.f32 %v698_v43, %v868_v47 }
 0x133   :  { %487 = vst.msk [vmem:[%s955_s3 + $0x18] sm:$0xf] %vm480_vm1, %v573_v48  ;;  %v574_v52 = vpack.c.bf16 %v407_v49, %v407_v49 }
 0x134   :  { %495 = vst.msk [vmem:[%s955_s3 + $0x38] sm:$0xf] %vm480_vm1, %v581_v50  ;;  %v582_v27 = vpack.c.bf16 %v415_v51, %v415_v51 }
 0x135   :  { %488 = vst.msk [vmem:[%s955_s3 + $0x1c] sm:$0xf] %vm480_vm1, %v574_v52 }
 0x136   :  { %496 = vst.msk [vmem:[%s955_s3 + $0x3c] sm:$0xf] %vm480_vm1, %v582_v27 }

// kernel: yolox_forward.40
= control target key start
LH: loop header
LB: loop body
LE: loop exit
PB: predicated region body
PF: predicated region fallthrough
CT: control target
= control target key end

     0   :  { %vm318_vm0 = vcmask 261120   ;;  %vm713_vm1 = vcmask 257024   ;;  %s1378_s1 = inlined_call_operand.vmem [shape: bf16[288,32], index: 1, kind: input, shape index: {}]   ;;  %s1379_s0 = inlined_call_operand.vmem [shape: bf16[128,288], index: 0, kind: input, shape index: {}]   ;;  %s1380_s2 = inlined_call_operand.vmem [shape: f32[1,32], index: 2, kind: input, shape index: {}]   ;;  %s1381_s3 = inlined_call_operand.vmem [shape: bf16[128,32], index: 3, kind: output, shape index: {}]  }
   0x1   :  { %v943_v0 = vld [vmem:[%s1378_s1 + $0x40] sm:$0xff]   ;;  %v945_v2 = vld [vmem:[%s1378_s1 + $0x48] sm:$0xff]   ;;  %v947_v4 = vld [vmem:[%s1378_s1 + $0x50] sm:$0xff]  }
   0x2   :  { %v944_v1 = vld [vmem:[%s1378_s1] sm:$0xff]   ;;  %833 = vmatprep.subr.bf16.mxu0 %v943_v0  ;;  %927 = vmatprep.subr.bf16.mxu1 %v943_v0  ;;  %v946_v3 = vld [vmem:[%s1378_s1 + $0x8] sm:$0xff]   ;;  %v948_v5 = vld [vmem:[%s1378_s1 + $0x10] sm:$0xff]  }
   0x3   :  { %834 = vmatpush3.bf16.msra.mxu0 %v944_v1  ;;  %935 = vmatpush3.bf16.msra.mxu1 %v944_v1  ;;  %v949_v6 = vld [vmem:[%s1378_s1 + $0x58] sm:$0xff]   ;;  %v951_v8 = vld [vmem:[%s1378_s1 + $0x60] sm:$0xff]   ;;  %v953_v10 = vld [vmem:[%s1378_s1 + $0x68] sm:$0xff]  }
   0x4   :  { %835 = vmatprep.subr.bf16.mxu0 %v945_v2  ;;  %928 = vmatprep.subr.bf16.mxu1 %v945_v2  ;;  %v950_v7 = vld [vmem:[%s1378_s1 + $0x18] sm:$0xff]   ;;  %v952_v9 = vld [vmem:[%s1378_s1 + $0x20] sm:$0xff]   ;;  %v954_v13 = vld [vmem:[%s1378_s1 + $0x28] sm:$0xff]  }
   0x5   :  { %v961_v11 = vld [vmem:[%s1379_s0 + $0x4] ss:$12 sps:$4 sm:$0xff]   ;;  %v964_v12 = vld [vmem:[%s1379_s0 + $0x94] ss:$12 sps:$4 sm:$0xff]   ;;  %v957_v16 = vld [vmem:[%s1378_s1 + $0x78] sm:$0xff]  }
   0x6   :  { %v955_v14 = vld [vmem:[%s1378_s1 + $0x70] sm:$0xff]   ;;  %375 = vmatprep.mubr.bf16.mxu0 %v961_v11  ;;  %423 = vmatprep.mubr.bf16.mxu1 %v964_v12  ;;  %v958_v17 = vld [vmem:[%s1378_s1 + $0x38] sm:$0xff]   ;;  %v959_v18 = vld [vmem:[%s1379_s0] ss:$12 sps:$4 sm:$0xff]  }
   0x7   :  { %836 = vmatpush3.bf16.msra.mxu0 %v946_v3  ;;  %936 = vmatpush3.bf16.msra.mxu1 %v946_v3  ;;  %v956_v15 = vld [vmem:[%s1378_s1 + $0x30] sm:$0xff]   ;;  %v965_v19 = vld [vmem:[%s1378_s1 + $0x80] sm:$0xff]   ;;  %v966_v21 = vld [vmem:[%s1379_s0 + $0x1c] ss:$12 sps:$4 sm:$0xff]  }
   0x8   :  { %837 = vmatprep.subr.bf16.mxu0 %v947_v4  ;;  %929 = vmatprep.subr.bf16.mxu1 %v947_v4  ;;  %v962_v20 = vld [vmem:[%s1379_s0 + $0x90] ss:$12 sps:$4 sm:$0xff]   ;;  %v968_v22 = vld [vmem:[%s1379_s0 + $0xac] ss:$12 sps:$4 sm:$0xff]   ;;  %v971_v25 = vld [vmem:[%s1379_s0 + $0xa8] ss:$12 sps:$4 sm:$0xff]  }
   0x9   :  { %v972_v23 = vld [vmem:[%s1378_s1 + $0x88] sm:$0xff]   ;;  %v970_v24 = vld [vmem:[%s1379_s0 + $0x18] ss:$12 sps:$4 sm:$0xff]   ;;  %v973_v26 = vld [vmem:[%s1379_s0 + $0x34] ss:$12 sps:$4 sm:$0xff]  }
   0xa   :  { %v975_v27 = vld [vmem:[%s1379_s0 + $0x8] ss:$12 sps:$4 sm:$0xff]   ;;  %v976_v28 = vld [vmem:[%s1379_s0 + $0x30] ss:$12 sps:$4 sm:$0xff]   ;;  %v977_v29 = vld [vmem:[%s1379_s0 + $0x20] ss:$12 sps:$4 sm:$0xff]  }
   0xb   :  { %838 = vmatpush3.bf16.msra.mxu0 %v948_v5  ;;  %937 = vmatpush3.bf16.msra.mxu1 %v948_v5  ;;  %v978_v30 = vld [vmem:[%s1379_s0 + $0x4c] ss:$12 sps:$4 sm:$0xff]   ;;  %v981_v32 = vld [vmem:[%s1379_s0 + $0x48] ss:$12 sps:$4 sm:$0xff]   ;;  %v982_v33 = vld [vmem:[%s1379_s0 + $0x50] ss:$12 sps:$4 sm:$0xff]  }
   0xc   :  { %839 = vmatprep.subr.bf16.mxu0 %v949_v6  ;;  %930 = vmatprep.subr.bf16.mxu1 %v949_v6  ;;  %v980_v31 = vld [vmem:[%s1379_s0 + $0x38] ss:$12 sps:$4 sm:$0xff]   ;;  %v985_v35 = vld [vmem:[%s1379_s0 + $0x68] ss:$12 sps:$4 sm:$0xff]   ;;  %v986_v36 = vld [vmem:[%s1379_s0 + $0x60] ss:$12 sps:$4 sm:$0xff]  }
   0xd   :  { %v983_v34 = vld [vmem:[%s1379_s0 + $0x64] ss:$12 sps:$4 sm:$0xff]   ;;  %v987_v37 = vld [vmem:[%s1379_s0 + $0x80] ss:$12 sps:$4 sm:$0xff]   ;;  %v988_v38 = vld [vmem:[%s1379_s0 + $0x7c] ss:$12 sps:$4 sm:$0xff]  }
   0xe   :  { %v990_v39 = vld [vmem:[%s1379_s0 + $0x98] ss:$12 sps:$4 sm:$0xff]   ;;  %v992_v41 = vld [vmem:[%s1379_s0 + $0xb0] ss:$12 sps:$4 sm:$0xff]   ;;  %v1222_v2 = vld [vmem:[%s1380_s2] ss:$0 sm:$0xff] }
   0xf   :  { %840 = vmatpush3.bf16.msra.mxu0 %v950_v7  ;;  %938 = vmatpush3.bf16.msra.mxu1 %v950_v7  ;;  %v991_v40 = vld [vmem:[%s1379_s0 + $0x78] ss:$12 sps:$4 sm:$0xff]  }
  0x10   :  { %841 = vmatprep.subr.bf16.mxu0 %v951_v8  ;;  %931 = vmatprep.subr.bf16.mxu1 %v951_v8 }
  0x13   :  { %842 = vmatpush3.bf16.msra.mxu0 %v952_v9  ;;  %939 = vmatpush3.bf16.msra.mxu1 %v952_v9 }
  0x14   :  { %843 = vmatprep.subr.bf16.mxu0 %v953_v10  ;;  %932 = vmatprep.subr.bf16.mxu1 %v953_v10 }
  0x17   :  { %844 = vmatpush3.bf16.msra.mxu0 %v954_v13  ;;  %940 = vmatpush3.bf16.msra.mxu1 %v954_v13 }
  0x18   :  { %845 = vmatprep.subr.bf16.mxu0 %v955_v14  ;;  %933 = vmatprep.subr.bf16.mxu1 %v955_v14 }
  0x1b   :  { %846 = vmatpush3.bf16.msra.mxu0 %v956_v15  ;;  %941 = vmatpush3.bf16.msra.mxu1 %v956_v15 }
  0x1c   :  { %847 = vmatprep.subr.bf16.mxu0 %v957_v16  ;;  %934 = vmatprep.subr.bf16.mxu1 %v957_v16 }
  0x1f   :  { %848 = vmatpush3.bf16.msra.mxu0 %v958_v17  ;;  %942 = vmatpush3.bf16.msra.mxu1 %v958_v17 }
  0x20   :  { %907 = vmatprep.subr.bf16.mxu1 %v965_v19 }
  0x22   :  { %376 = vmatmul.mubr.bf16.vlgmr.msra.gmra.mrb[0].mxu0 %v959_v18  ;;  %424 = vmatmul.mubr.bf16.vlgmr.msra.gmra.mrb[0].mxu1 %v962_v20 }
  0x23   :  { %908 = vmatpush3.bf16.msra.mxu1 %v965_v19  ;;  %383 = vmatprep.mubr.bf16.mxu0 %v966_v21 }
  0x24   :  { %431 = vmatprep.mubr.bf16.mxu1 %v968_v22  ;;  %909 = vmatprep.subr.bf16.mxu1 %v972_v23 }
  0x27   :  { %910 = vmatpush3.bf16.msra.mxu1 %v972_v23 }
  0x2a   :  { %384 = vmatmul.mubr.bf16.gmra.mrb[4].mxu0 %v970_v24  ;;  %432 = vmatmul.mubr.bf16.gmra.mrb[4].mxu1 %v971_v25 }
  0x2b   :  { %391 = vmatprep.mubr.bf16.mxu0 %v973_v26  ;;  %911 = vmatprep.mubr.msk.bf16.mxu1 %vm318_vm0, %v975_v27 }
  0x32   :  { %392 = vmatmul.mubr.bf16.gmra.mrb[8].mxu0 %v976_v28  ;;  %912 = vmatmul.mubr.msk.bf16.vlgmr.msra.gmra.mrb[8].mxu1 %vm318_vm0, %v977_v29 }
  0x33   :  { %399 = vmatprep.mubr.bf16.mxu0 %v978_v30  ;;  %915 = vmatprep.mubr.msk.bf16.mxu1 %vm318_vm0, %v980_v31 }
  0x3a   :  { %400 = vmatmul.mubr.bf16.gmra.mrb[12].mxu0 %v981_v32  ;;  %916 = vmatmul.mubr.msk.bf16.gmra.mrb[12].mxu1 %vm318_vm0, %v982_v33 }
  0x3b   :  { %407 = vmatprep.mubr.bf16.mxu0 %v983_v34  ;;  %919 = vmatprep.mubr.msk.bf16.mxu1 %vm318_vm0, %v985_v35 }
  0x42   :  { %408 = vmatmul.mubr.bf16.gmra.mrb[16].mxu0 %v986_v36  ;;  %920 = vmatmul.mubr.msk.bf16.gmra.mrb[16].mxu1 %vm318_vm0, %v987_v37 }
  0x43   :  { %415 = vmatprep.mubr.bf16.mxu0 %v988_v38  ;;  %923 = vmatprep.mubr.msk.bf16.mxu1 %vm318_vm0, %v990_v39 }
  0x4a   :  { %416 = vmatmul.mubr.bf16.gmra.mrb[20].mxu0 %v991_v40  ;;  %924 = vmatmul.mubr.msk.bf16.gmra.mrb[20].mxu1 %vm318_vm0, %v992_v41 }
  0xf5   :  { %v849_v42 = vpop.f32.mrb[0].mxu0  ;;  %v885_v43 = vpop.f32.mrb[0].mxu1 }
  0xf6   :  { %v850_v44 = vpop.f32.mrb[1].mxu0  ;;  %v886_v45 = vpop.f32.mrb[1].mxu1 }
  0xf7   :  { %v851_v46 = vadd.f32 %v850_v44, %v849_v42  ;;  %v852_v47 = vpop.f32.mrb[2].mxu0  ;;  %v1211_v48 = vadd.f32 %v886_v45, %v885_v43  ;;  %v888_v49 = vpop.f32.mrb[2].mxu1 }
  0xf8   :  { %v853_v50 = vpop.f32.mrb[3].mxu0  ;;  %v889_v51 = vpop.f32.mrb[3].mxu1 }
  0xf9   :  { %v854_v52 = vadd.f32 %v853_v50, %v852_v47  ;;  %v1213_v53 = vadd.f32 %v889_v51, %v888_v49  ;;  %v378_v6 = vadd.f32 %v851_v46, %v1222_v2 }
  0xfb   :  { %v381_v15 = vadd.f32 %v854_v52, %v1222_v2 }
  0xfd   :  { %v855_v54 = vpop.f32.mrb[4].mxu0  ;;  %v891_v55 = vpop.f32.mrb[4].mxu1 }
  0xfe   :  { %v856_v56 = vpop.f32.mrb[5].mxu0  ;;  %v892_v57 = vpop.f32.mrb[5].mxu1 }
  0xff   :  { %v857_v58 = vadd.f32 %v856_v56, %v855_v54  ;;  %v858_v59 = vpop.f32.mrb[6].mxu0  ;;  %v1215_v60 = vadd.f32 %v892_v57, %v891_v55  ;;  %v894_v61 = vpop.f32.mrb[6].mxu1 }
 0x100   :  { %v859_v62 = vpop.f32.mrb[7].mxu0  ;;  %v895_v63 = vpop.f32.mrb[7].mxu1 }
 0x101   :  { %v860_v0 = vadd.f32 %v859_v62, %v858_v59  ;;  %v1217_v1 = vadd.f32 %v895_v63, %v894_v61  ;;  %v386_v3 = vadd.f32 %v857_v58, %v1222_v2 }
 0x103   :  { %v389_v10 = vadd.f32 %v860_v0, %v1222_v2 }
 0x105   :  { %v861_v4 = vpop.f32.mrb[8].mxu0  ;;  %v913_v5 = vpop.f32.mrb[8].mxu1 }
 0x106   :  { %v1226_v7 = vadd.f32 %v913_v5, %v386_v3  ;;  %v862_v8 = vpop.f32.mrb[9].mxu0  ;;  %v474_v9 = vpop.f32.mrb[9].mxu1 }
 0x107   :  { %v863_v11 = vadd.f32 %v862_v8, %v861_v4  ;;  %v1229_v12 = vadd.f32 %v474_v9, %v378_v6  ;;  %v864_v13 = vpop.f32.mrb[10].mxu0  ;;  %v914_v14 = vpop.f32.mrb[10].mxu1 }
 0x108   :  { %v787_v16 = vmul.f32 -1.442695, %v1226_v7  ;;  %v1233_v17 = vadd.f32 %v914_v14, %v389_v10  ;;  %v865_v18 = vpop.f32.mrb[11].mxu0  ;;  %v477_v19 = vpop.f32.mrb[11].mxu1  ;;  %v434_v10 = vadd.f32 %v1215_v60, %v1222_v2  ;;  %v429_v60 = vadd.f32 %v1213_v53, %v1222_v2 }
 0x109   :  { %v785_v20 = vmul.f32 -1.442695, %v1229_v12  ;;  %v866_v21 = vadd.f32 %v865_v18, %v864_v13  ;;  %v1236_v22 = vadd.f32 %v477_v19, %v381_v15  ;;  %v394_v27 = vadd.f32 %v863_v11, %v1222_v2 }
 0x10a   :  { %993 = vpow2.f32 %v787_v16  ;;  %v788_v23 = vmul.f32 -1.442695, %v1233_v17  ;;  %v426_v18 = vadd.f32 %v1211_v48, %v1222_v2 }
 0x10b   :  { %995 = vpow2.f32 %v785_v20  ;;  %v786_v24 = vmul.f32 -1.442695, %v1236_v22  ;;  %v397_v34 = vadd.f32 %v866_v21, %v1222_v2 }
 0x10c   :  { %997 = vpow2.f32 %v788_v23 }
 0x10d   :  { %999 = vpow2.f32 %v786_v24  ;;  %v867_v25 = vpop.f32.mrb[12].mxu0  ;;  %v917_v26 = vpop.f32.mrb[12].mxu1  ;;  %v437_v24 = vadd.f32 %v1217_v1, %v1222_v2 }
 0x10e   :  { %v868_v28 = vpop.f32.mrb[13].mxu0  ;;  %v490_v29 = vpop.f32.mrb[13].mxu1 }
 0x10f   :  { %v869_v30 = vadd.f32 %v868_v28, %v867_v25  ;;  %v1241_v31 = vadd.f32 %v490_v29, %v394_v27  ;;  %v870_v32 = vpop.f32.mrb[14].mxu0  ;;  %v918_v33 = vpop.f32.mrb[14].mxu1 }
 0x110   :  { %v871_v35 = vpop.f32.mrb[15].mxu0  ;;  %v493_v36 = vpop.f32.mrb[15].mxu1 }
 0x111   :  { %v402_v37 = vadd.f32 %v869_v30, %v1222_v2  ;;  %v789_v38 = vmul.f32 -1.442695, %v1241_v31  ;;  %v872_v39 = vadd.f32 %v871_v35, %v870_v32  ;;  %v1246_v40 = vadd.f32 %v493_v36, %v397_v34 }
 0x113   :  { %v1248_v41 = vadd.f32 %v917_v26, %v402_v37  ;;  %1001 = vpow2.f32 %v789_v38  ;;  %v405_v42 = vadd.f32 %v872_v39, %v1222_v2  ;;  %v790_v43 = vmul.f32 -1.442695, %v1246_v40 }
 0x114   :  { %v994_v44 = vpop.eup %993 }
 0x115   :  { %v996_v45 = vpop.eup %995  ;;  %v587_v46 = vadd.f32 1.0, %v994_v44  ;;  %v1252_v47 = vadd.f32 %v918_v33, %v405_v42  ;;  %1003 = vpow2.f32 %v790_v43  ;;  %v873_v49 = vpop.f32.mrb[16].mxu0  ;;  %v791_v58 = vmul.f32 -1.442695, %v1248_v41 }
 0x116   :  { %v1254_v50 = vpop.f32.mrb[16].mxu1  ;;  %v998_v51 = vpop.eup %997  ;;  %v585_v52 = vadd.f32 1.0, %v996_v45 }
 0x117   :  { %v874_v54 = vpop.f32.mrb[17].mxu0  ;;  %v506_v55 = vpop.f32.mrb[17].mxu1  ;;  %1005 = vrcp.f32 %v587_v46  ;;  %v588_v57 = vadd.f32 1.0, %v998_v51  ;;  %v792_v0 = vmul.f32 -1.442695, %v1252_v47 }
 0x118   :  { %v1000_v56 = vpop.eup %999  ;;  %v875_v59 = vadd.f32 %v874_v54, %v873_v49  ;;  %v876_v61 = vpop.f32.mrb[18].mxu0  ;;  %1007 = vrcp.f32 %v585_v52 }
 0x119   :  { %v1257_v62 = vpop.f32.mrb[18].mxu1  ;;  %v586_v63 = vadd.f32 1.0, %v1000_v56  ;;  %v877_v3 = vpop.f32.mrb[19].mxu0  ;;  %1009 = vrcp.f32 %v588_v57 }
 0x11a   :  { %v509_v4 = vpop.f32.mrb[19].mxu1  ;;  %v410_v5 = vadd.f32 %v875_v59, %v1222_v2  ;;  %v878_v6 = vadd.f32 %v877_v3, %v876_v61 }
 0x11b   :  { %1011 = vrcp.f32 %v586_v63 }
 0x11c   :  { %1013 = vpow2.f32 %v791_v58  ;;  %v1261_v8 = vadd.f32 %v506_v55, %v410_v5  ;;  %v413_v9 = vadd.f32 %v878_v6, %v1222_v2 }
 0x11d   :  { %1015 = vpow2.f32 %v792_v0  ;;  %v1002_v11 = vpop.eup %1001  ;;  %v879_v15 = vpop.f32.mrb[20].mxu0 }
 0x11e   :  { %v793_v13 = vmul.f32 -1.442695, %v1261_v8  ;;  %v1267_v14 = vadd.f32 %v509_v4, %v413_v9  ;;  %v925_v16 = vpop.f32.mrb[20].mxu1  ;;  %v589_v19 = vadd.f32 1.0, %v1002_v11  ;;  %v880_v21 = vpop.f32.mrb[21].mxu0 }
 0x11f   :  { %v1271_v20 = vadd.f32 %v925_v16, %v434_v10  ;;  %v522_v23 = vpop.f32.mrb[21].mxu1  ;;  %v1004_v25 = vpop.eup %1003  ;;  %v881_v27 = vadd.f32 %v880_v21, %v879_v15 }
 0x120   :  { %1017 = vpow2.f32 %v793_v13  ;;  %v794_v26 = vmul.f32 -1.442695, %v1267_v14  ;;  %v1278_v28 = vadd.f32 %v522_v23, %v426_v18  ;;  %v882_v29 = vpop.f32.mrb[22].mxu0  ;;  %v926_v48 = vpop.f32.mrb[22].mxu1  ;;  %v590_v30 = vadd.f32 1.0, %v1004_v25 }
 0x121   :  { %1019 = vrcp.f32 %v589_v19  ;;  %v799_v32 = vmul.f32 -1.442695, %v1271_v20  ;;  %v1281_v33 = vadd.f32 %v926_v48, %v437_v24  ;;  %v883_v34 = vpop.f32.mrb[23].mxu0  ;;  %v525_v1 = vpop.f32.mrb[23].mxu1  ;;  %v418_v53 = vadd.f32 %v881_v27, %v1222_v2 }
 0x122   :  { %v1006_v35 = vpop.eup %1005  ;;  %1021 = vpow2.f32 %v794_v26  ;;  %v797_v36 = vmul.f32 -1.442695, %v1278_v28  ;;  %v884_v37 = vadd.f32 %v883_v34, %v882_v29  ;;  %v1287_v43 = vadd.f32 %v525_v1, %v429_v60 }
 0x123   :  { %v1008_v38 = vpop.eup %1007  ;;  %v635_v39 = vmul.f32 %v1006_v35, %v1226_v7  ;;  %1023 = vrcp.f32 %v590_v30  ;;  %v800_v42 = vmul.f32 -1.442695, %v1281_v33  ;;  %v1291_v46 = vadd.f32 %v1254_v50, %v418_v53 }
 0x124   :  { %v1010_v44 = vpop.eup %1009  ;;  %v633_v45 = vmul.f32 %v1008_v38, %v1229_v12  ;;  %1025 = vpow2.f32 %v799_v32  ;;  %v421_v49 = vadd.f32 %v884_v37, %v1222_v2  ;;  %v798_v7 = vmul.f32 -1.442695, %v1287_v43 }
 0x125   :  { %v1012_v51 = vpop.eup %1011  ;;  %v819_v52 = vpack.c.bf16 %v635_v39, %v635_v39  ;;  %v636_v54 = vmul.f32 %v1010_v44, %v1233_v17  ;;  %1027 = vpow2.f32 %v797_v36  ;;  %v795_v58 = vmul.f32 -1.442695, %v1291_v46 }
 0x126   :  { %v1014_v55 = vpop.eup %1013  ;;  %v817_v56 = vpack.c.bf16 %v633_v45, %v633_v45  ;;  %v634_v57 = vmul.f32 %v1012_v51, %v1236_v22  ;;  %1029 = vpow2.f32 %v800_v42  ;;  %v1303_v17 = vadd.f32 %v1257_v62, %v421_v49 }
 0x127   :  { %v1016_v12 = vpop.eup %1015  ;;  %716 = vst.msk [vmem:[%s1381_s3 + $0x8] sm:$0xf] %vm713_vm1, %v819_v52  ;;  %v820_v2 = vpack.c.bf16 %v636_v54, %v636_v54  ;;  %v591_v50 = vadd.f32 1.0, %v1014_v55  ;;  %1031 = vpow2.f32 %v798_v7 }
 0x128   :  { %714 = vst.msk [vmem:[%s1381_s3] sm:$0xf] %vm713_vm1, %v817_v56  ;;  %v818_v22 = vpack.c.bf16 %v634_v57, %v634_v57  ;;  %v592_v59 = vadd.f32 1.0, %v1016_v12  ;;  %1033 = vpow2.f32 %v795_v58  ;;  %v796_v61 = vmul.f32 -1.442695, %v1303_v17 }
 0x129   :  { %717 = vst.msk [vmem:[%s1381_s3 + $0xc] sm:$0xf] %vm713_vm1, %v820_v2  ;;  %1035 = vrcp.f32 %v591_v50 }
 0x12a   :  { %v1018_v63 = vpop.eup %1017  ;;  %715 = vst.msk [vmem:[%s1381_s3 + $0x4] sm:$0xf] %vm713_vm1, %v818_v22  ;;  %1037 = vrcp.f32 %v592_v59 }
 0x12b   :  { %v1020_v62 = vpop.eup %1019  ;;  %v593_v0 = vadd.f32 1.0, %v1018_v63  ;;  %1039 = vpow2.f32 %v796_v61 }
 0x12c   :  { %v1022_v3 = vpop.eup %1021  ;;  %v637_v4 = vmul.f32 %v1020_v62, %v1241_v31 }
 0x12d   :  { %v1024_v5 = vpop.eup %1023  ;;  %1041 = vrcp.f32 %v593_v0  ;;  %v594_v6 = vadd.f32 1.0, %v1022_v3 }
 0x12e   :  { %v1026_v9 = vpop.eup %1025  ;;  %v821_v10 = vpack.c.bf16 %v637_v4, %v637_v4  ;;  %v638_v11 = vmul.f32 %v1024_v5, %v1246_v40 }
 0x12f   :  { %v1028_v13 = vpop.eup %1027  ;;  %1043 = vrcp.f32 %v594_v6  ;;  %v599_v15 = vadd.f32 1.0, %v1026_v9 }
 0x130   :  { %v1030_v16 = vpop.eup %1029  ;;  %718 = vst.msk [vmem:[%s1381_s3 + $0x10] sm:$0xf] %vm713_vm1, %v821_v10  ;;  %v822_v18 = vpack.c.bf16 %v638_v11, %v638_v11  ;;  %v597_v19 = vadd.f32 1.0, %v1028_v13 }
 0x131   :  { %v1032_v21 = vpop.eup %1031  ;;  %1045 = vrcp.f32 %v599_v15  ;;  %v600_v31 = vadd.f32 1.0, %v1030_v16 }
 0x132   :  { %v1034_v23 = vpop.eup %1033  ;;  %719 = vst.msk [vmem:[%s1381_s3 + $0x14] sm:$0xf] %vm713_vm1, %v822_v18  ;;  %1047 = vrcp.f32 %v597_v19  ;;  %v598_v40 = vadd.f32 1.0, %v1032_v21 }
 0x133   :  { %v1036_v24 = vpop.eup %1035  ;;  %v595_v60 = vadd.f32 1.0, %v1034_v23  ;;  %1049 = vrcp.f32 %v600_v31 }
 0x134   :  { %v1038_v25 = vpop.eup %1037  ;;  %v639_v26 = vmul.f32 %v1036_v24, %v1248_v41  ;;  %1051 = vrcp.f32 %v598_v40 }
 0x135   :  { %v1040_v27 = vpop.eup %1039  ;;  %v640_v29 = vmul.f32 %v1038_v25, %v1252_v47  ;;  %1053 = vrcp.f32 %v595_v60 }
 0x136   :  { %v823_v48 = vpack.c.bf16 %v639_v26, %v639_v26  ;;  %v596_v30 = vadd.f32 1.0, %v1040_v27 }
 0x137   :  { %v1042_v32 = vpop.eup %1041  ;;  %v824_v34 = vpack.c.bf16 %v640_v29, %v640_v29 }
 0x138   :  { %720 = vst.msk [vmem:[%s1381_s3 + $0x18] sm:$0xf] %vm713_vm1, %v823_v48  ;;  %v641_v1 = vmul.f32 %v1042_v32, %v1261_v8  ;;  %1055 = vrcp.f32 %v596_v30 }
 0x139   :  { %v1044_v35 = vpop.eup %1043  ;;  %721 = vst.msk [vmem:[%s1381_s3 + $0x1c] sm:$0xf] %vm713_vm1, %v824_v34 }
 0x13a   :  { %v825_v41 = vpack.c.bf16 %v641_v1, %v641_v1  ;;  %v642_v47 = vmul.f32 %v1044_v35, %v1267_v14 }
 0x13b   :  { %v1046_v53 = vpop.eup %1045 }
 0x13c   :  { %v1048_v36 = vpop.eup %1047  ;;  %722 = vst.msk [vmem:[%s1381_s3 + $0x20] sm:$0xf] %vm713_vm1, %v825_v41  ;;  %v826_v37 = vpack.c.bf16 %v642_v47, %v642_v47  ;;  %v647_v8 = vmul.f32 %v1046_v53, %v1271_v20 }
 0x13d   :  { %v1050_v38 = vpop.eup %1049  ;;  %v645_v39 = vmul.f32 %v1048_v36, %v1278_v28 }
 0x13e   :  { %v1052_v42 = vpop.eup %1051  ;;  %723 = vst.msk [vmem:[%s1381_s3 + $0x24] sm:$0xf] %vm713_vm1, %v826_v37  ;;  %v831_v14 = vpack.c.bf16 %v647_v8, %v647_v8  ;;  %v648_v44 = vmul.f32 %v1050_v38, %v1281_v33 }
 0x13f   :  { %v1054_v45 = vpop.eup %1053  ;;  %v829_v49 = vpack.c.bf16 %v645_v39, %v645_v39  ;;  %v646_v51 = vmul.f32 %v1052_v42, %v1287_v43 }
 0x140   :  { %728 = vst.msk [vmem:[%s1381_s3 + $0x38] sm:$0xf] %vm713_vm1, %v831_v14  ;;  %v643_v20 = vmul.f32 %v1054_v45, %v1291_v46  ;;  %v832_v28 = vpack.c.bf16 %v648_v44, %v648_v44 }
 0x141   :  { %726 = vst.msk [vmem:[%s1381_s3 + $0x30] sm:$0xf] %vm713_vm1, %v829_v49  ;;  %v830_v52 = vpack.c.bf16 %v646_v51, %v646_v51 }
 0x142   :  { %v1056_v54 = vpop.eup %1055  ;;  %v827_v33 = vpack.c.bf16 %v643_v20, %v643_v20  ;;  %729 = vst.msk [vmem:[%s1381_s3 + $0x3c] sm:$0xf] %vm713_vm1, %v832_v28 }
 0x143   :  { %v644_v43 = vmul.f32 %v1056_v54, %v1303_v17  ;;  %727 = vst.msk [vmem:[%s1381_s3 + $0x34] sm:$0xf] %vm713_vm1, %v830_v52 }
 0x144   :  { %724 = vst.msk [vmem:[%s1381_s3 + $0x28] sm:$0xf] %vm713_vm1, %v827_v33 }
 0x145   :  { %v828_v46 = vpack.c.bf16 %v644_v43, %v644_v43 }
 0x147   :  { %725 = vst.msk [vmem:[%s1381_s3 + $0x2c] sm:$0xf] %vm713_vm1, %v828_v46 }

// kernel: yolox_forward.41
= control target key start
LH: loop header
LB: loop body
LE: loop exit
PB: predicated region body
PF: predicated region fallthrough
CT: control target
= control target key end

     0   :  { %vm204_vm0 = vcmask 261120   ;;  %vm353_vm1 = vcmask 519168   ;;  %s590_s1 = inlined_call_operand.vmem [shape: bf16[288,64], index: 1, kind: input, shape index: {}]   ;;  %s591_s0 = inlined_call_operand.vmem [shape: bf16[32,288], index: 0, kind: input, shape index: {}]   ;;  %s592_s2 = inlined_call_operand.vmem [shape: f32[1,64], index: 2, kind: input, shape index: {}]   ;;  %s593_s3 = inlined_call_operand.vmem [shape: bf16[32,64], index: 3, kind: output, shape index: {}]  }
   0x1   :  { %v441_v0 = vld [vmem:[%s590_s1 + $0x40] sm:$0xff]   ;;  %v443_v2 = vld [vmem:[%s590_s1 + $0x48] sm:$0xff]   ;;  %v445_v4 = vld [vmem:[%s590_s1 + $0x50] sm:$0xff]  }
   0x2   :  { %v442_v1 = vld [vmem:[%s590_s1] sm:$0xff]   ;;  %401 = vmatprep.subr.bf16.mxu0 %v441_v0  ;;  %v444_v3 = vld [vmem:[%s590_s1 + $0x8] sm:$0xff]   ;;  %v446_v5 = vld [vmem:[%s590_s1 + $0x10] sm:$0xff]  }
   0x3   :  { %402 = vmatpush3.bf16.msra.mxu0 %v442_v1  ;;  %v447_v6 = vld [vmem:[%s590_s1 + $0x58] sm:$0xff]   ;;  %v449_v8 = vld [vmem:[%s590_s1 + $0x60] sm:$0xff]   ;;  %v451_v11 = vld [vmem:[%s590_s1 + $0x68] sm:$0xff]  }
   0x4   :  { %403 = vmatprep.subr.bf16.mxu0 %v443_v2  ;;  %v448_v7 = vld [vmem:[%s590_s1 + $0x18] sm:$0xff]   ;;  %v450_v9 = vld [vmem:[%s590_s1 + $0x20] sm:$0xff]   ;;  %v452_v12 = vld [vmem:[%s590_s1 + $0x28] sm:$0xff]  }
   0x5   :  { %v456_v10 = vld [vmem:[%s590_s1 + $0x80] sm:$0xff]   ;;  %v453_v13 = vld [vmem:[%s590_s1 + $0x70] sm:$0xff]   ;;  %v461_v15 = vld [vmem:[%s590_s1 + $0x88] sm:$0xff]  }
   0x6   :  { %433 = vmatprep.subr.bf16.mxu1 %v456_v10  ;;  %v460_v14 = vld [vmem:[%s591_s0 + $0x4] ss:$12 sps:$4 sm:$0xff]   ;;  %v462_v16 = vld [vmem:[%s591_s0 + $0x8] ss:$12 sps:$4 sm:$0xff]   ;;  %v463_v17 = vld [vmem:[%s591_s0 + $0x20] ss:$12 sps:$4 sm:$0xff]  }
   0x7   :  { %404 = vmatpush3.bf16.msra.mxu0 %v444_v3  ;;  %434 = vmatpush3.bf16.msra.mxu1 %v456_v10  ;;  %v454_v18 = vld [vmem:[%s590_s1 + $0x30] sm:$0xff]   ;;  %v455_v19 = vld [vmem:[%s590_s1 + $0x78] sm:$0xff]   ;;  %v458_v21 = vld [vmem:[%s591_s0] ss:$12 sps:$4 sm:$0xff]  }
   0x8   :  { %405 = vmatprep.subr.bf16.mxu0 %v445_v4  ;;  %243 = vmatprep.mubr.bf16.mxu0 %v460_v14  ;;  %v457_v20 = vld [vmem:[%s590_s1 + $0x38] sm:$0xff]   ;;  %v362_v30 = vld [vmem:[%s592_s2] ss:$0 sm:$0xff] }
   0x9   :  { %435 = vmatprep.subr.bf16.mxu1 %v461_v15  ;;  %437 = vmatprep.mubr.msk.bf16.mxu1 %vm204_vm0, %v462_v16  ;;  %v464_v22 = vld [vmem:[%s591_s0 + $0x1c] ss:$12 sps:$4 sm:$0xff]   ;;  %v466_v23 = vld [vmem:[%s591_s0 + $0x18] ss:$12 sps:$4 sm:$0xff]  }
   0xb   :  { %406 = vmatpush3.bf16.msra.mxu0 %v446_v5  ;;  %436 = vmatpush3.bf16.msra.mxu1 %v461_v15 }
   0xc   :  { %407 = vmatprep.subr.bf16.mxu0 %v447_v6 }
   0xe   :  { %438 = vmatmul.mubr.msk.bf16.vlgmr.msra.gmra.mrb[0].mxu1 %vm204_vm0, %v463_v17 }
   0xf   :  { %408 = vmatpush3.bf16.msra.mxu0 %v448_v7 }
  0x10   :  { %409 = vmatprep.subr.bf16.mxu0 %v449_v8 }
  0x13   :  { %410 = vmatpush3.bf16.msra.mxu0 %v450_v9 }
  0x14   :  { %411 = vmatprep.subr.bf16.mxu0 %v451_v11 }
  0x17   :  { %412 = vmatpush3.bf16.msra.mxu0 %v452_v12 }
  0x18   :  { %413 = vmatprep.subr.bf16.mxu0 %v453_v13 }
  0x1b   :  { %414 = vmatpush3.bf16.msra.mxu0 %v454_v18 }
  0x1c   :  { %415 = vmatprep.subr.bf16.mxu0 %v455_v19 }
  0x1f   :  { %416 = vmatpush3.bf16.msra.mxu0 %v457_v20 }
  0x22   :  { %244 = vmatmul.mubr.bf16.vlgmr.msra.gmra.mrb[0].mxu0 %v458_v21 }
  0x23   :  { %251 = vmatprep.mubr.bf16.mxu0 %v464_v22 }
  0x2a   :  { %252 = vmatmul.mubr.bf16.gmra.mrb[4].mxu0 %v466_v23 }
  0xe1   :  { %v439_v24 = vpop.f32.mrb[0].mxu1 }
  0xe2   :  { %v294_v25 = vpop.f32.mrb[1].mxu1 }
  0xe3   :  { %v440_v26 = vpop.f32.mrb[2].mxu1 }
  0xe4   :  { %v297_v27 = vpop.f32.mrb[3].mxu1 }
  0xf5   :  { %v417_v28 = vpop.f32.mrb[0].mxu0 }
  0xf6   :  { %v418_v29 = vpop.f32.mrb[1].mxu0 }
  0xf7   :  { %v419_v31 = vadd.f32 %v418_v29, %v417_v28  ;;  %v420_v32 = vpop.f32.mrb[2].mxu0 }
  0xf8   :  { %v421_v33 = vpop.f32.mrb[3].mxu0 }
  0xf9   :  { %v422_v34 = vadd.f32 %v421_v33, %v420_v32  ;;  %v246_v35 = vadd.f32 %v419_v31, %v362_v30 }
  0xfb   :  { %v295_v36 = vadd.f32 %v294_v25, %v246_v35  ;;  %v249_v37 = vadd.f32 %v422_v34, %v362_v30 }
  0xfd   :  { %v389_v38 = vmul.f32 -1.442695, %v295_v36  ;;  %v298_v39 = vadd.f32 %v297_v27, %v249_v37  ;;  %v423_v40 = vpop.f32.mrb[4].mxu0 }
  0xfe   :  { %v424_v41 = vpop.f32.mrb[5].mxu0 }
  0xff   :  { %467 = vpow2.f32 %v389_v38  ;;  %v390_v42 = vmul.f32 -1.442695, %v298_v39  ;;  %v425_v43 = vadd.f32 %v424_v41, %v423_v40  ;;  %v426_v44 = vpop.f32.mrb[6].mxu0 }
 0x100   :  { %v427_v45 = vpop.f32.mrb[7].mxu0 }
 0x101   :  { %469 = vpow2.f32 %v390_v42  ;;  %v254_v46 = vadd.f32 %v425_v43, %v362_v30  ;;  %v428_v47 = vadd.f32 %v427_v45, %v426_v44 }
 0x103   :  { %v303_v48 = vadd.f32 %v439_v24, %v254_v46  ;;  %v257_v49 = vadd.f32 %v428_v47, %v362_v30 }
 0x105   :  { %v391_v50 = vmul.f32 -1.442695, %v303_v48  ;;  %v306_v51 = vadd.f32 %v440_v26, %v257_v49 }
 0x107   :  { %471 = vpow2.f32 %v391_v50  ;;  %v392_v52 = vmul.f32 -1.442695, %v306_v51 }
 0x109   :  { %v468_v53 = vpop.eup %467  ;;  %473 = vpow2.f32 %v392_v52 }
 0x10a   :  { %v321_v54 = vadd.f32 1.0, %v468_v53 }
 0x10b   :  { %v470_v55 = vpop.eup %469 }
 0x10c   :  { %475 = vrcp.f32 %v321_v54  ;;  %v322_v56 = vadd.f32 1.0, %v470_v55 }
 0x10e   :  { %477 = vrcp.f32 %v322_v56 }
 0x111   :  { %v472_v57 = vpop.eup %471 }
 0x112   :  { %v323_v58 = vadd.f32 1.0, %v472_v57 }
 0x113   :  { %v474_v59 = vpop.eup %473 }
 0x114   :  { %479 = vrcp.f32 %v323_v58  ;;  %v324_v60 = vadd.f32 1.0, %v474_v59 }
 0x116   :  { %v476_v61 = vpop.eup %475  ;;  %481 = vrcp.f32 %v324_v60 }
 0x117   :  { %v333_v62 = vmul.f32 %v476_v61, %v295_v36 }
 0x118   :  { %v478_v63 = vpop.eup %477 }
 0x119   :  { %v397_v0 = vpack.c.bf16 %v333_v62, %v333_v62  ;;  %v334_v1 = vmul.f32 %v478_v63, %v298_v39 }
 0x11b   :  { %354 = vst.msk [vmem:[%s593_s3] sm:$0xf] %vm353_vm1, %v397_v0  ;;  %v398_v2 = vpack.c.bf16 %v334_v1, %v334_v1 }
 0x11d   :  { %355 = vst.msk [vmem:[%s593_s3 + $0x4] sm:$0xf] %vm353_vm1, %v398_v2 }
 0x11e   :  { %v480_v3 = vpop.eup %479 }
 0x11f   :  { %v335_v4 = vmul.f32 %v480_v3, %v303_v48 }
 0x120   :  { %v482_v5 = vpop.eup %481 }
 0x121   :  { %v399_v6 = vpack.c.bf16 %v335_v4, %v335_v4  ;;  %v336_v7 = vmul.f32 %v482_v5, %v306_v51 }
 0x123   :  { %356 = vst.msk [vmem:[%s593_s3 + $0x8] sm:$0xf] %vm353_vm1, %v399_v6  ;;  %v400_v8 = vpack.c.bf16 %v336_v7, %v336_v7 }
 0x125   :  { %357 = vst.msk [vmem:[%s593_s3 + $0xc] sm:$0xf] %vm353_vm1, %v400_v8 }

// kernel: yolox_forward.42
= control target key start
LH: loop header
LB: loop body
LE: loop exit
PB: predicated region body
PF: predicated region fallthrough
CT: control target
= control target key end

     0   :  { %vm372_vm0 = vcmask 523264   ;;  %vm570_vm1 = vcmask 519168   ;;  %s953_s1 = inlined_call_operand.vmem [shape: bf16[576,64], index: 1, kind: input, shape index: {}]   ;;  %s954_s0 = inlined_call_operand.vmem [shape: bf16[32,576], index: 0, kind: input, shape index: {}]   ;;  %s955_s2 = inlined_call_operand.vmem [shape: f32[1,64], index: 2, kind: input, shape index: {}]   ;;  %s956_s3 = inlined_call_operand.vmem [shape: bf16[32,64], index: 3, kind: output, shape index: {}]  }
   0x1   :  { %v714_v0 = vld [vmem:[%s953_s1 + $0x40] sm:$0xff]   ;;  %v718_v4 = vld [vmem:[%s953_s1 + $0x48] sm:$0xff]   ;;  %v722_v8 = vld [vmem:[%s953_s1 + $0x50] sm:$0xff]  }
   0x2   :  { %v715_v1 = vld [vmem:[%s953_s1] sm:$0xff]   ;;  %640 = vmatprep.subr.bf16.mxu0 %v714_v0  ;;  %v719_v5 = vld [vmem:[%s953_s1 + $0x8] sm:$0xff]   ;;  %v723_v9 = vld [vmem:[%s953_s1 + $0x10] sm:$0xff]  }
   0x3   :  { %v716_v2 = vld [vmem:[%s953_s1 + $0xc0] sm:$0xff]   ;;  %641 = vmatpush3.bf16.msra.mxu0 %v715_v1  ;;  %v720_v6 = vld [vmem:[%s953_s1 + $0xc8] sm:$0xff]   ;;  %v724_v10 = vld [vmem:[%s953_s1 + $0xd0] sm:$0xff]  }
   0x4   :  { %v717_v3 = vld [vmem:[%s953_s1 + $0x80] sm:$0xff]   ;;  %668 = vmatprep.subr.bf16.mxu1 %v716_v2  ;;  %642 = vmatprep.subr.bf16.mxu0 %v718_v4  ;;  %v721_v7 = vld [vmem:[%s953_s1 + $0x88] sm:$0xff]   ;;  %v725_v11 = vld [vmem:[%s953_s1 + $0x90] sm:$0xff]  }
   0x5   :  { %669 = vmatpush3.bf16.msra.mxu1 %v717_v3  ;;  %v726_v12 = vld [vmem:[%s953_s1 + $0x58] sm:$0xff]   ;;  %v730_v16 = vld [vmem:[%s953_s1 + $0x60] sm:$0xff]   ;;  %v734_v20 = vld [vmem:[%s953_s1 + $0x68] sm:$0xff]  }
   0x6   :  { %670 = vmatprep.subr.bf16.mxu1 %v720_v6  ;;  %v727_v13 = vld [vmem:[%s953_s1 + $0x18] sm:$0xff]   ;;  %v731_v17 = vld [vmem:[%s953_s1 + $0x20] sm:$0xff]   ;;  %v735_v21 = vld [vmem:[%s953_s1 + $0x28] sm:$0xff]  }
   0x7   :  { %643 = vmatpush3.bf16.msra.mxu0 %v719_v5  ;;  %v728_v14 = vld [vmem:[%s953_s1 + $0xd8] sm:$0xff]   ;;  %v732_v18 = vld [vmem:[%s953_s1 + $0xe0] sm:$0xff]   ;;  %v736_v22 = vld [vmem:[%s953_s1 + $0xe8] sm:$0xff]  }
   0x8   :  { %644 = vmatprep.subr.bf16.mxu0 %v722_v8  ;;  %v729_v15 = vld [vmem:[%s953_s1 + $0x98] sm:$0xff]   ;;  %v733_v19 = vld [vmem:[%s953_s1 + $0xa0] sm:$0xff]   ;;  %v737_v23 = vld [vmem:[%s953_s1 + $0xa8] sm:$0xff]  }
   0x9   :  { %671 = vmatpush3.bf16.msra.mxu1 %v721_v7  ;;  %v738_v24 = vld [vmem:[%s953_s1 + $0x70] sm:$0xff]   ;;  %v742_v28 = vld [vmem:[%s953_s1 + $0x78] sm:$0xff]   ;;  %v749_v34 = vld [vmem:[%s953_s1 + $0x100] sm:$0xff]  }
   0xa   :  { %672 = vmatprep.subr.bf16.mxu1 %v724_v10  ;;  %v739_v25 = vld [vmem:[%s953_s1 + $0x30] sm:$0xff]   ;;  %v743_v29 = vld [vmem:[%s953_s1 + $0x38] sm:$0xff]   ;;  %v752_v36 = vld [vmem:[%s954_s0 + $0xc] ss:$20 sps:$4 sm:$0xff]  }
   0xb   :  { %645 = vmatpush3.bf16.msra.mxu0 %v723_v9  ;;  %v740_v26 = vld [vmem:[%s953_s1 + $0xf0] sm:$0xff]   ;;  %v744_v30 = vld [vmem:[%s953_s1 + $0xf8] sm:$0xff]   ;;  %v753_v37 = vld [vmem:[%s953_s1 + $0x108] sm:$0xff]   ;;  %460 = vmatprep.mubr.bf16.mxu1 %v752_v36 }
   0xc   :  { %646 = vmatprep.subr.bf16.mxu0 %v726_v12  ;;  %v741_v27 = vld [vmem:[%s953_s1 + $0xb0] sm:$0xff]   ;;  %v747_v32 = vld [vmem:[%s954_s0 + $0x4] ss:$20 sps:$4 sm:$0xff]   ;;  %v750_v35 = vld [vmem:[%s954_s0 + $0x8] ss:$20 sps:$4 sm:$0xff]  }
   0xd   :  { %673 = vmatpush3.bf16.msra.mxu1 %v725_v11  ;;  %v745_v31 = vld [vmem:[%s954_s0] ss:$20 sps:$4 sm:$0xff]   ;;  %v748_v33 = vld [vmem:[%s953_s1 + $0xb8] sm:$0xff]   ;;  %411 = vmatprep.mubr.bf16.mxu0 %v747_v32  ;;  %v760_v42 = vld [vmem:[%s954_s0 + $0x30] ss:$20 sps:$4 sm:$0xff]  }
   0xe   :  { %674 = vmatprep.subr.bf16.mxu1 %v728_v14  ;;  %v754_v38 = vld [vmem:[%s954_s0 + $0x2c] ss:$20 sps:$4 sm:$0xff]   ;;  %v756_v39 = vld [vmem:[%s954_s0 + $0x28] ss:$20 sps:$4 sm:$0xff]   ;;  %v757_v40 = vld [vmem:[%s953_s1 + $0x110] sm:$0xff]  }
   0xf   :  { %647 = vmatpush3.bf16.msra.mxu0 %v727_v13  ;;  %v758_v41 = vld [vmem:[%s954_s0 + $0x34] ss:$20 sps:$4 sm:$0xff]   ;;  %v761_v43 = vld [vmem:[%s953_s1 + $0x118] sm:$0xff]   ;;  %v762_v44 = vld [vmem:[%s954_s0 + $0x10] ss:$20 sps:$4 sm:$0xff]  }
  0x10   :  { %648 = vmatprep.subr.bf16.mxu0 %v730_v16  ;;  %v763_v45 = vld [vmem:[%s954_s0 + $0x38] ss:$20 sps:$4 sm:$0xff]   ;;  %v579_v47 = vld [vmem:[%s955_s2] ss:$0 sm:$0xff] }
  0x11   :  { %675 = vmatpush3.bf16.msra.mxu1 %v729_v15 }
  0x12   :  { %676 = vmatprep.subr.bf16.mxu1 %v732_v18 }
  0x13   :  { %649 = vmatpush3.bf16.msra.mxu0 %v731_v17 }
  0x14   :  { %650 = vmatprep.subr.bf16.mxu0 %v734_v20 }
  0x15   :  { %677 = vmatpush3.bf16.msra.mxu1 %v733_v19 }
  0x16   :  { %678 = vmatprep.subr.bf16.mxu1 %v736_v22 }
  0x17   :  { %651 = vmatpush3.bf16.msra.mxu0 %v735_v21 }
  0x18   :  { %652 = vmatprep.subr.bf16.mxu0 %v738_v24 }
  0x19   :  { %679 = vmatpush3.bf16.msra.mxu1 %v737_v23 }
  0x1a   :  { %680 = vmatprep.subr.bf16.mxu1 %v740_v26 }
  0x1b   :  { %653 = vmatpush3.bf16.msra.mxu0 %v739_v25 }
  0x1c   :  { %654 = vmatprep.subr.bf16.mxu0 %v742_v28 }
  0x1d   :  { %681 = vmatpush3.bf16.msra.mxu1 %v741_v27 }
  0x1e   :  { %682 = vmatprep.subr.bf16.mxu1 %v744_v30 }
  0x1f   :  { %655 = vmatpush3.bf16.msra.mxu0 %v743_v29 }
  0x20   :  { %702 = vmatprep.subr.bf16.mxu0 %v749_v34 }
  0x21   :  { %683 = vmatpush3.bf16.msra.mxu1 %v748_v33 }
  0x22   :  { %412 = vmatmul.mubr.bf16.vlgmr.msra.gmra.mrb[0].mxu0 %v745_v31 }
  0x23   :  { %703 = vmatpush3.bf16.msra.mxu0 %v749_v34  ;;  %419 = vmatprep.mubr.bf16.mxu0 %v754_v38 }
  0x24   :  { %461 = vmatmul.mubr.bf16.vlgmr.msra.gmra.mrb[0].mxu1 %v750_v35  ;;  %704 = vmatprep.subr.bf16.mxu0 %v753_v37 }
  0x25   :  { %468 = vmatprep.mubr.bf16.mxu1 %v758_v41 }
  0x27   :  { %705 = vmatpush3.bf16.msra.mxu0 %v753_v37 }
  0x28   :  { %706 = vmatprep.subr.bf16.mxu0 %v757_v40 }
  0x2a   :  { %420 = vmatmul.mubr.bf16.gmra.mrb[4].mxu0 %v756_v39 }
  0x2b   :  { %710 = vmatprep.mubr.msk.bf16.mxu0 %vm372_vm0, %v762_v44  ;;  %707 = vmatpush3.bf16.msra.mxu0 %v757_v40 }
  0x2c   :  { %469 = vmatmul.mubr.bf16.gmra.mrb[4].mxu1 %v760_v42  ;;  %708 = vmatprep.subr.bf16.mxu0 %v761_v43 }
  0x2f   :  { %709 = vmatpush3.bf16.msra.mxu0 %v761_v43 }
  0x32   :  { %711 = vmatmul.mubr.msk.bf16.vlgmr.msra.gmra.mrb[8].mxu0 %vm372_vm0, %v763_v45 }
  0xf5   :  { %v656_v46 = vpop.f32.mrb[0].mxu0 }
  0xf6   :  { %v657_v48 = vpop.f32.mrb[1].mxu0 }
  0xf7   :  { %v658_v49 = vadd.f32 %v657_v48, %v656_v46  ;;  %v659_v50 = vpop.f32.mrb[2].mxu0  ;;  %v684_v51 = vpop.f32.mrb[0].mxu1 }
  0xf8   :  { %v660_v52 = vpop.f32.mrb[3].mxu0  ;;  %v685_v55 = vpop.f32.mrb[1].mxu1 }
  0xf9   :  { %v414_v53 = vadd.f32 %v658_v49, %v579_v47  ;;  %v661_v54 = vadd.f32 %v660_v52, %v659_v50  ;;  %v686_v56 = vadd.f32 %v685_v55, %v684_v51  ;;  %v687_v57 = vpop.f32.mrb[2].mxu1 }
  0xfa   :  { %v688_v59 = vpop.f32.mrb[3].mxu1 }
  0xfb   :  { %v417_v58 = vadd.f32 %v661_v54, %v579_v47  ;;  %v689_v60 = vadd.f32 %v688_v59, %v687_v57  ;;  %v463_v61 = vadd.f32 %v686_v56, %v414_v53 }
  0xfd   :  { %v662_v62 = vpop.f32.mrb[4].mxu0  ;;  %v466_v0 = vadd.f32 %v689_v60, %v417_v58 }
  0xfe   :  { %v663_v63 = vpop.f32.mrb[5].mxu0 }
  0xff   :  { %v664_v1 = vadd.f32 %v663_v63, %v662_v62  ;;  %v665_v2 = vpop.f32.mrb[6].mxu0  ;;  %v690_v3 = vpop.f32.mrb[4].mxu1 }
 0x100   :  { %v666_v4 = vpop.f32.mrb[7].mxu0  ;;  %v691_v7 = vpop.f32.mrb[5].mxu1 }
 0x101   :  { %v422_v5 = vadd.f32 %v664_v1, %v579_v47  ;;  %v667_v6 = vadd.f32 %v666_v4, %v665_v2  ;;  %v692_v8 = vadd.f32 %v691_v7, %v690_v3  ;;  %v693_v9 = vpop.f32.mrb[6].mxu1 }
 0x102   :  { %v694_v11 = vpop.f32.mrb[7].mxu1 }
 0x103   :  { %v425_v10 = vadd.f32 %v667_v6, %v579_v47  ;;  %v695_v12 = vadd.f32 %v694_v11, %v693_v9  ;;  %v471_v13 = vadd.f32 %v692_v8, %v422_v5 }
 0x105   :  { %v712_v14 = vpop.f32.mrb[8].mxu0  ;;  %v474_v15 = vadd.f32 %v695_v12, %v425_v10 }
 0x106   :  { %v520_v16 = vadd.f32 %v712_v14, %v471_v13  ;;  %v511_v17 = vpop.f32.mrb[9].mxu0 }
 0x107   :  { %v512_v18 = vadd.f32 %v511_v17, %v463_v61  ;;  %v713_v19 = vpop.f32.mrb[10].mxu0 }
 0x108   :  { %v630_v20 = vmul.f32 -1.442695, %v520_v16  ;;  %v523_v21 = vadd.f32 %v713_v19, %v474_v15  ;;  %v514_v22 = vpop.f32.mrb[11].mxu0 }
 0x109   :  { %v628_v23 = vmul.f32 -1.442695, %v512_v18  ;;  %v515_v24 = vadd.f32 %v514_v22, %v466_v0 }
 0x10a   :  { %764 = vpow2.f32 %v630_v20  ;;  %v631_v25 = vmul.f32 -1.442695, %v523_v21 }
 0x10b   :  { %766 = vpow2.f32 %v628_v23  ;;  %v629_v26 = vmul.f32 -1.442695, %v515_v24 }
 0x10c   :  { %768 = vpow2.f32 %v631_v25 }
 0x10d   :  { %770 = vpow2.f32 %v629_v26 }
 0x114   :  { %v765_v27 = vpop.eup %764 }
 0x115   :  { %v767_v28 = vpop.eup %766  ;;  %v540_v29 = vadd.f32 1.0, %v765_v27 }
 0x116   :  { %v769_v30 = vpop.eup %768  ;;  %v538_v31 = vadd.f32 1.0, %v767_v28 }
 0x117   :  { %v771_v32 = vpop.eup %770  ;;  %772 = vrcp.f32 %v540_v29  ;;  %v541_v33 = vadd.f32 1.0, %v769_v30 }
 0x118   :  { %774 = vrcp.f32 %v538_v31  ;;  %v539_v34 = vadd.f32 1.0, %v771_v32 }
 0x119   :  { %776 = vrcp.f32 %v541_v33 }
 0x11a   :  { %778 = vrcp.f32 %v539_v34 }
 0x121   :  { %v773_v35 = vpop.eup %772 }
 0x122   :  { %v775_v36 = vpop.eup %774  ;;  %v552_v37 = vmul.f32 %v773_v35, %v520_v16 }
 0x123   :  { %v777_v38 = vpop.eup %776  ;;  %v550_v39 = vmul.f32 %v775_v36, %v512_v18 }
 0x124   :  { %v779_v40 = vpop.eup %778  ;;  %v638_v41 = vpack.c.bf16 %v552_v37, %v552_v37  ;;  %v553_v42 = vmul.f32 %v777_v38, %v523_v21 }
 0x125   :  { %v636_v43 = vpack.c.bf16 %v550_v39, %v550_v39  ;;  %v551_v44 = vmul.f32 %v779_v40, %v515_v24 }
 0x126   :  { %573 = vst.msk [vmem:[%s956_s3 + $0x8] sm:$0xf] %vm570_vm1, %v638_v41  ;;  %v639_v45 = vpack.c.bf16 %v553_v42, %v553_v42 }
 0x127   :  { %571 = vst.msk [vmem:[%s956_s3] sm:$0xf] %vm570_vm1, %v636_v43  ;;  %v637_v46 = vpack.c.bf16 %v551_v44, %v551_v44 }
 0x128   :  { %574 = vst.msk [vmem:[%s956_s3 + $0xc] sm:$0xf] %vm570_vm1, %v639_v45 }
 0x129   :  { %572 = vst.msk [vmem:[%s956_s3 + $0x4] sm:$0xf] %vm570_vm1, %v637_v46 }

// kernel: yolox_forward.43
= control target key start
LH: loop header
LB: loop body
LE: loop exit
PB: predicated region body
PF: predicated region fallthrough
CT: control target
= control target key end

     0   :  { %v619_v35 = vmov 0.0   ;;  %vm620_vm0 = vmmov 0   ;;  %vm330_vm1 = vcmask 523264   ;;  %s764_s1 = inlined_call_operand.vmem [shape: bf16[576,128], index: 1, kind: input, shape index: {}]   ;;  %s765_s0 = inlined_call_operand.vmem [shape: bf16[8,576], index: 0, kind: input, shape index: {}]   ;;  %s766_s2 = inlined_call_operand.vmem [shape: f32[1,128], index: 2, kind: input, shape index: {}]   ;;  %s767_s3 = inlined_call_operand.vmem [shape: bf16[8,128], index: 3, kind: output, shape index: {}]  }
   0x1   :  { %v574_v0 = vld [vmem:[%s764_s1 + $0x40] sm:$0xff]   ;;  %v578_v4 = vld [vmem:[%s764_s1 + $0x48] sm:$0xff]   ;;  %v582_v8 = vld [vmem:[%s764_s1 + $0x50] sm:$0xff]  }
   0x2   :  { %v575_v1 = vld [vmem:[%s764_s1] sm:$0xff]   ;;  %511 = vmatprep.subr.bf16.mxu0 %v574_v0  ;;  %v579_v5 = vld [vmem:[%s764_s1 + $0x8] sm:$0xff]   ;;  %v583_v9 = vld [vmem:[%s764_s1 + $0x10] sm:$0xff]  }
   0x3   :  { %v576_v2 = vld [vmem:[%s764_s1 + $0xc0] sm:$0xff]   ;;  %512 = vmatpush3.bf16.msra.mxu0 %v575_v1  ;;  %v580_v6 = vld [vmem:[%s764_s1 + $0xc8] sm:$0xff]   ;;  %v584_v10 = vld [vmem:[%s764_s1 + $0xd0] sm:$0xff]  }
   0x4   :  { %v577_v3 = vld [vmem:[%s764_s1 + $0x80] sm:$0xff]   ;;  %533 = vmatprep.subr.bf16.mxu1 %v576_v2  ;;  %513 = vmatprep.subr.bf16.mxu0 %v578_v4  ;;  %v581_v7 = vld [vmem:[%s764_s1 + $0x88] sm:$0xff]   ;;  %v585_v11 = vld [vmem:[%s764_s1 + $0x90] sm:$0xff]  }
   0x5   :  { %534 = vmatpush3.bf16.msra.mxu1 %v577_v3  ;;  %v586_v12 = vld [vmem:[%s764_s1 + $0x58] sm:$0xff]   ;;  %v590_v16 = vld [vmem:[%s764_s1 + $0x60] sm:$0xff]   ;;  %v594_v20 = vld [vmem:[%s764_s1 + $0x68] sm:$0xff]  }
   0x6   :  { %535 = vmatprep.subr.bf16.mxu1 %v580_v6  ;;  %v587_v13 = vld [vmem:[%s764_s1 + $0x18] sm:$0xff]   ;;  %v591_v17 = vld [vmem:[%s764_s1 + $0x20] sm:$0xff]   ;;  %v595_v21 = vld [vmem:[%s764_s1 + $0x28] sm:$0xff]  }
   0x7   :  { %514 = vmatpush3.bf16.msra.mxu0 %v579_v5  ;;  %v588_v14 = vld [vmem:[%s764_s1 + $0xd8] sm:$0xff]   ;;  %v592_v18 = vld [vmem:[%s764_s1 + $0xe0] sm:$0xff]   ;;  %v596_v22 = vld [vmem:[%s764_s1 + $0xe8] sm:$0xff]  }
   0x8   :  { %515 = vmatprep.subr.bf16.mxu0 %v582_v8  ;;  %v589_v15 = vld [vmem:[%s764_s1 + $0x98] sm:$0xff]   ;;  %v593_v19 = vld [vmem:[%s764_s1 + $0xa0] sm:$0xff]   ;;  %v597_v23 = vld [vmem:[%s764_s1 + $0xa8] sm:$0xff]  }
   0x9   :  { %536 = vmatpush3.bf16.msra.mxu1 %v581_v7  ;;  %v598_v24 = vld [vmem:[%s764_s1 + $0x70] sm:$0xff]   ;;  %v602_v28 = vld [vmem:[%s764_s1 + $0x78] sm:$0xff]   ;;  %v15_v31 = vld [vmem:[%s765_s0] sm:$0xff] }
   0xa   :  { %537 = vmatprep.subr.bf16.mxu1 %v584_v10  ;;  %v599_v25 = vld [vmem:[%s764_s1 + $0x30] sm:$0xff]   ;;  %v603_v29 = vld [vmem:[%s764_s1 + $0x38] sm:$0xff]   ;;  %v468_v32 = vcombine.low %v15_v31, %v15_v31  ;;  %v469_v33 = vcombine.high %v15_v31, %v15_v31  ;;  %v16_v36 = vld [vmem:[%s765_s0 + $0x8] sm:$0xff] }
   0xb   :  { %516 = vmatpush3.bf16.msra.mxu0 %v583_v9  ;;  %v600_v26 = vld [vmem:[%s764_s1 + $0xf0] sm:$0xff]   ;;  %v604_v30 = vld [vmem:[%s764_s1 + $0xf8] sm:$0xff]   ;;  %v470_v37 = vcombine.low %v16_v36, %v16_v36  ;;  %v471_v38 = vcombine.high %v16_v36, %v16_v36  ;;  %v611_v39 = vld [vmem:[%s764_s1 + $0x100] sm:$0xff]  }
   0xc   :  { %517 = vmatprep.subr.bf16.mxu0 %v586_v12  ;;  %v601_v27 = vld [vmem:[%s764_s1 + $0xb0] sm:$0xff]   ;;  %v608_v34 = vld [vmem:[%s764_s1 + $0xb8] sm:$0xff]   ;;  %366 = vmatprep.mubr.bf16.mxu0 %v469_v33  ;;  %v612_v40 = vld [vmem:[%s764_s1 + $0x108] sm:$0xff]  }
   0xd   :  { %538 = vmatpush3.bf16.msra.mxu1 %v585_v11  ;;  %406 = vmatprep.mubr.bf16.mxu1 %v471_v38  ;;  %v613_v41 = vld [vmem:[%s764_s1 + $0x110] sm:$0xff]   ;;  %v614_v42 = vld [vmem:[%s764_s1 + $0x118] sm:$0xff]   ;;  %v467_v45 = vld [vmem:[%s766_s2] ss:$0 sm:$0xff] }
   0xe   :  { %539 = vmatprep.subr.bf16.mxu1 %v588_v14  ;;  %v607_v43 = vld [vmem:[%s765_s0 + $0x10] ss:$0 sps:$4 sm:$0xff]  }
   0xf   :  { %518 = vmatpush3.bf16.msra.mxu0 %v587_v13 }
  0x10   :  { %519 = vmatprep.subr.bf16.mxu0 %v590_v16 }
  0x11   :  { %540 = vmatpush3.bf16.msra.mxu1 %v589_v15 }
  0x12   :  { %541 = vmatprep.subr.bf16.mxu1 %v592_v18 }
  0x13   :  { %520 = vmatpush3.bf16.msra.mxu0 %v591_v17 }
  0x14   :  { %521 = vmatprep.subr.bf16.mxu0 %v594_v20 }
  0x15   :  { %542 = vmatpush3.bf16.msra.mxu1 %v593_v19 }
  0x16   :  { %543 = vmatprep.subr.bf16.mxu1 %v596_v22 }
  0x17   :  { %522 = vmatpush3.bf16.msra.mxu0 %v595_v21 }
  0x18   :  { %523 = vmatprep.subr.bf16.mxu0 %v598_v24 }
  0x19   :  { %544 = vmatpush3.bf16.msra.mxu1 %v597_v23 }
  0x1a   :  { %545 = vmatprep.subr.bf16.mxu1 %v600_v26 }
  0x1b   :  { %524 = vmatpush3.bf16.msra.mxu0 %v599_v25 }
  0x1c   :  { %525 = vmatprep.subr.bf16.mxu0 %v602_v28 }
  0x1d   :  { %546 = vmatpush3.bf16.msra.mxu1 %v601_v27 }
  0x1e   :  { %547 = vmatprep.subr.bf16.mxu1 %v604_v30 }
  0x1f   :  { %526 = vmatpush3.bf16.msra.mxu0 %v603_v29 }
  0x20   :  { %560 = vmatprep.subr.bf16.mxu0 %v619_v35 }
  0x21   :  { %548 = vmatpush3.bf16.msra.mxu1 %v608_v34 }
  0x22   :  { %367 = vmatmul.mubr.bf16.vlgmr.msra.gmra.mrb[0].mxu0 %v468_v32 }
  0x23   :  { %561 = vmatpush3.bf16.msra.mxu0 %v611_v39  ;;  %568 = vmatprep.mubr.msk.bf16.mxu0 %vm620_vm0, %v619_v35 }
  0x24   :  { %407 = vmatmul.mubr.bf16.vlgmr.msra.gmra.mrb[0].mxu1 %v470_v37  ;;  %562 = vmatprep.subr.bf16.mxu0 %v619_v35 }
  0x27   :  { %563 = vmatpush3.bf16.msra.mxu0 %v612_v40 }
  0x28   :  { %564 = vmatprep.subr.bf16.mxu0 %v619_v35 }
  0x2b   :  { %565 = vmatpush3.bf16.msra.mxu0 %v613_v41 }
  0x2c   :  { %566 = vmatprep.subr.bf16.mxu0 %v619_v35 }
  0x2f   :  { %567 = vmatpush3.bf16.msra.mxu0 %v614_v42 }
  0x32   :  { %569 = vmatmul.mubr.msk.bf16.vlgmr.msra.gmra.mrb[4].mxu0 %vm330_vm1, %v607_v43 }
  0xf5   :  { %v527_v44 = vpop.f32.mrb[0].mxu0 }
  0xf6   :  { %v528_v46 = vpop.f32.mrb[1].mxu0 }
  0xf7   :  { %v529_v47 = vadd.f32 %v528_v46, %v527_v44  ;;  %v530_v48 = vpop.f32.mrb[2].mxu0  ;;  %v549_v49 = vpop.f32.mrb[0].mxu1 }
  0xf8   :  { %v531_v50 = vpop.f32.mrb[3].mxu0  ;;  %v550_v51 = vpop.f32.mrb[1].mxu1 }
  0xf9   :  { %v369_v52 = vadd.f32 %v529_v47, %v467_v45  ;;  %v551_v53 = vadd.f32 %v550_v51, %v549_v49  ;;  %v552_v54 = vpop.f32.mrb[2].mxu1 }
  0xfa   :  { %v553_v55 = vpop.f32.mrb[3].mxu1 }
  0xfb   :  { %v409_v56 = vadd.f32 %v551_v53, %v369_v52 }
 0x105   :  { %v448_v57 = vpop.f32.mrb[4].mxu0 }
 0x106   :  { %v449_v58 = vadd.f32 %v448_v57, %v409_v56  ;;  %v570_v59 = vpop.f32.mrb[5].mxu0 }
 0x107   :  { %v451_v60 = vpop.f32.mrb[6].mxu0 }
 0x108   :  { %v510_v61 = vmul.f32 -1.442695, %v449_v58  ;;  %v571_v62 = vpop.f32.mrb[7].mxu0 }
 0x10a   :  { %615 = vpow2.f32 %v510_v61 }
 0x114   :  { %v616_v63 = vpop.eup %615 }
 0x115   :  { %v457_v0 = vadd.f32 1.0, %v616_v63 }
 0x117   :  { %617 = vrcp.f32 %v457_v0 }
 0x121   :  { %v618_v1 = vpop.eup %617 }
 0x122   :  { %v460_v2 = vmul.f32 %v618_v1, %v449_v58 }
 0x124   :  { %v461_v3 = vpack.c.bf16 %v460_v2, %v460_v2 }
 0x126   :  { %462 = vst [vmem:[%s767_s3] sm:$0xf] %v461_v3 }

// kernel: yolox_forward.44
= control target key start
LH: loop header
LB: loop body
LE: loop exit
PB: predicated region body
PF: predicated region fallthrough
CT: control target
= control target key end

     0   :  { %vm1136_vm0 = vmmov 0   ;;  %s1394_s1 = inlined_call_operand.vmem [shape: bf16[1152,128], index: 1, kind: input, shape index: {}]   ;;  %s1395_s0 = inlined_call_operand.vmem [shape: bf16[8,1152], index: 0, kind: input, shape index: {}]   ;;  %s1396_s2 = inlined_call_operand.vmem [shape: f32[1,128], index: 2, kind: input, shape index: {}]   ;;  %s1397_s3 = inlined_call_operand.vmem [shape: bf16[8,128], index: 3, kind: output, shape index: {}]  }
   0x1   :  { %v1050_v0 = vld [vmem:[%s1394_s1 + $0x40] sm:$0xff]   ;;  %v1054_v4 = vld [vmem:[%s1394_s1 + $0x48] sm:$0xff]   ;;  %v1058_v8 = vld [vmem:[%s1394_s1 + $0x50] sm:$0xff]  }
   0x2   :  { %v1051_v1 = vld [vmem:[%s1394_s1] sm:$0xff]   ;;  %931 = vmatprep.subr.bf16.mxu0 %v1050_v0  ;;  %v1055_v5 = vld [vmem:[%s1394_s1 + $0x8] sm:$0xff]   ;;  %v1059_v9 = vld [vmem:[%s1394_s1 + $0x10] sm:$0xff]  }
   0x3   :  { %v1052_v2 = vld [vmem:[%s1394_s1 + $0xc0] sm:$0xff]   ;;  %932 = vmatpush3.bf16.msra.mxu0 %v1051_v1  ;;  %v1056_v6 = vld [vmem:[%s1394_s1 + $0xc8] sm:$0xff]   ;;  %v1060_v10 = vld [vmem:[%s1394_s1 + $0xd0] sm:$0xff]  }
   0x4   :  { %v1053_v3 = vld [vmem:[%s1394_s1 + $0x80] sm:$0xff]   ;;  %953 = vmatprep.subr.bf16.mxu1 %v1052_v2  ;;  %933 = vmatprep.subr.bf16.mxu0 %v1054_v4  ;;  %v1057_v7 = vld [vmem:[%s1394_s1 + $0x88] sm:$0xff]   ;;  %v1061_v11 = vld [vmem:[%s1394_s1 + $0x90] sm:$0xff]  }
   0x5   :  { %954 = vmatpush3.bf16.msra.mxu1 %v1053_v3  ;;  %v1062_v12 = vld [vmem:[%s1394_s1 + $0x58] sm:$0xff]   ;;  %v1066_v16 = vld [vmem:[%s1394_s1 + $0x60] sm:$0xff]   ;;  %v1070_v20 = vld [vmem:[%s1394_s1 + $0x68] sm:$0xff]  }
   0x6   :  { %955 = vmatprep.subr.bf16.mxu1 %v1056_v6  ;;  %v1063_v13 = vld [vmem:[%s1394_s1 + $0x18] sm:$0xff]   ;;  %v1067_v17 = vld [vmem:[%s1394_s1 + $0x20] sm:$0xff]   ;;  %v1071_v21 = vld [vmem:[%s1394_s1 + $0x28] sm:$0xff]  }
   0x7   :  { %934 = vmatpush3.bf16.msra.mxu0 %v1055_v5  ;;  %v1064_v14 = vld [vmem:[%s1394_s1 + $0xd8] sm:$0xff]   ;;  %v1068_v18 = vld [vmem:[%s1394_s1 + $0xe0] sm:$0xff]   ;;  %v1072_v22 = vld [vmem:[%s1394_s1 + $0xe8] sm:$0xff]  }
   0x8   :  { %935 = vmatprep.subr.bf16.mxu0 %v1058_v8  ;;  %v1065_v15 = vld [vmem:[%s1394_s1 + $0x98] sm:$0xff]   ;;  %v1069_v19 = vld [vmem:[%s1394_s1 + $0xa0] sm:$0xff]   ;;  %v1073_v23 = vld [vmem:[%s1394_s1 + $0xa8] sm:$0xff]  }
   0x9   :  { %956 = vmatpush3.bf16.msra.mxu1 %v1057_v7  ;;  %v1074_v24 = vld [vmem:[%s1394_s1 + $0x70] sm:$0xff]   ;;  %v1078_v28 = vld [vmem:[%s1394_s1 + $0x78] sm:$0xff]   ;;  %v15_v31 = vld [vmem:[%s1395_s0] sm:$0xff] }
   0xa   :  { %957 = vmatprep.subr.bf16.mxu1 %v1060_v10  ;;  %v1075_v25 = vld [vmem:[%s1394_s1 + $0x30] sm:$0xff]   ;;  %v1079_v29 = vld [vmem:[%s1394_s1 + $0x38] sm:$0xff]   ;;  %v849_v32 = vcombine.low %v15_v31, %v15_v31  ;;  %v850_v33 = vcombine.high %v15_v31, %v15_v31  ;;  %v1084_v35 = vld [vmem:[%s1394_s1 + $0x140] sm:$0xff]  }
   0xb   :  { %936 = vmatpush3.bf16.msra.mxu0 %v1059_v9  ;;  %v1076_v26 = vld [vmem:[%s1394_s1 + $0xf0] sm:$0xff]   ;;  %v1080_v30 = vld [vmem:[%s1394_s1 + $0xf8] sm:$0xff]   ;;  %v16_v36 = vld [vmem:[%s1395_s0 + $0x8] sm:$0xff]  ;;  %v1135_v9 = vmov 0.0  }
   0xc   :  { %937 = vmatprep.subr.bf16.mxu0 %v1062_v12  ;;  %v1077_v27 = vld [vmem:[%s1394_s1 + $0xb0] sm:$0xff]   ;;  %v1083_v34 = vld [vmem:[%s1394_s1 + $0xb8] sm:$0xff]   ;;  %667 = vmatprep.mubr.bf16.mxu0 %v850_v33  ;;  %v851_v37 = vcombine.low %v16_v36, %v16_v36  ;;  %v852_v38 = vcombine.high %v16_v36, %v16_v36  ;;  %v1087_v39 = vld [vmem:[%s1394_s1 + $0x100] sm:$0xff]  }
   0xd   :  { %958 = vmatpush3.bf16.msra.mxu1 %v1061_v11  ;;  %v1088_v40 = vld [vmem:[%s1394_s1 + $0x1c0] sm:$0xff]   ;;  %v1090_v42 = vld [vmem:[%s1394_s1 + $0x148] sm:$0xff]   ;;  %v1094_v46 = vld [vmem:[%s1394_s1 + $0x150] sm:$0xff]  }
   0xe   :  { %959 = vmatprep.subr.bf16.mxu1 %v1064_v14  ;;  %707 = vmatprep.mubr.bf16.mxu1 %v852_v38  ;;  %v1089_v41 = vld [vmem:[%s1394_s1 + $0x180] sm:$0xff]   ;;  %v1091_v43 = vld [vmem:[%s1394_s1 + $0x108] sm:$0xff]   ;;  %v1095_v47 = vld [vmem:[%s1394_s1 + $0x110] sm:$0xff]  }
   0xf   :  { %938 = vmatpush3.bf16.msra.mxu0 %v1063_v13  ;;  %v1092_v44 = vld [vmem:[%s1394_s1 + $0x1c8] sm:$0xff]   ;;  %v1096_v48 = vld [vmem:[%s1394_s1 + $0x1d0] sm:$0xff]   ;;  %v1098_v50 = vld [vmem:[%s1394_s1 + $0x158] sm:$0xff]  }
  0x10   :  { %939 = vmatprep.subr.bf16.mxu0 %v1066_v16  ;;  %v1093_v45 = vld [vmem:[%s1394_s1 + $0x188] sm:$0xff]   ;;  %v1097_v49 = vld [vmem:[%s1394_s1 + $0x190] sm:$0xff]   ;;  %v1099_v51 = vld [vmem:[%s1394_s1 + $0x118] sm:$0xff]  }
  0x11   :  { %960 = vmatpush3.bf16.msra.mxu1 %v1065_v15  ;;  %v1100_v52 = vld [vmem:[%s1394_s1 + $0x1d8] sm:$0xff]   ;;  %v1102_v54 = vld [vmem:[%s1394_s1 + $0x160] sm:$0xff]   ;;  %v1106_v58 = vld [vmem:[%s1394_s1 + $0x168] sm:$0xff]  }
  0x12   :  { %961 = vmatprep.subr.bf16.mxu1 %v1068_v18  ;;  %v1101_v53 = vld [vmem:[%s1394_s1 + $0x198] sm:$0xff]   ;;  %v1103_v55 = vld [vmem:[%s1394_s1 + $0x120] sm:$0xff]   ;;  %v1107_v59 = vld [vmem:[%s1394_s1 + $0x128] sm:$0xff]  }
  0x13   :  { %940 = vmatpush3.bf16.msra.mxu0 %v1067_v17  ;;  %v1104_v56 = vld [vmem:[%s1394_s1 + $0x1e0] sm:$0xff]   ;;  %v1108_v60 = vld [vmem:[%s1394_s1 + $0x1e8] sm:$0xff]   ;;  %v1110_v62 = vld [vmem:[%s1394_s1 + $0x170] sm:$0xff]  }
  0x14   :  { %941 = vmatprep.subr.bf16.mxu0 %v1070_v20  ;;  %v1105_v57 = vld [vmem:[%s1394_s1 + $0x1a0] sm:$0xff]   ;;  %v1109_v61 = vld [vmem:[%s1394_s1 + $0x1a8] sm:$0xff]   ;;  %v1111_v63 = vld [vmem:[%s1394_s1 + $0x130] sm:$0xff]  }
  0x15   :  { %962 = vmatpush3.bf16.msra.mxu1 %v1069_v19  ;;  %v1112_v0 = vld [vmem:[%s1394_s1 + $0x1f0] sm:$0xff]   ;;  %v1114_v2 = vld [vmem:[%s1394_s1 + $0x178] sm:$0xff]   ;;  %v1122_v13 = vld [vmem:[%s1394_s1 + $0x200] sm:$0xff]  }
  0x16   :  { %963 = vmatprep.subr.bf16.mxu1 %v1072_v22  ;;  %v1113_v1 = vld [vmem:[%s1394_s1 + $0x1b0] sm:$0xff]   ;;  %v1115_v3 = vld [vmem:[%s1394_s1 + $0x138] sm:$0xff]   ;;  %v1123_v14 = vld [vmem:[%s1394_s1 + $0x208] sm:$0xff]  }
  0x17   :  { %942 = vmatpush3.bf16.msra.mxu0 %v1071_v21  ;;  %v1116_v4 = vld [vmem:[%s1394_s1 + $0x1f8] sm:$0xff]   ;;  %v17_v5 = vld [vmem:[%s1395_s0 + $0x10] sm:$0xff]  ;;  %v1126_v17 = vld [vmem:[%s1394_s1 + $0x220] sm:$0xff]  }
  0x18   :  { %943 = vmatprep.subr.bf16.mxu0 %v1074_v24  ;;  %v853_v6 = vcombine.low %v17_v5, %v17_v5  ;;  %v854_v7 = vcombine.high %v17_v5, %v17_v5  ;;  %v1119_v8 = vld [vmem:[%s1394_s1 + $0x1b8] sm:$0xff]   ;;  %v1124_v15 = vld [vmem:[%s1394_s1 + $0x210] sm:$0xff]   ;;  %v1127_v18 = vld [vmem:[%s1394_s1 + $0x228] sm:$0xff]  }
  0x19   :  { %964 = vmatpush3.bf16.msra.mxu1 %v1073_v23  ;;  %v18_v10 = vld [vmem:[%s1395_s0 + $0x18] sm:$0xff]  ;;  %v1128_v19 = vld [vmem:[%s1394_s1 + $0x230] sm:$0xff]   ;;  %v1130_v21 = vld [vmem:[%s1395_s0 + $0x20] ss:$0 sps:$4 sm:$0xff]  }
  0x1a   :  { %965 = vmatprep.subr.bf16.mxu1 %v1076_v26  ;;  %v855_v11 = vcombine.low %v18_v10, %v18_v10  ;;  %v856_v12 = vcombine.high %v18_v10, %v18_v10  ;;  %v1125_v16 = vld [vmem:[%s1394_s1 + $0x218] sm:$0xff]   ;;  %v848_v23 = vld [vmem:[%s1396_s2] ss:$0 sm:$0xff] }
  0x1b   :  { %944 = vmatpush3.bf16.msra.mxu0 %v1075_v25  ;;  %v1129_v20 = vld [vmem:[%s1394_s1 + $0x238] sm:$0xff]  }
  0x1c   :  { %945 = vmatprep.subr.bf16.mxu0 %v1078_v28 }
  0x1d   :  { %966 = vmatpush3.bf16.msra.mxu1 %v1077_v27 }
  0x1e   :  { %967 = vmatprep.subr.bf16.mxu1 %v1080_v30 }
  0x1f   :  { %946 = vmatpush3.bf16.msra.mxu0 %v1079_v29 }
  0x20   :  { %975 = vmatprep.subr.bf16.mxu0 %v1084_v35 }
  0x21   :  { %968 = vmatpush3.bf16.msra.mxu1 %v1083_v34 }
  0x22   :  { %668 = vmatmul.mubr.bf16.vlgmr.msra.gmra.mrb[0].mxu0 %v849_v32  ;;  %997 = vmatprep.subr.bf16.mxu1 %v1088_v40 }
  0x23   :  { %976 = vmatpush3.bf16.msra.mxu0 %v1087_v39  ;;  %747 = vmatprep.mubr.bf16.mxu0 %v854_v7 }
  0x24   :  { %708 = vmatmul.mubr.bf16.vlgmr.msra.gmra.mrb[0].mxu1 %v851_v37  ;;  %977 = vmatprep.subr.bf16.mxu0 %v1090_v42 }
  0x25   :  { %998 = vmatpush3.bf16.msra.mxu1 %v1089_v41  ;;  %787 = vmatprep.mubr.bf16.mxu1 %v856_v12 }
  0x26   :  { %999 = vmatprep.subr.bf16.mxu1 %v1092_v44 }
  0x27   :  { %978 = vmatpush3.bf16.msra.mxu0 %v1091_v43 }
  0x28   :  { %979 = vmatprep.subr.bf16.mxu0 %v1094_v46 }
  0x29   :  { %1000 = vmatpush3.bf16.msra.mxu1 %v1093_v45 }
  0x2a   :  { %1001 = vmatprep.subr.bf16.mxu1 %v1096_v48 }
  0x2b   :  { %980 = vmatpush3.bf16.msra.mxu0 %v1095_v47 }
  0x2c   :  { %981 = vmatprep.subr.bf16.mxu0 %v1098_v50 }
  0x2d   :  { %1002 = vmatpush3.bf16.msra.mxu1 %v1097_v49 }
  0x2e   :  { %1003 = vmatprep.subr.bf16.mxu1 %v1100_v52 }
  0x2f   :  { %982 = vmatpush3.bf16.msra.mxu0 %v1099_v51 }
  0x30   :  { %983 = vmatprep.subr.bf16.mxu0 %v1102_v54 }
  0x31   :  { %1004 = vmatpush3.bf16.msra.mxu1 %v1101_v53 }
  0x32   :  { %1005 = vmatprep.subr.bf16.mxu1 %v1104_v56 }
  0x33   :  { %984 = vmatpush3.bf16.msra.mxu0 %v1103_v55 }
  0x34   :  { %985 = vmatprep.subr.bf16.mxu0 %v1106_v58 }
  0x35   :  { %1006 = vmatpush3.bf16.msra.mxu1 %v1105_v57 }
  0x36   :  { %1007 = vmatprep.subr.bf16.mxu1 %v1108_v60 }
  0x37   :  { %986 = vmatpush3.bf16.msra.mxu0 %v1107_v59 }
  0x38   :  { %987 = vmatprep.subr.bf16.mxu0 %v1110_v62 }
  0x39   :  { %1008 = vmatpush3.bf16.msra.mxu1 %v1109_v61 }
  0x3a   :  { %1009 = vmatprep.subr.bf16.mxu1 %v1112_v0 }
  0x3b   :  { %988 = vmatpush3.bf16.msra.mxu0 %v1111_v63 }
  0x3c   :  { %989 = vmatprep.subr.bf16.mxu0 %v1114_v2 }
  0x3d   :  { %1010 = vmatpush3.bf16.msra.mxu1 %v1113_v1 }
  0x3e   :  { %1011 = vmatprep.subr.bf16.mxu1 %v1116_v4 }
  0x3f   :  { %990 = vmatpush3.bf16.msra.mxu0 %v1115_v3 }
  0x40   :  { %1028 = vmatprep.subr.bf16.mxu0 %v1135_v9 }
  0x41   :  { %1012 = vmatpush3.bf16.msra.mxu1 %v1119_v8 }
  0x42   :  { %748 = vmatmul.mubr.bf16.vlgmr.msra.gmra.mrb[4].mxu0 %v853_v6 }
  0x43   :  { %1029 = vmatpush3.bf16.msra.mxu0 %v1122_v13  ;;  %1044 = vmatprep.mubr.msk.bf16.mxu0 %vm1136_vm0, %v1135_v9 }
  0x44   :  { %788 = vmatmul.mubr.bf16.vlgmr.msra.gmra.mrb[4].mxu1 %v855_v11  ;;  %1030 = vmatprep.subr.bf16.mxu0 %v1135_v9 }
  0x47   :  { %1031 = vmatpush3.bf16.msra.mxu0 %v1123_v14 }
  0x48   :  { %1032 = vmatprep.subr.bf16.mxu0 %v1135_v9 }
  0x4b   :  { %1033 = vmatpush3.bf16.msra.mxu0 %v1124_v15 }
  0x4c   :  { %1034 = vmatprep.subr.bf16.mxu0 %v1135_v9 }
  0x4f   :  { %1035 = vmatpush3.bf16.msra.mxu0 %v1125_v16 }
  0x50   :  { %1036 = vmatprep.subr.bf16.mxu0 %v1135_v9 }
  0x53   :  { %1037 = vmatpush3.bf16.msra.mxu0 %v1126_v17 }
  0x54   :  { %1038 = vmatprep.subr.bf16.mxu0 %v1135_v9 }
  0x57   :  { %1039 = vmatpush3.bf16.msra.mxu0 %v1127_v18 }
  0x58   :  { %1040 = vmatprep.subr.bf16.mxu0 %v1135_v9 }
  0x5b   :  { %1041 = vmatpush3.bf16.msra.mxu0 %v1128_v19 }
  0x5c   :  { %1042 = vmatprep.subr.bf16.mxu0 %v1135_v9 }
  0x5f   :  { %1043 = vmatpush3.bf16.msra.mxu0 %v1129_v20 }
  0x62   :  { %1045 = vmatmul.mubr.bf16.vlgmr.msra.gmra.mrb[8].mxu0 %v1130_v21 }
  0xf5   :  { %v947_v22 = vpop.f32.mrb[0].mxu0 }
  0xf6   :  { %v948_v24 = vpop.f32.mrb[1].mxu0 }
  0xf7   :  { %v949_v25 = vadd.f32 %v948_v24, %v947_v22  ;;  %v950_v26 = vpop.f32.mrb[2].mxu0  ;;  %v969_v27 = vpop.f32.mrb[0].mxu1 }
  0xf8   :  { %v951_v28 = vpop.f32.mrb[3].mxu0  ;;  %v970_v29 = vpop.f32.mrb[1].mxu1 }
  0xf9   :  { %v670_v30 = vadd.f32 %v949_v25, %v848_v23  ;;  %v971_v31 = vadd.f32 %v970_v29, %v969_v27  ;;  %v972_v32 = vpop.f32.mrb[2].mxu1 }
  0xfa   :  { %v973_v33 = vpop.f32.mrb[3].mxu1 }
  0xfb   :  { %v710_v34 = vadd.f32 %v971_v31, %v670_v30 }
 0x115   :  { %v991_v35 = vpop.f32.mrb[4].mxu0 }
 0x116   :  { %v992_v36 = vpop.f32.mrb[5].mxu0 }
 0x117   :  { %v993_v37 = vadd.f32 %v992_v36, %v991_v35  ;;  %v994_v38 = vpop.f32.mrb[6].mxu0  ;;  %v1013_v39 = vpop.f32.mrb[4].mxu1 }
 0x118   :  { %v995_v40 = vpop.f32.mrb[7].mxu0  ;;  %v1014_v41 = vpop.f32.mrb[5].mxu1 }
 0x119   :  { %v750_v42 = vadd.f32 %v993_v37, %v710_v34  ;;  %v1015_v43 = vadd.f32 %v1014_v41, %v1013_v39  ;;  %v1016_v44 = vpop.f32.mrb[6].mxu1 }
 0x11a   :  { %v1017_v45 = vpop.f32.mrb[7].mxu1 }
 0x11b   :  { %v790_v46 = vadd.f32 %v1015_v43, %v750_v42 }
 0x135   :  { %v829_v47 = vpop.f32.mrb[8].mxu0 }
 0x136   :  { %v830_v48 = vadd.f32 %v829_v47, %v790_v46  ;;  %v1046_v49 = vpop.f32.mrb[9].mxu0 }
 0x137   :  { %v832_v50 = vpop.f32.mrb[10].mxu0 }
 0x138   :  { %v930_v51 = vmul.f32 -1.442695, %v830_v48  ;;  %v1047_v52 = vpop.f32.mrb[11].mxu0 }
 0x13a   :  { %1131 = vpow2.f32 %v930_v51 }
 0x144   :  { %v1132_v53 = vpop.eup %1131 }
 0x145   :  { %v838_v54 = vadd.f32 1.0, %v1132_v53 }
 0x147   :  { %1133 = vrcp.f32 %v838_v54 }
 0x151   :  { %v1134_v55 = vpop.eup %1133 }
 0x152   :  { %v841_v56 = vmul.f32 %v1134_v55, %v830_v48 }
 0x154   :  { %v842_v57 = vpack.c.bf16 %v841_v56, %v841_v56 }
 0x156   :  { %843 = vst [vmem:[%s1397_s3] sm:$0xf] %v842_v57 }

// kernel: yolox_forward.45
= control target key start
LH: loop header
LB: loop body
LE: loop exit
PB: predicated region body
PF: predicated region fallthrough
CT: control target
= control target key end

     0   :  { %v194_v0 = vmov 0.0   ;;  %vm195_vm0 = vmmov 0   ;;  %vm135_vm1 = vcmask 519168   ;;  %s249_s1 = inlined_call_operand.vmem [shape: bf16[128,64], index: 1, kind: input, shape index: {}]   ;;  %s250_s0 = inlined_call_operand.vmem [shape: bf16[8,128], index: 0, kind: input, shape index: {}]   ;;  %s251_s2 = inlined_call_operand.vmem [shape: f32[1,64], index: 2, kind: input, shape index: {}]   ;;  %s252_s3 = inlined_call_operand.vmem [shape: bf16[8,64], index: 3, kind: output, shape index: {}]  }
   0x1   :  { %160 = vmatprep.subr.bf16.mxu0 %v194_v0  ;;  %v182_v1 = vld [vmem:[%s249_s1] sm:$0xff]   ;;  %176 = vmatprep.mubr.msk.bf16.mxu0 %vm195_vm0, %v194_v0  ;;  %v183_v2 = vld [vmem:[%s249_s1 + $0x8] sm:$0xff]   ;;  %v184_v3 = vld [vmem:[%s249_s1 + $0x10] sm:$0xff]  }
   0x2   :  { %161 = vmatpush3.bf16.msra.mxu0 %v182_v1  ;;  %v185_v4 = vld [vmem:[%s249_s1 + $0x18] sm:$0xff]   ;;  %v186_v5 = vld [vmem:[%s249_s1 + $0x20] sm:$0xff]   ;;  %v187_v6 = vld [vmem:[%s249_s1 + $0x28] sm:$0xff]  }
   0x3   :  { %162 = vmatprep.subr.bf16.mxu0 %v194_v0  ;;  %v188_v7 = vld [vmem:[%s249_s1 + $0x30] sm:$0xff]   ;;  %v189_v8 = vld [vmem:[%s249_s1 + $0x38] sm:$0xff]   ;;  %v15_v9 = vld [vmem:[%s250_s0] sm:$0xf] }
   0x4   :  { %v141_v10 = vld [vmem:[%s251_s2] ss:$0 sm:$0xff] }
   0x6   :  { %163 = vmatpush3.bf16.msra.mxu0 %v183_v2 }
   0x7   :  { %164 = vmatprep.subr.bf16.mxu0 %v194_v0 }
   0xa   :  { %165 = vmatpush3.bf16.msra.mxu0 %v184_v3 }
   0xb   :  { %166 = vmatprep.subr.bf16.mxu0 %v194_v0 }
   0xe   :  { %167 = vmatpush3.bf16.msra.mxu0 %v185_v4 }
   0xf   :  { %168 = vmatprep.subr.bf16.mxu0 %v194_v0 }
  0x12   :  { %169 = vmatpush3.bf16.msra.mxu0 %v186_v5 }
  0x13   :  { %170 = vmatprep.subr.bf16.mxu0 %v194_v0 }
  0x16   :  { %171 = vmatpush3.bf16.msra.mxu0 %v187_v6 }
  0x17   :  { %172 = vmatprep.subr.bf16.mxu0 %v194_v0 }
  0x1a   :  { %173 = vmatpush3.bf16.msra.mxu0 %v188_v7 }
  0x1b   :  { %174 = vmatprep.subr.bf16.mxu0 %v194_v0 }
  0x1e   :  { %175 = vmatpush3.bf16.msra.mxu0 %v189_v8 }
  0x21   :  { %177 = vmatmul.mubr.bf16.vlgmr.msra.gmra.mrb[0].mxu0 %v15_v9 }
  0xf4   :  { %v121_v11 = vpop.f32.mrb[0].mxu0 }
  0xf5   :  { %v122_v12 = vadd.f32 %v141_v10, %v121_v11  ;;  %v178_v13 = vpop.f32.mrb[1].mxu0 }
  0xf6   :  { %v124_v14 = vpop.f32.mrb[2].mxu0 }
  0xf7   :  { %v150_v15 = vmul.f32 -1.442695, %v122_v12  ;;  %v179_v16 = vpop.f32.mrb[3].mxu0 }
  0xf9   :  { %190 = vpow2.f32 %v150_v15 }
 0x103   :  { %v191_v17 = vpop.eup %190 }
 0x104   :  { %v130_v18 = vadd.f32 1.0, %v191_v17 }
 0x106   :  { %192 = vrcp.f32 %v130_v18 }
 0x110   :  { %v193_v19 = vpop.eup %192 }
 0x111   :  { %v133_v20 = vmul.f32 %v193_v19, %v122_v12 }
 0x113   :  { %v134_v21 = vpack.c.bf16 %v133_v20, %v133_v20 }
 0x115   :  { %136 = vst.msk [vmem:[%s252_s3] sm:$0xf] %vm135_vm1, %v134_v21 }

// kernel: yolox_forward.47
= control target key start
LH: loop header
LB: loop body
LE: loop exit
PB: predicated region body
PF: predicated region fallthrough
CT: control target
= control target key end

     0   :  { %vm68_vm0 = vcmask 523264   ;;  %vm168_vm1 = vcmask 257024   ;;  %s291_s1 = inlined_call_operand.vmem [shape: bf16[64,32], index: 1, kind: input, shape index: {}]   ;;  %s292_s0 = inlined_call_operand.vmem [shape: bf16[32,64], index: 0, kind: input, shape index: {}]   ;;  %s293_s2 = inlined_call_operand.vmem [shape: f32[1,32], index: 2, kind: input, shape index: {}]   ;;  %s294_s3 = inlined_call_operand.vmem [shape: bf16[32,32], index: 3, kind: output, shape index: {}]  }
   0x1   :  { %v216_v0 = vld [vmem:[%s291_s1] sm:$0xff]   ;;  %v217_v1 = vld [vmem:[%s291_s1 + $0x8] sm:$0xff]   ;;  %v218_v2 = vld [vmem:[%s291_s1 + $0x10] sm:$0xff]  }
   0x2   :  { %204 = vmatprep.subr.bf16.mxu0 %v216_v0  ;;  %v220_v3 = vld [vmem:[%s292_s0] sm:$0xff]   ;;  %v219_v4 = vld [vmem:[%s291_s1 + $0x18] sm:$0xff]   ;;  %v221_v5 = vld [vmem:[%s292_s0 + $0x8] sm:$0xff]  }
   0x3   :  { %205 = vmatpush3.bf16.msra.mxu0 %v216_v0  ;;  %212 = vmatprep.mubr.msk.bf16.mxu0 %vm68_vm0, %v220_v3  ;;  %v177_v6 = vld [vmem:[%s293_s2] ss:$0 sm:$0xff] }
   0x4   :  { %206 = vmatprep.subr.bf16.mxu0 %v217_v1 }
   0x7   :  { %207 = vmatpush3.bf16.msra.mxu0 %v217_v1 }
   0x8   :  { %208 = vmatprep.subr.bf16.mxu0 %v218_v2 }
   0xb   :  { %209 = vmatpush3.bf16.msra.mxu0 %v218_v2 }
   0xc   :  { %210 = vmatprep.subr.bf16.mxu0 %v219_v4 }
   0xf   :  { %211 = vmatpush3.bf16.msra.mxu0 %v219_v4 }
  0x12   :  { %213 = vmatmul.mubr.msk.bf16.vlgmr.msra.gmra.mrb[0].mxu0 %vm68_vm0, %v221_v5 }
  0xe5   :  { %v214_v7 = vpop.f32.mrb[0].mxu0 }
  0xe6   :  { %v118_v8 = vadd.f32 %v214_v7, %v177_v6  ;;  %v109_v9 = vpop.f32.mrb[1].mxu0 }
  0xe7   :  { %v110_v10 = vadd.f32 %v177_v6, %v109_v9  ;;  %v215_v11 = vpop.f32.mrb[2].mxu0 }
  0xe8   :  { %v188_v12 = vmul.f32 -1.442695, %v118_v8  ;;  %v121_v13 = vadd.f32 %v215_v11, %v177_v6  ;;  %v112_v14 = vpop.f32.mrb[3].mxu0 }
  0xe9   :  { %v186_v15 = vmul.f32 -1.442695, %v110_v10  ;;  %v113_v16 = vadd.f32 %v177_v6, %v112_v14 }
  0xea   :  { %222 = vpow2.f32 %v188_v12  ;;  %v189_v17 = vmul.f32 -1.442695, %v121_v13 }
  0xeb   :  { %224 = vpow2.f32 %v186_v15  ;;  %v187_v18 = vmul.f32 -1.442695, %v113_v16 }
  0xec   :  { %226 = vpow2.f32 %v189_v17 }
  0xed   :  { %228 = vpow2.f32 %v187_v18 }
  0xf4   :  { %v223_v19 = vpop.eup %222 }
  0xf5   :  { %v225_v20 = vpop.eup %224  ;;  %v138_v21 = vadd.f32 1.0, %v223_v19 }
  0xf6   :  { %v227_v22 = vpop.eup %226  ;;  %v136_v23 = vadd.f32 1.0, %v225_v20 }
  0xf7   :  { %v229_v24 = vpop.eup %228  ;;  %230 = vrcp.f32 %v138_v21  ;;  %v139_v25 = vadd.f32 1.0, %v227_v22 }
  0xf8   :  { %232 = vrcp.f32 %v136_v23  ;;  %v137_v26 = vadd.f32 1.0, %v229_v24 }
  0xf9   :  { %234 = vrcp.f32 %v139_v25 }
  0xfa   :  { %236 = vrcp.f32 %v137_v26 }
 0x101   :  { %v231_v27 = vpop.eup %230 }
 0x102   :  { %v233_v28 = vpop.eup %232  ;;  %v150_v29 = vmul.f32 %v231_v27, %v118_v8 }
 0x103   :  { %v235_v30 = vpop.eup %234  ;;  %v148_v31 = vmul.f32 %v233_v28, %v110_v10 }
 0x104   :  { %v237_v32 = vpop.eup %236  ;;  %v196_v33 = vpack.c.bf16 %v150_v29, %v150_v29  ;;  %v151_v34 = vmul.f32 %v235_v30, %v121_v13 }
 0x105   :  { %v194_v35 = vpack.c.bf16 %v148_v31, %v148_v31  ;;  %v149_v36 = vmul.f32 %v237_v32, %v113_v16 }
 0x106   :  { %171 = vst.msk [vmem:[%s294_s3 + $0x8] sm:$0xf] %vm168_vm1, %v196_v33  ;;  %v197_v37 = vpack.c.bf16 %v151_v34, %v151_v34 }
 0x107   :  { %169 = vst.msk [vmem:[%s294_s3] sm:$0xf] %vm168_vm1, %v194_v35  ;;  %v195_v38 = vpack.c.bf16 %v149_v36, %v149_v36 }
 0x108   :  { %172 = vst.msk [vmem:[%s294_s3 + $0xc] sm:$0xf] %vm168_vm1, %v197_v37 }
 0x109   :  { %170 = vst.msk [vmem:[%s294_s3 + $0x4] sm:$0xf] %vm168_vm1, %v195_v38 }

// kernel: yolox_forward.46
= control target key start
LH: loop header
LB: loop body
LE: loop exit
PB: predicated region body
PF: predicated region fallthrough
CT: control target
= control target key end

     0   :  { %vm999_vm0 = vcmask 519168   ;;  %s1672_s1 = inlined_call_operand.vmem [shape: bf16[1152,64], index: 1, kind: input, shape index: {}]   ;;  %s1673_s0 = inlined_call_operand.vmem [shape: bf16[32,1152], index: 0, kind: input, shape index: {}]   ;;  %s1674_s2 = inlined_call_operand.vmem [shape: f32[1,64], index: 2, kind: input, shape index: {}]   ;;  %s1675_s3 = inlined_call_operand.vmem [shape: bf16[32,64], index: 3, kind: output, shape index: {}]  }
   0x1   :  { %v1253_v0 = vld [vmem:[%s1672_s1 + $0x40] sm:$0xff]   ;;  %v1257_v4 = vld [vmem:[%s1672_s1 + $0x48] sm:$0xff]   ;;  %v1261_v8 = vld [vmem:[%s1672_s1 + $0x50] sm:$0xff]  }
   0x2   :  { %v1254_v1 = vld [vmem:[%s1672_s1] sm:$0xff]   ;;  %1111 = vmatprep.subr.bf16.mxu0 %v1253_v0  ;;  %v1258_v5 = vld [vmem:[%s1672_s1 + $0x8] sm:$0xff]   ;;  %v1262_v9 = vld [vmem:[%s1672_s1 + $0x10] sm:$0xff]  }
   0x3   :  { %v1255_v2 = vld [vmem:[%s1672_s1 + $0xc0] sm:$0xff]   ;;  %1112 = vmatpush3.bf16.msra.mxu0 %v1254_v1  ;;  %v1259_v6 = vld [vmem:[%s1672_s1 + $0xc8] sm:$0xff]   ;;  %v1263_v10 = vld [vmem:[%s1672_s1 + $0xd0] sm:$0xff]  }
   0x4   :  { %v1256_v3 = vld [vmem:[%s1672_s1 + $0x80] sm:$0xff]   ;;  %1139 = vmatprep.subr.bf16.mxu1 %v1255_v2  ;;  %1113 = vmatprep.subr.bf16.mxu0 %v1257_v4  ;;  %v1260_v7 = vld [vmem:[%s1672_s1 + $0x88] sm:$0xff]   ;;  %v1264_v11 = vld [vmem:[%s1672_s1 + $0x90] sm:$0xff]  }
   0x5   :  { %1140 = vmatpush3.bf16.msra.mxu1 %v1256_v3  ;;  %v1265_v12 = vld [vmem:[%s1672_s1 + $0x58] sm:$0xff]   ;;  %v1269_v16 = vld [vmem:[%s1672_s1 + $0x60] sm:$0xff]   ;;  %v1273_v20 = vld [vmem:[%s1672_s1 + $0x68] sm:$0xff]  }
   0x6   :  { %1141 = vmatprep.subr.bf16.mxu1 %v1259_v6  ;;  %v1266_v13 = vld [vmem:[%s1672_s1 + $0x18] sm:$0xff]   ;;  %v1270_v17 = vld [vmem:[%s1672_s1 + $0x20] sm:$0xff]   ;;  %v1274_v21 = vld [vmem:[%s1672_s1 + $0x28] sm:$0xff]  }
   0x7   :  { %1114 = vmatpush3.bf16.msra.mxu0 %v1258_v5  ;;  %v1267_v14 = vld [vmem:[%s1672_s1 + $0xd8] sm:$0xff]   ;;  %v1271_v18 = vld [vmem:[%s1672_s1 + $0xe0] sm:$0xff]   ;;  %v1275_v22 = vld [vmem:[%s1672_s1 + $0xe8] sm:$0xff]  }
   0x8   :  { %1115 = vmatprep.subr.bf16.mxu0 %v1261_v8  ;;  %v1268_v15 = vld [vmem:[%s1672_s1 + $0x98] sm:$0xff]   ;;  %v1272_v19 = vld [vmem:[%s1672_s1 + $0xa0] sm:$0xff]   ;;  %v1276_v23 = vld [vmem:[%s1672_s1 + $0xa8] sm:$0xff]  }
   0x9   :  { %1142 = vmatpush3.bf16.msra.mxu1 %v1260_v7  ;;  %v1277_v24 = vld [vmem:[%s1672_s1 + $0x70] sm:$0xff]   ;;  %v1281_v28 = vld [vmem:[%s1672_s1 + $0x78] sm:$0xff]   ;;  %v1284_v31 = vld [vmem:[%s1673_s0] ss:$36 sps:$4 sm:$0xff]  }
   0xa   :  { %1143 = vmatprep.subr.bf16.mxu1 %v1263_v10  ;;  %v1278_v25 = vld [vmem:[%s1672_s1 + $0x30] sm:$0xff]   ;;  %v1282_v29 = vld [vmem:[%s1672_s1 + $0x38] sm:$0xff]   ;;  %v1286_v32 = vld [vmem:[%s1673_s0 + $0x4] ss:$36 sps:$4 sm:$0xff]  }
   0xb   :  { %1116 = vmatpush3.bf16.msra.mxu0 %v1262_v9  ;;  %v1279_v26 = vld [vmem:[%s1672_s1 + $0xf0] sm:$0xff]   ;;  %v1283_v30 = vld [vmem:[%s1672_s1 + $0xf8] sm:$0xff]   ;;  %742 = vmatprep.mubr.bf16.mxu0 %v1286_v32  ;;  %v1288_v34 = vld [vmem:[%s1672_s1 + $0x140] sm:$0xff]  }
   0xc   :  { %1117 = vmatprep.subr.bf16.mxu0 %v1265_v12  ;;  %v1280_v27 = vld [vmem:[%s1672_s1 + $0xb0] sm:$0xff]   ;;  %v1287_v33 = vld [vmem:[%s1672_s1 + $0xb8] sm:$0xff]   ;;  %v1289_v35 = vld [vmem:[%s1673_s0 + $0x8] ss:$36 sps:$4 sm:$0xff]  }
   0xd   :  { %1144 = vmatpush3.bf16.msra.mxu1 %v1264_v11  ;;  %v1291_v36 = vld [vmem:[%s1673_s0 + $0xc] ss:$36 sps:$4 sm:$0xff]   ;;  %v1292_v37 = vld [vmem:[%s1672_s1 + $0x100] sm:$0xff]   ;;  %v1303_v48 = vld [vmem:[%s1672_s1 + $0x158] sm:$0xff]  }
   0xe   :  { %1145 = vmatprep.subr.bf16.mxu1 %v1267_v14  ;;  %791 = vmatprep.mubr.bf16.mxu1 %v1291_v36  ;;  %v1293_v38 = vld [vmem:[%s1672_s1 + $0x1c0] sm:$0xff]   ;;  %v1295_v40 = vld [vmem:[%s1672_s1 + $0x148] sm:$0xff]   ;;  %v1299_v44 = vld [vmem:[%s1672_s1 + $0x150] sm:$0xff]  }
   0xf   :  { %1118 = vmatpush3.bf16.msra.mxu0 %v1266_v13  ;;  %v1294_v39 = vld [vmem:[%s1672_s1 + $0x180] sm:$0xff]   ;;  %v1296_v41 = vld [vmem:[%s1672_s1 + $0x108] sm:$0xff]   ;;  %v1300_v45 = vld [vmem:[%s1672_s1 + $0x110] sm:$0xff]  }
  0x10   :  { %1119 = vmatprep.subr.bf16.mxu0 %v1269_v16  ;;  %v1297_v42 = vld [vmem:[%s1672_s1 + $0x1c8] sm:$0xff]   ;;  %v1301_v46 = vld [vmem:[%s1672_s1 + $0x1d0] sm:$0xff]   ;;  %v1304_v49 = vld [vmem:[%s1672_s1 + $0x118] sm:$0xff]  }
  0x11   :  { %1146 = vmatpush3.bf16.msra.mxu1 %v1268_v15  ;;  %v1298_v43 = vld [vmem:[%s1672_s1 + $0x188] sm:$0xff]   ;;  %v1302_v47 = vld [vmem:[%s1672_s1 + $0x190] sm:$0xff]   ;;  %v1305_v50 = vld [vmem:[%s1672_s1 + $0x1d8] sm:$0xff]  }
  0x12   :  { %1147 = vmatprep.subr.bf16.mxu1 %v1271_v18  ;;  %v1306_v51 = vld [vmem:[%s1672_s1 + $0x198] sm:$0xff]   ;;  %v1307_v52 = vld [vmem:[%s1672_s1 + $0x160] sm:$0xff]   ;;  %v1311_v56 = vld [vmem:[%s1672_s1 + $0x168] sm:$0xff]  }
  0x13   :  { %1120 = vmatpush3.bf16.msra.mxu0 %v1270_v17  ;;  %v1308_v53 = vld [vmem:[%s1672_s1 + $0x120] sm:$0xff]   ;;  %v1312_v57 = vld [vmem:[%s1673_s0 + $0x4c] ss:$36 sps:$4 sm:$0xff]   ;;  %v1317_v61 = vld [vmem:[%s1673_s0 + $0x54] ss:$36 sps:$4 sm:$0xff]  }
  0x14   :  { %1121 = vmatprep.subr.bf16.mxu0 %v1273_v20  ;;  %v1309_v54 = vld [vmem:[%s1672_s1 + $0x1e0] sm:$0xff]   ;;  %v1314_v58 = vld [vmem:[%s1672_s1 + $0x128] sm:$0xff]   ;;  %v1320_v63 = vld [vmem:[%s1673_s0 + $0x50] ss:$36 sps:$4 sm:$0xff]  }
  0x15   :  { %1148 = vmatpush3.bf16.msra.mxu1 %v1272_v19  ;;  %v1310_v55 = vld [vmem:[%s1672_s1 + $0x1a0] sm:$0xff]   ;;  %v1315_v59 = vld [vmem:[%s1673_s0 + $0x48] ss:$36 sps:$4 sm:$0xff]   ;;  %v1321_v0 = vld [vmem:[%s1672_s1 + $0x170] sm:$0xff]  }
  0x16   :  { %1149 = vmatprep.subr.bf16.mxu1 %v1275_v22  ;;  %v1316_v60 = vld [vmem:[%s1672_s1 + $0x1e8] sm:$0xff]   ;;  %v1322_v1 = vld [vmem:[%s1672_s1 + $0x130] sm:$0xff]   ;;  %v1325_v4 = vld [vmem:[%s1672_s1 + $0x178] sm:$0xff]  }
  0x17   :  { %1122 = vmatpush3.bf16.msra.mxu0 %v1274_v21  ;;  %v1319_v62 = vld [vmem:[%s1672_s1 + $0x1a8] sm:$0xff]   ;;  %v1323_v2 = vld [vmem:[%s1672_s1 + $0x1f0] sm:$0xff]   ;;  %v1326_v5 = vld [vmem:[%s1672_s1 + $0x138] sm:$0xff]  }
  0x18   :  { %1123 = vmatprep.subr.bf16.mxu0 %v1277_v24  ;;  %v1324_v3 = vld [vmem:[%s1672_s1 + $0x1b0] sm:$0xff]   ;;  %v1327_v6 = vld [vmem:[%s1672_s1 + $0x1f8] sm:$0xff]   ;;  %v1332_v10 = vld [vmem:[%s1672_s1 + $0x200] sm:$0xff]  }
  0x19   :  { %1150 = vmatpush3.bf16.msra.mxu1 %v1276_v23  ;;  %v1328_v7 = vld [vmem:[%s1673_s0 + $0x10] ss:$36 sps:$4 sm:$0xff]   ;;  %v1331_v9 = vld [vmem:[%s1672_s1 + $0x1b8] sm:$0xff]   ;;  %v1336_v13 = vld [vmem:[%s1672_s1 + $0x208] sm:$0xff]  }
  0x1a   :  { %1151 = vmatprep.subr.bf16.mxu1 %v1279_v26  ;;  %v1330_v8 = vld [vmem:[%s1673_s0 + $0x14] ss:$36 sps:$4 sm:$0xff]   ;;  %v1335_v12 = vld [vmem:[%s1673_s0 + $0x1c] ss:$36 sps:$4 sm:$0xff]   ;;  %v1341_v17 = vld [vmem:[%s1673_s0 + $0x64] ss:$36 sps:$4 sm:$0xff]  }
  0x1b   :  { %1124 = vmatpush3.bf16.msra.mxu0 %v1278_v25  ;;  %v1333_v11 = vld [vmem:[%s1673_s0 + $0x18] ss:$36 sps:$4 sm:$0xff]   ;;  %v1340_v16 = vld [vmem:[%s1672_s1 + $0x210] sm:$0xff]   ;;  %v1343_v18 = vld [vmem:[%s1673_s0 + $0x60] ss:$36 sps:$4 sm:$0xff]  }
  0x1c   :  { %1125 = vmatprep.subr.bf16.mxu0 %v1281_v28  ;;  %v1337_v14 = vld [vmem:[%s1673_s0 + $0x5c] ss:$36 sps:$4 sm:$0xff]   ;;  %v1346_v22 = vld [vmem:[%s1672_s1 + $0x228] sm:$0xff]   ;;  %v1347_v23 = vld [vmem:[%s1672_s1 + $0x230] sm:$0xff]  }
  0x1d   :  { %1152 = vmatpush3.bf16.msra.mxu1 %v1280_v27  ;;  %v1339_v15 = vld [vmem:[%s1673_s0 + $0x58] ss:$36 sps:$4 sm:$0xff]   ;;  %v1345_v20 = vld [vmem:[%s1672_s1 + $0x220] sm:$0xff]   ;;  %v1350_v25 = vld [vmem:[%s1673_s0 + $0x68] ss:$36 sps:$4 sm:$0xff]  }
  0x1e   :  { %1153 = vmatprep.subr.bf16.mxu1 %v1283_v30  ;;  %v1344_v19 = vld [vmem:[%s1672_s1 + $0x218] sm:$0xff]   ;;  %v1349_v21 = vld [vmem:[%s1673_s0 + $0x20] ss:$36 sps:$4 sm:$0xff]  }
  0x1f   :  { %1126 = vmatpush3.bf16.msra.mxu0 %v1282_v29  ;;  %v1348_v24 = vld [vmem:[%s1672_s1 + $0x238] sm:$0xff]   ;;  %v1008_v27 = vld [vmem:[%s1674_s2] ss:$0 sm:$0xff] }
  0x20   :  { %1167 = vmatprep.subr.bf16.mxu0 %v1288_v34 }
  0x21   :  { %1154 = vmatpush3.bf16.msra.mxu1 %v1287_v33 }
  0x22   :  { %743 = vmatmul.mubr.bf16.vlgmr.msra.gmra.mrb[0].mxu0 %v1284_v31  ;;  %1195 = vmatprep.subr.bf16.mxu1 %v1293_v38 }
  0x23   :  { %1168 = vmatpush3.bf16.msra.mxu0 %v1292_v37  ;;  %750 = vmatprep.mubr.bf16.mxu0 %v1312_v57 }
  0x24   :  { %792 = vmatmul.mubr.bf16.vlgmr.msra.gmra.mrb[0].mxu1 %v1289_v35  ;;  %1169 = vmatprep.subr.bf16.mxu0 %v1295_v40 }
  0x25   :  { %1196 = vmatpush3.bf16.msra.mxu1 %v1294_v39  ;;  %799 = vmatprep.mubr.bf16.mxu1 %v1317_v61 }
  0x26   :  { %1197 = vmatprep.subr.bf16.mxu1 %v1297_v42 }
  0x27   :  { %1170 = vmatpush3.bf16.msra.mxu0 %v1296_v41 }
  0x28   :  { %1171 = vmatprep.subr.bf16.mxu0 %v1299_v44 }
  0x29   :  { %1198 = vmatpush3.bf16.msra.mxu1 %v1298_v43 }
  0x2a   :  { %1199 = vmatprep.subr.bf16.mxu1 %v1301_v46  ;;  %751 = vmatmul.mubr.bf16.gmra.mrb[4].mxu0 %v1315_v59 }
  0x2b   :  { %1172 = vmatpush3.bf16.msra.mxu0 %v1300_v45  ;;  %840 = vmatprep.mubr.bf16.mxu0 %v1330_v8 }
  0x2c   :  { %1173 = vmatprep.subr.bf16.mxu0 %v1303_v48  ;;  %800 = vmatmul.mubr.bf16.gmra.mrb[4].mxu1 %v1320_v63 }
  0x2d   :  { %1200 = vmatpush3.bf16.msra.mxu1 %v1302_v47  ;;  %889 = vmatprep.mubr.bf16.mxu1 %v1335_v12 }
  0x2e   :  { %1201 = vmatprep.subr.bf16.mxu1 %v1305_v50 }
  0x2f   :  { %1174 = vmatpush3.bf16.msra.mxu0 %v1304_v49 }
  0x30   :  { %1175 = vmatprep.subr.bf16.mxu0 %v1307_v52 }
  0x31   :  { %1202 = vmatpush3.bf16.msra.mxu1 %v1306_v51 }
  0x32   :  { %1203 = vmatprep.subr.bf16.mxu1 %v1309_v54 }
  0x33   :  { %1176 = vmatpush3.bf16.msra.mxu0 %v1308_v53 }
  0x34   :  { %1177 = vmatprep.subr.bf16.mxu0 %v1311_v56 }
  0x35   :  { %1204 = vmatpush3.bf16.msra.mxu1 %v1310_v55 }
  0x36   :  { %1205 = vmatprep.subr.bf16.mxu1 %v1316_v60 }
  0x37   :  { %1178 = vmatpush3.bf16.msra.mxu0 %v1314_v58 }
  0x38   :  { %1179 = vmatprep.subr.bf16.mxu0 %v1321_v0 }
  0x39   :  { %1206 = vmatpush3.bf16.msra.mxu1 %v1319_v62 }
  0x3a   :  { %1207 = vmatprep.subr.bf16.mxu1 %v1323_v2 }
  0x3b   :  { %1180 = vmatpush3.bf16.msra.mxu0 %v1322_v1 }
  0x3c   :  { %1181 = vmatprep.subr.bf16.mxu0 %v1325_v4 }
  0x3d   :  { %1208 = vmatpush3.bf16.msra.mxu1 %v1324_v3 }
  0x3e   :  { %1209 = vmatprep.subr.bf16.mxu1 %v1327_v6 }
  0x3f   :  { %1182 = vmatpush3.bf16.msra.mxu0 %v1326_v5 }
  0x40   :  { %1233 = vmatprep.subr.bf16.mxu0 %v1332_v10 }
  0x41   :  { %1210 = vmatpush3.bf16.msra.mxu1 %v1331_v9 }
  0x42   :  { %841 = vmatmul.mubr.bf16.vlgmr.msra.gmra.mrb[8].mxu0 %v1328_v7 }
  0x43   :  { %1234 = vmatpush3.bf16.msra.mxu0 %v1332_v10  ;;  %848 = vmatprep.mubr.bf16.mxu0 %v1337_v14 }
  0x44   :  { %890 = vmatmul.mubr.bf16.vlgmr.msra.gmra.mrb[8].mxu1 %v1333_v11  ;;  %1235 = vmatprep.subr.bf16.mxu0 %v1336_v13 }
  0x45   :  { %897 = vmatprep.mubr.bf16.mxu1 %v1341_v17 }
  0x47   :  { %1236 = vmatpush3.bf16.msra.mxu0 %v1336_v13 }
  0x48   :  { %1237 = vmatprep.subr.bf16.mxu0 %v1340_v16 }
  0x4a   :  { %849 = vmatmul.mubr.bf16.gmra.mrb[12].mxu0 %v1339_v15 }
  0x4b   :  { %1238 = vmatpush3.bf16.msra.mxu0 %v1340_v16  ;;  %1249 = vmatprep.mubr.bf16.mxu0 %v1349_v21 }
  0x4c   :  { %898 = vmatmul.mubr.bf16.gmra.mrb[12].mxu1 %v1343_v18  ;;  %1239 = vmatprep.subr.bf16.mxu0 %v1344_v19 }
  0x4f   :  { %1240 = vmatpush3.bf16.msra.mxu0 %v1344_v19 }
  0x50   :  { %1241 = vmatprep.subr.bf16.mxu0 %v1345_v20 }
  0x53   :  { %1242 = vmatpush3.bf16.msra.mxu0 %v1345_v20 }
  0x54   :  { %1243 = vmatprep.subr.bf16.mxu0 %v1346_v22 }
  0x57   :  { %1244 = vmatpush3.bf16.msra.mxu0 %v1346_v22 }
  0x58   :  { %1245 = vmatprep.subr.bf16.mxu0 %v1347_v23 }
  0x5b   :  { %1246 = vmatpush3.bf16.msra.mxu0 %v1347_v23 }
  0x5c   :  { %1247 = vmatprep.subr.bf16.mxu0 %v1348_v24 }
  0x5f   :  { %1248 = vmatpush3.bf16.msra.mxu0 %v1348_v24 }
  0x62   :  { %1250 = vmatmul.mubr.bf16.vlgmr.msra.gmra.mrb[16].mxu0 %v1350_v25 }
  0xf5   :  { %v1127_v26 = vpop.f32.mrb[0].mxu0 }
  0xf6   :  { %v1128_v28 = vpop.f32.mrb[1].mxu0 }
  0xf7   :  { %v1129_v29 = vadd.f32 %v1128_v28, %v1127_v26  ;;  %v1130_v30 = vpop.f32.mrb[2].mxu0  ;;  %v1155_v31 = vpop.f32.mrb[0].mxu1 }
  0xf8   :  { %v1131_v32 = vpop.f32.mrb[3].mxu0  ;;  %v1156_v35 = vpop.f32.mrb[1].mxu1 }
  0xf9   :  { %v745_v33 = vadd.f32 %v1129_v29, %v1008_v27  ;;  %v1132_v34 = vadd.f32 %v1131_v32, %v1130_v30  ;;  %v1157_v36 = vadd.f32 %v1156_v35, %v1155_v31  ;;  %v1158_v37 = vpop.f32.mrb[2].mxu1 }
  0xfa   :  { %v1159_v39 = vpop.f32.mrb[3].mxu1 }
  0xfb   :  { %v748_v38 = vadd.f32 %v1132_v34, %v1008_v27  ;;  %v794_v40 = vadd.f32 %v1157_v36, %v745_v33  ;;  %v1160_v41 = vadd.f32 %v1159_v39, %v1158_v37 }
  0xfd   :  { %v797_v42 = vadd.f32 %v1160_v41, %v748_v38  ;;  %v1133_v43 = vpop.f32.mrb[4].mxu0 }
  0xfe   :  { %v1134_v44 = vpop.f32.mrb[5].mxu0 }
  0xff   :  { %v1135_v45 = vadd.f32 %v1134_v44, %v1133_v43  ;;  %v1136_v46 = vpop.f32.mrb[6].mxu0  ;;  %v1161_v47 = vpop.f32.mrb[4].mxu1 }
 0x100   :  { %v1137_v48 = vpop.f32.mrb[7].mxu0  ;;  %v1162_v51 = vpop.f32.mrb[5].mxu1 }
 0x101   :  { %v753_v49 = vadd.f32 %v1135_v45, %v1008_v27  ;;  %v1138_v50 = vadd.f32 %v1137_v48, %v1136_v46  ;;  %v1163_v52 = vadd.f32 %v1162_v51, %v1161_v47  ;;  %v1164_v53 = vpop.f32.mrb[6].mxu1 }
 0x102   :  { %v1165_v55 = vpop.f32.mrb[7].mxu1 }
 0x103   :  { %v756_v54 = vadd.f32 %v1138_v50, %v1008_v27  ;;  %v802_v56 = vadd.f32 %v1163_v52, %v753_v49  ;;  %v1166_v57 = vadd.f32 %v1165_v55, %v1164_v53 }
 0x105   :  { %v805_v58 = vadd.f32 %v1166_v57, %v756_v54 }
 0x115   :  { %v1183_v59 = vpop.f32.mrb[8].mxu0 }
 0x116   :  { %v1184_v60 = vpop.f32.mrb[9].mxu0 }
 0x117   :  { %v1185_v61 = vadd.f32 %v1184_v60, %v1183_v59  ;;  %v1186_v62 = vpop.f32.mrb[10].mxu0  ;;  %v1211_v63 = vpop.f32.mrb[8].mxu1 }
 0x118   :  { %v1187_v0 = vpop.f32.mrb[11].mxu0  ;;  %v1212_v3 = vpop.f32.mrb[9].mxu1 }
 0x119   :  { %v843_v1 = vadd.f32 %v1185_v61, %v794_v40  ;;  %v1188_v2 = vadd.f32 %v1187_v0, %v1186_v62  ;;  %v1213_v4 = vadd.f32 %v1212_v3, %v1211_v63  ;;  %v1214_v5 = vpop.f32.mrb[10].mxu1 }
 0x11a   :  { %v1215_v7 = vpop.f32.mrb[11].mxu1 }
 0x11b   :  { %v846_v6 = vadd.f32 %v1188_v2, %v797_v42  ;;  %v1216_v8 = vadd.f32 %v1215_v7, %v1214_v5  ;;  %v892_v9 = vadd.f32 %v1213_v4, %v843_v1 }
 0x11d   :  { %v1189_v10 = vpop.f32.mrb[12].mxu0  ;;  %v895_v12 = vadd.f32 %v1216_v8, %v846_v6 }
 0x11e   :  { %v1190_v11 = vpop.f32.mrb[13].mxu0 }
 0x11f   :  { %v1191_v13 = vadd.f32 %v1190_v11, %v1189_v10  ;;  %v1192_v14 = vpop.f32.mrb[14].mxu0  ;;  %v1217_v15 = vpop.f32.mrb[12].mxu1 }
 0x120   :  { %v1193_v16 = vpop.f32.mrb[15].mxu0  ;;  %v1218_v19 = vpop.f32.mrb[13].mxu1 }
 0x121   :  { %v851_v17 = vadd.f32 %v1191_v13, %v802_v56  ;;  %v1194_v18 = vadd.f32 %v1193_v16, %v1192_v14  ;;  %v1219_v20 = vadd.f32 %v1218_v19, %v1217_v15  ;;  %v1220_v21 = vpop.f32.mrb[14].mxu1 }
 0x122   :  { %v1221_v23 = vpop.f32.mrb[15].mxu1 }
 0x123   :  { %v854_v22 = vadd.f32 %v1194_v18, %v805_v58  ;;  %v1222_v24 = vadd.f32 %v1221_v23, %v1220_v21  ;;  %v900_v25 = vadd.f32 %v1219_v20, %v851_v17 }
 0x125   :  { %v903_v26 = vadd.f32 %v1222_v24, %v854_v22 }
 0x135   :  { %v1251_v27 = vpop.f32.mrb[16].mxu0 }
 0x136   :  { %v949_v28 = vadd.f32 %v1251_v27, %v900_v25  ;;  %v940_v29 = vpop.f32.mrb[17].mxu0 }
 0x137   :  { %v941_v30 = vadd.f32 %v940_v29, %v892_v9  ;;  %v1252_v31 = vpop.f32.mrb[18].mxu0 }
 0x138   :  { %v1101_v32 = vmul.f32 -1.442695, %v949_v28  ;;  %v952_v33 = vadd.f32 %v1252_v31, %v903_v26  ;;  %v943_v34 = vpop.f32.mrb[19].mxu0 }
 0x139   :  { %v1099_v35 = vmul.f32 -1.442695, %v941_v30  ;;  %v944_v36 = vadd.f32 %v943_v34, %v895_v12 }
 0x13a   :  { %1351 = vpow2.f32 %v1101_v32  ;;  %v1102_v37 = vmul.f32 -1.442695, %v952_v33 }
 0x13b   :  { %1353 = vpow2.f32 %v1099_v35  ;;  %v1100_v38 = vmul.f32 -1.442695, %v944_v36 }
 0x13c   :  { %1355 = vpow2.f32 %v1102_v37 }
 0x13d   :  { %1357 = vpow2.f32 %v1100_v38 }
 0x144   :  { %v1352_v39 = vpop.eup %1351 }
 0x145   :  { %v1354_v40 = vpop.eup %1353  ;;  %v969_v41 = vadd.f32 1.0, %v1352_v39 }
 0x146   :  { %v1356_v42 = vpop.eup %1355  ;;  %v967_v43 = vadd.f32 1.0, %v1354_v40 }
 0x147   :  { %v1358_v44 = vpop.eup %1357  ;;  %1359 = vrcp.f32 %v969_v41  ;;  %v970_v45 = vadd.f32 1.0, %v1356_v42 }
 0x148   :  { %1361 = vrcp.f32 %v967_v43  ;;  %v968_v46 = vadd.f32 1.0, %v1358_v44 }
 0x149   :  { %1363 = vrcp.f32 %v970_v45 }
 0x14a   :  { %1365 = vrcp.f32 %v968_v46 }
 0x151   :  { %v1360_v47 = vpop.eup %1359 }
 0x152   :  { %v1362_v48 = vpop.eup %1361  ;;  %v981_v49 = vmul.f32 %v1360_v47, %v949_v28 }
 0x153   :  { %v1364_v50 = vpop.eup %1363  ;;  %v979_v51 = vmul.f32 %v1362_v48, %v941_v30 }
 0x154   :  { %v1366_v52 = vpop.eup %1365  ;;  %v1109_v53 = vpack.c.bf16 %v981_v49, %v981_v49  ;;  %v982_v54 = vmul.f32 %v1364_v50, %v952_v33 }
 0x155   :  { %v1107_v55 = vpack.c.bf16 %v979_v51, %v979_v51  ;;  %v980_v56 = vmul.f32 %v1366_v52, %v944_v36 }
 0x156   :  { %1002 = vst.msk [vmem:[%s1675_s3 + $0x8] sm:$0xf] %vm999_vm0, %v1109_v53  ;;  %v1110_v57 = vpack.c.bf16 %v982_v54, %v982_v54 }
 0x157   :  { %1000 = vst.msk [vmem:[%s1675_s3] sm:$0xf] %vm999_vm0, %v1107_v55  ;;  %v1108_v58 = vpack.c.bf16 %v980_v56, %v980_v56 }
 0x158   :  { %1003 = vst.msk [vmem:[%s1675_s3 + $0xc] sm:$0xf] %vm999_vm0, %v1110_v57 }
 0x159   :  { %1001 = vst.msk [vmem:[%s1675_s3 + $0x4] sm:$0xf] %vm999_vm0, %v1108_v58 }

// kernel: yolox_forward.49
= control target key start
LH: loop header
LB: loop body
LE: loop exit
PB: predicated region body
PF: predicated region fallthrough
CT: control target
= control target key end

     0   :  { %vm204_vm0 = vcmask 261120   ;;  %vm353_vm1 = vcmask 257024   ;;  %s590_s1 = inlined_call_operand.vmem [shape: bf16[288,32], index: 1, kind: input, shape index: {}]   ;;  %s591_s0 = inlined_call_operand.vmem [shape: bf16[32,288], index: 0, kind: input, shape index: {}]   ;;  %s592_s2 = inlined_call_operand.vmem [shape: f32[1,32], index: 2, kind: input, shape index: {}]   ;;  %s593_s3 = inlined_call_operand.vmem [shape: bf16[32,32], index: 3, kind: output, shape index: {}]  }
   0x1   :  { %v441_v0 = vld [vmem:[%s590_s1 + $0x40] sm:$0xff]   ;;  %v443_v2 = vld [vmem:[%s590_s1 + $0x48] sm:$0xff]   ;;  %v445_v4 = vld [vmem:[%s590_s1 + $0x50] sm:$0xff]  }
   0x2   :  { %v442_v1 = vld [vmem:[%s590_s1] sm:$0xff]   ;;  %401 = vmatprep.subr.bf16.mxu0 %v441_v0  ;;  %v444_v3 = vld [vmem:[%s590_s1 + $0x8] sm:$0xff]   ;;  %v446_v5 = vld [vmem:[%s590_s1 + $0x10] sm:$0xff]  }
   0x3   :  { %402 = vmatpush3.bf16.msra.mxu0 %v442_v1  ;;  %v447_v6 = vld [vmem:[%s590_s1 + $0x58] sm:$0xff]   ;;  %v449_v8 = vld [vmem:[%s590_s1 + $0x60] sm:$0xff]   ;;  %v451_v11 = vld [vmem:[%s590_s1 + $0x68] sm:$0xff]  }
   0x4   :  { %403 = vmatprep.subr.bf16.mxu0 %v443_v2  ;;  %v448_v7 = vld [vmem:[%s590_s1 + $0x18] sm:$0xff]   ;;  %v450_v9 = vld [vmem:[%s590_s1 + $0x20] sm:$0xff]   ;;  %v452_v12 = vld [vmem:[%s590_s1 + $0x28] sm:$0xff]  }
   0x5   :  { %v456_v10 = vld [vmem:[%s590_s1 + $0x80] sm:$0xff]   ;;  %v453_v13 = vld [vmem:[%s590_s1 + $0x70] sm:$0xff]   ;;  %v461_v15 = vld [vmem:[%s590_s1 + $0x88] sm:$0xff]  }
   0x6   :  { %433 = vmatprep.subr.bf16.mxu1 %v456_v10  ;;  %v460_v14 = vld [vmem:[%s591_s0 + $0x4] ss:$12 sps:$4 sm:$0xff]   ;;  %v462_v16 = vld [vmem:[%s591_s0 + $0x8] ss:$12 sps:$4 sm:$0xff]   ;;  %v463_v17 = vld [vmem:[%s591_s0 + $0x20] ss:$12 sps:$4 sm:$0xff]  }
   0x7   :  { %404 = vmatpush3.bf16.msra.mxu0 %v444_v3  ;;  %434 = vmatpush3.bf16.msra.mxu1 %v456_v10  ;;  %v454_v18 = vld [vmem:[%s590_s1 + $0x30] sm:$0xff]   ;;  %v455_v19 = vld [vmem:[%s590_s1 + $0x78] sm:$0xff]   ;;  %v458_v21 = vld [vmem:[%s591_s0] ss:$12 sps:$4 sm:$0xff]  }
   0x8   :  { %405 = vmatprep.subr.bf16.mxu0 %v445_v4  ;;  %243 = vmatprep.mubr.bf16.mxu0 %v460_v14  ;;  %v457_v20 = vld [vmem:[%s590_s1 + $0x38] sm:$0xff]   ;;  %v362_v30 = vld [vmem:[%s592_s2] ss:$0 sm:$0xff] }
   0x9   :  { %435 = vmatprep.subr.bf16.mxu1 %v461_v15  ;;  %437 = vmatprep.mubr.msk.bf16.mxu1 %vm204_vm0, %v462_v16  ;;  %v464_v22 = vld [vmem:[%s591_s0 + $0x1c] ss:$12 sps:$4 sm:$0xff]   ;;  %v466_v23 = vld [vmem:[%s591_s0 + $0x18] ss:$12 sps:$4 sm:$0xff]  }
   0xb   :  { %406 = vmatpush3.bf16.msra.mxu0 %v446_v5  ;;  %436 = vmatpush3.bf16.msra.mxu1 %v461_v15 }
   0xc   :  { %407 = vmatprep.subr.bf16.mxu0 %v447_v6 }
   0xe   :  { %438 = vmatmul.mubr.msk.bf16.vlgmr.msra.gmra.mrb[0].mxu1 %vm204_vm0, %v463_v17 }
   0xf   :  { %408 = vmatpush3.bf16.msra.mxu0 %v448_v7 }
  0x10   :  { %409 = vmatprep.subr.bf16.mxu0 %v449_v8 }
  0x13   :  { %410 = vmatpush3.bf16.msra.mxu0 %v450_v9 }
  0x14   :  { %411 = vmatprep.subr.bf16.mxu0 %v451_v11 }
  0x17   :  { %412 = vmatpush3.bf16.msra.mxu0 %v452_v12 }
  0x18   :  { %413 = vmatprep.subr.bf16.mxu0 %v453_v13 }
  0x1b   :  { %414 = vmatpush3.bf16.msra.mxu0 %v454_v18 }
  0x1c   :  { %415 = vmatprep.subr.bf16.mxu0 %v455_v19 }
  0x1f   :  { %416 = vmatpush3.bf16.msra.mxu0 %v457_v20 }
  0x22   :  { %244 = vmatmul.mubr.bf16.vlgmr.msra.gmra.mrb[0].mxu0 %v458_v21 }
  0x23   :  { %251 = vmatprep.mubr.bf16.mxu0 %v464_v22 }
  0x2a   :  { %252 = vmatmul.mubr.bf16.gmra.mrb[4].mxu0 %v466_v23 }
  0xe1   :  { %v439_v24 = vpop.f32.mrb[0].mxu1 }
  0xe2   :  { %v294_v25 = vpop.f32.mrb[1].mxu1 }
  0xe3   :  { %v440_v26 = vpop.f32.mrb[2].mxu1 }
  0xe4   :  { %v297_v27 = vpop.f32.mrb[3].mxu1 }
  0xf5   :  { %v417_v28 = vpop.f32.mrb[0].mxu0 }
  0xf6   :  { %v418_v29 = vpop.f32.mrb[1].mxu0 }
  0xf7   :  { %v419_v31 = vadd.f32 %v418_v29, %v417_v28  ;;  %v420_v32 = vpop.f32.mrb[2].mxu0 }
  0xf8   :  { %v421_v33 = vpop.f32.mrb[3].mxu0 }
  0xf9   :  { %v422_v34 = vadd.f32 %v421_v33, %v420_v32  ;;  %v246_v35 = vadd.f32 %v419_v31, %v362_v30 }
  0xfb   :  { %v295_v36 = vadd.f32 %v294_v25, %v246_v35  ;;  %v249_v37 = vadd.f32 %v422_v34, %v362_v30 }
  0xfd   :  { %v389_v38 = vmul.f32 -1.442695, %v295_v36  ;;  %v298_v39 = vadd.f32 %v297_v27, %v249_v37  ;;  %v423_v40 = vpop.f32.mrb[4].mxu0 }
  0xfe   :  { %v424_v41 = vpop.f32.mrb[5].mxu0 }
  0xff   :  { %467 = vpow2.f32 %v389_v38  ;;  %v390_v42 = vmul.f32 -1.442695, %v298_v39  ;;  %v425_v43 = vadd.f32 %v424_v41, %v423_v40  ;;  %v426_v44 = vpop.f32.mrb[6].mxu0 }
 0x100   :  { %v427_v45 = vpop.f32.mrb[7].mxu0 }
 0x101   :  { %469 = vpow2.f32 %v390_v42  ;;  %v254_v46 = vadd.f32 %v425_v43, %v362_v30  ;;  %v428_v47 = vadd.f32 %v427_v45, %v426_v44 }
 0x103   :  { %v303_v48 = vadd.f32 %v439_v24, %v254_v46  ;;  %v257_v49 = vadd.f32 %v428_v47, %v362_v30 }
 0x105   :  { %v391_v50 = vmul.f32 -1.442695, %v303_v48  ;;  %v306_v51 = vadd.f32 %v440_v26, %v257_v49 }
 0x107   :  { %471 = vpow2.f32 %v391_v50  ;;  %v392_v52 = vmul.f32 -1.442695, %v306_v51 }
 0x109   :  { %v468_v53 = vpop.eup %467  ;;  %473 = vpow2.f32 %v392_v52 }
 0x10a   :  { %v321_v54 = vadd.f32 1.0, %v468_v53 }
 0x10b   :  { %v470_v55 = vpop.eup %469 }
 0x10c   :  { %475 = vrcp.f32 %v321_v54  ;;  %v322_v56 = vadd.f32 1.0, %v470_v55 }
 0x10e   :  { %477 = vrcp.f32 %v322_v56 }
 0x111   :  { %v472_v57 = vpop.eup %471 }
 0x112   :  { %v323_v58 = vadd.f32 1.0, %v472_v57 }
 0x113   :  { %v474_v59 = vpop.eup %473 }
 0x114   :  { %479 = vrcp.f32 %v323_v58  ;;  %v324_v60 = vadd.f32 1.0, %v474_v59 }
 0x116   :  { %v476_v61 = vpop.eup %475  ;;  %481 = vrcp.f32 %v324_v60 }
 0x117   :  { %v333_v62 = vmul.f32 %v476_v61, %v295_v36 }
 0x118   :  { %v478_v63 = vpop.eup %477 }
 0x119   :  { %v397_v0 = vpack.c.bf16 %v333_v62, %v333_v62  ;;  %v334_v1 = vmul.f32 %v478_v63, %v298_v39 }
 0x11b   :  { %354 = vst.msk [vmem:[%s593_s3] sm:$0xf] %vm353_vm1, %v397_v0  ;;  %v398_v2 = vpack.c.bf16 %v334_v1, %v334_v1 }
 0x11d   :  { %355 = vst.msk [vmem:[%s593_s3 + $0x4] sm:$0xf] %vm353_vm1, %v398_v2 }
 0x11e   :  { %v480_v3 = vpop.eup %479 }
 0x11f   :  { %v335_v4 = vmul.f32 %v480_v3, %v303_v48 }
 0x120   :  { %v482_v5 = vpop.eup %481 }
 0x121   :  { %v399_v6 = vpack.c.bf16 %v335_v4, %v335_v4  ;;  %v336_v7 = vmul.f32 %v482_v5, %v306_v51 }
 0x123   :  { %356 = vst.msk [vmem:[%s593_s3 + $0x8] sm:$0xf] %vm353_vm1, %v399_v6  ;;  %v400_v8 = vpack.c.bf16 %v336_v7, %v336_v7 }
 0x125   :  { %357 = vst.msk [vmem:[%s593_s3 + $0xc] sm:$0xf] %vm353_vm1, %v400_v8 }

// kernel: yolox_forward.58
= control target key start
LH: loop header
LB: loop body
LE: loop exit
PB: predicated region body
PF: predicated region fallthrough
CT: control target
= control target key end

     0   :  { %vm110_vm0 = vcmask 523264   ;;  %vm232_vm1 = vcmask 695296   ;;  %s461_s1 = inlined_call_operand.vmem [shape: bf16[64,85], index: 1, kind: input, shape index: {}]   ;;  %s462_s0 = inlined_call_operand.vmem [shape: bf16[128,64], index: 0, kind: input, shape index: {}]   ;;  %s463_s2 = inlined_call_operand.vmem [shape: f32[1,85], index: 2, kind: input, shape index: {}]   ;;  %s464_s3 = inlined_call_operand.vmem [shape: f32[128,85], index: 3, kind: output, shape index: {}]  }
   0x1   :  { %v318_v0 = vld [vmem:[%s461_s1] sm:$0xff]   ;;  %v319_v1 = vld [vmem:[%s461_s1 + $0x8] sm:$0xff]   ;;  %v320_v2 = vld [vmem:[%s461_s1 + $0x10] sm:$0xff]  }
   0x2   :  { %286 = vmatprep.subr.bf16.mxu0 %v318_v0  ;;  %310 = vmatprep.subr.bf16.mxu1 %v318_v0  ;;  %v322_v3 = vld [vmem:[%s462_s0] sm:$0xff]   ;;  %v321_v5 = vld [vmem:[%s461_s1 + $0x18] sm:$0xff]   ;;  %v324_v6 = vld [vmem:[%s462_s0 + $0x8] sm:$0xff]  }
   0x3   :  { %287 = vmatpush3.bf16.msra.mxu0 %v318_v0  ;;  %314 = vmatpush3.bf16.msra.mxu1 %v318_v0  ;;  %v323_v4 = vld [vmem:[%s462_s0 + $0x20] sm:$0xff]   ;;  %v325_v7 = vld [vmem:[%s462_s0 + $0x28] sm:$0xff]   ;;  %v326_v8 = vld [vmem:[%s462_s0 + $0x10] sm:$0xff]  }
   0x4   :  { %288 = vmatprep.subr.bf16.mxu0 %v319_v1  ;;  %311 = vmatprep.subr.bf16.mxu1 %v319_v1  ;;  %v327_v9 = vld [vmem:[%s462_s0 + $0x30] sm:$0xff]   ;;  %v328_v10 = vld [vmem:[%s462_s0 + $0x18] sm:$0xff]   ;;  %v253_v12 = vld [vmem:[%s463_s2] ss:$0 sm:$0xff] }
   0x5   :  { %294 = vmatprep.mubr.msk.bf16.mxu0 %vm110_vm0, %v322_v3  ;;  %302 = vmatprep.mubr.msk.bf16.mxu1 %vm110_vm0, %v323_v4  ;;  %v329_v11 = vld [vmem:[%s462_s0 + $0x38] sm:$0xff]  }
   0x7   :  { %289 = vmatpush3.bf16.msra.mxu0 %v319_v1  ;;  %315 = vmatpush3.bf16.msra.mxu1 %v319_v1 }
   0x8   :  { %290 = vmatprep.subr.bf16.mxu0 %v320_v2  ;;  %312 = vmatprep.subr.bf16.mxu1 %v320_v2 }
   0xb   :  { %291 = vmatpush3.bf16.msra.mxu0 %v320_v2  ;;  %316 = vmatpush3.bf16.msra.mxu1 %v320_v2 }
   0xc   :  { %292 = vmatprep.subr.bf16.mxu0 %v321_v5  ;;  %313 = vmatprep.subr.bf16.mxu1 %v321_v5 }
   0xf   :  { %293 = vmatpush3.bf16.msra.mxu0 %v321_v5  ;;  %317 = vmatpush3.bf16.msra.mxu1 %v321_v5 }
  0x12   :  { %295 = vmatmul.mubr.msk.bf16.vlgmr.msra.gmra.mrb[0].mxu0 %vm110_vm0, %v324_v6  ;;  %303 = vmatmul.mubr.msk.bf16.vlgmr.msra.gmra.mrb[0].mxu1 %vm110_vm0, %v325_v7 }
  0x13   :  { %298 = vmatprep.mubr.msk.bf16.mxu0 %vm110_vm0, %v326_v8  ;;  %306 = vmatprep.mubr.msk.bf16.mxu1 %vm110_vm0, %v327_v9 }
  0x1a   :  { %299 = vmatmul.mubr.msk.bf16.gmra.mrb[4].mxu0 %vm110_vm0, %v328_v10  ;;  %307 = vmatmul.mubr.msk.bf16.gmra.mrb[4].mxu1 %vm110_vm0, %v329_v11 }
  0xe5   :  { %v296_v13 = vpop.f32.mrb[0].mxu0  ;;  %v304_v14 = vpop.f32.mrb[0].mxu1 }
  0xe6   :  { %v178_v15 = vadd.f32 %v296_v13, %v253_v12  ;;  %v210_v16 = vadd.f32 %v304_v14, %v253_v12  ;;  %v169_v17 = vpop.f32.mrb[1].mxu0  ;;  %v201_v18 = vpop.f32.mrb[1].mxu1 }
  0xe7   :  { %v170_v19 = vadd.f32 %v253_v12, %v169_v17  ;;  %v202_v20 = vadd.f32 %v253_v12, %v201_v18  ;;  %v297_v21 = vpop.f32.mrb[2].mxu0  ;;  %v305_v22 = vpop.f32.mrb[2].mxu1 }
  0xe8   :  { %235 = vst.msk [vmem:[%s464_s3 + $0x10] sm:$0xff] %vm232_vm1, %v178_v15  ;;  %243 = vst.msk [vmem:[%s464_s3 + $0x50] sm:$0xff] %vm232_vm1, %v210_v16  ;;  %v181_v23 = vadd.f32 %v297_v21, %v253_v12  ;;  %v213_v24 = vadd.f32 %v305_v22, %v253_v12  ;;  %v172_v25 = vpop.f32.mrb[3].mxu0  ;;  %v204_v26 = vpop.f32.mrb[3].mxu1 }
  0xe9   :  { %233 = vst.msk [vmem:[%s464_s3] sm:$0xff] %vm232_vm1, %v170_v19  ;;  %241 = vst.msk [vmem:[%s464_s3 + $0x40] sm:$0xff] %vm232_vm1, %v202_v20  ;;  %v173_v27 = vadd.f32 %v253_v12, %v172_v25  ;;  %v205_v28 = vadd.f32 %v253_v12, %v204_v26 }
  0xea   :  { %236 = vst.msk [vmem:[%s464_s3 + $0x18] sm:$0xff] %vm232_vm1, %v181_v23  ;;  %244 = vst.msk [vmem:[%s464_s3 + $0x58] sm:$0xff] %vm232_vm1, %v213_v24 }
  0xeb   :  { %234 = vst.msk [vmem:[%s464_s3 + $0x8] sm:$0xff] %vm232_vm1, %v173_v27  ;;  %242 = vst.msk [vmem:[%s464_s3 + $0x48] sm:$0xff] %vm232_vm1, %v205_v28 }
  0xed   :  { %v300_v29 = vpop.f32.mrb[4].mxu0  ;;  %v308_v30 = vpop.f32.mrb[4].mxu1 }
  0xee   :  { %v194_v31 = vadd.f32 %v300_v29, %v253_v12  ;;  %v226_v32 = vadd.f32 %v308_v30, %v253_v12  ;;  %v185_v33 = vpop.f32.mrb[5].mxu0  ;;  %v217_v34 = vpop.f32.mrb[5].mxu1 }
  0xef   :  { %v186_v35 = vadd.f32 %v253_v12, %v185_v33  ;;  %v218_v36 = vadd.f32 %v253_v12, %v217_v34  ;;  %v301_v37 = vpop.f32.mrb[6].mxu0  ;;  %v309_v38 = vpop.f32.mrb[6].mxu1 }
  0xf0   :  { %239 = vst.msk [vmem:[%s464_s3 + $0x30] sm:$0xff] %vm232_vm1, %v194_v31  ;;  %247 = vst.msk [vmem:[%s464_s3 + $0x70] sm:$0xff] %vm232_vm1, %v226_v32  ;;  %v197_v39 = vadd.f32 %v301_v37, %v253_v12  ;;  %v229_v40 = vadd.f32 %v309_v38, %v253_v12  ;;  %v188_v41 = vpop.f32.mrb[7].mxu0  ;;  %v220_v42 = vpop.f32.mrb[7].mxu1 }
  0xf1   :  { %237 = vst.msk [vmem:[%s464_s3 + $0x20] sm:$0xff] %vm232_vm1, %v186_v35  ;;  %245 = vst.msk [vmem:[%s464_s3 + $0x60] sm:$0xff] %vm232_vm1, %v218_v36  ;;  %v189_v43 = vadd.f32 %v253_v12, %v188_v41  ;;  %v221_v44 = vadd.f32 %v253_v12, %v220_v42 }
  0xf2   :  { %240 = vst.msk [vmem:[%s464_s3 + $0x38] sm:$0xff] %vm232_vm1, %v197_v39  ;;  %248 = vst.msk [vmem:[%s464_s3 + $0x78] sm:$0xff] %vm232_vm1, %v229_v40 }
  0xf3   :  { %238 = vst.msk [vmem:[%s464_s3 + $0x28] sm:$0xff] %vm232_vm1, %v189_v43  ;;  %246 = vst.msk [vmem:[%s464_s3 + $0x68] sm:$0xff] %vm232_vm1, %v221_v44 }

// kernel: yolox_forward.53
= control target key start
LH: loop header
LB: loop body
LE: loop exit
PB: predicated region body
PF: predicated region fallthrough
CT: control target
= control target key end

     0   :  { %vm94_vm0 = vcmask 261120   ;;  %vm392_vm1 = vcmask 257024   ;;  %s795_s1 = inlined_call_operand.vmem [shape: bf16[32,32], index: 1, kind: input, shape index: {}]   ;;  %s796_s0 = inlined_call_operand.vmem [shape: bf16[128,32], index: 0, kind: input, shape index: {}]   ;;  %s797_s2 = inlined_call_operand.vmem [shape: f32[1,32], index: 2, kind: input, shape index: {}]   ;;  %s798_s3 = inlined_call_operand.vmem [shape: bf16[128,32], index: 3, kind: output, shape index: {}]  }
   0x1   :  { %v514_v0 = vld [vmem:[%s795_s1] sm:$0xff]   ;;  %v515_v1 = vld [vmem:[%s795_s1 + $0x8] sm:$0xff]   ;;  %v520_v6 = vld [vmem:[%s796_s0 + $0x10] sm:$0xff]  }
   0x2   :  { %490 = vmatprep.subr.bf16.mxu0 %v514_v0  ;;  %510 = vmatprep.subr.bf16.mxu1 %v514_v0  ;;  %v516_v2 = vld [vmem:[%s796_s0] sm:$0xff]   ;;  %v518_v4 = vld [vmem:[%s796_s0 + $0x8] sm:$0xff]   ;;  %v521_v7 = vld [vmem:[%s796_s0 + $0x30] sm:$0xff]  }
   0x3   :  { %491 = vmatpush3.bf16.msra.mxu0 %v514_v0  ;;  %512 = vmatpush3.bf16.msra.mxu1 %v514_v0  ;;  %v517_v3 = vld [vmem:[%s796_s0 + $0x20] sm:$0xff]   ;;  %v519_v5 = vld [vmem:[%s796_s0 + $0x28] sm:$0xff]   ;;  %v522_v8 = vld [vmem:[%s796_s0 + $0x18] sm:$0xff]  }
   0x4   :  { %492 = vmatprep.subr.bf16.mxu0 %v515_v1  ;;  %511 = vmatprep.subr.bf16.mxu1 %v515_v1  ;;  %v523_v9 = vld [vmem:[%s796_s0 + $0x38] sm:$0xff]   ;;  %v649_v10 = vld [vmem:[%s797_s2] ss:$0 sm:$0xff] }
   0x5   :  { %494 = vmatprep.mubr.msk.bf16.mxu0 %vm94_vm0, %v516_v2  ;;  %502 = vmatprep.mubr.msk.bf16.mxu1 %vm94_vm0, %v517_v3 }
   0x7   :  { %493 = vmatpush3.bf16.msra.mxu0 %v515_v1  ;;  %513 = vmatpush3.bf16.msra.mxu1 %v515_v1 }
   0xa   :  { %495 = vmatmul.mubr.msk.bf16.vlgmr.msra.gmra.mrb[0].mxu0 %vm94_vm0, %v518_v4  ;;  %503 = vmatmul.mubr.msk.bf16.vlgmr.msra.gmra.mrb[0].mxu1 %vm94_vm0, %v519_v5 }
   0xb   :  { %498 = vmatprep.mubr.msk.bf16.mxu0 %vm94_vm0, %v520_v6  ;;  %506 = vmatprep.mubr.msk.bf16.mxu1 %vm94_vm0, %v521_v7 }
  0x12   :  { %499 = vmatmul.mubr.msk.bf16.gmra.mrb[4].mxu0 %vm94_vm0, %v522_v8  ;;  %507 = vmatmul.mubr.msk.bf16.gmra.mrb[4].mxu1 %vm94_vm0, %v523_v9 }
  0xdd   :  { %v496_v11 = vpop.f32.mrb[0].mxu0  ;;  %v504_v12 = vpop.f32.mrb[0].mxu1 }
  0xde   :  { %v652_v13 = vadd.f32 %v496_v11, %v649_v10  ;;  %v655_v14 = vadd.f32 %v504_v12, %v649_v10  ;;  %v153_v15 = vpop.f32.mrb[1].mxu0  ;;  %v185_v16 = vpop.f32.mrb[1].mxu1 }
  0xdf   :  { %v658_v17 = vadd.f32 %v649_v10, %v153_v15  ;;  %v661_v18 = vadd.f32 %v649_v10, %v185_v16  ;;  %v497_v19 = vpop.f32.mrb[2].mxu0  ;;  %v505_v20 = vpop.f32.mrb[2].mxu1 }
  0xe0   :  { %v434_v21 = vmul.f32 -1.442695, %v652_v13  ;;  %v442_v22 = vmul.f32 -1.442695, %v655_v14  ;;  %v666_v23 = vadd.f32 %v497_v19, %v649_v10  ;;  %v669_v24 = vadd.f32 %v505_v20, %v649_v10  ;;  %v156_v25 = vpop.f32.mrb[3].mxu0  ;;  %v188_v26 = vpop.f32.mrb[3].mxu1 }
  0xe1   :  { %v432_v27 = vmul.f32 -1.442695, %v658_v17  ;;  %v440_v28 = vmul.f32 -1.442695, %v661_v18  ;;  %v674_v29 = vadd.f32 %v649_v10, %v156_v25  ;;  %v677_v30 = vadd.f32 %v649_v10, %v188_v26 }
  0xe2   :  { %524 = vpow2.f32 %v434_v21  ;;  %v435_v31 = vmul.f32 -1.442695, %v666_v23  ;;  %v443_v32 = vmul.f32 -1.442695, %v669_v24 }
  0xe3   :  { %526 = vpow2.f32 %v442_v22  ;;  %v433_v33 = vmul.f32 -1.442695, %v674_v29  ;;  %v441_v34 = vmul.f32 -1.442695, %v677_v30 }
  0xe4   :  { %528 = vpow2.f32 %v432_v27 }
  0xe5   :  { %530 = vpow2.f32 %v440_v28  ;;  %v500_v35 = vpop.f32.mrb[4].mxu0  ;;  %v508_v36 = vpop.f32.mrb[4].mxu1 }
  0xe6   :  { %532 = vpow2.f32 %v435_v31  ;;  %v684_v37 = vadd.f32 %v500_v35, %v649_v10  ;;  %v687_v38 = vadd.f32 %v508_v36, %v649_v10  ;;  %v169_v39 = vpop.f32.mrb[5].mxu0  ;;  %v201_v40 = vpop.f32.mrb[5].mxu1 }
  0xe7   :  { %534 = vpow2.f32 %v443_v32  ;;  %v690_v41 = vadd.f32 %v649_v10, %v169_v39  ;;  %v693_v42 = vadd.f32 %v649_v10, %v201_v40  ;;  %v501_v43 = vpop.f32.mrb[6].mxu0  ;;  %v509_v44 = vpop.f32.mrb[6].mxu1 }
  0xe8   :  { %536 = vpow2.f32 %v433_v33  ;;  %v438_v45 = vmul.f32 -1.442695, %v684_v37  ;;  %v446_v46 = vmul.f32 -1.442695, %v687_v38  ;;  %v698_v47 = vadd.f32 %v501_v43, %v649_v10  ;;  %v172_v48 = vpop.f32.mrb[7].mxu0  ;;  %v204_v49 = vpop.f32.mrb[7].mxu1 }
  0xe9   :  { %538 = vpow2.f32 %v441_v34  ;;  %v436_v50 = vmul.f32 -1.442695, %v690_v41  ;;  %v444_v51 = vmul.f32 -1.442695, %v693_v42  ;;  %v704_v6 = vadd.f32 %v509_v44, %v649_v10 }
  0xea   :  { %540 = vpow2.f32 %v438_v45  ;;  %v439_v52 = vmul.f32 -1.442695, %v698_v47  ;;  %v707_v9 = vadd.f32 %v649_v10, %v172_v48  ;;  %v710_v15 = vadd.f32 %v649_v10, %v204_v49 }
  0xeb   :  { %542 = vpow2.f32 %v446_v46  ;;  %v447_v22 = vmul.f32 -1.442695, %v704_v6 }
  0xec   :  { %v525_v53 = vpop.eup %524  ;;  %544 = vpow2.f32 %v436_v50  ;;  %v437_v27 = vmul.f32 -1.442695, %v707_v9  ;;  %v445_v10 = vmul.f32 -1.442695, %v710_v15 }
  0xed   :  { %v527_v54 = vpop.eup %526  ;;  %v266_v55 = vadd.f32 1.0, %v525_v53  ;;  %546 = vpow2.f32 %v444_v51 }
  0xee   :  { %v529_v56 = vpop.eup %528  ;;  %v274_v57 = vadd.f32 1.0, %v527_v54  ;;  %548 = vpow2.f32 %v439_v52 }
  0xef   :  { %v531_v58 = vpop.eup %530  ;;  %550 = vrcp.f32 %v266_v55  ;;  %v264_v59 = vadd.f32 1.0, %v529_v56 }
  0xf0   :  { %v533_v60 = vpop.eup %532  ;;  %552 = vrcp.f32 %v274_v57  ;;  %v272_v61 = vadd.f32 1.0, %v531_v58 }
  0xf1   :  { %v535_v62 = vpop.eup %534  ;;  %554 = vrcp.f32 %v264_v59  ;;  %v267_v63 = vadd.f32 1.0, %v533_v60 }
  0xf2   :  { %v537_v0 = vpop.eup %536  ;;  %556 = vrcp.f32 %v272_v61  ;;  %v275_v1 = vadd.f32 1.0, %v535_v62 }
  0xf3   :  { %v539_v2 = vpop.eup %538  ;;  %558 = vrcp.f32 %v267_v63  ;;  %v265_v3 = vadd.f32 1.0, %v537_v0 }
  0xf4   :  { %v541_v4 = vpop.eup %540  ;;  %560 = vrcp.f32 %v275_v1  ;;  %v273_v5 = vadd.f32 1.0, %v539_v2 }
  0xf5   :  { %v543_v7 = vpop.eup %542  ;;  %562 = vrcp.f32 %v265_v3  ;;  %v270_v8 = vadd.f32 1.0, %v541_v4 }
  0xf6   :  { %v545_v11 = vpop.eup %544  ;;  %564 = vrcp.f32 %v273_v5  ;;  %v278_v12 = vadd.f32 1.0, %v543_v7 }
  0xf7   :  { %v547_v16 = vpop.eup %546  ;;  %566 = vrcp.f32 %v270_v8  ;;  %v268_v19 = vadd.f32 1.0, %v545_v11 }
  0xf8   :  { %v549_v20 = vpop.eup %548  ;;  %568 = vrcp.f32 %v278_v12  ;;  %v276_v21 = vadd.f32 1.0, %v547_v16 }
  0xf9   :  { %v551_v25 = vpop.eup %550  ;;  %570 = vrcp.f32 %v268_v19  ;;  %v271_v26 = vadd.f32 1.0, %v549_v20 }
  0xfa   :  { %v553_v28 = vpop.eup %552  ;;  %v314_v31 = vmul.f32 %v551_v25, %v652_v13  ;;  %572 = vrcp.f32 %v276_v21 }
  0xfb   :  { %v555_v32 = vpop.eup %554  ;;  %v322_v33 = vmul.f32 %v553_v28, %v655_v14  ;;  %574 = vrcp.f32 %v271_v26 }
  0xfc   :  { %v557_v34 = vpop.eup %556  ;;  %v466_v35 = vpack.c.bf16 %v314_v31, %v314_v31  ;;  %v312_v36 = vmul.f32 %v555_v32, %v658_v17  ;;  %576 = vpow2.f32 %v447_v22 }
  0xfd   :  { %v559_v39 = vpop.eup %558  ;;  %v474_v40 = vpack.c.bf16 %v322_v33, %v322_v33  ;;  %v320_v43 = vmul.f32 %v557_v34, %v661_v18  ;;  %578 = vpow2.f32 %v437_v27 }
  0xfe   :  { %v561_v44 = vpop.eup %560  ;;  %395 = vst.msk [vmem:[%s798_s3 + $0x8] sm:$0xf] %vm392_vm1, %v466_v35  ;;  %v464_v13 = vpack.c.bf16 %v312_v36, %v312_v36  ;;  %v315_v14 = vmul.f32 %v559_v39, %v666_v23  ;;  %580 = vpow2.f32 %v445_v10 }
  0xff   :  { %v563_v45 = vpop.eup %562  ;;  %403 = vst.msk [vmem:[%s798_s3 + $0x28] sm:$0xf] %vm392_vm1, %v474_v40  ;;  %v472_v17 = vpack.c.bf16 %v320_v43, %v320_v43  ;;  %v323_v18 = vmul.f32 %v561_v44, %v669_v24 }
 0x100   :  { %v565_v46 = vpop.eup %564  ;;  %393 = vst.msk [vmem:[%s798_s3] sm:$0xf] %vm392_vm1, %v464_v13  ;;  %v467_v48 = vpack.c.bf16 %v315_v14, %v315_v14  ;;  %v313_v49 = vmul.f32 %v563_v45, %v674_v29 }
 0x101   :  { %v567_v23 = vpop.eup %566  ;;  %401 = vst.msk [vmem:[%s798_s3 + $0x20] sm:$0xf] %vm392_vm1, %v472_v17  ;;  %v475_v50 = vpack.c.bf16 %v323_v18, %v323_v18  ;;  %v321_v51 = vmul.f32 %v565_v46, %v677_v30 }
 0x102   :  { %v569_v52 = vpop.eup %568  ;;  %396 = vst.msk [vmem:[%s798_s3 + $0xc] sm:$0xf] %vm392_vm1, %v467_v48  ;;  %v465_v24 = vpack.c.bf16 %v313_v49, %v313_v49  ;;  %v318_v53 = vmul.f32 %v567_v23, %v684_v37 }
 0x103   :  { %v571_v54 = vpop.eup %570  ;;  %404 = vst.msk [vmem:[%s798_s3 + $0x2c] sm:$0xf] %vm392_vm1, %v475_v50  ;;  %v473_v29 = vpack.c.bf16 %v321_v51, %v321_v51  ;;  %v326_v55 = vmul.f32 %v569_v52, %v687_v38 }
 0x104   :  { %v573_v56 = vpop.eup %572  ;;  %394 = vst.msk [vmem:[%s798_s3 + $0x4] sm:$0xf] %vm392_vm1, %v465_v24  ;;  %v470_v30 = vpack.c.bf16 %v318_v53, %v318_v53  ;;  %v316_v57 = vmul.f32 %v571_v54, %v690_v41 }
 0x105   :  { %v575_v58 = vpop.eup %574  ;;  %402 = vst.msk [vmem:[%s798_s3 + $0x24] sm:$0xf] %vm392_vm1, %v473_v29  ;;  %v478_v37 = vpack.c.bf16 %v326_v55, %v326_v55  ;;  %v324_v59 = vmul.f32 %v573_v56, %v693_v42 }
 0x106   :  { %v577_v60 = vpop.eup %576  ;;  %399 = vst.msk [vmem:[%s798_s3 + $0x18] sm:$0xf] %vm392_vm1, %v470_v30  ;;  %v468_v38 = vpack.c.bf16 %v316_v57, %v316_v57  ;;  %v319_v61 = vmul.f32 %v575_v58, %v698_v47 }
 0x107   :  { %v579_v62 = vpop.eup %578  ;;  %407 = vst.msk [vmem:[%s798_s3 + $0x38] sm:$0xf] %vm392_vm1, %v478_v37  ;;  %v476_v41 = vpack.c.bf16 %v324_v59, %v324_v59  ;;  %v279_v63 = vadd.f32 1.0, %v577_v60 }
 0x108   :  { %v581_v0 = vpop.eup %580  ;;  %397 = vst.msk [vmem:[%s798_s3 + $0x10] sm:$0xf] %vm392_vm1, %v468_v38  ;;  %v471_v42 = vpack.c.bf16 %v319_v61, %v319_v61  ;;  %v269_v1 = vadd.f32 1.0, %v579_v62 }
 0x109   :  { %405 = vst.msk [vmem:[%s798_s3 + $0x30] sm:$0xf] %vm392_vm1, %v476_v41  ;;  %582 = vrcp.f32 %v279_v63  ;;  %v277_v47 = vadd.f32 1.0, %v581_v0 }
 0x10a   :  { %400 = vst.msk [vmem:[%s798_s3 + $0x1c] sm:$0xf] %vm392_vm1, %v471_v42  ;;  %584 = vrcp.f32 %v269_v1 }
 0x10b   :  { %586 = vrcp.f32 %v277_v47 }
 0x113   :  { %v583_v2 = vpop.eup %582 }
 0x114   :  { %v585_v3 = vpop.eup %584  ;;  %v327_v4 = vmul.f32 %v583_v2, %v704_v6 }
 0x115   :  { %v587_v5 = vpop.eup %586  ;;  %v317_v7 = vmul.f32 %v585_v3, %v707_v9 }
 0x116   :  { %v479_v8 = vpack.c.bf16 %v327_v4, %v327_v4  ;;  %v325_v11 = vmul.f32 %v587_v5, %v710_v15 }
 0x117   :  { %v469_v12 = vpack.c.bf16 %v317_v7, %v317_v7 }
 0x118   :  { %408 = vst.msk [vmem:[%s798_s3 + $0x3c] sm:$0xf] %vm392_vm1, %v479_v8  ;;  %v477_v16 = vpack.c.bf16 %v325_v11, %v325_v11 }
 0x119   :  { %398 = vst.msk [vmem:[%s798_s3 + $0x14] sm:$0xf] %vm392_vm1, %v469_v12 }
 0x11a   :  { %406 = vst.msk [vmem:[%s798_s3 + $0x34] sm:$0xf] %vm392_vm1, %v477_v16 }

// kernel: yolox_forward.48
= control target key start
LH: loop header
LB: loop body
LE: loop exit
PB: predicated region body
PF: predicated region fallthrough
CT: control target
= control target key end

     0   :  { %vm558_vm0 = vcmask 523264   ;;  %vm1050_vm1 = vcmask 257024   ;;  %s1967_s1 = inlined_call_operand.vmem [shape: bf16[576,32], index: 1, kind: input, shape index: {}]   ;;  %s1968_s0 = inlined_call_operand.vmem [shape: bf16[128,576], index: 0, kind: input, shape index: {}]   ;;  %s1969_s2 = inlined_call_operand.vmem [shape: f32[1,32], index: 2, kind: input, shape index: {}]   ;;  %s1970_s3 = inlined_call_operand.vmem [shape: bf16[128,32], index: 3, kind: output, shape index: {}]  }
   0x1   :  { %v1376_v0 = vld [vmem:[%s1967_s1 + $0x40] sm:$0xff]   ;;  %v1380_v4 = vld [vmem:[%s1967_s1 + $0x48] sm:$0xff]   ;;  %v1384_v8 = vld [vmem:[%s1967_s1 + $0x50] sm:$0xff]  }
   0x2   :  { %v1377_v1 = vld [vmem:[%s1967_s1 + $0xc0] sm:$0xff]   ;;  %1204 = vmatprep.subr.bf16.mxu0 %v1376_v0  ;;  %v1381_v5 = vld [vmem:[%s1967_s1 + $0xc8] sm:$0xff]   ;;  %v1385_v9 = vld [vmem:[%s1967_s1 + $0xd0] sm:$0xff]  }
   0x3   :  { %v1378_v2 = vld [vmem:[%s1967_s1] sm:$0xff]   ;;  %1268 = vmatprep.subr.bf16.mxu1 %v1377_v1  ;;  %v1382_v6 = vld [vmem:[%s1967_s1 + $0x8] sm:$0xff]   ;;  %v1386_v10 = vld [vmem:[%s1967_s1 + $0x10] sm:$0xff]  }
   0x4   :  { %v1379_v3 = vld [vmem:[%s1967_s1 + $0x80] sm:$0xff]   ;;  %1205 = vmatpush3.bf16.msra.mxu0 %v1378_v2  ;;  %v1383_v7 = vld [vmem:[%s1967_s1 + $0x88] sm:$0xff]   ;;  %v1387_v11 = vld [vmem:[%s1967_s1 + $0x90] sm:$0xff]  }
   0x5   :  { %1269 = vmatpush3.bf16.msra.mxu1 %v1379_v3  ;;  %1206 = vmatprep.subr.bf16.mxu0 %v1380_v4  ;;  %v1388_v12 = vld [vmem:[%s1967_s1 + $0x58] sm:$0xff]   ;;  %v1392_v16 = vld [vmem:[%s1967_s1 + $0x60] sm:$0xff]   ;;  %v1396_v20 = vld [vmem:[%s1967_s1 + $0x68] sm:$0xff]  }
   0x6   :  { %1270 = vmatprep.subr.bf16.mxu1 %v1381_v5  ;;  %v1389_v13 = vld [vmem:[%s1967_s1 + $0xd8] sm:$0xff]   ;;  %v1393_v17 = vld [vmem:[%s1967_s1 + $0xe0] sm:$0xff]   ;;  %v1397_v21 = vld [vmem:[%s1967_s1 + $0xe8] sm:$0xff]  }
   0x7   :  { %v1390_v14 = vld [vmem:[%s1967_s1 + $0x18] sm:$0xff]   ;;  %v1394_v18 = vld [vmem:[%s1967_s1 + $0x20] sm:$0xff]   ;;  %v1398_v22 = vld [vmem:[%s1967_s1 + $0x28] sm:$0xff]  }
   0x8   :  { %1207 = vmatpush3.bf16.msra.mxu0 %v1382_v6  ;;  %v1391_v15 = vld [vmem:[%s1967_s1 + $0x98] sm:$0xff]   ;;  %v1395_v19 = vld [vmem:[%s1967_s1 + $0xa0] sm:$0xff]   ;;  %v1399_v23 = vld [vmem:[%s1967_s1 + $0xa8] sm:$0xff]  }
   0x9   :  { %1271 = vmatpush3.bf16.msra.mxu1 %v1383_v7  ;;  %1208 = vmatprep.subr.bf16.mxu0 %v1384_v8  ;;  %v1400_v24 = vld [vmem:[%s1967_s1 + $0x70] sm:$0xff]   ;;  %v1404_v28 = vld [vmem:[%s1967_s1 + $0x78] sm:$0xff]   ;;  %v1413_v35 = vld [vmem:[%s1968_s0 + $0xc] ss:$20 sps:$4 sm:$0xff]  }
   0xa   :  { %1272 = vmatprep.subr.bf16.mxu1 %v1385_v9  ;;  %v1401_v25 = vld [vmem:[%s1967_s1 + $0xf0] sm:$0xff]   ;;  %v1405_v29 = vld [vmem:[%s1967_s1 + $0xf8] sm:$0xff]   ;;  %v1414_v36 = vld [vmem:[%s1967_s1 + $0x100] sm:$0xff]   ;;  %712 = vmatprep.mubr.bf16.mxu1 %v1413_v35 }
   0xb   :  { %v1402_v26 = vld [vmem:[%s1967_s1 + $0x30] sm:$0xff]   ;;  %v1406_v30 = vld [vmem:[%s1967_s1 + $0x38] sm:$0xff]   ;;  %v1415_v37 = vld [vmem:[%s1968_s0 + $0x2c] ss:$20 sps:$4 sm:$0xff]  }
   0xc   :  { %1209 = vmatpush3.bf16.msra.mxu0 %v1386_v10  ;;  %v1403_v27 = vld [vmem:[%s1967_s1 + $0xb0] sm:$0xff]   ;;  %v1407_v31 = vld [vmem:[%s1967_s1 + $0xb8] sm:$0xff]   ;;  %v1427_v42 = vld [vmem:[%s1967_s1 + $0x108] sm:$0xff]  }
   0xd   :  { %1273 = vmatpush3.bf16.msra.mxu1 %v1387_v11  ;;  %1210 = vmatprep.subr.bf16.mxu0 %v1388_v12  ;;  %v1408_v32 = vld [vmem:[%s1968_s0] ss:$20 sps:$4 sm:$0xff]   ;;  %v1410_v33 = vld [vmem:[%s1968_s0 + $0x4] ss:$20 sps:$4 sm:$0xff]   ;;  %v1411_v34 = vld [vmem:[%s1968_s0 + $0x8] ss:$20 sps:$4 sm:$0xff]  }
   0xe   :  { %1274 = vmatprep.subr.bf16.mxu1 %v1389_v13  ;;  %615 = vmatprep.mubr.bf16.mxu0 %v1410_v33  ;;  %v1417_v38 = vld [vmem:[%s1968_s0 + $0x34] ss:$20 sps:$4 sm:$0xff]   ;;  %v1420_v40 = vld [vmem:[%s1968_s0 + $0x30] ss:$20 sps:$4 sm:$0xff]   ;;  %v1426_v45 = vld [vmem:[%s1968_s0 + $0x58] ss:$20 sps:$4 sm:$0xff]  }
   0xf   :  { %v1419_v39 = vld [vmem:[%s1968_s0 + $0x28] ss:$20 sps:$4 sm:$0xff]   ;;  %v1425_v44 = vld [vmem:[%s1968_s0 + $0x50] ss:$20 sps:$4 sm:$0xff]   ;;  %v1432_v50 = vld [vmem:[%s1968_s0 + $0x78] ss:$20 sps:$4 sm:$0xff]  }
  0x10   :  { %1211 = vmatpush3.bf16.msra.mxu0 %v1390_v14  ;;  %v1421_v41 = vld [vmem:[%s1968_s0 + $0x54] ss:$20 sps:$4 sm:$0xff]   ;;  %v1423_v43 = vld [vmem:[%s1968_s0 + $0x5c] ss:$20 sps:$4 sm:$0xff]   ;;  %v1430_v48 = vld [vmem:[%s1968_s0 + $0x84] ss:$20 sps:$4 sm:$0xff]  }
  0x11   :  { %1275 = vmatpush3.bf16.msra.mxu1 %v1391_v15  ;;  %1212 = vmatprep.subr.bf16.mxu0 %v1392_v16  ;;  %v1440_v46 = vld [vmem:[%s1967_s1 + $0x110] sm:$0xff]   ;;  %v1453_v49 = vld [vmem:[%s1967_s1 + $0x118] sm:$0xff]   ;;  %v1436_v53 = vld [vmem:[%s1968_s0 + $0xac] ss:$20 sps:$4 sm:$0xff]  }
  0x12   :  { %1276 = vmatprep.subr.bf16.mxu1 %v1393_v17  ;;  %v1428_v47 = vld [vmem:[%s1968_s0 + $0x7c] ss:$20 sps:$4 sm:$0xff]   ;;  %v1433_v51 = vld [vmem:[%s1968_s0 + $0x80] ss:$20 sps:$4 sm:$0xff]   ;;  %v1434_v52 = vld [vmem:[%s1968_s0 + $0xa4] ss:$20 sps:$4 sm:$0xff]  }
  0x13   :  { %v1438_v54 = vld [vmem:[%s1968_s0 + $0xa0] ss:$20 sps:$4 sm:$0xff]   ;;  %v1439_v55 = vld [vmem:[%s1968_s0 + $0xa8] ss:$20 sps:$4 sm:$0xff]   ;;  %v1446_v59 = vld [vmem:[%s1968_s0 + $0xd0] ss:$20 sps:$4 sm:$0xff]  }
  0x14   :  { %1213 = vmatpush3.bf16.msra.mxu0 %v1394_v18  ;;  %v1441_v56 = vld [vmem:[%s1968_s0 + $0xcc] ss:$20 sps:$4 sm:$0xff]   ;;  %v1443_v57 = vld [vmem:[%s1968_s0 + $0xd4] ss:$20 sps:$4 sm:$0xff]   ;;  %v1449_v61 = vld [vmem:[%s1968_s0 + $0xfc] ss:$20 sps:$4 sm:$0xff]  }
  0x15   :  { %1277 = vmatpush3.bf16.msra.mxu1 %v1395_v19  ;;  %1214 = vmatprep.subr.bf16.mxu0 %v1396_v20  ;;  %v1445_v58 = vld [vmem:[%s1968_s0 + $0xc8] ss:$20 sps:$4 sm:$0xff]   ;;  %v1451_v62 = vld [vmem:[%s1968_s0 + $0xf0] ss:$20 sps:$4 sm:$0xff]   ;;  %v1452_v63 = vld [vmem:[%s1968_s0 + $0xf8] ss:$20 sps:$4 sm:$0xff]  }
  0x16   :  { %1278 = vmatprep.subr.bf16.mxu1 %v1397_v21  ;;  %v1447_v60 = vld [vmem:[%s1968_s0 + $0xf4] ss:$20 sps:$4 sm:$0xff]   ;;  %v1454_v0 = vld [vmem:[%s1968_s0 + $0x11c] ss:$20 sps:$4 sm:$0xff]   ;;  %v1456_v1 = vld [vmem:[%s1968_s0 + $0x124] ss:$20 sps:$4 sm:$0xff]  }
  0x17   :  { %v1458_v2 = vld [vmem:[%s1968_s0 + $0x118] ss:$20 sps:$4 sm:$0xff]   ;;  %v1459_v3 = vld [vmem:[%s1968_s0 + $0x120] ss:$20 sps:$4 sm:$0xff]   ;;  %v1460_v4 = vld [vmem:[%s1968_s0 + $0x10] ss:$20 sps:$4 sm:$0xff]  }
  0x18   :  { %1215 = vmatpush3.bf16.msra.mxu0 %v1398_v22  ;;  %v1461_v5 = vld [vmem:[%s1968_s0 + $0xb0] ss:$20 sps:$4 sm:$0xff]   ;;  %v1462_v6 = vld [vmem:[%s1968_s0 + $0x38] ss:$20 sps:$4 sm:$0xff]   ;;  %v1464_v8 = vld [vmem:[%s1968_s0 + $0x60] ss:$20 sps:$4 sm:$0xff]  }
  0x19   :  { %1279 = vmatpush3.bf16.msra.mxu1 %v1399_v23  ;;  %1216 = vmatprep.subr.bf16.mxu0 %v1400_v24  ;;  %v1463_v7 = vld [vmem:[%s1968_s0 + $0xd8] ss:$20 sps:$4 sm:$0xff]   ;;  %v1465_v9 = vld [vmem:[%s1968_s0 + $0x100] ss:$20 sps:$4 sm:$0xff]   ;;  %v1466_v10 = vld [vmem:[%s1968_s0 + $0x88] ss:$20 sps:$4 sm:$0xff]  }
  0x1a   :  { %1280 = vmatprep.subr.bf16.mxu1 %v1401_v25  ;;  %v1467_v11 = vld [vmem:[%s1968_s0 + $0x128] ss:$20 sps:$4 sm:$0xff]   ;;  %v1791_v14 = vld [vmem:[%s1969_s2] ss:$0 sm:$0xff] }
  0x1c   :  { %1217 = vmatpush3.bf16.msra.mxu0 %v1402_v26 }
  0x1d   :  { %1281 = vmatpush3.bf16.msra.mxu1 %v1403_v27  ;;  %1218 = vmatprep.subr.bf16.mxu0 %v1404_v28 }
  0x1e   :  { %1282 = vmatprep.subr.bf16.mxu1 %v1405_v29 }
  0x20   :  { %1219 = vmatpush3.bf16.msra.mxu0 %v1406_v30 }
  0x21   :  { %1283 = vmatpush3.bf16.msra.mxu1 %v1407_v31  ;;  %1344 = vmatprep.subr.bf16.mxu0 %v1414_v36 }
  0x22   :  { %1368 = vmatprep.subr.bf16.mxu1 %v1414_v36 }
  0x23   :  { %616 = vmatmul.mubr.bf16.vlgmr.msra.gmra.mrb[0].mxu0 %v1408_v32 }
  0x24   :  { %713 = vmatmul.mubr.bf16.vlgmr.msra.gmra.mrb[0].mxu1 %v1411_v34  ;;  %1345 = vmatpush3.bf16.msra.mxu0 %v1414_v36 }
  0x25   :  { %1372 = vmatpush3.bf16.msra.mxu1 %v1414_v36  ;;  %623 = vmatprep.mubr.bf16.mxu0 %v1415_v37 }
  0x26   :  { %720 = vmatprep.mubr.bf16.mxu1 %v1417_v38  ;;  %1346 = vmatprep.subr.bf16.mxu0 %v1427_v42 }
  0x27   :  { %1369 = vmatprep.subr.bf16.mxu1 %v1427_v42 }
  0x28   :  { %1347 = vmatpush3.bf16.msra.mxu0 %v1427_v42 }
  0x29   :  { %1373 = vmatpush3.bf16.msra.mxu1 %v1427_v42  ;;  %1348 = vmatprep.subr.bf16.mxu0 %v1440_v46 }
  0x2a   :  { %1370 = vmatprep.subr.bf16.mxu1 %v1440_v46 }
  0x2b   :  { %624 = vmatmul.mubr.bf16.gmra.mrb[4].mxu0 %v1419_v39 }
  0x2c   :  { %721 = vmatmul.mubr.bf16.gmra.mrb[4].mxu1 %v1420_v40  ;;  %631 = vmatprep.mubr.bf16.mxu0 %v1421_v41 }
  0x2d   :  { %728 = vmatprep.mubr.bf16.mxu1 %v1423_v43  ;;  %1349 = vmatpush3.bf16.msra.mxu0 %v1440_v46 }
  0x2e   :  { %1374 = vmatpush3.bf16.msra.mxu1 %v1440_v46  ;;  %1350 = vmatprep.subr.bf16.mxu0 %v1453_v49 }
  0x2f   :  { %1371 = vmatprep.subr.bf16.mxu1 %v1453_v49 }
  0x31   :  { %1351 = vmatpush3.bf16.msra.mxu0 %v1453_v49 }
  0x32   :  { %1375 = vmatpush3.bf16.msra.mxu1 %v1453_v49 }
  0x33   :  { %632 = vmatmul.mubr.bf16.gmra.mrb[8].mxu0 %v1425_v44 }
  0x34   :  { %729 = vmatmul.mubr.bf16.gmra.mrb[8].mxu1 %v1426_v45  ;;  %639 = vmatprep.mubr.bf16.mxu0 %v1428_v47 }
  0x35   :  { %736 = vmatprep.mubr.bf16.mxu1 %v1430_v48 }
  0x3b   :  { %640 = vmatmul.mubr.bf16.gmra.mrb[12].mxu0 %v1432_v50 }
  0x3c   :  { %737 = vmatmul.mubr.bf16.gmra.mrb[12].mxu1 %v1433_v51  ;;  %647 = vmatprep.mubr.bf16.mxu0 %v1434_v52 }
  0x3d   :  { %744 = vmatprep.mubr.bf16.mxu1 %v1436_v53 }
  0x43   :  { %648 = vmatmul.mubr.bf16.gmra.mrb[16].mxu0 %v1438_v54 }
  0x44   :  { %745 = vmatmul.mubr.bf16.gmra.mrb[16].mxu1 %v1439_v55  ;;  %655 = vmatprep.mubr.bf16.mxu0 %v1441_v56 }
  0x45   :  { %752 = vmatprep.mubr.bf16.mxu1 %v1443_v57 }
  0x4b   :  { %656 = vmatmul.mubr.bf16.gmra.mrb[20].mxu0 %v1445_v58 }
  0x4c   :  { %753 = vmatmul.mubr.bf16.gmra.mrb[20].mxu1 %v1446_v59  ;;  %663 = vmatprep.mubr.bf16.mxu0 %v1447_v60 }
  0x4d   :  { %760 = vmatprep.mubr.bf16.mxu1 %v1449_v61 }
  0x53   :  { %664 = vmatmul.mubr.bf16.gmra.mrb[24].mxu0 %v1451_v62 }
  0x54   :  { %761 = vmatmul.mubr.bf16.gmra.mrb[24].mxu1 %v1452_v63  ;;  %671 = vmatprep.mubr.bf16.mxu0 %v1454_v0 }
  0x55   :  { %768 = vmatprep.mubr.bf16.mxu1 %v1456_v1 }
  0x5b   :  { %672 = vmatmul.mubr.bf16.gmra.mrb[28].mxu0 %v1458_v2 }
  0x5c   :  { %769 = vmatmul.mubr.bf16.gmra.mrb[28].mxu1 %v1459_v3  ;;  %1352 = vmatprep.mubr.msk.bf16.mxu0 %vm558_vm0, %v1460_v4 }
  0x5d   :  { %1360 = vmatprep.mubr.msk.bf16.mxu1 %vm558_vm0, %v1461_v5 }
  0x63   :  { %1353 = vmatmul.mubr.msk.bf16.vlgmr.msra.gmra.mrb[32].mxu0 %vm558_vm0, %v1462_v6 }
  0x64   :  { %1361 = vmatmul.mubr.msk.bf16.vlgmr.msra.gmra.mrb[32].mxu1 %vm558_vm0, %v1463_v7  ;;  %1356 = vmatprep.mubr.msk.bf16.mxu0 %vm558_vm0, %v1464_v8 }
  0x65   :  { %1364 = vmatprep.mubr.msk.bf16.mxu1 %vm558_vm0, %v1465_v9 }
  0x6b   :  { %1357 = vmatmul.mubr.msk.bf16.gmra.mrb[36].mxu0 %vm558_vm0, %v1466_v10 }
  0x6c   :  { %1365 = vmatmul.mubr.msk.bf16.gmra.mrb[36].mxu1 %vm558_vm0, %v1467_v11 }
  0xf6   :  { %v1220_v12 = vpop.f32.mrb[0].mxu0 }
  0xf7   :  { %v1284_v13 = vpop.f32.mrb[0].mxu1  ;;  %v1221_v15 = vpop.f32.mrb[1].mxu0 }
  0xf8   :  { %v1222_v16 = vadd.f32 %v1221_v15, %v1220_v12  ;;  %v1285_v17 = vpop.f32.mrb[1].mxu1  ;;  %v1223_v18 = vpop.f32.mrb[2].mxu0 }
  0xf9   :  { %v1286_v19 = vadd.f32 %v1285_v17, %v1284_v13  ;;  %v1287_v20 = vpop.f32.mrb[2].mxu1  ;;  %v1224_v21 = vpop.f32.mrb[3].mxu0 }
  0xfa   :  { %v618_v22 = vadd.f32 %v1222_v16, %v1791_v14  ;;  %v1225_v23 = vadd.f32 %v1224_v21, %v1223_v18  ;;  %v1288_v24 = vpop.f32.mrb[3].mxu1 }
  0xfb   :  { %v1289_v25 = vadd.f32 %v1288_v24, %v1287_v20 }
  0xfc   :  { %v621_v26 = vadd.f32 %v1225_v23, %v1791_v14  ;;  %v1795_v27 = vadd.f32 %v1286_v19, %v618_v22 }
  0xfe   :  { %v1226_v28 = vpop.f32.mrb[4].mxu0  ;;  %v1797_v29 = vadd.f32 %v1289_v25, %v621_v26 }
  0xff   :  { %v1290_v30 = vpop.f32.mrb[4].mxu1  ;;  %v1227_v31 = vpop.f32.mrb[5].mxu0 }
 0x100   :  { %v1228_v32 = vadd.f32 %v1227_v31, %v1226_v28  ;;  %v1291_v33 = vpop.f32.mrb[5].mxu1  ;;  %v1229_v34 = vpop.f32.mrb[6].mxu0 }
 0x101   :  { %v1292_v35 = vadd.f32 %v1291_v33, %v1290_v30  ;;  %v1293_v36 = vpop.f32.mrb[6].mxu1  ;;  %v1230_v37 = vpop.f32.mrb[7].mxu0 }
 0x102   :  { %v626_v38 = vadd.f32 %v1228_v32, %v1791_v14  ;;  %v1231_v39 = vadd.f32 %v1230_v37, %v1229_v34  ;;  %v1294_v40 = vpop.f32.mrb[7].mxu1 }
 0x103   :  { %v1295_v41 = vadd.f32 %v1294_v40, %v1293_v36 }
 0x104   :  { %v629_v42 = vadd.f32 %v1231_v39, %v1791_v14  ;;  %v1801_v43 = vadd.f32 %v1292_v35, %v626_v38 }
 0x106   :  { %v1232_v44 = vpop.f32.mrb[8].mxu0  ;;  %v1803_v45 = vadd.f32 %v1295_v41, %v629_v42 }
 0x107   :  { %v1296_v46 = vpop.f32.mrb[8].mxu1  ;;  %v1233_v47 = vpop.f32.mrb[9].mxu0 }
 0x108   :  { %v1234_v48 = vadd.f32 %v1233_v47, %v1232_v44  ;;  %v1297_v49 = vpop.f32.mrb[9].mxu1  ;;  %v1235_v50 = vpop.f32.mrb[10].mxu0 }
 0x109   :  { %v1298_v51 = vadd.f32 %v1297_v49, %v1296_v46  ;;  %v1299_v52 = vpop.f32.mrb[10].mxu1  ;;  %v1236_v53 = vpop.f32.mrb[11].mxu0 }
 0x10a   :  { %v634_v54 = vadd.f32 %v1234_v48, %v1791_v14  ;;  %v1237_v55 = vadd.f32 %v1236_v53, %v1235_v50  ;;  %v1300_v56 = vpop.f32.mrb[11].mxu1 }
 0x10b   :  { %v1301_v57 = vadd.f32 %v1300_v56, %v1299_v52 }
 0x10c   :  { %v637_v58 = vadd.f32 %v1237_v55, %v1791_v14  ;;  %v1807_v59 = vadd.f32 %v1298_v51, %v634_v54 }
 0x10e   :  { %v1238_v60 = vpop.f32.mrb[12].mxu0  ;;  %v1809_v61 = vadd.f32 %v1301_v57, %v637_v58 }
 0x10f   :  { %v1302_v62 = vpop.f32.mrb[12].mxu1  ;;  %v1239_v63 = vpop.f32.mrb[13].mxu0 }
 0x110   :  { %v1240_v0 = vadd.f32 %v1239_v63, %v1238_v60  ;;  %v1303_v1 = vpop.f32.mrb[13].mxu1  ;;  %v1241_v2 = vpop.f32.mrb[14].mxu0 }
 0x111   :  { %v1304_v3 = vadd.f32 %v1303_v1, %v1302_v62  ;;  %v1305_v4 = vpop.f32.mrb[14].mxu1  ;;  %v1242_v5 = vpop.f32.mrb[15].mxu0 }
 0x112   :  { %v642_v6 = vadd.f32 %v1240_v0, %v1791_v14  ;;  %v1243_v7 = vadd.f32 %v1242_v5, %v1241_v2  ;;  %v1306_v8 = vpop.f32.mrb[15].mxu1 }
 0x113   :  { %v1307_v9 = vadd.f32 %v1306_v8, %v1305_v4 }
 0x114   :  { %v645_v10 = vadd.f32 %v1243_v7, %v1791_v14  ;;  %v1813_v11 = vadd.f32 %v1304_v3, %v642_v6 }
 0x116   :  { %v1244_v12 = vpop.f32.mrb[16].mxu0  ;;  %v1815_v13 = vadd.f32 %v1307_v9, %v645_v10 }
 0x117   :  { %v1308_v15 = vpop.f32.mrb[16].mxu1  ;;  %v1245_v16 = vpop.f32.mrb[17].mxu0 }
 0x118   :  { %v1246_v17 = vadd.f32 %v1245_v16, %v1244_v12  ;;  %v1309_v18 = vpop.f32.mrb[17].mxu1  ;;  %v1247_v19 = vpop.f32.mrb[18].mxu0 }
 0x119   :  { %v1310_v20 = vadd.f32 %v1309_v18, %v1308_v15  ;;  %v1311_v21 = vpop.f32.mrb[18].mxu1  ;;  %v1248_v22 = vpop.f32.mrb[19].mxu0 }
 0x11a   :  { %v650_v23 = vadd.f32 %v1246_v17, %v1791_v14  ;;  %v1249_v24 = vadd.f32 %v1248_v22, %v1247_v19  ;;  %v1312_v25 = vpop.f32.mrb[19].mxu1 }
 0x11b   :  { %v1313_v26 = vadd.f32 %v1312_v25, %v1311_v21 }
 0x11c   :  { %v653_v28 = vadd.f32 %v1249_v24, %v1791_v14  ;;  %v747_v30 = vadd.f32 %v1310_v20, %v650_v23 }
 0x11e   :  { %v1250_v31 = vpop.f32.mrb[20].mxu0  ;;  %v1819_v32 = vadd.f32 %v1313_v26, %v653_v28 }
 0x11f   :  { %v1314_v33 = vpop.f32.mrb[20].mxu1  ;;  %v1251_v34 = vpop.f32.mrb[21].mxu0 }
 0x120   :  { %v1252_v35 = vadd.f32 %v1251_v34, %v1250_v31  ;;  %v1315_v36 = vpop.f32.mrb[21].mxu1  ;;  %v1253_v37 = vpop.f32.mrb[22].mxu0 }
 0x121   :  { %v1316_v38 = vadd.f32 %v1315_v36, %v1314_v33  ;;  %v1317_v39 = vpop.f32.mrb[22].mxu1  ;;  %v1254_v40 = vpop.f32.mrb[23].mxu0 }
 0x122   :  { %v658_v41 = vadd.f32 %v1252_v35, %v1791_v14  ;;  %v1255_v42 = vadd.f32 %v1254_v40, %v1253_v37  ;;  %v1318_v44 = vpop.f32.mrb[23].mxu1 }
 0x123   :  { %v1319_v46 = vadd.f32 %v1318_v44, %v1317_v39 }
 0x124   :  { %v661_v47 = vadd.f32 %v1255_v42, %v1791_v14  ;;  %v755_v48 = vadd.f32 %v1316_v38, %v658_v41 }
 0x126   :  { %v1256_v49 = vpop.f32.mrb[24].mxu0  ;;  %v758_v50 = vadd.f32 %v1319_v46, %v661_v47 }
 0x127   :  { %v1320_v51 = vpop.f32.mrb[24].mxu1  ;;  %v1257_v52 = vpop.f32.mrb[25].mxu0 }
 0x128   :  { %v1258_v53 = vadd.f32 %v1257_v52, %v1256_v49  ;;  %v1321_v54 = vpop.f32.mrb[25].mxu1  ;;  %v1259_v55 = vpop.f32.mrb[26].mxu0 }
 0x129   :  { %v1322_v56 = vadd.f32 %v1321_v54, %v1320_v51  ;;  %v1323_v57 = vpop.f32.mrb[26].mxu1  ;;  %v1260_v58 = vpop.f32.mrb[27].mxu0 }
 0x12a   :  { %v666_v60 = vadd.f32 %v1258_v53, %v1791_v14  ;;  %v1261_v62 = vadd.f32 %v1260_v58, %v1259_v55  ;;  %v1324_v63 = vpop.f32.mrb[27].mxu1 }
 0x12b   :  { %v1325_v0 = vadd.f32 %v1324_v63, %v1323_v57 }
 0x12c   :  { %v669_v1 = vadd.f32 %v1261_v62, %v1791_v14  ;;  %v763_v2 = vadd.f32 %v1322_v56, %v666_v60 }
 0x12e   :  { %v1262_v3 = vpop.f32.mrb[28].mxu0  ;;  %v1825_v4 = vadd.f32 %v1325_v0, %v669_v1 }
 0x12f   :  { %v1326_v5 = vpop.f32.mrb[28].mxu1  ;;  %v1263_v6 = vpop.f32.mrb[29].mxu0 }
 0x130   :  { %v1264_v7 = vadd.f32 %v1263_v6, %v1262_v3  ;;  %v1327_v8 = vpop.f32.mrb[29].mxu1  ;;  %v1265_v9 = vpop.f32.mrb[30].mxu0 }
 0x131   :  { %v1328_v10 = vadd.f32 %v1327_v8, %v1326_v5  ;;  %v1329_v12 = vpop.f32.mrb[30].mxu1  ;;  %v1266_v15 = vpop.f32.mrb[31].mxu0 }
 0x132   :  { %v674_v16 = vadd.f32 %v1264_v7, %v1791_v14  ;;  %v1267_v17 = vadd.f32 %v1266_v15, %v1265_v9  ;;  %v1330_v18 = vpop.f32.mrb[31].mxu1 }
 0x133   :  { %v1331_v19 = vadd.f32 %v1330_v18, %v1329_v12 }
 0x134   :  { %v677_v20 = vadd.f32 %v1267_v17, %v1791_v14  ;;  %v771_v21 = vadd.f32 %v1328_v10, %v674_v16 }
 0x136   :  { %v1354_v22 = vpop.f32.mrb[32].mxu0  ;;  %v774_v23 = vadd.f32 %v1331_v19, %v677_v20 }
 0x137   :  { %v1830_v24 = vadd.f32 %v1354_v22, %v1801_v43  ;;  %v1362_v25 = vpop.f32.mrb[32].mxu1  ;;  %v811_v26 = vpop.f32.mrb[33].mxu0 }
 0x138   :  { %v1832_v28 = vadd.f32 %v1362_v25, %v755_v48  ;;  %v1835_v31 = vadd.f32 %v811_v26, %v1795_v27  ;;  %v843_v33 = vpop.f32.mrb[33].mxu1  ;;  %v1355_v34 = vpop.f32.mrb[34].mxu0 }
 0x139   :  { %v1158_v35 = vmul.f32 -1.442695, %v1830_v24  ;;  %v1838_v36 = vadd.f32 %v843_v33, %v747_v30  ;;  %v1841_v14 = vadd.f32 %v1355_v34, %v1803_v45  ;;  %v1363_v37 = vpop.f32.mrb[34].mxu1  ;;  %v814_v38 = vpop.f32.mrb[35].mxu0 }
 0x13a   :  { %v1166_v43 = vmul.f32 -1.442695, %v1832_v28  ;;  %v1156_v39 = vmul.f32 -1.442695, %v1835_v31  ;;  %v1845_v40 = vadd.f32 %v1363_v37, %v758_v50  ;;  %v1848_v27 = vadd.f32 %v814_v38, %v1797_v29  ;;  %v846_v41 = vpop.f32.mrb[35].mxu1 }
 0x13b   :  { %1468 = vpow2.f32 %v1158_v35  ;;  %v1164_v42 = vmul.f32 -1.442695, %v1838_v36  ;;  %v1159_v30 = vmul.f32 -1.442695, %v1841_v14  ;;  %v1853_v45 = vadd.f32 %v846_v41, %v1819_v32 }
 0x13c   :  { %1470 = vpow2.f32 %v1166_v43  ;;  %v1167_v44 = vmul.f32 -1.442695, %v1845_v40  ;;  %v1157_v46 = vmul.f32 -1.442695, %v1848_v27 }
 0x13d   :  { %1472 = vpow2.f32 %v1156_v39  ;;  %v1165_v47 = vmul.f32 -1.442695, %v1853_v45 }
 0x13e   :  { %1474 = vpow2.f32 %v1164_v42  ;;  %v1358_v29 = vpop.f32.mrb[36].mxu0 }
 0x13f   :  { %1476 = vpow2.f32 %v1159_v30  ;;  %v1859_v48 = vadd.f32 %v1358_v29, %v1813_v11  ;;  %v1366_v49 = vpop.f32.mrb[36].mxu1  ;;  %v827_v50 = vpop.f32.mrb[37].mxu0 }
 0x140   :  { %1478 = vpow2.f32 %v1167_v44  ;;  %v1861_v51 = vadd.f32 %v1366_v49, %v771_v21  ;;  %v1864_v32 = vadd.f32 %v827_v50, %v1807_v59  ;;  %v859_v52 = vpop.f32.mrb[37].mxu1  ;;  %v1359_v53 = vpop.f32.mrb[38].mxu0 }
 0x141   :  { %1480 = vpow2.f32 %v1157_v46  ;;  %v1162_v54 = vmul.f32 -1.442695, %v1859_v48  ;;  %v1867_v55 = vadd.f32 %v859_v52, %v763_v2  ;;  %v1870_v56 = vadd.f32 %v1359_v53, %v1815_v13  ;;  %v1367_v11 = vpop.f32.mrb[38].mxu1  ;;  %v830_v57 = vpop.f32.mrb[39].mxu0 }
 0x142   :  { %1482 = vpow2.f32 %v1165_v47  ;;  %v1170_v58 = vmul.f32 -1.442695, %v1861_v51  ;;  %v1160_v60 = vmul.f32 -1.442695, %v1864_v32  ;;  %v1874_v62 = vadd.f32 %v1367_v11, %v774_v23  ;;  %v862_v59 = vpop.f32.mrb[39].mxu1 }
 0x143   :  { %1484 = vpow2.f32 %v1162_v54  ;;  %v1168_v63 = vmul.f32 -1.442695, %v1867_v55  ;;  %v1163_v0 = vmul.f32 -1.442695, %v1870_v56  ;;  %v1879_v1 = vadd.f32 %v830_v57, %v1809_v61 }
 0x144   :  { %1486 = vpow2.f32 %v1170_v58  ;;  %v1882_v13 = vadd.f32 %v862_v59, %v1825_v4  ;;  %v1171_v37 = vmul.f32 -1.442695, %v1874_v62 }
 0x145   :  { %v1469_v2 = vpop.eup %1468  ;;  %1488 = vpow2.f32 %v1160_v60  ;;  %v1161_v39 = vmul.f32 -1.442695, %v1879_v1 }
 0x146   :  { %v1471_v3 = vpop.eup %1470  ;;  %v924_v5 = vadd.f32 1.0, %v1469_v2  ;;  %1490 = vpow2.f32 %v1168_v63  ;;  %v1169_v30 = vmul.f32 -1.442695, %v1882_v13 }
 0x147   :  { %v1473_v6 = vpop.eup %1472  ;;  %v932_v7 = vadd.f32 1.0, %v1471_v3  ;;  %1492 = vpow2.f32 %v1163_v0 }
 0x148   :  { %v1475_v8 = vpop.eup %1474  ;;  %1494 = vrcp.f32 %v924_v5  ;;  %v922_v9 = vadd.f32 1.0, %v1473_v6 }
 0x149   :  { %v1477_v10 = vpop.eup %1476  ;;  %1496 = vrcp.f32 %v932_v7  ;;  %v930_v12 = vadd.f32 1.0, %v1475_v8 }
 0x14a   :  { %v1479_v61 = vpop.eup %1478  ;;  %1498 = vrcp.f32 %v922_v9  ;;  %v925_v15 = vadd.f32 1.0, %v1477_v10 }
 0x14b   :  { %v1481_v16 = vpop.eup %1480  ;;  %1500 = vrcp.f32 %v930_v12  ;;  %v933_v4 = vadd.f32 1.0, %v1479_v61 }
 0x14c   :  { %v1483_v17 = vpop.eup %1482  ;;  %1502 = vrcp.f32 %v925_v15  ;;  %v923_v18 = vadd.f32 1.0, %v1481_v16 }
 0x14d   :  { %v1485_v19 = vpop.eup %1484  ;;  %1504 = vrcp.f32 %v933_v4  ;;  %v931_v20 = vadd.f32 1.0, %v1483_v17 }
 0x14e   :  { %v1487_v21 = vpop.eup %1486  ;;  %1506 = vrcp.f32 %v923_v18  ;;  %v928_v22 = vadd.f32 1.0, %v1485_v19 }
 0x14f   :  { %v1489_v23 = vpop.eup %1488  ;;  %1508 = vrcp.f32 %v931_v20  ;;  %v936_v25 = vadd.f32 1.0, %v1487_v21 }
 0x150   :  { %v1491_v26 = vpop.eup %1490  ;;  %1510 = vrcp.f32 %v928_v22  ;;  %v926_v33 = vadd.f32 1.0, %v1489_v23 }
 0x151   :  { %v1493_v34 = vpop.eup %1492  ;;  %1512 = vrcp.f32 %v936_v25  ;;  %v934_v35 = vadd.f32 1.0, %v1491_v26 }
 0x152   :  { %v1495_v38 = vpop.eup %1494  ;;  %1514 = vrcp.f32 %v926_v33  ;;  %v929_v43 = vadd.f32 1.0, %v1493_v34 }
 0x153   :  { %v1497_v41 = vpop.eup %1496  ;;  %v972_v42 = vmul.f32 %v1495_v38, %v1830_v24  ;;  %1516 = vrcp.f32 %v934_v35 }
 0x154   :  { %v1499_v44 = vpop.eup %1498  ;;  %v980_v46 = vmul.f32 %v1497_v41, %v1832_v28  ;;  %1518 = vrcp.f32 %v929_v43 }
 0x155   :  { %v1501_v47 = vpop.eup %1500  ;;  %v1190_v29 = vpack.c.bf16 %v972_v42, %v972_v42  ;;  %v970_v49 = vmul.f32 %v1499_v44, %v1835_v31  ;;  %1520 = vpow2.f32 %v1171_v37 }
 0x156   :  { %v1503_v50 = vpop.eup %1502  ;;  %v1198_v52 = vpack.c.bf16 %v980_v46, %v980_v46  ;;  %v978_v53 = vmul.f32 %v1501_v47, %v1838_v36  ;;  %1522 = vpow2.f32 %v1161_v39 }
 0x157   :  { %v1505_v54 = vpop.eup %1504  ;;  %1053 = vst.msk [vmem:[%s1970_s3 + $0x8] sm:$0xf] %vm1050_vm1, %v1190_v29  ;;  %v1188_v24 = vpack.c.bf16 %v970_v49, %v970_v49  ;;  %v973_v28 = vmul.f32 %v1503_v50, %v1841_v14  ;;  %1524 = vpow2.f32 %v1169_v30 }
 0x158   :  { %v1507_v11 = vpop.eup %1506  ;;  %1061 = vst.msk [vmem:[%s1970_s3 + $0x28] sm:$0xf] %vm1050_vm1, %v1198_v52  ;;  %v1196_v31 = vpack.c.bf16 %v978_v53, %v978_v53  ;;  %v981_v36 = vmul.f32 %v1505_v54, %v1845_v40 }
 0x159   :  { %v1509_v57 = vpop.eup %1508  ;;  %1051 = vst.msk [vmem:[%s1970_s3] sm:$0xf] %vm1050_vm1, %v1188_v24  ;;  %v1191_v58 = vpack.c.bf16 %v973_v28, %v973_v28  ;;  %v971_v60 = vmul.f32 %v1507_v11, %v1848_v27 }
 0x15a   :  { %v1511_v14 = vpop.eup %1510  ;;  %1059 = vst.msk [vmem:[%s1970_s3 + $0x20] sm:$0xf] %vm1050_vm1, %v1196_v31  ;;  %v1199_v59 = vpack.c.bf16 %v981_v36, %v981_v36  ;;  %v979_v63 = vmul.f32 %v1509_v57, %v1853_v45 }
 0x15b   :  { %v1513_v0 = vpop.eup %1512  ;;  %1054 = vst.msk [vmem:[%s1970_s3 + $0xc] sm:$0xf] %vm1050_vm1, %v1191_v58  ;;  %v1189_v40 = vpack.c.bf16 %v971_v60, %v971_v60  ;;  %v976_v2 = vmul.f32 %v1511_v14, %v1859_v48 }
 0x15c   :  { %v1515_v3 = vpop.eup %1514  ;;  %1062 = vst.msk [vmem:[%s1970_s3 + $0x2c] sm:$0xf] %vm1050_vm1, %v1199_v59  ;;  %v1197_v27 = vpack.c.bf16 %v979_v63, %v979_v63  ;;  %v984_v5 = vmul.f32 %v1513_v0, %v1861_v51 }
 0x15d   :  { %v1517_v6 = vpop.eup %1516  ;;  %1052 = vst.msk [vmem:[%s1970_s3 + $0x4] sm:$0xf] %vm1050_vm1, %v1189_v40  ;;  %v1194_v45 = vpack.c.bf16 %v976_v2, %v976_v2  ;;  %v974_v7 = vmul.f32 %v1515_v3, %v1864_v32 }
 0x15e   :  { %v1519_v8 = vpop.eup %1518  ;;  %1060 = vst.msk [vmem:[%s1970_s3 + $0x24] sm:$0xf] %vm1050_vm1, %v1197_v27  ;;  %v1202_v48 = vpack.c.bf16 %v984_v5, %v984_v5  ;;  %v982_v9 = vmul.f32 %v1517_v6, %v1867_v55 }
 0x15f   :  { %v1521_v10 = vpop.eup %1520  ;;  %1057 = vst.msk [vmem:[%s1970_s3 + $0x18] sm:$0xf] %vm1050_vm1, %v1194_v45  ;;  %v1192_v51 = vpack.c.bf16 %v974_v7, %v974_v7  ;;  %v977_v12 = vmul.f32 %v1519_v8, %v1870_v56 }
 0x160   :  { %v1523_v61 = vpop.eup %1522  ;;  %1065 = vst.msk [vmem:[%s1970_s3 + $0x38] sm:$0xf] %vm1050_vm1, %v1202_v48  ;;  %v1200_v32 = vpack.c.bf16 %v982_v9, %v982_v9  ;;  %v937_v15 = vadd.f32 1.0, %v1521_v10 }
 0x161   :  { %v1525_v16 = vpop.eup %1524  ;;  %1055 = vst.msk [vmem:[%s1970_s3 + $0x10] sm:$0xf] %vm1050_vm1, %v1192_v51  ;;  %v1195_v55 = vpack.c.bf16 %v977_v12, %v977_v12  ;;  %v927_v4 = vadd.f32 1.0, %v1523_v61 }
 0x162   :  { %1063 = vst.msk [vmem:[%s1970_s3 + $0x30] sm:$0xf] %vm1050_vm1, %v1200_v32  ;;  %1526 = vrcp.f32 %v937_v15  ;;  %v935_v56 = vadd.f32 1.0, %v1525_v16 }
 0x163   :  { %1058 = vst.msk [vmem:[%s1970_s3 + $0x1c] sm:$0xf] %vm1050_vm1, %v1195_v55  ;;  %1528 = vrcp.f32 %v927_v4 }
 0x164   :  { %1530 = vrcp.f32 %v935_v56 }
 0x16c   :  { %v1527_v17 = vpop.eup %1526 }
 0x16d   :  { %v1529_v18 = vpop.eup %1528  ;;  %v985_v19 = vmul.f32 %v1527_v17, %v1874_v62 }
 0x16e   :  { %v1531_v20 = vpop.eup %1530  ;;  %v975_v21 = vmul.f32 %v1529_v18, %v1879_v1 }
 0x16f   :  { %v1203_v22 = vpack.c.bf16 %v985_v19, %v985_v19  ;;  %v983_v23 = vmul.f32 %v1531_v20, %v1882_v13 }
 0x170   :  { %v1193_v25 = vpack.c.bf16 %v975_v21, %v975_v21 }
 0x171   :  { %1066 = vst.msk [vmem:[%s1970_s3 + $0x3c] sm:$0xf] %vm1050_vm1, %v1203_v22  ;;  %v1201_v26 = vpack.c.bf16 %v983_v23, %v983_v23 }
 0x172   :  { %1056 = vst.msk [vmem:[%s1970_s3 + $0x14] sm:$0xf] %vm1050_vm1, %v1193_v25 }
 0x173   :  { %1064 = vst.msk [vmem:[%s1970_s3 + $0x34] sm:$0xf] %vm1050_vm1, %v1201_v26 }

// kernel: yolox_forward.64
= control target key start
LH: loop header
LB: loop body
LE: loop exit
PB: predicated region body
PF: predicated region fallthrough
CT: control target
= control target key end

     0   :  { %vm68_vm0 = vcmask 523264   ;;  %vm124_vm1 = vcmask 695296   ;;  %s219_s1 = inlined_call_operand.vmem [shape: bf16[64,85], index: 1, kind: input, shape index: {}]   ;;  %s220_s0 = inlined_call_operand.vmem [shape: bf16[32,64], index: 0, kind: input, shape index: {}]   ;;  %s221_s2 = inlined_call_operand.vmem [shape: f32[1,85], index: 2, kind: input, shape index: {}]   ;;  %s222_s3 = inlined_call_operand.vmem [shape: f32[32,85], index: 3, kind: output, shape index: {}]  }
   0x1   :  { %v160_v0 = vld [vmem:[%s219_s1] sm:$0xff]   ;;  %v161_v1 = vld [vmem:[%s219_s1 + $0x8] sm:$0xff]   ;;  %v162_v2 = vld [vmem:[%s219_s1 + $0x10] sm:$0xff]  }
   0x2   :  { %148 = vmatprep.subr.bf16.mxu0 %v160_v0  ;;  %v164_v3 = vld [vmem:[%s220_s0] sm:$0xff]   ;;  %v163_v4 = vld [vmem:[%s219_s1 + $0x18] sm:$0xff]   ;;  %v165_v5 = vld [vmem:[%s220_s0 + $0x8] sm:$0xff]  }
   0x3   :  { %149 = vmatpush3.bf16.msra.mxu0 %v160_v0  ;;  %156 = vmatprep.mubr.msk.bf16.mxu0 %vm68_vm0, %v164_v3  ;;  %v133_v6 = vld [vmem:[%s221_s2] ss:$0 sm:$0xff] }
   0x4   :  { %150 = vmatprep.subr.bf16.mxu0 %v161_v1 }
   0x7   :  { %151 = vmatpush3.bf16.msra.mxu0 %v161_v1 }
   0x8   :  { %152 = vmatprep.subr.bf16.mxu0 %v162_v2 }
   0xb   :  { %153 = vmatpush3.bf16.msra.mxu0 %v162_v2 }
   0xc   :  { %154 = vmatprep.subr.bf16.mxu0 %v163_v4 }
   0xf   :  { %155 = vmatpush3.bf16.msra.mxu0 %v163_v4 }
  0x12   :  { %157 = vmatmul.mubr.msk.bf16.vlgmr.msra.gmra.mrb[0].mxu0 %vm68_vm0, %v165_v5 }
  0xe5   :  { %v158_v7 = vpop.f32.mrb[0].mxu0 }
  0xe6   :  { %v118_v8 = vadd.f32 %v158_v7, %v133_v6  ;;  %v109_v9 = vpop.f32.mrb[1].mxu0 }
  0xe7   :  { %v110_v10 = vadd.f32 %v133_v6, %v109_v9  ;;  %v159_v11 = vpop.f32.mrb[2].mxu0 }
  0xe8   :  { %127 = vst.msk [vmem:[%s222_s3 + $0x10] sm:$0xff] %vm124_vm1, %v118_v8  ;;  %v121_v12 = vadd.f32 %v159_v11, %v133_v6  ;;  %v112_v13 = vpop.f32.mrb[3].mxu0 }
  0xe9   :  { %125 = vst.msk [vmem:[%s222_s3] sm:$0xff] %vm124_vm1, %v110_v10  ;;  %v113_v14 = vadd.f32 %v133_v6, %v112_v13 }
  0xea   :  { %128 = vst.msk [vmem:[%s222_s3 + $0x18] sm:$0xff] %vm124_vm1, %v121_v12 }
  0xeb   :  { %126 = vst.msk [vmem:[%s222_s3 + $0x8] sm:$0xff] %vm124_vm1, %v113_v14 }

// kernel: yolox_forward.65
= control target key start
LH: loop header
LB: loop body
LE: loop exit
PB: predicated region body
PF: predicated region fallthrough
CT: control target
= control target key end

     0   :  { %v194_v0 = vmov 0.0   ;;  %vm195_vm0 = vmmov 0   ;;  %vm135_vm1 = vcmask 257024   ;;  %s249_s1 = inlined_call_operand.vmem [shape: bf16[128,32], index: 1, kind: input, shape index: {}]   ;;  %s250_s0 = inlined_call_operand.vmem [shape: bf16[8,128], index: 0, kind: input, shape index: {}]   ;;  %s251_s2 = inlined_call_operand.vmem [shape: f32[1,32], index: 2, kind: input, shape index: {}]   ;;  %s252_s3 = inlined_call_operand.vmem [shape: bf16[8,32], index: 3, kind: output, shape index: {}]  }
   0x1   :  { %160 = vmatprep.subr.bf16.mxu0 %v194_v0  ;;  %v182_v1 = vld [vmem:[%s249_s1] sm:$0xff]   ;;  %176 = vmatprep.mubr.msk.bf16.mxu0 %vm195_vm0, %v194_v0  ;;  %v183_v2 = vld [vmem:[%s249_s1 + $0x8] sm:$0xff]   ;;  %v184_v3 = vld [vmem:[%s249_s1 + $0x10] sm:$0xff]  }
   0x2   :  { %161 = vmatpush3.bf16.msra.mxu0 %v182_v1  ;;  %v185_v4 = vld [vmem:[%s249_s1 + $0x18] sm:$0xff]   ;;  %v186_v5 = vld [vmem:[%s249_s1 + $0x20] sm:$0xff]   ;;  %v187_v6 = vld [vmem:[%s249_s1 + $0x28] sm:$0xff]  }
   0x3   :  { %162 = vmatprep.subr.bf16.mxu0 %v194_v0  ;;  %v188_v7 = vld [vmem:[%s249_s1 + $0x30] sm:$0xff]   ;;  %v189_v8 = vld [vmem:[%s249_s1 + $0x38] sm:$0xff]   ;;  %v15_v9 = vld [vmem:[%s250_s0] sm:$0xf] }
   0x4   :  { %v141_v10 = vld [vmem:[%s251_s2] ss:$0 sm:$0xff] }
   0x6   :  { %163 = vmatpush3.bf16.msra.mxu0 %v183_v2 }
   0x7   :  { %164 = vmatprep.subr.bf16.mxu0 %v194_v0 }
   0xa   :  { %165 = vmatpush3.bf16.msra.mxu0 %v184_v3 }
   0xb   :  { %166 = vmatprep.subr.bf16.mxu0 %v194_v0 }
   0xe   :  { %167 = vmatpush3.bf16.msra.mxu0 %v185_v4 }
   0xf   :  { %168 = vmatprep.subr.bf16.mxu0 %v194_v0 }
  0x12   :  { %169 = vmatpush3.bf16.msra.mxu0 %v186_v5 }
  0x13   :  { %170 = vmatprep.subr.bf16.mxu0 %v194_v0 }
  0x16   :  { %171 = vmatpush3.bf16.msra.mxu0 %v187_v6 }
  0x17   :  { %172 = vmatprep.subr.bf16.mxu0 %v194_v0 }
  0x1a   :  { %173 = vmatpush3.bf16.msra.mxu0 %v188_v7 }
  0x1b   :  { %174 = vmatprep.subr.bf16.mxu0 %v194_v0 }
  0x1e   :  { %175 = vmatpush3.bf16.msra.mxu0 %v189_v8 }
  0x21   :  { %177 = vmatmul.mubr.bf16.vlgmr.msra.gmra.mrb[0].mxu0 %v15_v9 }
  0xf4   :  { %v121_v11 = vpop.f32.mrb[0].mxu0 }
  0xf5   :  { %v122_v12 = vadd.f32 %v141_v10, %v121_v11  ;;  %v178_v13 = vpop.f32.mrb[1].mxu0 }
  0xf6   :  { %v124_v14 = vpop.f32.mrb[2].mxu0 }
  0xf7   :  { %v150_v15 = vmul.f32 -1.442695, %v122_v12  ;;  %v179_v16 = vpop.f32.mrb[3].mxu0 }
  0xf9   :  { %190 = vpow2.f32 %v150_v15 }
 0x103   :  { %v191_v17 = vpop.eup %190 }
 0x104   :  { %v130_v18 = vadd.f32 1.0, %v191_v17 }
 0x106   :  { %192 = vrcp.f32 %v130_v18 }
 0x110   :  { %v193_v19 = vpop.eup %192 }
 0x111   :  { %v133_v20 = vmul.f32 %v193_v19, %v122_v12 }
 0x113   :  { %v134_v21 = vpack.c.bf16 %v133_v20, %v133_v20 }
 0x115   :  { %136 = vst.msk [vmem:[%s252_s3] sm:$0xf] %vm135_vm1, %v134_v21 }

// kernel: yolox_forward.51
= control target key start
LH: loop header
LB: loop body
LE: loop exit
PB: predicated region body
PF: predicated region fallthrough
CT: control target
= control target key end

     0   :  { %v620_v35 = vmov 0.0   ;;  %vm621_vm0 = vmmov 0   ;;  %vm330_vm1 = vcmask 523264   ;;  %vm462_vm2 = vcmask 519168   ;;  %s765_s1 = inlined_call_operand.vmem [shape: bf16[576,64], index: 1, kind: input, shape index: {}]   ;;  %s766_s0 = inlined_call_operand.vmem [shape: bf16[8,576], index: 0, kind: input, shape index: {}]   ;;  %s767_s2 = inlined_call_operand.vmem [shape: f32[1,64], index: 2, kind: input, shape index: {}]   ;;  %s768_s3 = inlined_call_operand.vmem [shape: bf16[8,64], index: 3, kind: output, shape index: {}]  }
   0x1   :  { %v575_v0 = vld [vmem:[%s765_s1 + $0x40] sm:$0xff]   ;;  %v579_v4 = vld [vmem:[%s765_s1 + $0x48] sm:$0xff]   ;;  %v583_v8 = vld [vmem:[%s765_s1 + $0x50] sm:$0xff]  }
   0x2   :  { %v576_v1 = vld [vmem:[%s765_s1] sm:$0xff]   ;;  %512 = vmatprep.subr.bf16.mxu0 %v575_v0  ;;  %v580_v5 = vld [vmem:[%s765_s1 + $0x8] sm:$0xff]   ;;  %v584_v9 = vld [vmem:[%s765_s1 + $0x10] sm:$0xff]  }
   0x3   :  { %v577_v2 = vld [vmem:[%s765_s1 + $0xc0] sm:$0xff]   ;;  %513 = vmatpush3.bf16.msra.mxu0 %v576_v1  ;;  %v581_v6 = vld [vmem:[%s765_s1 + $0xc8] sm:$0xff]   ;;  %v585_v10 = vld [vmem:[%s765_s1 + $0xd0] sm:$0xff]  }
   0x4   :  { %v578_v3 = vld [vmem:[%s765_s1 + $0x80] sm:$0xff]   ;;  %534 = vmatprep.subr.bf16.mxu1 %v577_v2  ;;  %514 = vmatprep.subr.bf16.mxu0 %v579_v4  ;;  %v582_v7 = vld [vmem:[%s765_s1 + $0x88] sm:$0xff]   ;;  %v586_v11 = vld [vmem:[%s765_s1 + $0x90] sm:$0xff]  }
   0x5   :  { %535 = vmatpush3.bf16.msra.mxu1 %v578_v3  ;;  %v587_v12 = vld [vmem:[%s765_s1 + $0x58] sm:$0xff]   ;;  %v591_v16 = vld [vmem:[%s765_s1 + $0x60] sm:$0xff]   ;;  %v595_v20 = vld [vmem:[%s765_s1 + $0x68] sm:$0xff]  }
   0x6   :  { %536 = vmatprep.subr.bf16.mxu1 %v581_v6  ;;  %v588_v13 = vld [vmem:[%s765_s1 + $0x18] sm:$0xff]   ;;  %v592_v17 = vld [vmem:[%s765_s1 + $0x20] sm:$0xff]   ;;  %v596_v21 = vld [vmem:[%s765_s1 + $0x28] sm:$0xff]  }
   0x7   :  { %515 = vmatpush3.bf16.msra.mxu0 %v580_v5  ;;  %v589_v14 = vld [vmem:[%s765_s1 + $0xd8] sm:$0xff]   ;;  %v593_v18 = vld [vmem:[%s765_s1 + $0xe0] sm:$0xff]   ;;  %v597_v22 = vld [vmem:[%s765_s1 + $0xe8] sm:$0xff]  }
   0x8   :  { %516 = vmatprep.subr.bf16.mxu0 %v583_v8  ;;  %v590_v15 = vld [vmem:[%s765_s1 + $0x98] sm:$0xff]   ;;  %v594_v19 = vld [vmem:[%s765_s1 + $0xa0] sm:$0xff]   ;;  %v598_v23 = vld [vmem:[%s765_s1 + $0xa8] sm:$0xff]  }
   0x9   :  { %537 = vmatpush3.bf16.msra.mxu1 %v582_v7  ;;  %v599_v24 = vld [vmem:[%s765_s1 + $0x70] sm:$0xff]   ;;  %v603_v28 = vld [vmem:[%s765_s1 + $0x78] sm:$0xff]   ;;  %v15_v31 = vld [vmem:[%s766_s0] sm:$0xff] }
   0xa   :  { %538 = vmatprep.subr.bf16.mxu1 %v585_v10  ;;  %v600_v25 = vld [vmem:[%s765_s1 + $0x30] sm:$0xff]   ;;  %v604_v29 = vld [vmem:[%s765_s1 + $0x38] sm:$0xff]   ;;  %v469_v32 = vcombine.low %v15_v31, %v15_v31  ;;  %v470_v33 = vcombine.high %v15_v31, %v15_v31  ;;  %v16_v36 = vld [vmem:[%s766_s0 + $0x8] sm:$0xff] }
   0xb   :  { %517 = vmatpush3.bf16.msra.mxu0 %v584_v9  ;;  %v601_v26 = vld [vmem:[%s765_s1 + $0xf0] sm:$0xff]   ;;  %v605_v30 = vld [vmem:[%s765_s1 + $0xf8] sm:$0xff]   ;;  %v471_v37 = vcombine.low %v16_v36, %v16_v36  ;;  %v472_v38 = vcombine.high %v16_v36, %v16_v36  ;;  %v612_v39 = vld [vmem:[%s765_s1 + $0x100] sm:$0xff]  }
   0xc   :  { %518 = vmatprep.subr.bf16.mxu0 %v587_v12  ;;  %v602_v27 = vld [vmem:[%s765_s1 + $0xb0] sm:$0xff]   ;;  %v609_v34 = vld [vmem:[%s765_s1 + $0xb8] sm:$0xff]   ;;  %366 = vmatprep.mubr.bf16.mxu0 %v470_v33  ;;  %v613_v40 = vld [vmem:[%s765_s1 + $0x108] sm:$0xff]  }
   0xd   :  { %539 = vmatpush3.bf16.msra.mxu1 %v586_v11  ;;  %406 = vmatprep.mubr.bf16.mxu1 %v472_v38  ;;  %v614_v41 = vld [vmem:[%s765_s1 + $0x110] sm:$0xff]   ;;  %v615_v42 = vld [vmem:[%s765_s1 + $0x118] sm:$0xff]   ;;  %v468_v45 = vld [vmem:[%s767_s2] ss:$0 sm:$0xff] }
   0xe   :  { %540 = vmatprep.subr.bf16.mxu1 %v589_v14  ;;  %v608_v43 = vld [vmem:[%s766_s0 + $0x10] ss:$0 sps:$4 sm:$0xff]  }
   0xf   :  { %519 = vmatpush3.bf16.msra.mxu0 %v588_v13 }
  0x10   :  { %520 = vmatprep.subr.bf16.mxu0 %v591_v16 }
  0x11   :  { %541 = vmatpush3.bf16.msra.mxu1 %v590_v15 }
  0x12   :  { %542 = vmatprep.subr.bf16.mxu1 %v593_v18 }
  0x13   :  { %521 = vmatpush3.bf16.msra.mxu0 %v592_v17 }
  0x14   :  { %522 = vmatprep.subr.bf16.mxu0 %v595_v20 }
  0x15   :  { %543 = vmatpush3.bf16.msra.mxu1 %v594_v19 }
  0x16   :  { %544 = vmatprep.subr.bf16.mxu1 %v597_v22 }
  0x17   :  { %523 = vmatpush3.bf16.msra.mxu0 %v596_v21 }
  0x18   :  { %524 = vmatprep.subr.bf16.mxu0 %v599_v24 }
  0x19   :  { %545 = vmatpush3.bf16.msra.mxu1 %v598_v23 }
  0x1a   :  { %546 = vmatprep.subr.bf16.mxu1 %v601_v26 }
  0x1b   :  { %525 = vmatpush3.bf16.msra.mxu0 %v600_v25 }
  0x1c   :  { %526 = vmatprep.subr.bf16.mxu0 %v603_v28 }
  0x1d   :  { %547 = vmatpush3.bf16.msra.mxu1 %v602_v27 }
  0x1e   :  { %548 = vmatprep.subr.bf16.mxu1 %v605_v30 }
  0x1f   :  { %527 = vmatpush3.bf16.msra.mxu0 %v604_v29 }
  0x20   :  { %561 = vmatprep.subr.bf16.mxu0 %v620_v35 }
  0x21   :  { %549 = vmatpush3.bf16.msra.mxu1 %v609_v34 }
  0x22   :  { %367 = vmatmul.mubr.bf16.vlgmr.msra.gmra.mrb[0].mxu0 %v469_v32 }
  0x23   :  { %562 = vmatpush3.bf16.msra.mxu0 %v612_v39  ;;  %569 = vmatprep.mubr.msk.bf16.mxu0 %vm621_vm0, %v620_v35 }
  0x24   :  { %407 = vmatmul.mubr.bf16.vlgmr.msra.gmra.mrb[0].mxu1 %v471_v37  ;;  %563 = vmatprep.subr.bf16.mxu0 %v620_v35 }
  0x27   :  { %564 = vmatpush3.bf16.msra.mxu0 %v613_v40 }
  0x28   :  { %565 = vmatprep.subr.bf16.mxu0 %v620_v35 }
  0x2b   :  { %566 = vmatpush3.bf16.msra.mxu0 %v614_v41 }
  0x2c   :  { %567 = vmatprep.subr.bf16.mxu0 %v620_v35 }
  0x2f   :  { %568 = vmatpush3.bf16.msra.mxu0 %v615_v42 }
  0x32   :  { %570 = vmatmul.mubr.msk.bf16.vlgmr.msra.gmra.mrb[4].mxu0 %vm330_vm1, %v608_v43 }
  0xf5   :  { %v528_v44 = vpop.f32.mrb[0].mxu0 }
  0xf6   :  { %v529_v46 = vpop.f32.mrb[1].mxu0 }
  0xf7   :  { %v530_v47 = vadd.f32 %v529_v46, %v528_v44  ;;  %v531_v48 = vpop.f32.mrb[2].mxu0  ;;  %v550_v49 = vpop.f32.mrb[0].mxu1 }
  0xf8   :  { %v532_v50 = vpop.f32.mrb[3].mxu0  ;;  %v551_v51 = vpop.f32.mrb[1].mxu1 }
  0xf9   :  { %v369_v52 = vadd.f32 %v530_v47, %v468_v45  ;;  %v552_v53 = vadd.f32 %v551_v51, %v550_v49  ;;  %v553_v54 = vpop.f32.mrb[2].mxu1 }
  0xfa   :  { %v554_v55 = vpop.f32.mrb[3].mxu1 }
  0xfb   :  { %v409_v56 = vadd.f32 %v552_v53, %v369_v52 }
 0x105   :  { %v448_v57 = vpop.f32.mrb[4].mxu0 }
 0x106   :  { %v449_v58 = vadd.f32 %v448_v57, %v409_v56  ;;  %v571_v59 = vpop.f32.mrb[5].mxu0 }
 0x107   :  { %v451_v60 = vpop.f32.mrb[6].mxu0 }
 0x108   :  { %v511_v61 = vmul.f32 -1.442695, %v449_v58  ;;  %v572_v62 = vpop.f32.mrb[7].mxu0 }
 0x10a   :  { %616 = vpow2.f32 %v511_v61 }
 0x114   :  { %v617_v63 = vpop.eup %616 }
 0x115   :  { %v457_v0 = vadd.f32 1.0, %v617_v63 }
 0x117   :  { %618 = vrcp.f32 %v457_v0 }
 0x121   :  { %v619_v1 = vpop.eup %618 }
 0x122   :  { %v460_v2 = vmul.f32 %v619_v1, %v449_v58 }
 0x124   :  { %v461_v3 = vpack.c.bf16 %v460_v2, %v460_v2 }
 0x126   :  { %463 = vst.msk [vmem:[%s768_s3] sm:$0xf] %vm462_vm2, %v461_v3 }

// kernel: yolox_forward.70
= control target key start
LH: loop header
LB: loop body
LE: loop exit
PB: predicated region body
PF: predicated region fallthrough
CT: control target
= control target key end

     0   :  { %v134_v0 = vmov 0.0   ;;  %vm135_vm0 = vmmov 0   ;;  %vm55_vm1 = vcmask 523264   ;;  %vm99_vm2 = vcmask 695296   ;;  %s177_s1 = inlined_call_operand.vmem [shape: bf16[64,85], index: 1, kind: input, shape index: {}]   ;;  %s178_s0 = inlined_call_operand.vmem [shape: bf16[8,64], index: 0, kind: input, shape index: {}]   ;;  %s179_s2 = inlined_call_operand.vmem [shape: f32[1,85], index: 2, kind: input, shape index: {}]   ;;  %s180_s3 = inlined_call_operand.vmem [shape: f32[8,85], index: 3, kind: output, shape index: {}]  }
   0x1   :  { %116 = vmatprep.subr.bf16.mxu0 %v134_v0  ;;  %v130_v1 = vld [vmem:[%s177_s1] sm:$0xff]   ;;  %124 = vmatprep.mubr.msk.bf16.mxu0 %vm135_vm0, %v134_v0  ;;  %v131_v2 = vld [vmem:[%s177_s1 + $0x8] sm:$0xff]   ;;  %v132_v3 = vld [vmem:[%s177_s1 + $0x10] sm:$0xff]  }
   0x2   :  { %117 = vmatpush3.bf16.msra.mxu0 %v130_v1  ;;  %v133_v4 = vld [vmem:[%s177_s1 + $0x18] sm:$0xff]   ;;  %v15_v5 = vld [vmem:[%s178_s0] sm:$0xf] }
   0x3   :  { %118 = vmatprep.subr.bf16.mxu0 %v134_v0  ;;  %v105_v6 = vld [vmem:[%s179_s2] ss:$0 sm:$0xff] }
   0x6   :  { %119 = vmatpush3.bf16.msra.mxu0 %v131_v2 }
   0x7   :  { %120 = vmatprep.subr.bf16.mxu0 %v134_v0 }
   0xa   :  { %121 = vmatpush3.bf16.msra.mxu0 %v132_v3 }
   0xb   :  { %122 = vmatprep.subr.bf16.mxu0 %v134_v0 }
   0xe   :  { %123 = vmatpush3.bf16.msra.mxu0 %v133_v4 }
  0x11   :  { %125 = vmatmul.mubr.msk.bf16.vlgmr.msra.gmra.mrb[0].mxu0 %vm55_vm1, %v15_v5 }
  0xe4   :  { %v93_v7 = vpop.f32.mrb[0].mxu0 }
  0xe5   :  { %v94_v8 = vadd.f32 %v105_v6, %v93_v7  ;;  %v126_v9 = vpop.f32.mrb[1].mxu0 }
  0xe6   :  { %v96_v10 = vpop.f32.mrb[2].mxu0 }
  0xe7   :  { %100 = vst.msk [vmem:[%s180_s3] sm:$0xff] %vm99_vm2, %v94_v8  ;;  %v127_v11 = vpop.f32.mrb[3].mxu0 }

// kernel: yolox_forward.68
= control target key start
LH: loop header
LB: loop body
LE: loop exit
PB: predicated region body
PF: predicated region fallthrough
CT: control target
= control target key end

     0   :  { %v360_v1 = vmov 0.0   ;;  %vm361_vm0 = vmmov 0   ;;  %vm178_vm1 = vcmask 261120   ;;  %vm270_vm2 = vcmask 257024   ;;  %s448_s1 = inlined_call_operand.vmem [shape: bf16[288,32], index: 1, kind: input, shape index: {}]   ;;  %s449_s0 = inlined_call_operand.vmem [shape: bf16[8,288], index: 0, kind: input, shape index: {}]   ;;  %s450_s2 = inlined_call_operand.vmem [shape: f32[1,32], index: 2, kind: input, shape index: {}]   ;;  %s451_s3 = inlined_call_operand.vmem [shape: bf16[8,32], index: 3, kind: output, shape index: {}]  }
   0x1   :  { %v335_v0 = vld [vmem:[%s448_s1 + $0x40] sm:$0xff]   ;;  %325 = vmatprep.subr.bf16.mxu1 %v360_v1  ;;  %329 = vmatprep.mubr.msk.bf16.mxu1 %vm361_vm0, %v360_v1  ;;  %v337_v3 = vld [vmem:[%s448_s1 + $0x48] sm:$0xff]   ;;  %v339_v5 = vld [vmem:[%s448_s1 + $0x50] sm:$0xff]  }
   0x2   :  { %v336_v2 = vld [vmem:[%s448_s1] sm:$0xff]   ;;  %300 = vmatprep.subr.bf16.mxu0 %v335_v0  ;;  %v338_v4 = vld [vmem:[%s448_s1 + $0x8] sm:$0xff]   ;;  %v340_v6 = vld [vmem:[%s448_s1 + $0x10] sm:$0xff]  }
   0x3   :  { %301 = vmatpush3.bf16.msra.mxu0 %v336_v2  ;;  %v341_v7 = vld [vmem:[%s448_s1 + $0x58] sm:$0xff]   ;;  %v343_v9 = vld [vmem:[%s448_s1 + $0x60] sm:$0xff]   ;;  %v345_v12 = vld [vmem:[%s448_s1 + $0x68] sm:$0xff]  }
   0x4   :  { %302 = vmatprep.subr.bf16.mxu0 %v337_v3  ;;  %v342_v8 = vld [vmem:[%s448_s1 + $0x18] sm:$0xff]   ;;  %v349_v10 = vld [vmem:[%s448_s1 + $0x80] sm:$0xff]   ;;  %v355_v15 = vld [vmem:[%s448_s1 + $0x88] sm:$0xff]  }
   0x5   :  { %v344_v11 = vld [vmem:[%s448_s1 + $0x20] sm:$0xff]   ;;  %326 = vmatpush3.bf16.msra.mxu1 %v349_v10  ;;  %v346_v16 = vld [vmem:[%s448_s1 + $0x28] sm:$0xff]   ;;  %v347_v17 = vld [vmem:[%s448_s1 + $0x70] sm:$0xff]  }
   0x6   :  { %327 = vmatprep.subr.bf16.mxu1 %v360_v1  ;;  %v15_v13 = vld [vmem:[%s449_s0] sm:$0xff]  ;;  %v354_v18 = vld [vmem:[%s449_s0 + $0x8] ss:$0 sps:$4 sm:$0xff]   ;;  %v348_v19 = vld [vmem:[%s448_s1 + $0x30] sm:$0xff]  }
   0x7   :  { %303 = vmatpush3.bf16.msra.mxu0 %v338_v4  ;;  %v278_v14 = vcombine.high %v15_v13, %v15_v13  ;;  %v350_v20 = vld [vmem:[%s448_s1 + $0x78] sm:$0xff]   ;;  %v277_v22 = vcombine.low %v15_v13, %v15_v13  ;;  %v276_v29 = vld [vmem:[%s450_s2] ss:$0 sm:$0xff] }
   0x8   :  { %304 = vmatprep.subr.bf16.mxu0 %v339_v5  ;;  %v351_v21 = vld [vmem:[%s448_s1 + $0x38] sm:$0xff]  }
   0x9   :  { %214 = vmatprep.mubr.bf16.mxu0 %v278_v14  ;;  %328 = vmatpush3.bf16.msra.mxu1 %v355_v15 }
   0xb   :  { %305 = vmatpush3.bf16.msra.mxu0 %v340_v6 }
   0xc   :  { %306 = vmatprep.subr.bf16.mxu0 %v341_v7  ;;  %330 = vmatmul.mubr.msk.bf16.vlgmr.msra.gmra.mrb[0].mxu1 %vm178_vm1, %v354_v18 }
   0xf   :  { %307 = vmatpush3.bf16.msra.mxu0 %v342_v8 }
  0x10   :  { %308 = vmatprep.subr.bf16.mxu0 %v343_v9 }
  0x13   :  { %309 = vmatpush3.bf16.msra.mxu0 %v344_v11 }
  0x14   :  { %310 = vmatprep.subr.bf16.mxu0 %v345_v12 }
  0x17   :  { %311 = vmatpush3.bf16.msra.mxu0 %v346_v16 }
  0x18   :  { %312 = vmatprep.subr.bf16.mxu0 %v347_v17 }
  0x1b   :  { %313 = vmatpush3.bf16.msra.mxu0 %v348_v19 }
  0x1c   :  { %314 = vmatprep.subr.bf16.mxu0 %v350_v20 }
  0x1f   :  { %315 = vmatpush3.bf16.msra.mxu0 %v351_v21 }
  0x22   :  { %215 = vmatmul.mubr.bf16.vlgmr.msra.gmra.mrb[0].mxu0 %v277_v22 }
  0xdf   :  { %v256_v23 = vpop.f32.mrb[0].mxu1 }
  0xe0   :  { %v331_v24 = vpop.f32.mrb[1].mxu1 }
  0xe1   :  { %v259_v25 = vpop.f32.mrb[2].mxu1 }
  0xe2   :  { %v332_v26 = vpop.f32.mrb[3].mxu1 }
  0xf5   :  { %v316_v27 = vpop.f32.mrb[0].mxu0 }
  0xf6   :  { %v317_v28 = vpop.f32.mrb[1].mxu0 }
  0xf7   :  { %v318_v30 = vadd.f32 %v317_v28, %v316_v27  ;;  %v319_v31 = vpop.f32.mrb[2].mxu0 }
  0xf8   :  { %v320_v32 = vpop.f32.mrb[3].mxu0 }
  0xf9   :  { %v217_v33 = vadd.f32 %v318_v30, %v276_v29 }
  0xfb   :  { %v257_v34 = vadd.f32 %v256_v23, %v217_v33 }
  0xfd   :  { %v299_v35 = vmul.f32 -1.442695, %v257_v34 }
  0xff   :  { %356 = vpow2.f32 %v299_v35 }
 0x109   :  { %v357_v36 = vpop.eup %356 }
 0x10a   :  { %v265_v37 = vadd.f32 1.0, %v357_v36 }
 0x10c   :  { %358 = vrcp.f32 %v265_v37 }
 0x116   :  { %v359_v38 = vpop.eup %358 }
 0x117   :  { %v268_v39 = vmul.f32 %v359_v38, %v257_v34 }
 0x119   :  { %v269_v40 = vpack.c.bf16 %v268_v39, %v268_v39 }
 0x11b   :  { %271 = vst.msk [vmem:[%s451_s3] sm:$0xf] %vm270_vm2, %v269_v40 }

// kernel: yolox_forward.71
= control target key start
LH: loop header
LB: loop body
LE: loop exit
PB: predicated region body
PF: predicated region fallthrough
CT: control target
= control target key end

     0   :  { %v588_v0 = vmov 0   ;;  %vm157_vm0 = vcmask 15360   ;;  %vm247_vm1 = vcmask 31760   ;;  %vm403_vm2 = vcmask 695328   ;;  %s1227_s2 = inlined_call_operand.vmem [shape: f32[84,1], index: 2, kind: input, shape index: {}]   ;;  %s1228_s0 = inlined_call_operand.vmem [shape: f32[2,84,85], index: 0, kind: input, shape index: {}]   ;;  %s1229_s1 = inlined_call_operand.vmem [shape: f32[84,2], index: 1, kind: input, shape index: {}]   ;;  %s1230_s3 = inlined_call_operand.vmem [shape: f32[2,84,85], index: 3, kind: output, shape index: {}]  }
   0x1   :  { %455 = vset.pattern.permute.xlu1 %v588_v0  ;;  %454 = vset.pattern.permute.xlu0 %v588_v0  ;;  %v49_v1 = vld [vmem:[%s1227_s2 + $0x10] sm:$0xff]  ;;  %v47_v2 = vld [vmem:[%s1227_s2] sm:$0xff]  ;;  %v50_v3 = vld [vmem:[%s1227_s2 + $0x18] sm:$0xff]  ;;  %vm168_vm3 = vcmask 11264   ;;  %vm258_vm4 = vcmask 27664   ;;  %vm414_vm5 = vcmask 691232  }
   0x2   :  { %92 = vperm.xlu1 %455, %v49_v1   ;;  %82 = vperm.xlu0 %454, %v47_v2   ;;  %v48_v4 = vld [vmem:[%s1227_s2 + $0x8] sm:$0xff]  ;;  %v51_v6 = vld [vmem:[%s1227_s2 + $0x20] sm:$0xff]  ;;  %v54_v7 = vld [vmem:[%s1227_s2 + $0x38] sm:$0xff] }
   0x3   :  { %v52_v5 = vld [vmem:[%s1227_s2 + $0x28] sm:$0xff]  ;;  %v53_v8 = vld [vmem:[%s1227_s2 + $0x30] sm:$0xff]  ;;  %v55_v10 = vld [vmem:[%s1227_s2 + $0x40] sm:$0xff] }
   0x4   :  { %v56_v9 = vld [vmem:[%s1227_s2 + $0x48] sm:$0xff]  ;;  %v57_v11 = vld [vmem:[%s1227_s2 + $0x50] sm:$0xf]  ;;  %v658_v17 = vld [vmem:[%s1228_s0] sm:$0xff] }
   0x5   :  { %v645_v12 = vld [vmem:[%s1228_s0 + $0x10] sm:$0xff]  ;;  %v650_v13 = vld [vmem:[%s1228_s0 + $0x68] sm:$0xff]  ;;  %v431_v18 = vmul.f32 -1.442695, %v658_v17  ;;  %v665_v20 = vld [vmem:[%s1228_s0 + $0x58] sm:$0xff] }
   0x6   :  { %97 = vperm.xlu1 %455, %v50_v3   ;;  %87 = vperm.xlu0 %454, %v48_v4   ;;  %v433_v14 = vmul.f32 -1.442695, %v645_v12  ;;  %v444_v15 = vmul.f32 -1.442695, %v650_v13  ;;  %v185_v16 = vmul.f32 1.442695, %v645_v12 }
   0x7   :  { %v207_v19 = vmul.f32 1.442695, %v650_v13  ;;  %v442_v21 = vmul.f32 -1.442695, %v665_v20  ;;  %v181_v22 = vmul.f32 1.442695, %v658_v17 }
   0x8   :  { %456 = vpow2.f32 %v433_v14  ;;  %v672_v23 = vld [vmem:[%s1228_s0 + $0x18] sm:$0xff]  ;;  %v203_v25 = vmul.f32 1.442695, %v665_v20  ;;  %v679_v26 = vld [vmem:[%s1228_s0 + $0x70] sm:$0xff]  ;;  %v686_v29 = vld [vmem:[%s1228_s0 + $0x8] sm:$0xff] }
   0x9   :  { %458 = vpow2.f32 %v444_v15  ;;  %v434_v24 = vmul.f32 -1.442695, %v672_v23  ;;  %v445_v27 = vmul.f32 -1.442695, %v679_v26  ;;  %v187_v28 = vmul.f32 1.442695, %v672_v23 }
   0xa   :  { %107 = vperm.xlu1 %455, %v52_v5   ;;  %102 = vperm.xlu0 %454, %v51_v6   ;;  %460 = vpow2.f32 %v185_v16  ;;  %v209_v30 = vmul.f32 1.442695, %v679_v26  ;;  %v692_v31 = vld [vmem:[%s1228_s0 + $0x60] sm:$0xff]  ;;  %v432_v32 = vmul.f32 -1.442695, %v686_v29  ;;  %v701_v38 = vld [vmem:[%s1228_s0 + $0x28] sm:$0xff] }
   0xb   :  { %462 = vpow2.f32 %v431_v18  ;;  %v183_v34 = vmul.f32 1.442695, %v686_v29  ;;  %v205_v36 = vmul.f32 1.442695, %v692_v31  ;;  %v443_v37 = vmul.f32 -1.442695, %v692_v31 }
   0xc   :  { %464 = vpow2.f32 %v207_v19  ;;  %v191_v44 = vmul.f32 1.442695, %v701_v38  ;;  %v436_v46 = vmul.f32 -1.442695, %v701_v38  ;;  %v714_v49 = vld [vmem:[%s1228_s0 + $0x80] sm:$0xff]  ;;  %v733_v63 = vld [vmem:[%s1228_s0 + $0x78] sm:$0xff] }
   0xd   :  { %466 = vpow2.f32 %v442_v21  ;;  %v447_v51 = vmul.f32 -1.442695, %v714_v49  ;;  %v213_v55 = vmul.f32 1.442695, %v714_v49  ;;  %v725_v58 = vld [vmem:[%s1228_s0 + $0x20] sm:$0xff]  ;;  %v744_v4 = vld [vmem:[%s1228_s0 + $0x38] sm:$0xff] }
   0xe   :  { %117 = vperm.xlu1 %455, %v54_v7   ;;  %112 = vperm.xlu0 %454, %v53_v8   ;;  %468 = vpow2.f32 %v181_v22  ;;  %v435_v60 = vmul.f32 -1.442695, %v725_v58  ;;  %v446_v1 = vmul.f32 -1.442695, %v733_v63  ;;  %v189_v3 = vmul.f32 1.442695, %v725_v58 }
   0xf   :  { %470 = vpow2.f32 %v434_v24  ;;  %v211_v8 = vmul.f32 1.442695, %v733_v63  ;;  %v195_v18 = vmul.f32 1.442695, %v744_v4  ;;  %v766_v22 = vld [vmem:[%s1228_s0 + $0x30] sm:$0xff] }
  0x10   :  { %472 = vpow2.f32 %v203_v25 }
  0x11   :  { %474 = vpow2.f32 %v445_v27 }
  0x12   :  { %127 = vperm.xlu1 %455, %v56_v9   ;;  %122 = vperm.xlu0 %454, %v55_v10   ;;  %v457_v33 = vpop.eup %456  ;;  %476 = vpow2.f32 %v187_v28  ;;  %v754_v10 = vld [vmem:[%s1228_s0 + $0x90] sm:$0xff] }
  0x13   :  { %v459_v35 = vpop.eup %458  ;;  %478 = vpow2.f32 %v209_v30  ;;  %v339_v40 = vadd.f32 1.0, %v457_v33  ;;  %v449_v21 = vmul.f32 -1.442695, %v754_v10  ;;  %v217_v25 = vmul.f32 1.442695, %v754_v10 }
  0x14   :  { %v703_v39 = vpop.eup %460  ;;  %480 = vpow2.f32 %v432_v32  ;;  %v350_v42 = vadd.f32 1.0, %v459_v35  ;;  %v776_v32 = vld [vmem:[%s1228_s0 + $0x88] sm:$0xff]  ;;  %v193_v33 = vmul.f32 1.442695, %v766_v22 }
  0x15   :  { %v463_v41 = vpop.eup %462  ;;  %482 = vpow2.f32 %v183_v34 }
  0x16   :  { %132 = vperm.xlu0 %454, %v57_v11   ;;  %v705_v43 = vpop.eup %464  ;;  %484 = vpow2.f32 %v205_v36  ;;  %v337_v48 = vadd.f32 1.0, %v463_v41  ;;  %v438_v11 = vmul.f32 -1.442695, %v744_v4  ;;  %v448_v41 = vmul.f32 -1.442695, %v776_v32 }
  0x17   :  { %v467_v45 = vpop.eup %466  ;;  %486 = vpow2.f32 %v443_v37  ;;  %v437_v37 = vmul.f32 -1.442695, %v766_v22 }
  0x18   :  { %v709_v47 = vpop.eup %468  ;;  %488 = vrcp.f32 %v339_v40  ;;  %v348_v53 = vadd.f32 1.0, %v467_v45 }
  0x19   :  { %v471_v50 = vpop.eup %470  ;;  %490 = vrcp.f32 %v350_v42 }
  0x1a   :  { %v717_v52 = vpop.eup %472  ;;  %492 = vpow2.f32 %v191_v44  ;;  %v340_v57 = vadd.f32 1.0, %v471_v50  ;;  %v215_v44 = vmul.f32 1.442695, %v776_v32 }
  0x1b   :  { %v475_v54 = vpop.eup %474  ;;  %494 = vpow2.f32 %v436_v46 }
  0x1c   :  { %v720_v56 = vpop.eup %476  ;;  %496 = vrcp.f32 %v337_v48  ;;  %v351_v62 = vadd.f32 1.0, %v475_v54  ;;  %v791_v48 = vld [vmem:[%s1228_s0 + $0x48] sm:$0xff] }
  0x1d   :  { %v727_v59 = vpop.eup %478  ;;  %498 = vpow2.f32 %v447_v51  ;;  %v798_v51 = vld [vmem:[%s1228_s0 + $0xa0] sm:$0xff] }
  0x1e   :  { %v481_v61 = vpop.eup %480  ;;  %500 = vrcp.f32 %v348_v53  ;;  %v199_v53 = vmul.f32 1.442695, %v791_v48 }
  0x1f   :  { %v735_v0 = vpop.eup %482  ;;  %502 = vpow2.f32 %v213_v55  ;;  %v338_v6 = vadd.f32 1.0, %v481_v61 }
  0x20   :  { %v738_v2 = vpop.eup %484  ;;  %504 = vrcp.f32 %v340_v57 }
  0x21   :  { %v487_v5 = vpop.eup %486  ;;  %506 = vpow2.f32 %v435_v60  ;;  %v440_v60 = vmul.f32 -1.442695, %v791_v48 }
  0x22   :  { %v746_v7 = vpop.eup %488  ;;  %508 = vrcp.f32 %v351_v62  ;;  %v349_v15 = vadd.f32 1.0, %v487_v5  ;;  %v451_v62 = vmul.f32 -1.442695, %v798_v51  ;;  %v221_v5 = vmul.f32 1.442695, %v798_v51 }
  0x23   :  { %v749_v9 = vpop.eup %490  ;;  %510 = vpow2.f32 %v446_v1  ;;  %v810_v1 = vld [vmem:[%s1228_s0 + $0x40] sm:$0xff] }
  0x24   :  { %v757_v14 = vpop.eup %492  ;;  %512 = vpow2.f32 %v189_v3 }
  0x25   :  { %v495_v16 = vpop.eup %494  ;;  %514 = vrcp.f32 %v338_v6  ;;  %v818_v6 = vld [vmem:[%s1228_s0 + $0x98] sm:$0xff] }
  0x26   :  { %v760_v19 = vpop.eup %496  ;;  %516 = vpow2.f32 %v211_v8  ;;  %v342_v28 = vadd.f32 1.0, %v495_v16  ;;  %v439_v16 = vmul.f32 -1.442695, %v810_v1 }
  0x27   :  { %v499_v24 = vpop.eup %498  ;;  %518 = vpow2.f32 %v438_v11 }
  0x28   :  { %v769_v27 = vpop.eup %500  ;;  %520 = vrcp.f32 %v349_v15  ;;  %v353_v35 = vadd.f32 1.0, %v499_v24  ;;  %v829_v24 = vld [vmem:[%s1228_s0 + $0x50] sm:$0xf] }
  0x29   :  { %v771_v30 = vpop.eup %502  ;;  %522 = vpow2.f32 %v195_v18  ;;  %1233 = vst [vmem:[#allocation2_spill] sm:$0xff] %v829_v24 }
  0x2a   :  { %v779_v34 = vpop.eup %504  ;;  %524 = vpow2.f32 %v449_v21  ;;  %v450_v21 = vmul.f32 -1.442695, %v818_v6 }
  0x2b   :  { %v507_v36 = vpop.eup %506  ;;  %526 = vpow2.f32 %v217_v25 }
  0x2c   :  { %v782_v40 = vpop.eup %508  ;;  %528 = vrcp.f32 %v342_v28  ;;  %v341_v46 = vadd.f32 1.0, %v507_v36  ;;  %v197_v36 = vmul.f32 1.442695, %v810_v1 }
  0x2d   :  { %v511_v42 = vpop.eup %510  ;;  %530 = vpow2.f32 %v193_v33  ;;  %v836_v33 = vld [vmem:[%s1228_s0 + $0xa8] sm:$0xf] }
  0x2e   :  { %v786_v45 = vpop.eup %512  ;;  %532 = vrcp.f32 %v353_v35  ;;  %v352_v55 = vadd.f32 1.0, %v511_v42  ;;  %1235 = vst [vmem:[#allocation4_spill] sm:$0xff] %v836_v33 }
  0x2f   :  { %v793_v50 = vpop.eup %514  ;;  %534 = vpow2.f32 %v437_v37 }
  0x30   :  { %v801_v54 = vpop.eup %516  ;;  %536 = vpow2.f32 %v448_v41  ;;  %v441_v41 = vmul.f32 -1.442695, %v829_v24 }
  0x31   :  { %v519_v57 = vpop.eup %518  ;;  %538 = vpow2.f32 %v215_v44  ;;  %v452_v44 = vmul.f32 -1.442695, %v836_v33 }
  0x32   :  { %v804_v61 = vpop.eup %520  ;;  %540 = vrcp.f32 %v341_v46  ;;  %v344_v11 = vadd.f32 1.0, %v519_v57 }
  0x33   :  { %v812_v3 = vpop.eup %522  ;;  %542 = vpow2.f32 %v199_v53  ;;  %v219_v53 = vmul.f32 1.442695, %v818_v6 }
  0x34   :  { %v525_v8 = vpop.eup %524  ;;  %544 = vrcp.f32 %v352_v55 }
  0x35   :  { %v820_v15 = vpop.eup %526  ;;  %546 = vpow2.f32 %v440_v60  ;;  %v355_v28 = vadd.f32 1.0, %v525_v8 }
  0x36   :  { %v823_v18 = vpop.eup %528  ;;  %548 = vpow2.f32 %v451_v62  ;;  %v38_v62 = vld [vmem:[%s1229_s1 + $0x10] sm:$0xff] }
  0x37   :  { %v831_v25 = vpop.eup %530  ;;  %550 = vpow2.f32 %v221_v5 }
  0x38   :  { %1234 = vst [vmem:[#allocation3_spill] sm:$0xff] %v831_v25  ;;  %v838_v35 = vpop.eup %532  ;;  %552 = vrcp.f32 %v344_v11  ;;  %v36_v11 = vld [vmem:[%s1229_s1] sm:$0xff] }
  0x39   :  { %v535_v37 = vpop.eup %534  ;;  %554 = vpow2.f32 %v439_v16  ;;  %v201_v16 = vmul.f32 1.442695, %v829_v24  ;;  %v58_v24 = vadd.f32 %v36_v11, %v658_v17  ;;  %v41_v17 = vld [vmem:[%s1229_s1 + $0x28] sm:$0xff] }
  0x3a   :  { %v537_v42 = vpop.eup %536  ;;  %556 = vpow2.f32 %v450_v21  ;;  %v343_v57 = vadd.f32 1.0, %v535_v37 }
  0x3b   :  { %v843_v46 = vpop.eup %538  ;;  %558 = vrcp.f32 %v355_v28  ;;  %v354_v5 = vadd.f32 1.0, %v537_v42  ;;  %v39_v28 = vld [vmem:[%s1229_s1 + $0x18] sm:$0xff]  ;;  %v71_v42 = vadd.f32 %v38_v62, %v650_v13 }
  0x3c   :  { %1236 = vst [vmem:[#allocation5_spill] sm:$0xff] %v843_v46  ;;  %v846_v55 = vpop.eup %540  ;;  %560 = vpow2.f32 %v197_v36  ;;  %v223_v36 = vmul.f32 1.442695, %v836_v33  ;;  %v61_v46 = vadd.f32 %v39_v28, %v672_v23 }
  0x3d   :  { %v848_v60 = vpop.eup %542  ;;  %562 = vpow2.f32 %v441_v41  ;;  %v60_v41 = vadd.f32 %v38_v62, %v645_v12  ;;  %v72_v12 = vadd.f32 %v39_v28, %v679_v26 }
  0x3e   :  { %1237 = vst [vmem:[#allocation6_spill] sm:$0xff] %v848_v60  ;;  %v853_v8 = vpop.eup %544  ;;  %564 = vpow2.f32 %v452_v44  ;;  %v37_v60 = vld [vmem:[%s1229_s1 + $0x8] sm:$0xff] }
  0x3f   :  { %1238 = vst [vmem:[#allocation7_spill] sm:$0xff] %v853_v8  ;;  %v547_v21 = vpop.eup %546  ;;  %566 = vpow2.f32 %v219_v53  ;;  %v69_v53 = vadd.f32 %v36_v11, %v665_v20 }
  0x40   :  { %v549_v37 = vpop.eup %548  ;;  %568 = vrcp.f32 %v343_v57  ;;  %v346_v13 = vadd.f32 1.0, %v547_v21  ;;  %v59_v57 = vadd.f32 %v37_v60, %v686_v29  ;;  %v40_v21 = vld [vmem:[%s1229_s1 + $0x20] sm:$0xff] }
  0x41   :  { %v868_v44 = vpop.eup %550  ;;  %570 = vrcp.f32 %v354_v5  ;;  %v357_v20 = vadd.f32 1.0, %v549_v37 }
  0x42   :  { %1239 = vst [vmem:[#allocation8_spill] sm:$0xff] %v868_v44  ;;  %v872_v33 = vpop.eup %552  ;;  %572 = vpow2.f32 %v201_v16  ;;  %v70_v44 = vadd.f32 %v37_v60, %v692_v31 }
  0x43   :  { %v555_v62 = vpop.eup %554  ;;  %574 = vpow2.f32 %v223_v36 }
  0x44   :  { %v557_v5 = vpop.eup %556  ;;  %576 = vrcp.f32 %v346_v13 }
  0x45   :  { %v886_v29 = vpop.eup %558  ;;  %578 = vrcp.f32 %v357_v20 }
  0x46   :  { %v890_v36 = vpop.eup %560 }
  0x81   :  { %v93_v25 = vpop.permute.xlu1 %92  ;;  %v83_v8 = vpop.permute.xlu0 %82 }
  0x82   :  { %v137_v11 = vmul.f32 %v93_v25, %v60_v41  ;;  %v148_v23 = vmul.f32 %v93_v25, %v71_v42  ;;  %v227_v26 = vmul.f32 %v703_v39, %v93_v25  ;;  %v238_v16 = vmul.f32 %v705_v43, %v93_v25 }
  0x83   :  { %v135_v31 = vmul.f32 %v83_v8, %v58_v24  ;;  %v146_v60 = vmul.f32 %v83_v8, %v69_v53  ;;  %v225_v28 = vmul.f32 %v709_v47, %v83_v8  ;;  %v236_v37 = vmul.f32 %v717_v52, %v83_v8  ;;  %v563_v24 = vpop.eup %562  ;;  %v43_v8 = vld [vmem:[%s1229_s1 + $0x38] sm:$0xff] }
  0x84   :  { %160 = vst.msk [vmem:[%s1230_s3 + $0x10] sm:$0xff] %vm157_vm0, %v137_v11  ;;  %172 = vst.msk [vmem:[%s1230_s3 + $0x68] sm:$0xff] %vm157_vm0, %v148_v23  ;;  %v63_v39 = vadd.f32 %v41_v17, %v701_v38  ;;  %v74_v43 = vadd.f32 %v41_v17, %v714_v49  ;;  %v345_v47 = vadd.f32 1.0, %v555_v62  ;;  %v62_v52 = vadd.f32 %v40_v21, %v725_v58  ;;  %v565_v42 = vpop.eup %564  ;;  %v45_v17 = vld [vmem:[%s1229_s1 + $0x48] sm:$0xff] }
  0x85   :  { %250 = vst.msk [vmem:[%s1230_s3 + $0x10] sm:$0xff] %vm247_vm1, %v227_v26  ;;  %262 = vst.msk [vmem:[%s1230_s3 + $0x68] sm:$0xff] %vm247_vm1, %v238_v16  ;;  %v98_v38 = vpop.permute.xlu1 %97  ;;  %v88_v49 = vpop.permute.xlu0 %87  ;;  %v73_v25 = vadd.f32 %v40_v21, %v733_v63  ;;  %v356_v41 = vadd.f32 1.0, %v557_v5  ;;  %v358_v20 = vadd.f32 1.0, %v565_v42 }
  0x86   :  { %158 = vst.msk [vmem:[%s1230_s3] sm:$0xff] %vm157_vm0, %v135_v31  ;;  %170 = vst.msk [vmem:[%s1230_s3 + $0x58] sm:$0xff] %vm157_vm0, %v146_v60  ;;  %v138_v58 = vmul.f32 %v98_v38, %v61_v46  ;;  %v149_v63 = vmul.f32 %v98_v38, %v72_v12  ;;  %v239_v53 = vmul.f32 %v727_v59, %v98_v38  ;;  %v946_v13 = vpop.eup %566  ;;  %580 = vrcp.f32 %v345_v47 }
  0x87   :  { %406 = vst.msk [vmem:[%s1230_s3 + $0x10] sm:$0xff] %vm403_vm2, %v746_v7  ;;  %418 = vst.msk [vmem:[%s1230_s3 + $0x68] sm:$0xff] %vm403_vm2, %v749_v9  ;;  %v228_v7 = vmul.f32 %v720_v56, %v98_v38  ;;  %v42_v9 = vld [vmem:[%s1229_s1 + $0x30] sm:$0xff]  ;;  %v136_v56 = vmul.f32 %v88_v49, %v59_v57  ;;  %v147_v59 = vmul.f32 %v88_v49, %v70_v44  ;;  %v960_v62 = vpop.eup %568  ;;  %582 = vrcp.f32 %v356_v41  ;;  %v1243_v38 = vld [vmem:[#allocation2_spill] sm:$0xff] }
  0x88   :  { %248 = vst.msk [vmem:[%s1230_s3] sm:$0xff] %vm247_vm1, %v225_v28  ;;  %260 = vst.msk [vmem:[%s1230_s3 + $0x58] sm:$0xff] %vm247_vm1, %v236_v37  ;;  %v226_v46 = vmul.f32 %v735_v0, %v88_v49  ;;  %v237_v12 = vmul.f32 %v738_v2, %v88_v49  ;;  %v347_v0 = vadd.f32 1.0, %v563_v24  ;;  %v972_v44 = vpop.eup %570  ;;  %v75_v57 = vadd.f32 %v42_v9, %v776_v32  ;;  %v1240_v28 = vld [vmem:[#allocation7_spill] sm:$0xff] }
  0x89   :  { %404 = vst.msk [vmem:[%s1230_s3] sm:$0xff] %vm403_vm2, %v760_v19  ;;  %416 = vst.msk [vmem:[%s1230_s3 + $0x58] sm:$0xff] %vm403_vm2, %v769_v27  ;;  %v65_v19 = vadd.f32 %v43_v8, %v744_v4  ;;  %v76_v27 = vadd.f32 %v43_v8, %v754_v10  ;;  %v108_v2 = vpop.permute.xlu1 %107  ;;  %v103_v4 = vpop.permute.xlu0 %102  ;;  %v64_v10 = vadd.f32 %v42_v9, %v766_v22 }
  0x8a   :  { %161 = vst.msk [vmem:[%s1230_s3 + $0x18] sm:$0xff] %vm157_vm0, %v138_v58  ;;  %173 = vst.msk [vmem:[%s1230_s3 + $0x70] sm:$0xff] %vm157_vm0, %v149_v63  ;;  %v995_v5 = vpop.eup %572  ;;  %v140_v22 = vmul.f32 %v108_v2, %v63_v39  ;;  %v151_v32 = vmul.f32 %v108_v2, %v74_v43  ;;  %v241_v11 = vmul.f32 %v771_v30, %v108_v2  ;;  %584 = vrcp.f32 %v347_v0  ;;  %v1242_v43 = vld [vmem:[#allocation5_spill] sm:$0xff]  ;;  %v1245_v58 = vld [vmem:[#allocation6_spill] sm:$0xff] }
  0x8b   :  { %251 = vst.msk [vmem:[%s1230_s3 + $0x18] sm:$0xff] %vm247_vm1, %v228_v7  ;;  %263 = vst.msk [vmem:[%s1230_s3 + $0x70] sm:$0xff] %vm247_vm1, %v239_v53  ;;  %v1020_v23 = vpop.eup %574  ;;  %v150_v30 = vmul.f32 %v103_v4, %v73_v25  ;;  %v229_v26 = vmul.f32 %v786_v45, %v103_v4  ;;  %v240_v16 = vmul.f32 %v801_v54, %v103_v4  ;;  %586 = vrcp.f32 %v358_v20  ;;  %v1246_v63 = vld [vmem:[#allocation8_spill] sm:$0xff] }
  0x8c   :  { %159 = vst.msk [vmem:[%s1230_s3 + $0x8] sm:$0xff] %vm157_vm0, %v136_v56  ;;  %171 = vst.msk [vmem:[%s1230_s3 + $0x60] sm:$0xff] %vm157_vm0, %v147_v59  ;;  %v78_v54 = vadd.f32 %v45_v17, %v798_v51  ;;  %v577_v31 = vpop.eup %576 }
  0x8d   :  { %407 = vst.msk [vmem:[%s1230_s3 + $0x18] sm:$0xff] %vm403_vm2, %v779_v34  ;;  %419 = vst.msk [vmem:[%s1230_s3 + $0x70] sm:$0xff] %vm403_vm2, %v782_v40  ;;  %v230_v34 = vmul.f32 %v757_v14, %v108_v2  ;;  %v44_v40 = vld [vmem:[%s1229_s1 + $0x40] sm:$0xff]  ;;  %v139_v14 = vmul.f32 %v103_v4, %v62_v52  ;;  %v118_v45 = vpop.permute.xlu1 %117  ;;  %v579_v60 = vpop.eup %578  ;;  %v1244_v52 = vld [vmem:[#allocation4_spill] sm:$0xff] }
  0x8e   :  { %249 = vst.msk [vmem:[%s1230_s3 + $0x8] sm:$0xff] %vm247_vm1, %v226_v46  ;;  %261 = vst.msk [vmem:[%s1230_s3 + $0x60] sm:$0xff] %vm247_vm1, %v237_v12  ;;  %v77_v21 = vadd.f32 %v44_v40, %v818_v6  ;;  %v142_v51 = vmul.f32 %v118_v45, %v65_v19  ;;  %v232_v6 = vmul.f32 %v812_v3, %v118_v45 }
  0x8f   :  { %405 = vst.msk [vmem:[%s1230_s3 + $0x8] sm:$0xff] %vm403_vm2, %v793_v50  ;;  %417 = vst.msk [vmem:[%s1230_s3 + $0x60] sm:$0xff] %vm403_vm2, %v804_v61  ;;  %v67_v50 = vadd.f32 %v45_v17, %v791_v48  ;;  %v113_v48 = vpop.permute.xlu0 %112  ;;  %v66_v61 = vadd.f32 %v44_v40, %v810_v1  ;;  %v153_v1 = vmul.f32 %v118_v45, %v76_v27 }
  0x90   :  { %163 = vst.msk [vmem:[%s1230_s3 + $0x28] sm:$0xff] %vm157_vm0, %v140_v22  ;;  %175 = vst.msk [vmem:[%s1230_s3 + $0x80] sm:$0xff] %vm157_vm0, %v151_v32  ;;  %v141_v3 = vmul.f32 %v113_v48, %v64_v10  ;;  %v152_v37 = vmul.f32 %v113_v48, %v75_v57  ;;  %v242_v47 = vmul.f32 %v1242_v43, %v113_v48  ;;  %v581_v8 = vpop.eup %580 }
  0x91   :  { %253 = vst.msk [vmem:[%s1230_s3 + $0x28] sm:$0xff] %vm247_vm1, %v230_v34  ;;  %265 = vst.msk [vmem:[%s1230_s3 + $0x80] sm:$0xff] %vm247_vm1, %v241_v11  ;;  %v583_v53 = vpop.eup %582 }
  0x92   :  { %162 = vst.msk [vmem:[%s1230_s3 + $0x20] sm:$0xff] %vm157_vm0, %v139_v14  ;;  %174 = vst.msk [vmem:[%s1230_s3 + $0x78] sm:$0xff] %vm157_vm0, %v150_v30 }
  0x93   :  { %409 = vst.msk [vmem:[%s1230_s3 + $0x28] sm:$0xff] %vm403_vm2, %v823_v18  ;;  %421 = vst.msk [vmem:[%s1230_s3 + $0x80] sm:$0xff] %vm403_vm2, %v838_v35  ;;  %v243_v18 = vmul.f32 %v820_v15, %v118_v45  ;;  %v46_v35 = vld [vmem:[%s1229_s1 + $0x50] sm:$0xf]  ;;  %v1241_v15 = vld [vmem:[#allocation3_spill] sm:$0xff]  ;;  %v123_v24 = vpop.permute.xlu0 %122 }
  0x94   :  { %252 = vst.msk [vmem:[%s1230_s3 + $0x20] sm:$0xff] %vm247_vm1, %v229_v26  ;;  %264 = vst.msk [vmem:[%s1230_s3 + $0x78] sm:$0xff] %vm247_vm1, %v240_v16  ;;  %v231_v39 = vmul.f32 %v1241_v15, %v113_v48  ;;  %v68_v49 = vadd.f32 %v46_v35, %v1243_v38  ;;  %v79_v25 = vadd.f32 %v46_v35, %v1244_v52 }
  0x95   :  { %408 = vst.msk [vmem:[%s1230_s3 + $0x20] sm:$0xff] %vm403_vm2, %v846_v55  ;;  %420 = vst.msk [vmem:[%s1230_s3 + $0x78] sm:$0xff] %vm403_vm2, %v1240_v28  ;;  %v128_v55 = vpop.permute.xlu1 %127  ;;  %v154_v9 = vmul.f32 %v123_v24, %v77_v21  ;;  %v233_v56 = vmul.f32 %v890_v36, %v123_v24  ;;  %v244_v59 = vmul.f32 %v946_v13, %v123_v24  ;;  %v585_v13 = vpop.eup %584 }
  0x96   :  { %165 = vst.msk [vmem:[%s1230_s3 + $0x38] sm:$0xff] %vm157_vm0, %v142_v51  ;;  %177 = vst.msk [vmem:[%s1230_s3 + $0x90] sm:$0xff] %vm157_vm0, %v153_v1  ;;  %v144_v41 = vmul.f32 %v128_v55, %v67_v50  ;;  %v155_v42 = vmul.f32 %v128_v55, %v78_v54  ;;  %v245_v7 = vmul.f32 %v1246_v63, %v128_v55  ;;  %v587_v27 = vpop.eup %586 }
  0x97   :  { %255 = vst.msk [vmem:[%s1230_s3 + $0x38] sm:$0xff] %vm247_vm1, %v232_v6  ;;  %267 = vst.msk [vmem:[%s1230_s3 + $0x90] sm:$0xff] %vm247_vm1, %v243_v18  ;;  %v133_v36 = vpop.permute.xlu0 %132 }
  0x98   :  { %164 = vst.msk [vmem:[%s1230_s3 + $0x30] sm:$0xff] %vm157_vm0, %v141_v3  ;;  %176 = vst.msk [vmem:[%s1230_s3 + $0x88] sm:$0xff] %vm157_vm0, %v152_v37  ;;  %v145_v46 = vmul.f32 %v133_v36, %v68_v49  ;;  %v156_v12 = vmul.f32 %v133_v36, %v79_v25  ;;  %v246_v19 = vmul.f32 %v1020_v23, %v133_v36 }
  0x99   :  { %411 = vst.msk [vmem:[%s1230_s3 + $0x38] sm:$0xff] %vm403_vm2, %v872_v33  ;;  %423 = vst.msk [vmem:[%s1230_s3 + $0x90] sm:$0xff] %vm403_vm2, %v886_v29  ;;  %v234_v33 = vmul.f32 %v1245_v58, %v128_v55  ;;  %v143_v29 = vmul.f32 %v123_v24, %v66_v61 }
  0x9a   :  { %254 = vst.msk [vmem:[%s1230_s3 + $0x30] sm:$0xff] %vm247_vm1, %v231_v39  ;;  %266 = vst.msk [vmem:[%s1230_s3 + $0x88] sm:$0xff] %vm247_vm1, %v242_v47 }
  0x9b   :  { %410 = vst.msk [vmem:[%s1230_s3 + $0x30] sm:$0xff] %vm403_vm2, %v960_v62  ;;  %422 = vst.msk [vmem:[%s1230_s3 + $0x88] sm:$0xff] %vm403_vm2, %v972_v44  ;;  %v235_v62 = vmul.f32 %v995_v5, %v133_v36 }
  0x9c   :  { %167 = vst.msk [vmem:[%s1230_s3 + $0x48] sm:$0xff] %vm157_vm0, %v144_v41  ;;  %179 = vst.msk [vmem:[%s1230_s3 + $0xa0] sm:$0xff] %vm157_vm0, %v155_v42 }
  0x9d   :  { %257 = vst.msk [vmem:[%s1230_s3 + $0x48] sm:$0xff] %vm247_vm1, %v234_v33  ;;  %269 = vst.msk [vmem:[%s1230_s3 + $0xa0] sm:$0xff] %vm247_vm1, %v245_v7 }
  0x9e   :  { %166 = vst.msk [vmem:[%s1230_s3 + $0x40] sm:$0xff] %vm157_vm0, %v143_v29  ;;  %178 = vst.msk [vmem:[%s1230_s3 + $0x98] sm:$0xff] %vm157_vm0, %v154_v9 }
  0x9f   :  { %413 = vst.msk [vmem:[%s1230_s3 + $0x48] sm:$0xff] %vm403_vm2, %v577_v31  ;;  %425 = vst.msk [vmem:[%s1230_s3 + $0xa0] sm:$0xff] %vm403_vm2, %v579_v60 }
  0xa0   :  { %256 = vst.msk [vmem:[%s1230_s3 + $0x40] sm:$0xff] %vm247_vm1, %v233_v56  ;;  %268 = vst.msk [vmem:[%s1230_s3 + $0x98] sm:$0xff] %vm247_vm1, %v244_v59 }
  0xa1   :  { %412 = vst.msk [vmem:[%s1230_s3 + $0x40] sm:$0xff] %vm403_vm2, %v581_v8  ;;  %424 = vst.msk [vmem:[%s1230_s3 + $0x98] sm:$0xff] %vm403_vm2, %v583_v53 }
  0xa2   :  { %169 = vst.msk [vmem:[%s1230_s3 + $0x50] sm:$0xf] %vm168_vm3, %v145_v46  ;;  %180 = vst.msk [vmem:[%s1230_s3 + $0xa8] sm:$0xf] %vm168_vm3, %v156_v12 }
  0xa3   :  { %259 = vst.msk [vmem:[%s1230_s3 + $0x50] sm:$0xf] %vm258_vm4, %v235_v62  ;;  %270 = vst.msk [vmem:[%s1230_s3 + $0xa8] sm:$0xf] %vm258_vm4, %v246_v19 }
  0xa4   :  { %415 = vst.msk [vmem:[%s1230_s3 + $0x50] sm:$0xf] %vm414_vm5, %v585_v13  ;;  %426 = vst.msk [vmem:[%s1230_s3 + $0xa8] sm:$0xf] %vm414_vm5, %v587_v27 }

</bundles_post_ra>
